<compile_context>
chip_gen: v7x
topology: tpu7x:2x2x1
jax: 0.10.0
libtpu: 0.0.40
codegen_flags: <defaults>
</compile_context>

<pallas_src>
import functools
import math

import jax
import jax.numpy as jnp
from jax import lax
from jax.experimental import pallas as pl
from jax.experimental.pallas import tpu as pltpu

MIN_NORM = 1e-15
MIN_SQ = MIN_NORM * MIN_NORM
PROJ_EPS = 4e-3           # float32 boundary eps used by PoincareBall.proj
ATANH_CLAMP = 1.0 - 1e-7
ATT_SLOPE = 0.2           # leaky-relu slope inside the GAT attention
ACT_SLOPE = 0.01          # F.leaky_relu default slope used by HypAct
NEG_BIG = -1e30


# ----------------------------- in-kernel helpers ----------------------------------

def _rowsum(v):
    """Row reduction on the MXU (idle unit) instead of an XLU cross-lane reduce."""
    ones_col = jnp.ones((v.shape[-1], 1), jnp.float32)
    return jnp.dot(v, ones_col, preferred_element_type=jnp.float32)


def _artanh(x):
    x = jnp.clip(x, -ATANH_CLAMP, ATANH_CLAMP)
    return 0.5 * (jnp.log1p(x) - jnp.log1p(-x))


def _leaky_relu(x, slope):
    return jnp.where(x >= 0.0, x, slope * x)


def _proj(x, c):
    sqrt_c = math.sqrt(c)
    maxnorm = (1.0 - PROJ_EPS) / sqrt_c
    sq = _rowsum(x * x)
    inv = lax.rsqrt(jnp.maximum(sq, MIN_SQ))
    norm = sq * inv
    return jnp.where(norm > maxnorm, x * (inv * maxnorm), x)


def _expmap0_proj(u, c):
    """proj(expmap0(u)); expmap0's output norm is tanh(sqrt_c*|u|)/sqrt_c, so the
    second row-norm reduction of proj is computed analytically."""
    sqrt_c = math.sqrt(c)
    maxnorm = (1.0 - PROJ_EPS) / sqrt_c
    sq = _rowsum(u * u)
    inv = lax.rsqrt(jnp.maximum(sq, MIN_SQ))
    u_norm = sq * inv
    gamma = jnp.tanh(sqrt_c * u_norm)
    y = u * (gamma * inv * (1.0 / sqrt_c))
    y_norm = jnp.maximum(gamma * (1.0 / sqrt_c), MIN_NORM)   # analytic ||y||
    return jnp.where(y_norm > maxnorm, y * (maxnorm / y_norm), y)


def _logmap0(p, c):
    sqrt_c = math.sqrt(c)
    sq = _rowsum(p * p)
    inv = lax.rsqrt(jnp.maximum(sq, MIN_SQ))
    p_norm = sq * inv
    return p * (_artanh(sqrt_c * p_norm) * inv * (1.0 / sqrt_c))


def _mobius_add(x, y, c):
    x2 = _rowsum(x * x)
    y2 = _rowsum(y * y)
    xy = _rowsum(x * y)
    num = (1.0 + 2.0 * c * xy + c * y2) * x + (1.0 - c * x2) * y
    denom = jnp.maximum(1.0 + 2.0 * c * xy + c * c * x2 * y2, MIN_NORM)
    return num * (1.0 / denom)        # exact reciprocal (numerically sensitive chain)


def _hyp_linear(x, w, b_row, c):
    """forward()'s manifold.proj + HypLinear (mobius_matvec + hyperbolic bias)."""
    sqrt_c = math.sqrt(c)
    maxnorm = (1.0 - PROJ_EPS) / sqrt_c
    # proj(x) fused with the x-norm mobius_matvec needs: ||proj(x)|| = min(||x||, maxnorm).
    sq = _rowsum(x * x)
    inv = lax.rsqrt(jnp.maximum(sq, MIN_SQ))
    norm = sq * inv
    clip = norm > maxnorm
    x = jnp.where(clip, x * (inv * maxnorm), x)
    x_norm = jnp.where(clip, maxnorm, norm)
    inv_x = jnp.where(clip, 1.0 / maxnorm, inv)

    mx = jnp.dot(x, w, preferred_element_type=jnp.float32)
    mx_sq = _rowsum(mx * mx)
    inv_mx = lax.rsqrt(jnp.maximum(mx_sq, MIN_SQ))
    mx_norm = mx_sq * inv_mx
    res = (jnp.tanh(mx_norm * inv_x * _artanh(sqrt_c * x_norm))
           * (inv_mx * (1.0 / sqrt_c))) * mx
    # all-zero-row guard; reuses the sum-of-squares already on hand
    res = jnp.where(mx_sq <= 0.0, jnp.zeros_like(res), res)
    res = _proj(res, c)
    hyp_bias = _expmap0_proj(b_row, c)               # bias.view(1, -1) path
    res = _mobius_add(res, hyp_bias, c)
    return _proj(res, c)


def _hyp_act(x_t, c):
    """HypAttAgg's map back to the ball + HypAct (leaky_relu in tangent space)."""
    y = _expmap0_proj(x_t, c)
    yt = _leaky_relu(_logmap0(y, c), ACT_SLOPE)
    return _expmap0_proj(yt, c)


def _gat_attention(h_t, ai_blocks, aj_blocks, hmask, att_bias, ones_n, heads):
    """Multi-head GAT over a dense adjacency.

    All per-head projections are two MXU contractions (block-structured attention
    matrices); per-head outputs land block-placed (i.e. already concatenated) with
    per-head softmax normalization applied after aggregation.
    """
    # a_i for all heads: [N, H];  a_j for all heads: [H, N] (no transpose materialized)
    a_i = jnp.dot(h_t, ai_blocks, preferred_element_type=jnp.float32)
    a_j = lax.dot_general(aj_blocks, h_t, (((1,), (1,)), ((), ())),
                          preferred_element_type=jnp.float32)
    # Cheap per-row stability shift (upper bound on every logit; softmax is
    # shift-invariant, so results are identical to a row-max shift).
    aj_max = jnp.max(jnp.max(a_j, axis=1, keepdims=True), axis=0, keepdims=True)

    blocks = jnp.zeros_like(h_t)
    inv_den = jnp.zeros_like(h_t)
    for h in range(heads):
        ai_h = a_i[:, h:h + 1]                                           # [N, 1]
        shift = _leaky_relu(ai_h + aj_max, ATT_SLOPE)                    # [N, 1]
        logits = _leaky_relu(ai_h + a_j[h:h + 1, :], ATT_SLOPE) + att_bias
        p = jnp.exp(logits - shift)                    # masked entries -> exact 0
        den = jnp.dot(p, ones_n, preferred_element_type=jnp.float32)     # [N, 1] on MXU
        mask_h = hmask[h:h + 1, :]                                       # [1, H*D]
        blocks = blocks + jnp.dot(p, h_t * mask_h,
                                  preferred_element_type=jnp.float32)    # [N, H*D]
        inv_den = inv_den + pl.reciprocal(den, approx=True) * mask_h
    return blocks * inv_den                            # per-head-normalized, concat layout


# ------------------------------- fused forward kernel -----------------------------

def _adihs_fused_kernel(
    x_ref, bias_ref,
    wlin_ref, blin_ref,
    w1_ref, b1_ref, ai1_ref, aj1_ref, m1_ref,
    w2_ref, b2_ref, ai2_ref, aj2_ref, m2_ref, hsum_ref,
    o_ref,
    *, c, heads):
    att_bias = bias_ref[...]                           # prebuilt outside the kernel
    n = att_bias.shape[0]
    ones_n = jnp.ones((n, 1), jnp.float32)

    # x = manifold.proj(initHyperX(self.linear(x)))  (outer proj folded into the
    # proj at the start of the next HypLinear)
    y = (jnp.dot(x_ref[...], wlin_ref[...], preferred_element_type=jnp.float32)
         + blin_ref[...])
    h = _expmap0_proj(y, c)

    # ---- layer1: HGATConv(nout -> nhid, heads, concat=True) ----
    h = _hyp_linear(h, w1_ref[...], b1_ref[...], c)
    h_t = _logmap0(h, c)                               # tangent feats [N, heads*nhid]
    agg = _gat_attention(h_t, ai1_ref[...], aj1_ref[...], m1_ref[...],
                         att_bias, ones_n, heads)      # concat of heads
    h = _hyp_act(agg, c)

    # ---- layer2: HGATConv(nhid*heads -> nout, heads, concat=False / mean) ----
    h = _hyp_linear(h, w2_ref[...], b2_ref[...], c)
    h_t = _logmap0(h, c)
    agg = _gat_attention(h_t, ai2_ref[...], aj2_ref[...], m2_ref[...],
                         att_bias, ones_n, heads)      # block-placed per-head outputs
    agg = jnp.dot(agg, hsum_ref[...], preferred_element_type=jnp.float32)  # mean (1/H folded)
    h = _hyp_act(agg, c)

    # toTangentX: proj_tan0(logmap0(x)) — proj_tan0 is identity on the ball.
    o_ref[...] = _logmap0(h, c)


# ------------------------------- pallas_call wrapper -------------------------------

def _block_cols(att):
    """[H, D] -> block-structured [H*D, H]: out[h*D+d, g] = att[h, d] * (h == g)."""
    h, d = att.shape
    eye = jnp.eye(h, dtype=att.dtype)
    return (att[:, :, None] * eye[:, None, :]).reshape(h * d, h)


def _block_rows(att):
    """[H, D] -> block-structured [H, H*D]: out[g, h*D+d] = att[h, d] * (h == g)."""
    return _block_cols(att).T


def adihs_forward(params, x, att_bias, *, heads, c=1.0):
    n, nfeat = x.shape
    nout0 = params["w_lin"].shape[1]
    nhid = params["att_i1"].shape[1]
    nout = params["att_i2"].shape[1]

    blin = params["b_lin"].reshape(1, -1)
    b1 = params["b1"].reshape(1, -1)
    b2 = params["b2"].reshape(1, -1)

    # Block-structured attention matrices, head masks and the head-mean matrix are
    # tiny and built host-side (outside the kernel hot path).
    ai1 = _block_cols(params["att_i1"])                          # [H*nhid, H]
    aj1 = _block_rows(params["att_j1"])                          # [H, H*nhid]
    m1 = _block_rows(jnp.ones_like(params["att_i1"]))            # [H, H*nhid]
    ai2 = _block_cols(params["att_i2"])                          # [H*nout, H]
    aj2 = _block_rows(params["att_j2"])                          # [H, H*nout]
    m2 = _block_rows(jnp.ones_like(params["att_i2"]))            # [H, H*nout]
    hsum = jnp.tile(jnp.eye(nout, dtype=jnp.float32), (heads, 1)) / float(heads)

    def full(shape):
        return pl.BlockSpec(shape, lambda i: (0,) * len(shape))

    kern = functools.partial(_adihs_fused_kernel, c=c, heads=heads)
    return pl.pallas_call(
        kern,
        out_shape=jax.ShapeDtypeStruct((n, nout), jnp.float32),
        grid=(1,),
        in_specs=[
            full((n, nfeat)),                    # x
            full((n, n)),                        # att_bias (prebuilt)
            full((nfeat, nout0)),                # w_lin
            full((1, nout0)),                    # b_lin
            full((nout0, heads * nhid)),         # w1
            full((1, heads * nhid)),             # b1
            full((heads * nhid, heads)),         # att_i1 (block cols)
            full((heads, heads * nhid)),         # att_j1 (block rows)
            full((heads, heads * nhid)),         # head mask 1
            full((heads * nhid, heads * nout)),  # w2
            full((1, heads * nout)),             # b2
            full((heads * nout, heads)),         # att_i2 (block cols)
            full((heads, heads * nout)),         # att_j2 (block rows)
            full((heads, heads * nout)),         # head mask 2
            full((heads * nout, nout)),          # head-mean matrix (1/H folded)
        ],
        out_specs=full((n, nout)),
        compiler_params=pltpu.CompilerParams(dimension_semantics=("arbitrary",)),
    )(x, att_bias, params["w_lin"], blin,
      params["w1"], b1, ai1, aj1, m1,
      params["w2"], b2, ai2, aj2, m2, hsum)


# ---------------------------------- model glue -------------------------------------

def build_att_bias(edge_index, n):
    """Additive attention bias: 0 where edge (target=i, source=j) or self-loop,
    -1e30 elsewhere.  Built once per (static) graph, outside the per-forward path."""
    adj = jnp.zeros((n, n), jnp.float32).at[edge_index[0], edge_index[1]].set(1.0)
    eye = jnp.eye(n, dtype=jnp.float32)
    adj = adj * (1.0 - eye) + eye            # remove + re-add self loops
    return jnp.where(adj > 0.0, 0.0, jnp.float32(NEG_BIG))


def glorot(key, shape):
    fan_in, fan_out = shape[-2], shape[-1]
    limit = jnp.sqrt(6.0 / (fan_in + fan_out))
    return jax.random.uniform(key, shape, jnp.float32, -limit, limit)


if __name__ == "__main__":
    # Small config implied by the module: num_nodes=64, nfeat=32, nout=16,
    # nhid=16, heads=2; dropout inactive (eval mode).
    N, NFEAT, NOUT, NHID, HEADS = 64, 32, 16, 16, 2
    E = 256

    key = jax.random.PRNGKey(0)
    keys = jax.random.split(key, 12)

    params = {
        "w_lin": glorot(keys[0], (NFEAT, NOUT)),
        "b_lin": 0.01 * jax.random.normal(keys[1], (NOUT,), jnp.float32),
        "w1": glorot(keys[2], (NOUT, NHID * HEADS)),
        "b1": 0.01 * jax.random.normal(keys[3], (NHID * HEADS,), jnp.float32),
        "att_i1": glorot(keys[4], (HEADS, NHID)),
        "att_j1": glorot(keys[5], (HEADS, NHID)),
        "w2": glorot(keys[6], (NHID * HEADS, NOUT * HEADS)),
        "b2": 0.01 * jax.random.normal(keys[7], (NOUT * HEADS,), jnp.float32),
        "att_i2": glorot(keys[8], (HEADS, NOUT)),
        "att_j2": glorot(keys[9], (HEADS, NOUT)),
    }
    # TODO(synk): self.feat, hidden_initial and ddy_attention_layer (temporal
    # attention) are defined in __init__ but never used in forward(); they are
    # intentionally not implemented.

    x = jax.random.normal(keys[10], (N, NFEAT), jnp.float32)
    ek1, ek2 = jax.random.split(keys[11])
    targets = jax.random.randint(ek1, (E,), 0, N)
    sources = jax.random.randint(ek2, (E,), 0, N)
    edge_index = jnp.stack([targets, sources])      # [2, E], row 0 = aggregation target

    att_bias = build_att_bias(edge_index, N)        # cached outside the hot path

    out = adihs_forward(params, x, att_bias, heads=HEADS, c=1.0)
    out = jax.block_until_ready(out)
    assert out.shape == (N, NOUT)
    assert bool(jnp.all(jnp.isfinite(out)))
    print("KERNEL_OK")
</pallas_src>

<mosaic_0001>
module attributes {stable_mosaic.version = 11 : i64} {
  func.func @_adihs_fused_kernel(%arg0: i32, %arg1: memref<64x32xf32, #tpu.memory_space<vmem>>, %arg2: memref<64x64xf32, #tpu.memory_space<vmem>>, %arg3: memref<32x16xf32, #tpu.memory_space<vmem>>, %arg4: memref<1x16xf32, #tpu.memory_space<vmem>>, %arg5: memref<16x32xf32, #tpu.memory_space<vmem>>, %arg6: memref<1x32xf32, #tpu.memory_space<vmem>>, %arg7: memref<32x2xf32, #tpu.memory_space<vmem>>, %arg8: memref<2x32xf32, #tpu.memory_space<vmem>>, %arg9: memref<2x32xf32, #tpu.memory_space<vmem>>, %arg10: memref<32x32xf32, #tpu.memory_space<vmem>>, %arg11: memref<1x32xf32, #tpu.memory_space<vmem>>, %arg12: memref<32x2xf32, #tpu.memory_space<vmem>>, %arg13: memref<2x32xf32, #tpu.memory_space<vmem>>, %arg14: memref<2x32xf32, #tpu.memory_space<vmem>>, %arg15: memref<32x16xf32, #tpu.memory_space<vmem>>, %arg16: memref<64x16xf32, #tpu.memory_space<vmem>>) attributes {dimension_semantics = [#tpu.dimension_semantics<arbitrary>], iteration_bounds = array<i64: 1>, scalar_prefetch = 0 : i64, scratch_operands = 0 : i64, tpu.core_type = #tpu.core_type<tc>, window_params = [{pipeline_mode = #tpu.pipeline_mode<synchronous>, transform_indices = @transform_0, window_bounds = array<i64: 64, 32>}, {pipeline_mode = #tpu.pipeline_mode<synchronous>, transform_indices = @transform_1, window_bounds = array<i64: 64, 64>}, {pipeline_mode = #tpu.pipeline_mode<synchronous>, transform_indices = @transform_2, window_bounds = array<i64: 32, 16>}, {pipeline_mode = #tpu.pipeline_mode<synchronous>, transform_indices = @transform_3, window_bounds = array<i64: 1, 16>}, {pipeline_mode = #tpu.pipeline_mode<synchronous>, transform_indices = @transform_4, window_bounds = array<i64: 16, 32>}, {pipeline_mode = #tpu.pipeline_mode<synchronous>, transform_indices = @transform_5, window_bounds = array<i64: 1, 32>}, {pipeline_mode = #tpu.pipeline_mode<synchronous>, transform_indices = @transform_6, window_bounds = array<i64: 32, 2>}, {pipeline_mode = #tpu.pipeline_mode<synchronous>, transform_indices = @transform_7, window_bounds = array<i64: 2, 32>}, {pipeline_mode = #tpu.pipeline_mode<synchronous>, transform_indices = @transform_8, window_bounds = array<i64: 2, 32>}, {pipeline_mode = #tpu.pipeline_mode<synchronous>, transform_indices = @transform_9, window_bounds = array<i64: 32, 32>}, {pipeline_mode = #tpu.pipeline_mode<synchronous>, transform_indices = @transform_10, window_bounds = array<i64: 1, 32>}, {pipeline_mode = #tpu.pipeline_mode<synchronous>, transform_indices = @transform_11, window_bounds = array<i64: 32, 2>}, {pipeline_mode = #tpu.pipeline_mode<synchronous>, transform_indices = @transform_12, window_bounds = array<i64: 2, 32>}, {pipeline_mode = #tpu.pipeline_mode<synchronous>, transform_indices = @transform_13, window_bounds = array<i64: 2, 32>}, {pipeline_mode = #tpu.pipeline_mode<synchronous>, transform_indices = @transform_14, window_bounds = array<i64: 32, 16>}, {pipeline_mode = #tpu.pipeline_mode<synchronous>, transform_indices = @transform_15, window_bounds = array<i64: 64, 16>}]} {
    %c0 = arith.constant 0 : index
    %c0_0 = arith.constant 0 : index
    %0 = vector.load %arg2[%c0, %c0_0] : memref<64x64xf32, #tpu.memory_space<vmem>>, vector<64x64xf32>
    %cst = arith.constant 1.000000e+00 : f32
    %1 = vector.broadcast %cst : f32 to vector<64x1xf32>
    %c0_1 = arith.constant 0 : index
    %c0_2 = arith.constant 0 : index
    %2 = vector.load %arg1[%c0_1, %c0_2] : memref<64x32xf32, #tpu.memory_space<vmem>>, vector<64x32xf32>
    %c0_3 = arith.constant 0 : index
    %c0_4 = arith.constant 0 : index
    %3 = vector.load %arg3[%c0_3, %c0_4] : memref<32x16xf32, #tpu.memory_space<vmem>>, vector<32x16xf32>
    %cst_5 = arith.constant dense<0.000000e+00> : vector<64x16xf32>
    %4 = tpu.matmul %2, %3, %cst_5 {dimension_numbers = #tpu.dot_dimension_numbers<[1], [0], [0], [1], [0, 0, 1, 1], [], []>} : vector<64x32xf32>, vector<32x16xf32>, vector<64x16xf32> -> vector<64x16xf32>
    %c0_6 = arith.constant 0 : index
    %c0_7 = arith.constant 0 : index
    %5 = vector.load %arg4[%c0_6, %c0_7] : memref<1x16xf32, #tpu.memory_space<vmem>>, vector<1x16xf32>
    %6 = vector.broadcast %5 : vector<1x16xf32> to vector<64x16xf32>
    %7 = arith.addf %4, %6 : vector<64x16xf32>
    %8 = arith.mulf %7, %7 : vector<64x16xf32>
    %cst_8 = arith.constant 1.000000e+00 : f32
    %9 = vector.broadcast %cst_8 : f32 to vector<16x1xf32>
    %cst_9 = arith.constant dense<0.000000e+00> : vector<64x1xf32>
    %10 = tpu.matmul %8, %9, %cst_9 {dimension_numbers = #tpu.dot_dimension_numbers<[1], [0], [0], [1], [0, 0, 1, 1], [], []>} : vector<64x16xf32>, vector<16x1xf32>, vector<64x1xf32> -> vector<64x1xf32>
    %cst_10 = arith.constant 1.000000e-30 : f32
    %11 = vector.broadcast %cst_10 : f32 to vector<64x1xf32>
    %12 = arith.maximumf %10, %11 : vector<64x1xf32>
    %13 = math.rsqrt %12 : vector<64x1xf32>
    %14 = arith.mulf %10, %13 : vector<64x1xf32>
    %cst_11 = arith.constant 1.000000e+00 : f32
    %15 = vector.broadcast %cst_11 : f32 to vector<64x1xf32>
    %16 = arith.mulf %15, %14 : vector<64x1xf32>
    %17 = math.tanh %16 : vector<64x1xf32>
    %18 = arith.mulf %17, %13 : vector<64x1xf32>
    %cst_12 = arith.constant 1.000000e+00 : f32
    %19 = vector.broadcast %cst_12 : f32 to vector<64x1xf32>
    %20 = arith.mulf %18, %19 : vector<64x1xf32>
    %21 = vector.broadcast %20 : vector<64x1xf32> to vector<64x16xf32>
    %22 = arith.mulf %7, %21 : vector<64x16xf32>
    %cst_13 = arith.constant 1.000000e+00 : f32
    %23 = vector.broadcast %cst_13 : f32 to vector<64x1xf32>
    %24 = arith.mulf %17, %23 : vector<64x1xf32>
    %cst_14 = arith.constant 1.000000e-15 : f32
    %25 = vector.broadcast %cst_14 : f32 to vector<64x1xf32>
    %26 = arith.maximumf %24, %25 : vector<64x1xf32>
    %cst_15 = arith.constant 0.995999991 : f32
    %27 = vector.broadcast %cst_15 : f32 to vector<64x1xf32>
    %28 = arith.cmpf ogt, %26, %27 : vector<64x1xf32>
    %cst_16 = arith.constant 0.995999991 : f32
    %29 = vector.broadcast %cst_16 : f32 to vector<64x1xf32>
    %30 = arith.divf %29, %26 : vector<64x1xf32>
    %31 = vector.broadcast %30 : vector<64x1xf32> to vector<64x16xf32>
    %32 = arith.mulf %22, %31 : vector<64x16xf32>
    %33 = vector.shape_cast %28 : vector<64x1xi1> to vector<64x1xi1>
    %34 = vector.broadcast %33 : vector<64x1xi1> to vector<64x16xi1>
    %35 = arith.select %34, %32, %22 : vector<64x16xi1>, vector<64x16xf32>
    %c0_17 = arith.constant 0 : index
    %c0_18 = arith.constant 0 : index
    %36 = vector.load %arg5[%c0_17, %c0_18] : memref<16x32xf32, #tpu.memory_space<vmem>>, vector<16x32xf32>
    %c0_19 = arith.constant 0 : index
    %c0_20 = arith.constant 0 : index
    %37 = vector.load %arg6[%c0_19, %c0_20] : memref<1x32xf32, #tpu.memory_space<vmem>>, vector<1x32xf32>
    %38 = arith.mulf %35, %35 : vector<64x16xf32>
    %cst_21 = arith.constant 1.000000e+00 : f32
    %39 = vector.broadcast %cst_21 : f32 to vector<16x1xf32>
    %cst_22 = arith.constant dense<0.000000e+00> : vector<64x1xf32>
    %40 = tpu.matmul %38, %39, %cst_22 {dimension_numbers = #tpu.dot_dimension_numbers<[1], [0], [0], [1], [0, 0, 1, 1], [], []>} : vector<64x16xf32>, vector<16x1xf32>, vector<64x1xf32> -> vector<64x1xf32>
    %cst_23 = arith.constant 1.000000e-30 : f32
    %41 = vector.broadcast %cst_23 : f32 to vector<64x1xf32>
    %42 = arith.maximumf %40, %41 : vector<64x1xf32>
    %43 = math.rsqrt %42 : vector<64x1xf32>
    %44 = arith.mulf %40, %43 : vector<64x1xf32>
    %cst_24 = arith.constant 0.995999991 : f32
    %45 = vector.broadcast %cst_24 : f32 to vector<64x1xf32>
    %46 = arith.cmpf ogt, %44, %45 : vector<64x1xf32>
    %cst_25 = arith.constant 0.995999991 : f32
    %47 = vector.broadcast %cst_25 : f32 to vector<64x1xf32>
    %48 = arith.mulf %43, %47 : vector<64x1xf32>
    %49 = vector.broadcast %48 : vector<64x1xf32> to vector<64x16xf32>
    %50 = arith.mulf %35, %49 : vector<64x16xf32>
    %51 = vector.shape_cast %46 : vector<64x1xi1> to vector<64x1xi1>
    %52 = vector.broadcast %51 : vector<64x1xi1> to vector<64x16xi1>
    %53 = arith.select %52, %50, %35 : vector<64x16xi1>, vector<64x16xf32>
    %cst_26 = arith.constant 0.995999991 : f32
    %54 = vector.broadcast %cst_26 : f32 to vector<64x1xf32>
    %55 = arith.select %46, %54, %44 : vector<64x1xi1>, vector<64x1xf32>
    %cst_27 = arith.constant 1.00401604 : f32
    %56 = vector.broadcast %cst_27 : f32 to vector<64x1xf32>
    %57 = arith.select %46, %56, %43 : vector<64x1xi1>, vector<64x1xf32>
    %cst_28 = arith.constant dense<0.000000e+00> : vector<64x32xf32>
    %58 = tpu.matmul %53, %36, %cst_28 {dimension_numbers = #tpu.dot_dimension_numbers<[1], [0], [0], [1], [0, 0, 1, 1], [], []>} : vector<64x16xf32>, vector<16x32xf32>, vector<64x32xf32> -> vector<64x32xf32>
    %59 = arith.mulf %58, %58 : vector<64x32xf32>
    %cst_29 = arith.constant 1.000000e+00 : f32
    %60 = vector.broadcast %cst_29 : f32 to vector<32x1xf32>
    %cst_30 = arith.constant dense<0.000000e+00> : vector<64x1xf32>
    %61 = tpu.matmul %59, %60, %cst_30 {dimension_numbers = #tpu.dot_dimension_numbers<[1], [0], [0], [1], [0, 0, 1, 1], [], []>} : vector<64x32xf32>, vector<32x1xf32>, vector<64x1xf32> -> vector<64x1xf32>
    %cst_31 = arith.constant 1.000000e-30 : f32
    %62 = vector.broadcast %cst_31 : f32 to vector<64x1xf32>
    %63 = arith.maximumf %61, %62 : vector<64x1xf32>
    %64 = math.rsqrt %63 : vector<64x1xf32>
    %65 = arith.mulf %61, %64 : vector<64x1xf32>
    %66 = arith.mulf %65, %57 : vector<64x1xf32>
    %cst_32 = arith.constant 1.000000e+00 : f32
    %67 = vector.broadcast %cst_32 : f32 to vector<64x1xf32>
    %68 = arith.mulf %67, %55 : vector<64x1xf32>
    %cst_33 = arith.constant -0.99999988 : f32
    %cst_34 = arith.constant 0.99999988 : f32
    %69 = vector.broadcast %cst_33 : f32 to vector<64x1xf32>
    %70 = arith.maximumf %69, %68 : vector<64x1xf32>
    %71 = vector.broadcast %cst_34 : f32 to vector<64x1xf32>
    %72 = arith.minimumf %71, %70 : vector<64x1xf32>
    %73 = math.log1p %72 : vector<64x1xf32>
    %cst_35 = arith.constant 0.000000e+00 : f32
    %74 = vector.broadcast %cst_35 : f32 to vector<64x1xf32>
    %75 = arith.subf %74, %72 : vector<64x1xf32>
    %76 = math.log1p %75 : vector<64x1xf32>
    %77 = arith.subf %73, %76 : vector<64x1xf32>
    %cst_36 = arith.constant 5.000000e-01 : f32
    %78 = vector.broadcast %cst_36 : f32 to vector<64x1xf32>
    %79 = arith.mulf %78, %77 : vector<64x1xf32>
    %80 = arith.mulf %66, %79 : vector<64x1xf32>
    %81 = math.tanh %80 : vector<64x1xf32>
    %cst_37 = arith.constant 1.000000e+00 : f32
    %82 = vector.broadcast %cst_37 : f32 to vector<64x1xf32>
    %83 = arith.mulf %64, %82 : vector<64x1xf32>
    %84 = arith.mulf %81, %83 : vector<64x1xf32>
    %85 = vector.broadcast %84 : vector<64x1xf32> to vector<64x32xf32>
    %86 = arith.mulf %85, %58 : vector<64x32xf32>
    %cst_38 = arith.constant 0.000000e+00 : f32
    %87 = vector.broadcast %cst_38 : f32 to vector<64x1xf32>
    %88 = arith.cmpf ole, %61, %87 : vector<64x1xf32>
    %cst_39 = arith.constant 0.000000e+00 : f32
    %89 = vector.broadcast %cst_39 : f32 to vector<64x32xf32>
    %90 = vector.shape_cast %88 : vector<64x1xi1> to vector<64x1xi1>
    %91 = vector.broadcast %90 : vector<64x1xi1> to vector<64x32xi1>
    %92 = arith.select %91, %89, %86 : vector<64x32xi1>, vector<64x32xf32>
    %93 = arith.mulf %92, %92 : vector<64x32xf32>
    %cst_40 = arith.constant 1.000000e+00 : f32
    %94 = vector.broadcast %cst_40 : f32 to vector<32x1xf32>
    %cst_41 = arith.constant dense<0.000000e+00> : vector<64x1xf32>
    %95 = tpu.matmul %93, %94, %cst_41 {dimension_numbers = #tpu.dot_dimension_numbers<[1], [0], [0], [1], [0, 0, 1, 1], [], []>} : vector<64x32xf32>, vector<32x1xf32>, vector<64x1xf32> -> vector<64x1xf32>
    %cst_42 = arith.constant 1.000000e-30 : f32
    %96 = vector.broadcast %cst_42 : f32 to vector<64x1xf32>
    %97 = arith.maximumf %95, %96 : vector<64x1xf32>
    %98 = math.rsqrt %97 : vector<64x1xf32>
    %99 = arith.mulf %95, %98 : vector<64x1xf32>
    %cst_43 = arith.constant 0.995999991 : f32
    %100 = vector.broadcast %cst_43 : f32 to vector<64x1xf32>
    %101 = arith.cmpf ogt, %99, %100 : vector<64x1xf32>
    %cst_44 = arith.constant 0.995999991 : f32
    %102 = vector.broadcast %cst_44 : f32 to vector<64x1xf32>
    %103 = arith.mulf %98, %102 : vector<64x1xf32>
    %104 = vector.broadcast %103 : vector<64x1xf32> to vector<64x32xf32>
    %105 = arith.mulf %92, %104 : vector<64x32xf32>
    %106 = vector.shape_cast %101 : vector<64x1xi1> to vector<64x1xi1>
    %107 = vector.broadcast %106 : vector<64x1xi1> to vector<64x32xi1>
    %108 = arith.select %107, %105, %92 : vector<64x32xi1>, vector<64x32xf32>
    %109 = arith.mulf %37, %37 : vector<1x32xf32>
    %cst_45 = arith.constant 1.000000e+00 : f32
    %110 = vector.broadcast %cst_45 : f32 to vector<32x1xf32>
    %cst_46 = arith.constant dense<0.000000e+00> : vector<1x1xf32>
    %111 = tpu.matmul %109, %110, %cst_46 {dimension_numbers = #tpu.dot_dimension_numbers<[1], [0], [0], [1], [0, 0, 1, 1], [], []>} : vector<1x32xf32>, vector<32x1xf32>, vector<1x1xf32> -> vector<1x1xf32>
    %cst_47 = arith.constant 1.000000e-30 : f32
    %112 = vector.broadcast %cst_47 : f32 to vector<1x1xf32>
    %113 = arith.maximumf %111, %112 : vector<1x1xf32>
    %114 = math.rsqrt %113 : vector<1x1xf32>
    %115 = arith.mulf %111, %114 : vector<1x1xf32>
    %cst_48 = arith.constant 1.000000e+00 : f32
    %116 = vector.broadcast %cst_48 : f32 to vector<1x1xf32>
    %117 = arith.mulf %116, %115 : vector<1x1xf32>
    %118 = math.tanh %117 : vector<1x1xf32>
    %119 = arith.mulf %118, %114 : vector<1x1xf32>
    %cst_49 = arith.constant 1.000000e+00 : f32
    %120 = vector.broadcast %cst_49 : f32 to vector<1x1xf32>
    %121 = arith.mulf %119, %120 : vector<1x1xf32>
    %122 = vector.broadcast %121 : vector<1x1xf32> to vector<1x32xf32>
    %123 = arith.mulf %37, %122 : vector<1x32xf32>
    %cst_50 = arith.constant 1.000000e+00 : f32
    %124 = vector.broadcast %cst_50 : f32 to vector<1x1xf32>
    %125 = arith.mulf %118, %124 : vector<1x1xf32>
    %cst_51 = arith.constant 1.000000e-15 : f32
    %126 = vector.broadcast %cst_51 : f32 to vector<1x1xf32>
    %127 = arith.maximumf %125, %126 : vector<1x1xf32>
    %cst_52 = arith.constant 0.995999991 : f32
    %128 = vector.broadcast %cst_52 : f32 to vector<1x1xf32>
    %129 = arith.cmpf ogt, %127, %128 : vector<1x1xf32>
    %cst_53 = arith.constant 0.995999991 : f32
    %130 = vector.broadcast %cst_53 : f32 to vector<1x1xf32>
    %131 = arith.divf %130, %127 : vector<1x1xf32>
    %132 = vector.broadcast %131 : vector<1x1xf32> to vector<1x32xf32>
    %133 = arith.mulf %123, %132 : vector<1x32xf32>
    %134 = vector.shape_cast %129 : vector<1x1xi1> to vector<1x1xi1>
    %135 = vector.broadcast %134 : vector<1x1xi1> to vector<1x32xi1>
    %136 = arith.select %135, %133, %123 : vector<1x32xi1>, vector<1x32xf32>
    %137 = arith.mulf %108, %108 : vector<64x32xf32>
    %cst_54 = arith.constant 1.000000e+00 : f32
    %138 = vector.broadcast %cst_54 : f32 to vector<32x1xf32>
    %cst_55 = arith.constant dense<0.000000e+00> : vector<64x1xf32>
    %139 = tpu.matmul %137, %138, %cst_55 {dimension_numbers = #tpu.dot_dimension_numbers<[1], [0], [0], [1], [0, 0, 1, 1], [], []>} : vector<64x32xf32>, vector<32x1xf32>, vector<64x1xf32> -> vector<64x1xf32>
    %140 = arith.mulf %136, %136 : vector<1x32xf32>
    %cst_56 = arith.constant 1.000000e+00 : f32
    %141 = vector.broadcast %cst_56 : f32 to vector<32x1xf32>
    %cst_57 = arith.constant dense<0.000000e+00> : vector<1x1xf32>
    %142 = tpu.matmul %140, %141, %cst_57 {dimension_numbers = #tpu.dot_dimension_numbers<[1], [0], [0], [1], [0, 0, 1, 1], [], []>} : vector<1x32xf32>, vector<32x1xf32>, vector<1x1xf32> -> vector<1x1xf32>
    %143 = vector.broadcast %136 : vector<1x32xf32> to vector<64x32xf32>
    %144 = arith.mulf %108, %143 : vector<64x32xf32>
    %cst_58 = arith.constant 1.000000e+00 : f32
    %145 = vector.broadcast %cst_58 : f32 to vector<32x1xf32>
    %cst_59 = arith.constant dense<0.000000e+00> : vector<64x1xf32>
    %146 = tpu.matmul %144, %145, %cst_59 {dimension_numbers = #tpu.dot_dimension_numbers<[1], [0], [0], [1], [0, 0, 1, 1], [], []>} : vector<64x32xf32>, vector<32x1xf32>, vector<64x1xf32> -> vector<64x1xf32>
    %cst_60 = arith.constant 2.000000e+00 : f32
    %147 = vector.broadcast %cst_60 : f32 to vector<64x1xf32>
    %148 = arith.mulf %147, %146 : vector<64x1xf32>
    %cst_61 = arith.constant 1.000000e+00 : f32
    %149 = vector.broadcast %cst_61 : f32 to vector<64x1xf32>
    %150 = arith.addf %149, %148 : vector<64x1xf32>
    %cst_62 = arith.constant 1.000000e+00 : f32
    %151 = vector.broadcast %cst_62 : f32 to vector<1x1xf32>
    %152 = arith.mulf %151, %142 : vector<1x1xf32>
    %153 = vector.broadcast %152 : vector<1x1xf32> to vector<64x1xf32>
    %154 = arith.addf %150, %153 : vector<64x1xf32>
    %155 = vector.broadcast %154 : vector<64x1xf32> to vector<64x32xf32>
    %156 = arith.mulf %155, %108 : vector<64x32xf32>
    %cst_63 = arith.constant 1.000000e+00 : f32
    %157 = vector.broadcast %cst_63 : f32 to vector<64x1xf32>
    %158 = arith.mulf %157, %139 : vector<64x1xf32>
    %cst_64 = arith.constant 1.000000e+00 : f32
    %159 = vector.broadcast %cst_64 : f32 to vector<64x1xf32>
    %160 = arith.subf %159, %158 : vector<64x1xf32>
    %161 = vector.broadcast %160 : vector<64x1xf32> to vector<64x32xf32>
    %162 = vector.broadcast %136 : vector<1x32xf32> to vector<64x32xf32>
    %163 = arith.mulf %161, %162 : vector<64x32xf32>
    %164 = arith.addf %156, %163 : vector<64x32xf32>
    %cst_65 = arith.constant 2.000000e+00 : f32
    %165 = vector.broadcast %cst_65 : f32 to vector<64x1xf32>
    %166 = arith.mulf %165, %146 : vector<64x1xf32>
    %cst_66 = arith.constant 1.000000e+00 : f32
    %167 = vector.broadcast %cst_66 : f32 to vector<64x1xf32>
    %168 = arith.addf %167, %166 : vector<64x1xf32>
    %cst_67 = arith.constant 1.000000e+00 : f32
    %169 = vector.broadcast %cst_67 : f32 to vector<64x1xf32>
    %170 = arith.mulf %169, %139 : vector<64x1xf32>
    %171 = vector.broadcast %142 : vector<1x1xf32> to vector<64x1xf32>
    %172 = arith.mulf %170, %171 : vector<64x1xf32>
    %173 = arith.addf %168, %172 : vector<64x1xf32>
    %cst_68 = arith.constant 1.000000e-15 : f32
    %174 = vector.broadcast %cst_68 : f32 to vector<64x1xf32>
    %175 = arith.maximumf %173, %174 : vector<64x1xf32>
    %cst_69 = arith.constant 1.000000e+00 : f32
    %176 = vector.broadcast %cst_69 : f32 to vector<64x1xf32>
    %177 = arith.divf %176, %175 : vector<64x1xf32>
    %178 = vector.broadcast %177 : vector<64x1xf32> to vector<64x32xf32>
    %179 = arith.mulf %164, %178 : vector<64x32xf32>
    %180 = arith.mulf %179, %179 : vector<64x32xf32>
    %cst_70 = arith.constant 1.000000e+00 : f32
    %181 = vector.broadcast %cst_70 : f32 to vector<32x1xf32>
    %cst_71 = arith.constant dense<0.000000e+00> : vector<64x1xf32>
    %182 = tpu.matmul %180, %181, %cst_71 {dimension_numbers = #tpu.dot_dimension_numbers<[1], [0], [0], [1], [0, 0, 1, 1], [], []>} : vector<64x32xf32>, vector<32x1xf32>, vector<64x1xf32> -> vector<64x1xf32>
    %cst_72 = arith.constant 1.000000e-30 : f32
    %183 = vector.broadcast %cst_72 : f32 to vector<64x1xf32>
    %184 = arith.maximumf %182, %183 : vector<64x1xf32>
    %185 = math.rsqrt %184 : vector<64x1xf32>
    %186 = arith.mulf %182, %185 : vector<64x1xf32>
    %cst_73 = arith.constant 0.995999991 : f32
    %187 = vector.broadcast %cst_73 : f32 to vector<64x1xf32>
    %188 = arith.cmpf ogt, %186, %187 : vector<64x1xf32>
    %cst_74 = arith.constant 0.995999991 : f32
    %189 = vector.broadcast %cst_74 : f32 to vector<64x1xf32>
    %190 = arith.mulf %185, %189 : vector<64x1xf32>
    %191 = vector.broadcast %190 : vector<64x1xf32> to vector<64x32xf32>
    %192 = arith.mulf %179, %191 : vector<64x32xf32>
    %193 = vector.shape_cast %188 : vector<64x1xi1> to vector<64x1xi1>
    %194 = vector.broadcast %193 : vector<64x1xi1> to vector<64x32xi1>
    %195 = arith.select %194, %192, %179 : vector<64x32xi1>, vector<64x32xf32>
    %196 = arith.mulf %195, %195 : vector<64x32xf32>
    %cst_75 = arith.constant 1.000000e+00 : f32
    %197 = vector.broadcast %cst_75 : f32 to vector<32x1xf32>
    %cst_76 = arith.constant dense<0.000000e+00> : vector<64x1xf32>
    %198 = tpu.matmul %196, %197, %cst_76 {dimension_numbers = #tpu.dot_dimension_numbers<[1], [0], [0], [1], [0, 0, 1, 1], [], []>} : vector<64x32xf32>, vector<32x1xf32>, vector<64x1xf32> -> vector<64x1xf32>
    %cst_77 = arith.constant 1.000000e-30 : f32
    %199 = vector.broadcast %cst_77 : f32 to vector<64x1xf32>
    %200 = arith.maximumf %198, %199 : vector<64x1xf32>
    %201 = math.rsqrt %200 : vector<64x1xf32>
    %202 = arith.mulf %198, %201 : vector<64x1xf32>
    %cst_78 = arith.constant 1.000000e+00 : f32
    %203 = vector.broadcast %cst_78 : f32 to vector<64x1xf32>
    %204 = arith.mulf %203, %202 : vector<64x1xf32>
    %cst_79 = arith.constant -0.99999988 : f32
    %cst_80 = arith.constant 0.99999988 : f32
    %205 = vector.broadcast %cst_79 : f32 to vector<64x1xf32>
    %206 = arith.maximumf %205, %204 : vector<64x1xf32>
    %207 = vector.broadcast %cst_80 : f32 to vector<64x1xf32>
    %208 = arith.minimumf %207, %206 : vector<64x1xf32>
    %209 = math.log1p %208 : vector<64x1xf32>
    %cst_81 = arith.constant 0.000000e+00 : f32
    %210 = vector.broadcast %cst_81 : f32 to vector<64x1xf32>
    %211 = arith.subf %210, %208 : vector<64x1xf32>
    %212 = math.log1p %211 : vector<64x1xf32>
    %213 = arith.subf %209, %212 : vector<64x1xf32>
    %cst_82 = arith.constant 5.000000e-01 : f32
    %214 = vector.broadcast %cst_82 : f32 to vector<64x1xf32>
    %215 = arith.mulf %214, %213 : vector<64x1xf32>
    %216 = arith.mulf %215, %201 : vector<64x1xf32>
    %cst_83 = arith.constant 1.000000e+00 : f32
    %217 = vector.broadcast %cst_83 : f32 to vector<64x1xf32>
    %218 = arith.mulf %216, %217 : vector<64x1xf32>
    %219 = vector.broadcast %218 : vector<64x1xf32> to vector<64x32xf32>
    %220 = arith.mulf %195, %219 : vector<64x32xf32>
    %c0_84 = arith.constant 0 : index
    %c0_85 = arith.constant 0 : index
    %221 = vector.load %arg7[%c0_84, %c0_85] : memref<32x2xf32, #tpu.memory_space<vmem>>, vector<32x2xf32>
    %c0_86 = arith.constant 0 : index
    %c0_87 = arith.constant 0 : index
    %222 = vector.load %arg8[%c0_86, %c0_87] : memref<2x32xf32, #tpu.memory_space<vmem>>, vector<2x32xf32>
    %c0_88 = arith.constant 0 : index
    %c0_89 = arith.constant 0 : index
    %223 = vector.load %arg9[%c0_88, %c0_89] : memref<2x32xf32, #tpu.memory_space<vmem>>, vector<2x32xf32>
    %cst_90 = arith.constant dense<0.000000e+00> : vector<64x2xf32>
    %224 = tpu.matmul %220, %221, %cst_90 {dimension_numbers = #tpu.dot_dimension_numbers<[1], [0], [0], [1], [0, 0, 1, 1], [], []>} : vector<64x32xf32>, vector<32x2xf32>, vector<64x2xf32> -> vector<64x2xf32>
    %cst_91 = arith.constant dense<0.000000e+00> : vector<2x64xf32>
    %225 = tpu.matmul %222, %220, %cst_91 {dimension_numbers = #tpu.dot_dimension_numbers<[1], [1], [0], [0], [0, 0, 1, 0], [], []>} : vector<2x32xf32>, vector<64x32xf32>, vector<2x64xf32> -> vector<2x64xf32>
    %cst_92 = arith.constant dense<0xFF800000> : vector<2xf32>
    %226 = vector.multi_reduction <maximumf>, %225, %cst_92 [1] : vector<2x64xf32> to vector<2xf32>
    %227 = vector.shape_cast %226 : vector<2xf32> to vector<2x1xf32>
    %cst_93 = arith.constant dense<0xFF800000> : vector<1xf32>
    %228 = vector.multi_reduction <maximumf>, %227, %cst_93 [0] : vector<2x1xf32> to vector<1xf32>
    %229 = vector.shape_cast %228 : vector<1xf32> to vector<1x1xf32>
    %cst_94 = arith.constant 0.000000e+00 : f32
    %230 = vector.broadcast %cst_94 : f32 to vector<64x32xf32>
    %cst_95 = arith.constant 0.000000e+00 : f32
    %231 = vector.broadcast %cst_95 : f32 to vector<64x32xf32>
    %232 = vector.extract_strided_slice %224 {offsets = [0, 0], sizes = [64, 1], strides = [1, 1]} : vector<64x2xf32> to vector<64x1xf32>
    %233 = vector.broadcast %229 : vector<1x1xf32> to vector<64x1xf32>
    %234 = arith.addf %232, %233 : vector<64x1xf32>
    %cst_96 = arith.constant 0.000000e+00 : f32
    %235 = vector.broadcast %cst_96 : f32 to vector<64x1xf32>
    %236 = arith.cmpf oge, %234, %235 : vector<64x1xf32>
    %cst_97 = arith.constant 2.000000e-01 : f32
    %237 = vector.broadcast %cst_97 : f32 to vector<64x1xf32>
    %238 = arith.mulf %237, %234 : vector<64x1xf32>
    %239 = arith.select %236, %234, %238 : vector<64x1xi1>, vector<64x1xf32>
    %240 = vector.extract_strided_slice %225 {offsets = [0, 0], sizes = [1, 64], strides = [1, 1]} : vector<2x64xf32> to vector<1x64xf32>
    %241 = vector.broadcast %232 : vector<64x1xf32> to vector<64x64xf32>
    %242 = vector.broadcast %240 : vector<1x64xf32> to vector<64x64xf32>
    %243 = arith.addf %241, %242 : vector<64x64xf32>
    %cst_98 = arith.constant 0.000000e+00 : f32
    %244 = vector.broadcast %cst_98 : f32 to vector<64x64xf32>
    %245 = arith.cmpf oge, %243, %244 : vector<64x64xf32>
    %cst_99 = arith.constant 2.000000e-01 : f32
    %246 = vector.broadcast %cst_99 : f32 to vector<64x64xf32>
    %247 = arith.mulf %246, %243 : vector<64x64xf32>
    %248 = arith.select %245, %243, %247 : vector<64x64xi1>, vector<64x64xf32>
    %249 = arith.addf %248, %0 : vector<64x64xf32>
    %250 = vector.broadcast %239 : vector<64x1xf32> to vector<64x64xf32>
    %251 = arith.subf %249, %250 : vector<64x64xf32>
    %252 = math.exp %251 : vector<64x64xf32>
    %cst_100 = arith.constant dense<0.000000e+00> : vector<64x1xf32>
    %253 = tpu.matmul %252, %1, %cst_100 {dimension_numbers = #tpu.dot_dimension_numbers<[1], [0], [0], [1], [0, 0, 1, 1], [], []>} : vector<64x64xf32>, vector<64x1xf32>, vector<64x1xf32> -> vector<64x1xf32>
    %254 = vector.extract_strided_slice %223 {offsets = [0, 0], sizes = [1, 32], strides = [1, 1]} : vector<2x32xf32> to vector<1x32xf32>
    %255 = vector.broadcast %254 : vector<1x32xf32> to vector<64x32xf32>
    %256 = arith.mulf %220, %255 : vector<64x32xf32>
    %cst_101 = arith.constant dense<0.000000e+00> : vector<64x32xf32>
    %257 = tpu.matmul %252, %256, %cst_101 {dimension_numbers = #tpu.dot_dimension_numbers<[1], [0], [0], [1], [0, 0, 1, 1], [], []>} : vector<64x64xf32>, vector<64x32xf32>, vector<64x32xf32> -> vector<64x32xf32>
    %258 = arith.addf %230, %257 : vector<64x32xf32>
    %259 = tpu.reciprocal %253 {approx = true} : vector<64x1xf32> -> vector<64x1xf32>
    %260 = vector.broadcast %259 : vector<64x1xf32> to vector<64x32xf32>
    %261 = vector.broadcast %254 : vector<1x32xf32> to vector<64x32xf32>
    %262 = arith.mulf %260, %261 : vector<64x32xf32>
    %263 = arith.addf %231, %262 : vector<64x32xf32>
    %264 = vector.extract_strided_slice %224 {offsets = [0, 1], sizes = [64, 1], strides = [1, 1]} : vector<64x2xf32> to vector<64x1xf32>
    %265 = vector.broadcast %229 : vector<1x1xf32> to vector<64x1xf32>
    %266 = arith.addf %264, %265 : vector<64x1xf32>
    %cst_102 = arith.constant 0.000000e+00 : f32
    %267 = vector.broadcast %cst_102 : f32 to vector<64x1xf32>
    %268 = arith.cmpf oge, %266, %267 : vector<64x1xf32>
    %cst_103 = arith.constant 2.000000e-01 : f32
    %269 = vector.broadcast %cst_103 : f32 to vector<64x1xf32>
    %270 = arith.mulf %269, %266 : vector<64x1xf32>
    %271 = arith.select %268, %266, %270 : vector<64x1xi1>, vector<64x1xf32>
    %272 = vector.extract_strided_slice %225 {offsets = [1, 0], sizes = [1, 64], strides = [1, 1]} : vector<2x64xf32> to vector<1x64xf32>
    %273 = vector.broadcast %264 : vector<64x1xf32> to vector<64x64xf32>
    %274 = vector.broadcast %272 : vector<1x64xf32> to vector<64x64xf32>
    %275 = arith.addf %273, %274 : vector<64x64xf32>
    %cst_104 = arith.constant 0.000000e+00 : f32
    %276 = vector.broadcast %cst_104 : f32 to vector<64x64xf32>
    %277 = arith.cmpf oge, %275, %276 : vector<64x64xf32>
    %cst_105 = arith.constant 2.000000e-01 : f32
    %278 = vector.broadcast %cst_105 : f32 to vector<64x64xf32>
    %279 = arith.mulf %278, %275 : vector<64x64xf32>
    %280 = arith.select %277, %275, %279 : vector<64x64xi1>, vector<64x64xf32>
    %281 = arith.addf %280, %0 : vector<64x64xf32>
    %282 = vector.broadcast %271 : vector<64x1xf32> to vector<64x64xf32>
    %283 = arith.subf %281, %282 : vector<64x64xf32>
    %284 = math.exp %283 : vector<64x64xf32>
    %cst_106 = arith.constant dense<0.000000e+00> : vector<64x1xf32>
    %285 = tpu.matmul %284, %1, %cst_106 {dimension_numbers = #tpu.dot_dimension_numbers<[1], [0], [0], [1], [0, 0, 1, 1], [], []>} : vector<64x64xf32>, vector<64x1xf32>, vector<64x1xf32> -> vector<64x1xf32>
    %286 = vector.extract_strided_slice %223 {offsets = [1, 0], sizes = [1, 32], strides = [1, 1]} : vector<2x32xf32> to vector<1x32xf32>
    %287 = vector.broadcast %286 : vector<1x32xf32> to vector<64x32xf32>
    %288 = arith.mulf %220, %287 : vector<64x32xf32>
    %cst_107 = arith.constant dense<0.000000e+00> : vector<64x32xf32>
    %289 = tpu.matmul %284, %288, %cst_107 {dimension_numbers = #tpu.dot_dimension_numbers<[1], [0], [0], [1], [0, 0, 1, 1], [], []>} : vector<64x64xf32>, vector<64x32xf32>, vector<64x32xf32> -> vector<64x32xf32>
    %290 = arith.addf %258, %289 : vector<64x32xf32>
    %291 = tpu.reciprocal %285 {approx = true} : vector<64x1xf32> -> vector<64x1xf32>
    %292 = vector.broadcast %291 : vector<64x1xf32> to vector<64x32xf32>
    %293 = vector.broadcast %286 : vector<1x32xf32> to vector<64x32xf32>
    %294 = arith.mulf %292, %293 : vector<64x32xf32>
    %295 = arith.addf %263, %294 : vector<64x32xf32>
    %296 = arith.mulf %290, %295 : vector<64x32xf32>
    %297 = arith.mulf %296, %296 : vector<64x32xf32>
    %cst_108 = arith.constant 1.000000e+00 : f32
    %298 = vector.broadcast %cst_108 : f32 to vector<32x1xf32>
    %cst_109 = arith.constant dense<0.000000e+00> : vector<64x1xf32>
    %299 = tpu.matmul %297, %298, %cst_109 {dimension_numbers = #tpu.dot_dimension_numbers<[1], [0], [0], [1], [0, 0, 1, 1], [], []>} : vector<64x32xf32>, vector<32x1xf32>, vector<64x1xf32> -> vector<64x1xf32>
    %cst_110 = arith.constant 1.000000e-30 : f32
    %300 = vector.broadcast %cst_110 : f32 to vector<64x1xf32>
    %301 = arith.maximumf %299, %300 : vector<64x1xf32>
    %302 = math.rsqrt %301 : vector<64x1xf32>
    %303 = arith.mulf %299, %302 : vector<64x1xf32>
    %cst_111 = arith.constant 1.000000e+00 : f32
    %304 = vector.broadcast %cst_111 : f32 to vector<64x1xf32>
    %305 = arith.mulf %304, %303 : vector<64x1xf32>
    %306 = math.tanh %305 : vector<64x1xf32>
    %307 = arith.mulf %306, %302 : vector<64x1xf32>
    %cst_112 = arith.constant 1.000000e+00 : f32
    %308 = vector.broadcast %cst_112 : f32 to vector<64x1xf32>
    %309 = arith.mulf %307, %308 : vector<64x1xf32>
    %310 = vector.broadcast %309 : vector<64x1xf32> to vector<64x32xf32>
    %311 = arith.mulf %296, %310 : vector<64x32xf32>
    %cst_113 = arith.constant 1.000000e+00 : f32
    %312 = vector.broadcast %cst_113 : f32 to vector<64x1xf32>
    %313 = arith.mulf %306, %312 : vector<64x1xf32>
    %cst_114 = arith.constant 1.000000e-15 : f32
    %314 = vector.broadcast %cst_114 : f32 to vector<64x1xf32>
    %315 = arith.maximumf %313, %314 : vector<64x1xf32>
    %cst_115 = arith.constant 0.995999991 : f32
    %316 = vector.broadcast %cst_115 : f32 to vector<64x1xf32>
    %317 = arith.cmpf ogt, %315, %316 : vector<64x1xf32>
    %cst_116 = arith.constant 0.995999991 : f32
    %318 = vector.broadcast %cst_116 : f32 to vector<64x1xf32>
    %319 = arith.divf %318, %315 : vector<64x1xf32>
    %320 = vector.broadcast %319 : vector<64x1xf32> to vector<64x32xf32>
    %321 = arith.mulf %311, %320 : vector<64x32xf32>
    %322 = vector.shape_cast %317 : vector<64x1xi1> to vector<64x1xi1>
    %323 = vector.broadcast %322 : vector<64x1xi1> to vector<64x32xi1>
    %324 = arith.select %323, %321, %311 : vector<64x32xi1>, vector<64x32xf32>
    %325 = arith.mulf %324, %324 : vector<64x32xf32>
    %cst_117 = arith.constant 1.000000e+00 : f32
    %326 = vector.broadcast %cst_117 : f32 to vector<32x1xf32>
    %cst_118 = arith.constant dense<0.000000e+00> : vector<64x1xf32>
    %327 = tpu.matmul %325, %326, %cst_118 {dimension_numbers = #tpu.dot_dimension_numbers<[1], [0], [0], [1], [0, 0, 1, 1], [], []>} : vector<64x32xf32>, vector<32x1xf32>, vector<64x1xf32> -> vector<64x1xf32>
    %cst_119 = arith.constant 1.000000e-30 : f32
    %328 = vector.broadcast %cst_119 : f32 to vector<64x1xf32>
    %329 = arith.maximumf %327, %328 : vector<64x1xf32>
    %330 = math.rsqrt %329 : vector<64x1xf32>
    %331 = arith.mulf %327, %330 : vector<64x1xf32>
    %cst_120 = arith.constant 1.000000e+00 : f32
    %332 = vector.broadcast %cst_120 : f32 to vector<64x1xf32>
    %333 = arith.mulf %332, %331 : vector<64x1xf32>
    %cst_121 = arith.constant -0.99999988 : f32
    %cst_122 = arith.constant 0.99999988 : f32
    %334 = vector.broadcast %cst_121 : f32 to vector<64x1xf32>
    %335 = arith.maximumf %334, %333 : vector<64x1xf32>
    %336 = vector.broadcast %cst_122 : f32 to vector<64x1xf32>
    %337 = arith.minimumf %336, %335 : vector<64x1xf32>
    %338 = math.log1p %337 : vector<64x1xf32>
    %cst_123 = arith.constant 0.000000e+00 : f32
    %339 = vector.broadcast %cst_123 : f32 to vector<64x1xf32>
    %340 = arith.subf %339, %337 : vector<64x1xf32>
    %341 = math.log1p %340 : vector<64x1xf32>
    %342 = arith.subf %338, %341 : vector<64x1xf32>
    %cst_124 = arith.constant 5.000000e-01 : f32
    %343 = vector.broadcast %cst_124 : f32 to vector<64x1xf32>
    %344 = arith.mulf %343, %342 : vector<64x1xf32>
    %345 = arith.mulf %344, %330 : vector<64x1xf32>
    %cst_125 = arith.constant 1.000000e+00 : f32
    %346 = vector.broadcast %cst_125 : f32 to vector<64x1xf32>
    %347 = arith.mulf %345, %346 : vector<64x1xf32>
    %348 = vector.broadcast %347 : vector<64x1xf32> to vector<64x32xf32>
    %349 = arith.mulf %324, %348 : vector<64x32xf32>
    %cst_126 = arith.constant 0.000000e+00 : f32
    %350 = vector.broadcast %cst_126 : f32 to vector<64x32xf32>
    %351 = arith.cmpf oge, %349, %350 : vector<64x32xf32>
    %cst_127 = arith.constant 0.00999999977 : f32
    %352 = vector.broadcast %cst_127 : f32 to vector<64x32xf32>
    %353 = arith.mulf %352, %349 : vector<64x32xf32>
    %354 = arith.select %351, %349, %353 : vector<64x32xi1>, vector<64x32xf32>
    %355 = arith.mulf %354, %354 : vector<64x32xf32>
    %cst_128 = arith.constant 1.000000e+00 : f32
    %356 = vector.broadcast %cst_128 : f32 to vector<32x1xf32>
    %cst_129 = arith.constant dense<0.000000e+00> : vector<64x1xf32>
    %357 = tpu.matmul %355, %356, %cst_129 {dimension_numbers = #tpu.dot_dimension_numbers<[1], [0], [0], [1], [0, 0, 1, 1], [], []>} : vector<64x32xf32>, vector<32x1xf32>, vector<64x1xf32> -> vector<64x1xf32>
    %cst_130 = arith.constant 1.000000e-30 : f32
    %358 = vector.broadcast %cst_130 : f32 to vector<64x1xf32>
    %359 = arith.maximumf %357, %358 : vector<64x1xf32>
    %360 = math.rsqrt %359 : vector<64x1xf32>
    %361 = arith.mulf %357, %360 : vector<64x1xf32>
    %cst_131 = arith.constant 1.000000e+00 : f32
    %362 = vector.broadcast %cst_131 : f32 to vector<64x1xf32>
    %363 = arith.mulf %362, %361 : vector<64x1xf32>
    %364 = math.tanh %363 : vector<64x1xf32>
    %365 = arith.mulf %364, %360 : vector<64x1xf32>
    %cst_132 = arith.constant 1.000000e+00 : f32
    %366 = vector.broadcast %cst_132 : f32 to vector<64x1xf32>
    %367 = arith.mulf %365, %366 : vector<64x1xf32>
    %368 = vector.broadcast %367 : vector<64x1xf32> to vector<64x32xf32>
    %369 = arith.mulf %354, %368 : vector<64x32xf32>
    %cst_133 = arith.constant 1.000000e+00 : f32
    %370 = vector.broadcast %cst_133 : f32 to vector<64x1xf32>
    %371 = arith.mulf %364, %370 : vector<64x1xf32>
    %cst_134 = arith.constant 1.000000e-15 : f32
    %372 = vector.broadcast %cst_134 : f32 to vector<64x1xf32>
    %373 = arith.maximumf %371, %372 : vector<64x1xf32>
    %cst_135 = arith.constant 0.995999991 : f32
    %374 = vector.broadcast %cst_135 : f32 to vector<64x1xf32>
    %375 = arith.cmpf ogt, %373, %374 : vector<64x1xf32>
    %cst_136 = arith.constant 0.995999991 : f32
    %376 = vector.broadcast %cst_136 : f32 to vector<64x1xf32>
    %377 = arith.divf %376, %373 : vector<64x1xf32>
    %378 = vector.broadcast %377 : vector<64x1xf32> to vector<64x32xf32>
    %379 = arith.mulf %369, %378 : vector<64x32xf32>
    %380 = vector.shape_cast %375 : vector<64x1xi1> to vector<64x1xi1>
    %381 = vector.broadcast %380 : vector<64x1xi1> to vector<64x32xi1>
    %382 = arith.select %381, %379, %369 : vector<64x32xi1>, vector<64x32xf32>
    %c0_137 = arith.constant 0 : index
    %c0_138 = arith.constant 0 : index
    %383 = vector.load %arg10[%c0_137, %c0_138] : memref<32x32xf32, #tpu.memory_space<vmem>>, vector<32x32xf32>
    %c0_139 = arith.constant 0 : index
    %c0_140 = arith.constant 0 : index
    %384 = vector.load %arg11[%c0_139, %c0_140] : memref<1x32xf32, #tpu.memory_space<vmem>>, vector<1x32xf32>
    %385 = arith.mulf %382, %382 : vector<64x32xf32>
    %cst_141 = arith.constant 1.000000e+00 : f32
    %386 = vector.broadcast %cst_141 : f32 to vector<32x1xf32>
    %cst_142 = arith.constant dense<0.000000e+00> : vector<64x1xf32>
    %387 = tpu.matmul %385, %386, %cst_142 {dimension_numbers = #tpu.dot_dimension_numbers<[1], [0], [0], [1], [0, 0, 1, 1], [], []>} : vector<64x32xf32>, vector<32x1xf32>, vector<64x1xf32> -> vector<64x1xf32>
    %cst_143 = arith.constant 1.000000e-30 : f32
    %388 = vector.broadcast %cst_143 : f32 to vector<64x1xf32>
    %389 = arith.maximumf %387, %388 : vector<64x1xf32>
    %390 = math.rsqrt %389 : vector<64x1xf32>
    %391 = arith.mulf %387, %390 : vector<64x1xf32>
    %cst_144 = arith.constant 0.995999991 : f32
    %392 = vector.broadcast %cst_144 : f32 to vector<64x1xf32>
    %393 = arith.cmpf ogt, %391, %392 : vector<64x1xf32>
    %cst_145 = arith.constant 0.995999991 : f32
    %394 = vector.broadcast %cst_145 : f32 to vector<64x1xf32>
    %395 = arith.mulf %390, %394 : vector<64x1xf32>
    %396 = vector.broadcast %395 : vector<64x1xf32> to vector<64x32xf32>
    %397 = arith.mulf %382, %396 : vector<64x32xf32>
    %398 = vector.shape_cast %393 : vector<64x1xi1> to vector<64x1xi1>
    %399 = vector.broadcast %398 : vector<64x1xi1> to vector<64x32xi1>
    %400 = arith.select %399, %397, %382 : vector<64x32xi1>, vector<64x32xf32>
    %cst_146 = arith.constant 0.995999991 : f32
    %401 = vector.broadcast %cst_146 : f32 to vector<64x1xf32>
    %402 = arith.select %393, %401, %391 : vector<64x1xi1>, vector<64x1xf32>
    %cst_147 = arith.constant 1.00401604 : f32
    %403 = vector.broadcast %cst_147 : f32 to vector<64x1xf32>
    %404 = arith.select %393, %403, %390 : vector<64x1xi1>, vector<64x1xf32>
    %cst_148 = arith.constant dense<0.000000e+00> : vector<64x32xf32>
    %405 = tpu.matmul %400, %383, %cst_148 {dimension_numbers = #tpu.dot_dimension_numbers<[1], [0], [0], [1], [0, 0, 1, 1], [], []>} : vector<64x32xf32>, vector<32x32xf32>, vector<64x32xf32> -> vector<64x32xf32>
    %406 = arith.mulf %405, %405 : vector<64x32xf32>
    %cst_149 = arith.constant 1.000000e+00 : f32
    %407 = vector.broadcast %cst_149 : f32 to vector<32x1xf32>
    %cst_150 = arith.constant dense<0.000000e+00> : vector<64x1xf32>
    %408 = tpu.matmul %406, %407, %cst_150 {dimension_numbers = #tpu.dot_dimension_numbers<[1], [0], [0], [1], [0, 0, 1, 1], [], []>} : vector<64x32xf32>, vector<32x1xf32>, vector<64x1xf32> -> vector<64x1xf32>
    %cst_151 = arith.constant 1.000000e-30 : f32
    %409 = vector.broadcast %cst_151 : f32 to vector<64x1xf32>
    %410 = arith.maximumf %408, %409 : vector<64x1xf32>
    %411 = math.rsqrt %410 : vector<64x1xf32>
    %412 = arith.mulf %408, %411 : vector<64x1xf32>
    %413 = arith.mulf %412, %404 : vector<64x1xf32>
    %cst_152 = arith.constant 1.000000e+00 : f32
    %414 = vector.broadcast %cst_152 : f32 to vector<64x1xf32>
    %415 = arith.mulf %414, %402 : vector<64x1xf32>
    %cst_153 = arith.constant -0.99999988 : f32
    %cst_154 = arith.constant 0.99999988 : f32
    %416 = vector.broadcast %cst_153 : f32 to vector<64x1xf32>
    %417 = arith.maximumf %416, %415 : vector<64x1xf32>
    %418 = vector.broadcast %cst_154 : f32 to vector<64x1xf32>
    %419 = arith.minimumf %418, %417 : vector<64x1xf32>
    %420 = math.log1p %419 : vector<64x1xf32>
    %cst_155 = arith.constant 0.000000e+00 : f32
    %421 = vector.broadcast %cst_155 : f32 to vector<64x1xf32>
    %422 = arith.subf %421, %419 : vector<64x1xf32>
    %423 = math.log1p %422 : vector<64x1xf32>
    %424 = arith.subf %420, %423 : vector<64x1xf32>
    %cst_156 = arith.constant 5.000000e-01 : f32
    %425 = vector.broadcast %cst_156 : f32 to vector<64x1xf32>
    %426 = arith.mulf %425, %424 : vector<64x1xf32>
    %427 = arith.mulf %413, %426 : vector<64x1xf32>
    %428 = math.tanh %427 : vector<64x1xf32>
    %cst_157 = arith.constant 1.000000e+00 : f32
    %429 = vector.broadcast %cst_157 : f32 to vector<64x1xf32>
    %430 = arith.mulf %411, %429 : vector<64x1xf32>
    %431 = arith.mulf %428, %430 : vector<64x1xf32>
    %432 = vector.broadcast %431 : vector<64x1xf32> to vector<64x32xf32>
    %433 = arith.mulf %432, %405 : vector<64x32xf32>
    %cst_158 = arith.constant 0.000000e+00 : f32
    %434 = vector.broadcast %cst_158 : f32 to vector<64x1xf32>
    %435 = arith.cmpf ole, %408, %434 : vector<64x1xf32>
    %cst_159 = arith.constant 0.000000e+00 : f32
    %436 = vector.broadcast %cst_159 : f32 to vector<64x32xf32>
    %437 = vector.shape_cast %435 : vector<64x1xi1> to vector<64x1xi1>
    %438 = vector.broadcast %437 : vector<64x1xi1> to vector<64x32xi1>
    %439 = arith.select %438, %436, %433 : vector<64x32xi1>, vector<64x32xf32>
    %440 = arith.mulf %439, %439 : vector<64x32xf32>
    %cst_160 = arith.constant 1.000000e+00 : f32
    %441 = vector.broadcast %cst_160 : f32 to vector<32x1xf32>
    %cst_161 = arith.constant dense<0.000000e+00> : vector<64x1xf32>
    %442 = tpu.matmul %440, %441, %cst_161 {dimension_numbers = #tpu.dot_dimension_numbers<[1], [0], [0], [1], [0, 0, 1, 1], [], []>} : vector<64x32xf32>, vector<32x1xf32>, vector<64x1xf32> -> vector<64x1xf32>
    %cst_162 = arith.constant 1.000000e-30 : f32
    %443 = vector.broadcast %cst_162 : f32 to vector<64x1xf32>
    %444 = arith.maximumf %442, %443 : vector<64x1xf32>
    %445 = math.rsqrt %444 : vector<64x1xf32>
    %446 = arith.mulf %442, %445 : vector<64x1xf32>
    %cst_163 = arith.constant 0.995999991 : f32
    %447 = vector.broadcast %cst_163 : f32 to vector<64x1xf32>
    %448 = arith.cmpf ogt, %446, %447 : vector<64x1xf32>
    %cst_164 = arith.constant 0.995999991 : f32
    %449 = vector.broadcast %cst_164 : f32 to vector<64x1xf32>
    %450 = arith.mulf %445, %449 : vector<64x1xf32>
    %451 = vector.broadcast %450 : vector<64x1xf32> to vector<64x32xf32>
    %452 = arith.mulf %439, %451 : vector<64x32xf32>
    %453 = vector.shape_cast %448 : vector<64x1xi1> to vector<64x1xi1>
    %454 = vector.broadcast %453 : vector<64x1xi1> to vector<64x32xi1>
    %455 = arith.select %454, %452, %439 : vector<64x32xi1>, vector<64x32xf32>
    %456 = arith.mulf %384, %384 : vector<1x32xf32>
    %cst_165 = arith.constant 1.000000e+00 : f32
    %457 = vector.broadcast %cst_165 : f32 to vector<32x1xf32>
    %cst_166 = arith.constant dense<0.000000e+00> : vector<1x1xf32>
    %458 = tpu.matmul %456, %457, %cst_166 {dimension_numbers = #tpu.dot_dimension_numbers<[1], [0], [0], [1], [0, 0, 1, 1], [], []>} : vector<1x32xf32>, vector<32x1xf32>, vector<1x1xf32> -> vector<1x1xf32>
    %cst_167 = arith.constant 1.000000e-30 : f32
    %459 = vector.broadcast %cst_167 : f32 to vector<1x1xf32>
    %460 = arith.maximumf %458, %459 : vector<1x1xf32>
    %461 = math.rsqrt %460 : vector<1x1xf32>
    %462 = arith.mulf %458, %461 : vector<1x1xf32>
    %cst_168 = arith.constant 1.000000e+00 : f32
    %463 = vector.broadcast %cst_168 : f32 to vector<1x1xf32>
    %464 = arith.mulf %463, %462 : vector<1x1xf32>
    %465 = math.tanh %464 : vector<1x1xf32>
    %466 = arith.mulf %465, %461 : vector<1x1xf32>
    %cst_169 = arith.constant 1.000000e+00 : f32
    %467 = vector.broadcast %cst_169 : f32 to vector<1x1xf32>
    %468 = arith.mulf %466, %467 : vector<1x1xf32>
    %469 = vector.broadcast %468 : vector<1x1xf32> to vector<1x32xf32>
    %470 = arith.mulf %384, %469 : vector<1x32xf32>
    %cst_170 = arith.constant 1.000000e+00 : f32
    %471 = vector.broadcast %cst_170 : f32 to vector<1x1xf32>
    %472 = arith.mulf %465, %471 : vector<1x1xf32>
    %cst_171 = arith.constant 1.000000e-15 : f32
    %473 = vector.broadcast %cst_171 : f32 to vector<1x1xf32>
    %474 = arith.maximumf %472, %473 : vector<1x1xf32>
    %cst_172 = arith.constant 0.995999991 : f32
    %475 = vector.broadcast %cst_172 : f32 to vector<1x1xf32>
    %476 = arith.cmpf ogt, %474, %475 : vector<1x1xf32>
    %cst_173 = arith.constant 0.995999991 : f32
    %477 = vector.broadcast %cst_173 : f32 to vector<1x1xf32>
    %478 = arith.divf %477, %474 : vector<1x1xf32>
    %479 = vector.broadcast %478 : vector<1x1xf32> to vector<1x32xf32>
    %480 = arith.mulf %470, %479 : vector<1x32xf32>
    %481 = vector.shape_cast %476 : vector<1x1xi1> to vector<1x1xi1>
    %482 = vector.broadcast %481 : vector<1x1xi1> to vector<1x32xi1>
    %483 = arith.select %482, %480, %470 : vector<1x32xi1>, vector<1x32xf32>
    %484 = arith.mulf %455, %455 : vector<64x32xf32>
    %cst_174 = arith.constant 1.000000e+00 : f32
    %485 = vector.broadcast %cst_174 : f32 to vector<32x1xf32>
    %cst_175 = arith.constant dense<0.000000e+00> : vector<64x1xf32>
    %486 = tpu.matmul %484, %485, %cst_175 {dimension_numbers = #tpu.dot_dimension_numbers<[1], [0], [0], [1], [0, 0, 1, 1], [], []>} : vector<64x32xf32>, vector<32x1xf32>, vector<64x1xf32> -> vector<64x1xf32>
    %487 = arith.mulf %483, %483 : vector<1x32xf32>
    %cst_176 = arith.constant 1.000000e+00 : f32
    %488 = vector.broadcast %cst_176 : f32 to vector<32x1xf32>
    %cst_177 = arith.constant dense<0.000000e+00> : vector<1x1xf32>
    %489 = tpu.matmul %487, %488, %cst_177 {dimension_numbers = #tpu.dot_dimension_numbers<[1], [0], [0], [1], [0, 0, 1, 1], [], []>} : vector<1x32xf32>, vector<32x1xf32>, vector<1x1xf32> -> vector<1x1xf32>
    %490 = vector.broadcast %483 : vector<1x32xf32> to vector<64x32xf32>
    %491 = arith.mulf %455, %490 : vector<64x32xf32>
    %cst_178 = arith.constant 1.000000e+00 : f32
    %492 = vector.broadcast %cst_178 : f32 to vector<32x1xf32>
    %cst_179 = arith.constant dense<0.000000e+00> : vector<64x1xf32>
    %493 = tpu.matmul %491, %492, %cst_179 {dimension_numbers = #tpu.dot_dimension_numbers<[1], [0], [0], [1], [0, 0, 1, 1], [], []>} : vector<64x32xf32>, vector<32x1xf32>, vector<64x1xf32> -> vector<64x1xf32>
    %cst_180 = arith.constant 2.000000e+00 : f32
    %494 = vector.broadcast %cst_180 : f32 to vector<64x1xf32>
    %495 = arith.mulf %494, %493 : vector<64x1xf32>
    %cst_181 = arith.constant 1.000000e+00 : f32
    %496 = vector.broadcast %cst_181 : f32 to vector<64x1xf32>
    %497 = arith.addf %496, %495 : vector<64x1xf32>
    %cst_182 = arith.constant 1.000000e+00 : f32
    %498 = vector.broadcast %cst_182 : f32 to vector<1x1xf32>
    %499 = arith.mulf %498, %489 : vector<1x1xf32>
    %500 = vector.broadcast %499 : vector<1x1xf32> to vector<64x1xf32>
    %501 = arith.addf %497, %500 : vector<64x1xf32>
    %502 = vector.broadcast %501 : vector<64x1xf32> to vector<64x32xf32>
    %503 = arith.mulf %502, %455 : vector<64x32xf32>
    %cst_183 = arith.constant 1.000000e+00 : f32
    %504 = vector.broadcast %cst_183 : f32 to vector<64x1xf32>
    %505 = arith.mulf %504, %486 : vector<64x1xf32>
    %cst_184 = arith.constant 1.000000e+00 : f32
    %506 = vector.broadcast %cst_184 : f32 to vector<64x1xf32>
    %507 = arith.subf %506, %505 : vector<64x1xf32>
    %508 = vector.broadcast %507 : vector<64x1xf32> to vector<64x32xf32>
    %509 = vector.broadcast %483 : vector<1x32xf32> to vector<64x32xf32>
    %510 = arith.mulf %508, %509 : vector<64x32xf32>
    %511 = arith.addf %503, %510 : vector<64x32xf32>
    %cst_185 = arith.constant 2.000000e+00 : f32
    %512 = vector.broadcast %cst_185 : f32 to vector<64x1xf32>
    %513 = arith.mulf %512, %493 : vector<64x1xf32>
    %cst_186 = arith.constant 1.000000e+00 : f32
    %514 = vector.broadcast %cst_186 : f32 to vector<64x1xf32>
    %515 = arith.addf %514, %513 : vector<64x1xf32>
    %cst_187 = arith.constant 1.000000e+00 : f32
    %516 = vector.broadcast %cst_187 : f32 to vector<64x1xf32>
    %517 = arith.mulf %516, %486 : vector<64x1xf32>
    %518 = vector.broadcast %489 : vector<1x1xf32> to vector<64x1xf32>
    %519 = arith.mulf %517, %518 : vector<64x1xf32>
    %520 = arith.addf %515, %519 : vector<64x1xf32>
    %cst_188 = arith.constant 1.000000e-15 : f32
    %521 = vector.broadcast %cst_188 : f32 to vector<64x1xf32>
    %522 = arith.maximumf %520, %521 : vector<64x1xf32>
    %cst_189 = arith.constant 1.000000e+00 : f32
    %523 = vector.broadcast %cst_189 : f32 to vector<64x1xf32>
    %524 = arith.divf %523, %522 : vector<64x1xf32>
    %525 = vector.broadcast %524 : vector<64x1xf32> to vector<64x32xf32>
    %526 = arith.mulf %511, %525 : vector<64x32xf32>
    %527 = arith.mulf %526, %526 : vector<64x32xf32>
    %cst_190 = arith.constant 1.000000e+00 : f32
    %528 = vector.broadcast %cst_190 : f32 to vector<32x1xf32>
    %cst_191 = arith.constant dense<0.000000e+00> : vector<64x1xf32>
    %529 = tpu.matmul %527, %528, %cst_191 {dimension_numbers = #tpu.dot_dimension_numbers<[1], [0], [0], [1], [0, 0, 1, 1], [], []>} : vector<64x32xf32>, vector<32x1xf32>, vector<64x1xf32> -> vector<64x1xf32>
    %cst_192 = arith.constant 1.000000e-30 : f32
    %530 = vector.broadcast %cst_192 : f32 to vector<64x1xf32>
    %531 = arith.maximumf %529, %530 : vector<64x1xf32>
    %532 = math.rsqrt %531 : vector<64x1xf32>
    %533 = arith.mulf %529, %532 : vector<64x1xf32>
    %cst_193 = arith.constant 0.995999991 : f32
    %534 = vector.broadcast %cst_193 : f32 to vector<64x1xf32>
    %535 = arith.cmpf ogt, %533, %534 : vector<64x1xf32>
    %cst_194 = arith.constant 0.995999991 : f32
    %536 = vector.broadcast %cst_194 : f32 to vector<64x1xf32>
    %537 = arith.mulf %532, %536 : vector<64x1xf32>
    %538 = vector.broadcast %537 : vector<64x1xf32> to vector<64x32xf32>
    %539 = arith.mulf %526, %538 : vector<64x32xf32>
    %540 = vector.shape_cast %535 : vector<64x1xi1> to vector<64x1xi1>
    %541 = vector.broadcast %540 : vector<64x1xi1> to vector<64x32xi1>
    %542 = arith.select %541, %539, %526 : vector<64x32xi1>, vector<64x32xf32>
    %543 = arith.mulf %542, %542 : vector<64x32xf32>
    %cst_195 = arith.constant 1.000000e+00 : f32
    %544 = vector.broadcast %cst_195 : f32 to vector<32x1xf32>
    %cst_196 = arith.constant dense<0.000000e+00> : vector<64x1xf32>
    %545 = tpu.matmul %543, %544, %cst_196 {dimension_numbers = #tpu.dot_dimension_numbers<[1], [0], [0], [1], [0, 0, 1, 1], [], []>} : vector<64x32xf32>, vector<32x1xf32>, vector<64x1xf32> -> vector<64x1xf32>
    %cst_197 = arith.constant 1.000000e-30 : f32
    %546 = vector.broadcast %cst_197 : f32 to vector<64x1xf32>
    %547 = arith.maximumf %545, %546 : vector<64x1xf32>
    %548 = math.rsqrt %547 : vector<64x1xf32>
    %549 = arith.mulf %545, %548 : vector<64x1xf32>
    %cst_198 = arith.constant 1.000000e+00 : f32
    %550 = vector.broadcast %cst_198 : f32 to vector<64x1xf32>
    %551 = arith.mulf %550, %549 : vector<64x1xf32>
    %cst_199 = arith.constant -0.99999988 : f32
    %cst_200 = arith.constant 0.99999988 : f32
    %552 = vector.broadcast %cst_199 : f32 to vector<64x1xf32>
    %553 = arith.maximumf %552, %551 : vector<64x1xf32>
    %554 = vector.broadcast %cst_200 : f32 to vector<64x1xf32>
    %555 = arith.minimumf %554, %553 : vector<64x1xf32>
    %556 = math.log1p %555 : vector<64x1xf32>
    %cst_201 = arith.constant 0.000000e+00 : f32
    %557 = vector.broadcast %cst_201 : f32 to vector<64x1xf32>
    %558 = arith.subf %557, %555 : vector<64x1xf32>
    %559 = math.log1p %558 : vector<64x1xf32>
    %560 = arith.subf %556, %559 : vector<64x1xf32>
    %cst_202 = arith.constant 5.000000e-01 : f32
    %561 = vector.broadcast %cst_202 : f32 to vector<64x1xf32>
    %562 = arith.mulf %561, %560 : vector<64x1xf32>
    %563 = arith.mulf %562, %548 : vector<64x1xf32>
    %cst_203 = arith.constant 1.000000e+00 : f32
    %564 = vector.broadcast %cst_203 : f32 to vector<64x1xf32>
    %565 = arith.mulf %563, %564 : vector<64x1xf32>
    %566 = vector.broadcast %565 : vector<64x1xf32> to vector<64x32xf32>
    %567 = arith.mulf %542, %566 : vector<64x32xf32>
    %c0_204 = arith.constant 0 : index
    %c0_205 = arith.constant 0 : index
    %568 = vector.load %arg12[%c0_204, %c0_205] : memref<32x2xf32, #tpu.memory_space<vmem>>, vector<32x2xf32>
    %c0_206 = arith.constant 0 : index
    %c0_207 = arith.constant 0 : index
    %569 = vector.load %arg13[%c0_206, %c0_207] : memref<2x32xf32, #tpu.memory_space<vmem>>, vector<2x32xf32>
    %c0_208 = arith.constant 0 : index
    %c0_209 = arith.constant 0 : index
    %570 = vector.load %arg14[%c0_208, %c0_209] : memref<2x32xf32, #tpu.memory_space<vmem>>, vector<2x32xf32>
    %cst_210 = arith.constant dense<0.000000e+00> : vector<64x2xf32>
    %571 = tpu.matmul %567, %568, %cst_210 {dimension_numbers = #tpu.dot_dimension_numbers<[1], [0], [0], [1], [0, 0, 1, 1], [], []>} : vector<64x32xf32>, vector<32x2xf32>, vector<64x2xf32> -> vector<64x2xf32>
    %cst_211 = arith.constant dense<0.000000e+00> : vector<2x64xf32>
    %572 = tpu.matmul %569, %567, %cst_211 {dimension_numbers = #tpu.dot_dimension_numbers<[1], [1], [0], [0], [0, 0, 1, 0], [], []>} : vector<2x32xf32>, vector<64x32xf32>, vector<2x64xf32> -> vector<2x64xf32>
    %cst_212 = arith.constant dense<0xFF800000> : vector<2xf32>
    %573 = vector.multi_reduction <maximumf>, %572, %cst_212 [1] : vector<2x64xf32> to vector<2xf32>
    %574 = vector.shape_cast %573 : vector<2xf32> to vector<2x1xf32>
    %cst_213 = arith.constant dense<0xFF800000> : vector<1xf32>
    %575 = vector.multi_reduction <maximumf>, %574, %cst_213 [0] : vector<2x1xf32> to vector<1xf32>
    %576 = vector.shape_cast %575 : vector<1xf32> to vector<1x1xf32>
    %cst_214 = arith.constant 0.000000e+00 : f32
    %577 = vector.broadcast %cst_214 : f32 to vector<64x32xf32>
    %cst_215 = arith.constant 0.000000e+00 : f32
    %578 = vector.broadcast %cst_215 : f32 to vector<64x32xf32>
    %579 = vector.extract_strided_slice %571 {offsets = [0, 0], sizes = [64, 1], strides = [1, 1]} : vector<64x2xf32> to vector<64x1xf32>
    %580 = vector.broadcast %576 : vector<1x1xf32> to vector<64x1xf32>
    %581 = arith.addf %579, %580 : vector<64x1xf32>
    %cst_216 = arith.constant 0.000000e+00 : f32
    %582 = vector.broadcast %cst_216 : f32 to vector<64x1xf32>
    %583 = arith.cmpf oge, %581, %582 : vector<64x1xf32>
    %cst_217 = arith.constant 2.000000e-01 : f32
    %584 = vector.broadcast %cst_217 : f32 to vector<64x1xf32>
    %585 = arith.mulf %584, %581 : vector<64x1xf32>
    %586 = arith.select %583, %581, %585 : vector<64x1xi1>, vector<64x1xf32>
    %587 = vector.extract_strided_slice %572 {offsets = [0, 0], sizes = [1, 64], strides = [1, 1]} : vector<2x64xf32> to vector<1x64xf32>
    %588 = vector.broadcast %579 : vector<64x1xf32> to vector<64x64xf32>
    %589 = vector.broadcast %587 : vector<1x64xf32> to vector<64x64xf32>
    %590 = arith.addf %588, %589 : vector<64x64xf32>
    %cst_218 = arith.constant 0.000000e+00 : f32
    %591 = vector.broadcast %cst_218 : f32 to vector<64x64xf32>
    %592 = arith.cmpf oge, %590, %591 : vector<64x64xf32>
    %cst_219 = arith.constant 2.000000e-01 : f32
    %593 = vector.broadcast %cst_219 : f32 to vector<64x64xf32>
    %594 = arith.mulf %593, %590 : vector<64x64xf32>
    %595 = arith.select %592, %590, %594 : vector<64x64xi1>, vector<64x64xf32>
    %596 = arith.addf %595, %0 : vector<64x64xf32>
    %597 = vector.broadcast %586 : vector<64x1xf32> to vector<64x64xf32>
    %598 = arith.subf %596, %597 : vector<64x64xf32>
    %599 = math.exp %598 : vector<64x64xf32>
    %cst_220 = arith.constant dense<0.000000e+00> : vector<64x1xf32>
    %600 = tpu.matmul %599, %1, %cst_220 {dimension_numbers = #tpu.dot_dimension_numbers<[1], [0], [0], [1], [0, 0, 1, 1], [], []>} : vector<64x64xf32>, vector<64x1xf32>, vector<64x1xf32> -> vector<64x1xf32>
    %601 = vector.extract_strided_slice %570 {offsets = [0, 0], sizes = [1, 32], strides = [1, 1]} : vector<2x32xf32> to vector<1x32xf32>
    %602 = vector.broadcast %601 : vector<1x32xf32> to vector<64x32xf32>
    %603 = arith.mulf %567, %602 : vector<64x32xf32>
    %cst_221 = arith.constant dense<0.000000e+00> : vector<64x32xf32>
    %604 = tpu.matmul %599, %603, %cst_221 {dimension_numbers = #tpu.dot_dimension_numbers<[1], [0], [0], [1], [0, 0, 1, 1], [], []>} : vector<64x64xf32>, vector<64x32xf32>, vector<64x32xf32> -> vector<64x32xf32>
    %605 = arith.addf %577, %604 : vector<64x32xf32>
    %606 = tpu.reciprocal %600 {approx = true} : vector<64x1xf32> -> vector<64x1xf32>
    %607 = vector.broadcast %606 : vector<64x1xf32> to vector<64x32xf32>
    %608 = vector.broadcast %601 : vector<1x32xf32> to vector<64x32xf32>
    %609 = arith.mulf %607, %608 : vector<64x32xf32>
    %610 = arith.addf %578, %609 : vector<64x32xf32>
    %611 = vector.extract_strided_slice %571 {offsets = [0, 1], sizes = [64, 1], strides = [1, 1]} : vector<64x2xf32> to vector<64x1xf32>
    %612 = vector.broadcast %576 : vector<1x1xf32> to vector<64x1xf32>
    %613 = arith.addf %611, %612 : vector<64x1xf32>
    %cst_222 = arith.constant 0.000000e+00 : f32
    %614 = vector.broadcast %cst_222 : f32 to vector<64x1xf32>
    %615 = arith.cmpf oge, %613, %614 : vector<64x1xf32>
    %cst_223 = arith.constant 2.000000e-01 : f32
    %616 = vector.broadcast %cst_223 : f32 to vector<64x1xf32>
    %617 = arith.mulf %616, %613 : vector<64x1xf32>
    %618 = arith.select %615, %613, %617 : vector<64x1xi1>, vector<64x1xf32>
    %619 = vector.extract_strided_slice %572 {offsets = [1, 0], sizes = [1, 64], strides = [1, 1]} : vector<2x64xf32> to vector<1x64xf32>
    %620 = vector.broadcast %611 : vector<64x1xf32> to vector<64x64xf32>
    %621 = vector.broadcast %619 : vector<1x64xf32> to vector<64x64xf32>
    %622 = arith.addf %620, %621 : vector<64x64xf32>
    %cst_224 = arith.constant 0.000000e+00 : f32
    %623 = vector.broadcast %cst_224 : f32 to vector<64x64xf32>
    %624 = arith.cmpf oge, %622, %623 : vector<64x64xf32>
    %cst_225 = arith.constant 2.000000e-01 : f32
    %625 = vector.broadcast %cst_225 : f32 to vector<64x64xf32>
    %626 = arith.mulf %625, %622 : vector<64x64xf32>
    %627 = arith.select %624, %622, %626 : vector<64x64xi1>, vector<64x64xf32>
    %628 = arith.addf %627, %0 : vector<64x64xf32>
    %629 = vector.broadcast %618 : vector<64x1xf32> to vector<64x64xf32>
    %630 = arith.subf %628, %629 : vector<64x64xf32>
    %631 = math.exp %630 : vector<64x64xf32>
    %cst_226 = arith.constant dense<0.000000e+00> : vector<64x1xf32>
    %632 = tpu.matmul %631, %1, %cst_226 {dimension_numbers = #tpu.dot_dimension_numbers<[1], [0], [0], [1], [0, 0, 1, 1], [], []>} : vector<64x64xf32>, vector<64x1xf32>, vector<64x1xf32> -> vector<64x1xf32>
    %633 = vector.extract_strided_slice %570 {offsets = [1, 0], sizes = [1, 32], strides = [1, 1]} : vector<2x32xf32> to vector<1x32xf32>
    %634 = vector.broadcast %633 : vector<1x32xf32> to vector<64x32xf32>
    %635 = arith.mulf %567, %634 : vector<64x32xf32>
    %cst_227 = arith.constant dense<0.000000e+00> : vector<64x32xf32>
    %636 = tpu.matmul %631, %635, %cst_227 {dimension_numbers = #tpu.dot_dimension_numbers<[1], [0], [0], [1], [0, 0, 1, 1], [], []>} : vector<64x64xf32>, vector<64x32xf32>, vector<64x32xf32> -> vector<64x32xf32>
    %637 = arith.addf %605, %636 : vector<64x32xf32>
    %638 = tpu.reciprocal %632 {approx = true} : vector<64x1xf32> -> vector<64x1xf32>
    %639 = vector.broadcast %638 : vector<64x1xf32> to vector<64x32xf32>
    %640 = vector.broadcast %633 : vector<1x32xf32> to vector<64x32xf32>
    %641 = arith.mulf %639, %640 : vector<64x32xf32>
    %642 = arith.addf %610, %641 : vector<64x32xf32>
    %643 = arith.mulf %637, %642 : vector<64x32xf32>
    %c0_228 = arith.constant 0 : index
    %c0_229 = arith.constant 0 : index
    %644 = vector.load %arg15[%c0_228, %c0_229] : memref<32x16xf32, #tpu.memory_space<vmem>>, vector<32x16xf32>
    %cst_230 = arith.constant dense<0.000000e+00> : vector<64x16xf32>
    %645 = tpu.matmul %643, %644, %cst_230 {dimension_numbers = #tpu.dot_dimension_numbers<[1], [0], [0], [1], [0, 0, 1, 1], [], []>} : vector<64x32xf32>, vector<32x16xf32>, vector<64x16xf32> -> vector<64x16xf32>
    %646 = arith.mulf %645, %645 : vector<64x16xf32>
    %cst_231 = arith.constant 1.000000e+00 : f32
    %647 = vector.broadcast %cst_231 : f32 to vector<16x1xf32>
    %cst_232 = arith.constant dense<0.000000e+00> : vector<64x1xf32>
    %648 = tpu.matmul %646, %647, %cst_232 {dimension_numbers = #tpu.dot_dimension_numbers<[1], [0], [0], [1], [0, 0, 1, 1], [], []>} : vector<64x16xf32>, vector<16x1xf32>, vector<64x1xf32> -> vector<64x1xf32>
    %cst_233 = arith.constant 1.000000e-30 : f32
    %649 = vector.broadcast %cst_233 : f32 to vector<64x1xf32>
    %650 = arith.maximumf %648, %649 : vector<64x1xf32>
    %651 = math.rsqrt %650 : vector<64x1xf32>
    %652 = arith.mulf %648, %651 : vector<64x1xf32>
    %cst_234 = arith.constant 1.000000e+00 : f32
    %653 = vector.broadcast %cst_234 : f32 to vector<64x1xf32>
    %654 = arith.mulf %653, %652 : vector<64x1xf32>
    %655 = math.tanh %654 : vector<64x1xf32>
    %656 = arith.mulf %655, %651 : vector<64x1xf32>
    %cst_235 = arith.constant 1.000000e+00 : f32
    %657 = vector.broadcast %cst_235 : f32 to vector<64x1xf32>
    %658 = arith.mulf %656, %657 : vector<64x1xf32>
    %659 = vector.broadcast %658 : vector<64x1xf32> to vector<64x16xf32>
    %660 = arith.mulf %645, %659 : vector<64x16xf32>
    %cst_236 = arith.constant 1.000000e+00 : f32
    %661 = vector.broadcast %cst_236 : f32 to vector<64x1xf32>
    %662 = arith.mulf %655, %661 : vector<64x1xf32>
    %cst_237 = arith.constant 1.000000e-15 : f32
    %663 = vector.broadcast %cst_237 : f32 to vector<64x1xf32>
    %664 = arith.maximumf %662, %663 : vector<64x1xf32>
    %cst_238 = arith.constant 0.995999991 : f32
    %665 = vector.broadcast %cst_238 : f32 to vector<64x1xf32>
    %666 = arith.cmpf ogt, %664, %665 : vector<64x1xf32>
    %cst_239 = arith.constant 0.995999991 : f32
    %667 = vector.broadcast %cst_239 : f32 to vector<64x1xf32>
    %668 = arith.divf %667, %664 : vector<64x1xf32>
    %669 = vector.broadcast %668 : vector<64x1xf32> to vector<64x16xf32>
    %670 = arith.mulf %660, %669 : vector<64x16xf32>
    %671 = vector.shape_cast %666 : vector<64x1xi1> to vector<64x1xi1>
    %672 = vector.broadcast %671 : vector<64x1xi1> to vector<64x16xi1>
    %673 = arith.select %672, %670, %660 : vector<64x16xi1>, vector<64x16xf32>
    %674 = arith.mulf %673, %673 : vector<64x16xf32>
    %cst_240 = arith.constant 1.000000e+00 : f32
    %675 = vector.broadcast %cst_240 : f32 to vector<16x1xf32>
    %cst_241 = arith.constant dense<0.000000e+00> : vector<64x1xf32>
    %676 = tpu.matmul %674, %675, %cst_241 {dimension_numbers = #tpu.dot_dimension_numbers<[1], [0], [0], [1], [0, 0, 1, 1], [], []>} : vector<64x16xf32>, vector<16x1xf32>, vector<64x1xf32> -> vector<64x1xf32>
    %cst_242 = arith.constant 1.000000e-30 : f32
    %677 = vector.broadcast %cst_242 : f32 to vector<64x1xf32>
    %678 = arith.maximumf %676, %677 : vector<64x1xf32>
    %679 = math.rsqrt %678 : vector<64x1xf32>
    %680 = arith.mulf %676, %679 : vector<64x1xf32>
    %cst_243 = arith.constant 1.000000e+00 : f32
    %681 = vector.broadcast %cst_243 : f32 to vector<64x1xf32>
    %682 = arith.mulf %681, %680 : vector<64x1xf32>
    %cst_244 = arith.constant -0.99999988 : f32
    %cst_245 = arith.constant 0.99999988 : f32
    %683 = vector.broadcast %cst_244 : f32 to vector<64x1xf32>
    %684 = arith.maximumf %683, %682 : vector<64x1xf32>
    %685 = vector.broadcast %cst_245 : f32 to vector<64x1xf32>
    %686 = arith.minimumf %685, %684 : vector<64x1xf32>
    %687 = math.log1p %686 : vector<64x1xf32>
    %cst_246 = arith.constant 0.000000e+00 : f32
    %688 = vector.broadcast %cst_246 : f32 to vector<64x1xf32>
    %689 = arith.subf %688, %686 : vector<64x1xf32>
    %690 = math.log1p %689 : vector<64x1xf32>
    %691 = arith.subf %687, %690 : vector<64x1xf32>
    %cst_247 = arith.constant 5.000000e-01 : f32
    %692 = vector.broadcast %cst_247 : f32 to vector<64x1xf32>
    %693 = arith.mulf %692, %691 : vector<64x1xf32>
    %694 = arith.mulf %693, %679 : vector<64x1xf32>
    %cst_248 = arith.constant 1.000000e+00 : f32
    %695 = vector.broadcast %cst_248 : f32 to vector<64x1xf32>
    %696 = arith.mulf %694, %695 : vector<64x1xf32>
    %697 = vector.broadcast %696 : vector<64x1xf32> to vector<64x16xf32>
    %698 = arith.mulf %673, %697 : vector<64x16xf32>
    %cst_249 = arith.constant 0.000000e+00 : f32
    %699 = vector.broadcast %cst_249 : f32 to vector<64x16xf32>
    %700 = arith.cmpf oge, %698, %699 : vector<64x16xf32>
    %cst_250 = arith.constant 0.00999999977 : f32
    %701 = vector.broadcast %cst_250 : f32 to vector<64x16xf32>
    %702 = arith.mulf %701, %698 : vector<64x16xf32>
    %703 = arith.select %700, %698, %702 : vector<64x16xi1>, vector<64x16xf32>
    %704 = arith.mulf %703, %703 : vector<64x16xf32>
    %cst_251 = arith.constant 1.000000e+00 : f32
    %705 = vector.broadcast %cst_251 : f32 to vector<16x1xf32>
    %cst_252 = arith.constant dense<0.000000e+00> : vector<64x1xf32>
    %706 = tpu.matmul %704, %705, %cst_252 {dimension_numbers = #tpu.dot_dimension_numbers<[1], [0], [0], [1], [0, 0, 1, 1], [], []>} : vector<64x16xf32>, vector<16x1xf32>, vector<64x1xf32> -> vector<64x1xf32>
    %cst_253 = arith.constant 1.000000e-30 : f32
    %707 = vector.broadcast %cst_253 : f32 to vector<64x1xf32>
    %708 = arith.maximumf %706, %707 : vector<64x1xf32>
    %709 = math.rsqrt %708 : vector<64x1xf32>
    %710 = arith.mulf %706, %709 : vector<64x1xf32>
    %cst_254 = arith.constant 1.000000e+00 : f32
    %711 = vector.broadcast %cst_254 : f32 to vector<64x1xf32>
    %712 = arith.mulf %711, %710 : vector<64x1xf32>
    %713 = math.tanh %712 : vector<64x1xf32>
    %714 = arith.mulf %713, %709 : vector<64x1xf32>
    %cst_255 = arith.constant 1.000000e+00 : f32
    %715 = vector.broadcast %cst_255 : f32 to vector<64x1xf32>
    %716 = arith.mulf %714, %715 : vector<64x1xf32>
    %717 = vector.broadcast %716 : vector<64x1xf32> to vector<64x16xf32>
    %718 = arith.mulf %703, %717 : vector<64x16xf32>
    %cst_256 = arith.constant 1.000000e+00 : f32
    %719 = vector.broadcast %cst_256 : f32 to vector<64x1xf32>
    %720 = arith.mulf %713, %719 : vector<64x1xf32>
    %cst_257 = arith.constant 1.000000e-15 : f32
    %721 = vector.broadcast %cst_257 : f32 to vector<64x1xf32>
    %722 = arith.maximumf %720, %721 : vector<64x1xf32>
    %cst_258 = arith.constant 0.995999991 : f32
    %723 = vector.broadcast %cst_258 : f32 to vector<64x1xf32>
    %724 = arith.cmpf ogt, %722, %723 : vector<64x1xf32>
    %cst_259 = arith.constant 0.995999991 : f32
    %725 = vector.broadcast %cst_259 : f32 to vector<64x1xf32>
    %726 = arith.divf %725, %722 : vector<64x1xf32>
    %727 = vector.broadcast %726 : vector<64x1xf32> to vector<64x16xf32>
    %728 = arith.mulf %718, %727 : vector<64x16xf32>
    %729 = vector.shape_cast %724 : vector<64x1xi1> to vector<64x1xi1>
    %730 = vector.broadcast %729 : vector<64x1xi1> to vector<64x16xi1>
    %731 = arith.select %730, %728, %718 : vector<64x16xi1>, vector<64x16xf32>
    %732 = arith.mulf %731, %731 : vector<64x16xf32>
    %cst_260 = arith.constant 1.000000e+00 : f32
    %733 = vector.broadcast %cst_260 : f32 to vector<16x1xf32>
    %cst_261 = arith.constant dense<0.000000e+00> : vector<64x1xf32>
    %734 = tpu.matmul %732, %733, %cst_261 {dimension_numbers = #tpu.dot_dimension_numbers<[1], [0], [0], [1], [0, 0, 1, 1], [], []>} : vector<64x16xf32>, vector<16x1xf32>, vector<64x1xf32> -> vector<64x1xf32>
    %cst_262 = arith.constant 1.000000e-30 : f32
    %735 = vector.broadcast %cst_262 : f32 to vector<64x1xf32>
    %736 = arith.maximumf %734, %735 : vector<64x1xf32>
    %737 = math.rsqrt %736 : vector<64x1xf32>
    %738 = arith.mulf %734, %737 : vector<64x1xf32>
    %cst_263 = arith.constant 1.000000e+00 : f32
    %739 = vector.broadcast %cst_263 : f32 to vector<64x1xf32>
    %740 = arith.mulf %739, %738 : vector<64x1xf32>
    %cst_264 = arith.constant -0.99999988 : f32
    %cst_265 = arith.constant 0.99999988 : f32
    %741 = vector.broadcast %cst_264 : f32 to vector<64x1xf32>
    %742 = arith.maximumf %741, %740 : vector<64x1xf32>
    %743 = vector.broadcast %cst_265 : f32 to vector<64x1xf32>
    %744 = arith.minimumf %743, %742 : vector<64x1xf32>
    %745 = math.log1p %744 : vector<64x1xf32>
    %cst_266 = arith.constant 0.000000e+00 : f32
    %746 = vector.broadcast %cst_266 : f32 to vector<64x1xf32>
    %747 = arith.subf %746, %744 : vector<64x1xf32>
    %748 = math.log1p %747 : vector<64x1xf32>
    %749 = arith.subf %745, %748 : vector<64x1xf32>
    %cst_267 = arith.constant 5.000000e-01 : f32
    %750 = vector.broadcast %cst_267 : f32 to vector<64x1xf32>
    %751 = arith.mulf %750, %749 : vector<64x1xf32>
    %752 = arith.mulf %751, %737 : vector<64x1xf32>
    %cst_268 = arith.constant 1.000000e+00 : f32
    %753 = vector.broadcast %cst_268 : f32 to vector<64x1xf32>
    %754 = arith.mulf %752, %753 : vector<64x1xf32>
    %755 = vector.broadcast %754 : vector<64x1xf32> to vector<64x16xf32>
    %756 = arith.mulf %731, %755 : vector<64x16xf32>
    %c0_269 = arith.constant 0 : index
    %c0_270 = arith.constant 0 : index
    %757 = vector.load %arg16[%c0_269, %c0_270] : memref<64x16xf32, #tpu.memory_space<vmem>>, vector<64x16xf32>
    tpu.vector_store %arg16[%c0_269, %c0_270], %756 {strides = array<i32>} : memref<64x16xf32, #tpu.memory_space<vmem>>, vector<64x16xf32>,
    return
  }
  func.func @transform_0(%arg0: i32) -> (i32, i32) {
    %c0_i32 = arith.constant 0 : i32
    %c0_i32_0 = arith.constant 0 : i32
    %c0_i32_1 = arith.constant 0 : i32
    return %c0_i32, %c0_i32_0 : i32, i32
  }
  func.func @transform_1(%arg0: i32) -> (i32, i32) {
    %c0_i32 = arith.constant 0 : i32
    %c0_i32_0 = arith.constant 0 : i32
    %c0_i32_1 = arith.constant 0 : i32
    return %c0_i32, %c0_i32_0 : i32, i32
  }
  func.func @transform_2(%arg0: i32) -> (i32, i32) {
    %c0_i32 = arith.constant 0 : i32
    %c0_i32_0 = arith.constant 0 : i32
    %c0_i32_1 = arith.constant 0 : i32
    return %c0_i32, %c0_i32_0 : i32, i32
  }
  func.func @transform_3(%arg0: i32) -> (i32, i32) {
    %c0_i32 = arith.constant 0 : i32
    %c0_i32_0 = arith.constant 0 : i32
    %c0_i32_1 = arith.constant 0 : i32
    return %c0_i32, %c0_i32_0 : i32, i32
  }
  func.func @transform_4(%arg0: i32) -> (i32, i32) {
    %c0_i32 = arith.constant 0 : i32
    %c0_i32_0 = arith.constant 0 : i32
    %c0_i32_1 = arith.constant 0 : i32
    return %c0_i32, %c0_i32_0 : i32, i32
  }
  func.func @transform_5(%arg0: i32) -> (i32, i32) {
    %c0_i32 = arith.constant 0 : i32
    %c0_i32_0 = arith.constant 0 : i32
    %c0_i32_1 = arith.constant 0 : i32
    return %c0_i32, %c0_i32_0 : i32, i32
  }
  func.func @transform_6(%arg0: i32) -> (i32, i32) {
    %c0_i32 = arith.constant 0 : i32
    %c0_i32_0 = arith.constant 0 : i32
    %c0_i32_1 = arith.constant 0 : i32
    return %c0_i32, %c0_i32_0 : i32, i32
  }
  func.func @transform_7(%arg0: i32) -> (i32, i32) {
    %c0_i32 = arith.constant 0 : i32
    %c0_i32_0 = arith.constant 0 : i32
    %c0_i32_1 = arith.constant 0 : i32
    return %c0_i32, %c0_i32_0 : i32, i32
  }
  func.func @transform_8(%arg0: i32) -> (i32, i32) {
    %c0_i32 = arith.constant 0 : i32
    %c0_i32_0 = arith.constant 0 : i32
    %c0_i32_1 = arith.constant 0 : i32
    return %c0_i32, %c0_i32_0 : i32, i32
  }
  func.func @transform_9(%arg0: i32) -> (i32, i32) {
    %c0_i32 = arith.constant 0 : i32
    %c0_i32_0 = arith.constant 0 : i32
    %c0_i32_1 = arith.constant 0 : i32
    return %c0_i32, %c0_i32_0 : i32, i32
  }
  func.func @transform_10(%arg0: i32) -> (i32, i32) {
    %c0_i32 = arith.constant 0 : i32
    %c0_i32_0 = arith.constant 0 : i32
    %c0_i32_1 = arith.constant 0 : i32
    return %c0_i32, %c0_i32_0 : i32, i32
  }
  func.func @transform_11(%arg0: i32) -> (i32, i32) {
    %c0_i32 = arith.constant 0 : i32
    %c0_i32_0 = arith.constant 0 : i32
    %c0_i32_1 = arith.constant 0 : i32
    return %c0_i32, %c0_i32_0 : i32, i32
  }
  func.func @transform_12(%arg0: i32) -> (i32, i32) {
    %c0_i32 = arith.constant 0 : i32
    %c0_i32_0 = arith.constant 0 : i32
    %c0_i32_1 = arith.constant 0 : i32
    return %c0_i32, %c0_i32_0 : i32, i32
  }
  func.func @transform_13(%arg0: i32) -> (i32, i32) {
    %c0_i32 = arith.constant 0 : i32
    %c0_i32_0 = arith.constant 0 : i32
    %c0_i32_1 = arith.constant 0 : i32
    return %c0_i32, %c0_i32_0 : i32, i32
  }
  func.func @transform_14(%arg0: i32) -> (i32, i32) {
    %c0_i32 = arith.constant 0 : i32
    %c0_i32_0 = arith.constant 0 : i32
    %c0_i32_1 = arith.constant 0 : i32
    return %c0_i32, %c0_i32_0 : i32, i32
  }
  func.func @transform_15(%arg0: i32) -> (i32, i32) {
    %c0_i32 = arith.constant 0 : i32
    %c0_i32_0 = arith.constant 0 : i32
    %c0_i32_1 = arith.constant 0 : i32
    return %c0_i32, %c0_i32_0 : i32, i32
  }
}

</mosaic_0001>

<bundles_post_ra>
// kernel: tpu_custom_call.1
= control target key start
LH: loop header
LB: loop body
LE: loop exit
PB: predicated region body
PF: predicated region fallthrough
CT: control target
= control target key end

     0   :  { %vm77_vm0 = vcmask 261120   ;;  %v17399_v3 = vmov 1.0|1.0   ;;  %vm215_vm1 = vcmask 130048   ;;  %v17401_v40 = vmov 0   ;;  %s17379_s2 = inlined_call_operand.vmem [shape: f32[32,16], index: 2, kind: input, shape index: {}]   ;;  %s17380_s0 = inlined_call_operand.vmem [shape: f32[64,32], index: 0, kind: input, shape index: {}]   ;;  %s17381_s3 = inlined_call_operand.vmem [shape: f32[1,16], index: 3, kind: input, shape index: {}]   ;;  %s17382_s4 = inlined_call_operand.vmem [shape: f32[16,32], index: 4, kind: input, shape index: {}]   ;;  %s17383_s5 = inlined_call_operand.vmem [shape: f32[1,32], index: 5, kind: input, shape index: {}]   ;;  %s17384_s6 = inlined_call_operand.vmem [shape: f32[32,2], index: 6, kind: input, shape index: {}]   ;;  %s17385_s8 = inlined_call_operand.vmem [shape: f32[2,32], index: 8, kind: input, shape index: {}]   ;;  %s17386_s7 = inlined_call_operand.vmem [shape: f32[2,32], index: 7, kind: input, shape index: {}]   ;;  %s17387_s1 = inlined_call_operand.vmem [shape: f32[64,64], index: 1, kind: input, shape index: {}]   ;;  %s17388_s9 = inlined_call_operand.vmem [shape: f32[32,32], index: 9, kind: input, shape index: {}]   ;;  %s17389_s10 = inlined_call_operand.vmem [shape: f32[1,32], index: 10, kind: input, shape index: {}]   ;;  %s17390_s11 = inlined_call_operand.vmem [shape: f32[32,2], index: 11, kind: input, shape index: {}]   ;;  %s17391_s13 = inlined_call_operand.vmem [shape: f32[2,32], index: 13, kind: input, shape index: {}]   ;;  %s17392_s12 = inlined_call_operand.vmem [shape: f32[2,32], index: 12, kind: input, shape index: {}]   ;;  %s17393_s14 = inlined_call_operand.vmem [shape: f32[32,16], index: 14, kind: input, shape index: {}]   ;;  %s17394_s15 = inlined_call_operand.vmem [shape: f32[64,16], index: 15, kind: output, shape index: {}]  }
   0x1   :  { %v66_v0 = vld [vmem:[%s17379_s2] sm:$0xff]  ;;  %v67_v1 = vld [vmem:[%s17379_s2 + $0x8] sm:$0xff]  ;;  %v68_v2 = vld [vmem:[%s17379_s2 + $0x10] sm:$0xff]  ;;  %12707 = vmatprep.subr.bf16.mxu1 %v17399_v3  ;;  %12731 = vset.pattern.permute.xlu0 %v17401_v40 }
   0x2   :  { %v12443_v4 = vpack.c.bf16 %v67_v1, %v66_v0  ;;  %v69_v5 = vld [vmem:[%s17379_s2 + $0x18] sm:$0xff]  ;;  %v58_v6 = vld [vmem:[%s17380_s0] sm:$0xff]  ;;  %12708 = vmatpush3.bf16.msra.mxu1 %v17399_v3  ;;  %v59_v8 = vld [vmem:[%s17380_s0 + $0x8] sm:$0xff]  ;;  %12732 = vset.pattern.permute.xlu1 %v17401_v40 }
   0x3   :  { %v12447_v7 = vpack.c.bf16 %v69_v5, %v68_v2  ;;  %11613 = vmatprep.mubr.msk.f32.mxu0 %vm77_vm0, %v58_v6  ;;  %12453 = vmatprep.subr.bf16.mxu1 %v17399_v3  ;;  %v60_v9 = vld [vmem:[%s17380_s0 + $0x10] sm:$0xff]  ;;  %v61_v10 = vld [vmem:[%s17380_s0 + $0x18] sm:$0xff]  ;;  %v62_v11 = vld [vmem:[%s17380_s0 + $0x20] sm:$0xff] }
   0x4   :  { %12444 = vmatprep.subr.bf16.mxu0 %v12443_v4  ;;  %v63_v12 = vld [vmem:[%s17380_s0 + $0x28] sm:$0xff]  ;;  %v64_v13 = vld [vmem:[%s17380_s0 + $0x30] sm:$0xff]  ;;  %v65_v14 = vld [vmem:[%s17380_s0 + $0x38] sm:$0xff] }
   0x5   :  { %12446 = vmatpush3.bf16.msra.mxu0 %v12443_v4  ;;  %v10750_v15 = vld [vmem:[%s17381_s3] ss:$0 sm:$0xff] }
   0x6   :  { %12448 = vmatprep.subr.bf16.mxu0 %v12447_v7 }
   0x9   :  { %12450 = vmatpush3.bf16.msra.mxu0 %v12447_v7 }
   0xa   :  { %12451 = vmatprep.subr.bf16.mxu0 %v17399_v3 }
   0xc   :  { %11614 = vmatmul.mubr.msk.f32.vlgmr.msra.gmra.mrb[0].mxu0 %vm77_vm0, %v59_v8 }
   0xd   :  { %11616 = vmatprep.mubr.msk.f32.mxu0 %vm77_vm0, %v60_v9  ;;  %12452 = vmatpush3.bf16.msra.mxu0 %v17399_v3 }
  0x10   :  { %11617 = vmatmul.mubr.msk.f32.gmra.mrb[2].mxu0 %vm77_vm0, %v61_v10 }
  0x11   :  { %11619 = vmatprep.mubr.msk.f32.mxu0 %vm77_vm0, %v62_v11 }
  0x14   :  { %11620 = vmatmul.mubr.msk.f32.gmra.mrb[4].mxu0 %vm77_vm0, %v63_v12 }
  0x15   :  { %11622 = vmatprep.mubr.msk.f32.mxu0 %vm77_vm0, %v64_v13 }
  0x18   :  { %11623 = vmatmul.mubr.msk.f32.gmra.mrb[6].mxu0 %vm77_vm0, %v65_v14 }
  0xdf   :  { %v11615_v16 = vpop.f32.mrb[0].mxu0 }
  0xe0   :  { %v13771_v17 = vadd.f32 %v11615_v16, %v10750_v15  ;;  %v168_v18 = vpop.f32.mrb[1].mxu0 }
  0xe1   :  { %v13773_v19 = vadd.f32 %v10750_v15, %v168_v18 }
  0xe2   :  { %v208_v22 = vmul.f32 %v13771_v17, %v13771_v17 }
  0xe3   :  { %v207_v20 = vmul.f32 %v13773_v19, %v13773_v19  ;;  %v11618_v21 = vpop.f32.mrb[2].mxu0 }
  0xe4   :  { %v13779_v23 = vadd.f32 %v11618_v21, %v10750_v15  ;;  %v178_v24 = vpop.f32.mrb[3].mxu0 }
  0xe5   :  { %v13781_v25 = vadd.f32 %v10750_v15, %v178_v24  ;;  %11629 = vmatprep.mubr.msk.f32.mxu0 %vm215_vm1, %v207_v20 }
  0xe6   :  { %v210_v26 = vmul.f32 %v13779_v23, %v13779_v23  ;;  %11630 = vmatmul.mubr.msk.f32.vlgmr.msra.gmra.mrb[8].mxu0 %vm215_vm1, %v208_v22 }
  0xe7   :  { %v11621_v27 = vpop.f32.mrb[4].mxu0  ;;  %v209_v28 = vmul.f32 %v13781_v25, %v13781_v25 }
  0xe8   :  { %v13789_v29 = vadd.f32 %v11621_v27, %v10750_v15  ;;  %v188_v30 = vpop.f32.mrb[5].mxu0 }
  0xe9   :  { %v13791_v31 = vadd.f32 %v10750_v15, %v188_v30  ;;  %11632 = vmatprep.mubr.msk.f32.mxu1 %vm215_vm1, %v209_v28 }
  0xea   :  { %v212_v32 = vmul.f32 %v13789_v29, %v13789_v29  ;;  %11633 = vmatmul.mubr.msk.f32.vlgmr.msra.gmra.mrb[0].mxu1 %vm215_vm1, %v210_v26 }
  0xeb   :  { %v211_v33 = vmul.f32 %v13791_v31, %v13791_v31  ;;  %v11624_v34 = vpop.f32.mrb[6].mxu0  ;;  %12454 = vmatpush3.bf16.msra.mxu1 %v17399_v3 }
  0xec   :  { %v13800_v35 = vadd.f32 %v11624_v34, %v10750_v15  ;;  %v198_v36 = vpop.f32.mrb[7].mxu0  ;;  %12459 = vmatprep.subr.bf16.mxu1 %v17399_v3 }
  0xed   :  { %11635 = vmatprep.mubr.msk.f32.mxu1 %vm215_vm1, %v211_v33  ;;  %v13804_v37 = vadd.f32 %v10750_v15, %v198_v36 }
  0xee   :  { %11636 = vmatmul.mubr.msk.f32.gmra.mrb[2].mxu1 %vm215_vm1, %v212_v32  ;;  %v214_v38 = vmul.f32 %v13800_v35, %v13800_v35 }
  0xef   :  { %v213_v39 = vmul.f32 %v13804_v37, %v13804_v37 }
  0xf1   :  { %11638 = vmatprep.mubr.msk.f32.mxu1 %vm215_vm1, %v213_v39 }
  0xf2   :  { %11639 = vmatmul.mubr.msk.f32.gmra.mrb[4].mxu1 %vm215_vm1, %v214_v38 }
 0x1b9   :  { %v11631_v41 = vpop.f32.mrb[8].mxu0 }
 0x1ba   :  { %v346_v42 = vmax.f32 %v11631_v41, 1e-30  ;;  %v306_v43 = vpop.f32.mrb[9].mxu0 }
 0x1bb   :  { %v345_v44 = vmax.f32 %v306_v43, 1e-30 }
 0x1bc   :  { %12749 = vrsqrt.f32 %v346_v42 }
 0x1bd   :  { %12751 = vrsqrt.f32 %v345_v44  ;;  %v11634_v45 = vpop.f32.mrb[0].mxu1 }
 0x1be   :  { %v348_v46 = vmax.f32 %v11634_v45, 1e-30  ;;  %v316_v47 = vpop.f32.mrb[1].mxu1 }
 0x1bf   :  { %v347_v48 = vmax.f32 %v316_v47, 1e-30 }
 0x1c0   :  { %12753 = vrsqrt.f32 %v348_v46 }
 0x1c1   :  { %12755 = vrsqrt.f32 %v347_v48  ;;  %v11637_v49 = vpop.f32.mrb[2].mxu1 }
 0x1c2   :  { %v326_v50 = vpop.f32.mrb[3].mxu1  ;;  %v350_v51 = vmax.f32 %v11637_v49, 1e-30 }
 0x1c3   :  { %v349_v52 = vmax.f32 %v326_v50, 1e-30 }
 0x1c5   :  { %12757 = vrsqrt.f32 %v349_v52  ;;  %v11640_v53 = vpop.f32.mrb[4].mxu1 }
 0x1c6   :  { %v12750_v54 = vpop.eup %12749  ;;  %v336_v55 = vpop.f32.mrb[5].mxu1  ;;  %12759 = vrsqrt.f32 %v350_v51  ;;  %v352_v63 = vmax.f32 %v11640_v53, 1e-30 }
 0x1c7   :  { %v12752_v56 = vpop.eup %12751  ;;  %v362_v57 = vmul.f32 %v12750_v54, %v11631_v41  ;;  %v351_v59 = vmax.f32 %v336_v55, 1e-30 }
 0x1c8   :  { %v361_v58 = vmul.f32 %v12752_v56, %v306_v43 }
 0x1c9   :  { %12761 = vtanh.f32 %v362_v57 }
 0x1ca   :  { %v12754_v60 = vpop.eup %12753  ;;  %12763 = vtanh.f32 %v361_v58 }
 0x1cb   :  { %v12756_v61 = vpop.eup %12755  ;;  %v364_v62 = vmul.f32 %v12754_v60, %v11634_v45  ;;  %12765 = vrsqrt.f32 %v351_v59 }
 0x1cc   :  { %v363_v0 = vmul.f32 %v12756_v61, %v316_v47 }
 0x1cd   :  { %12767 = vtanh.f32 %v364_v62 }
 0x1ce   :  { %12769 = vtanh.f32 %v363_v0 }
 0x1cf   :  { %v12758_v1 = vpop.eup %12757  ;;  %12771 = vrsqrt.f32 %v352_v63 }
 0x1d0   :  { %v12760_v2 = vpop.eup %12759  ;;  %v365_v4 = vmul.f32 %v12758_v1, %v326_v50 }
 0x1d1   :  { %v366_v7 = vmul.f32 %v12760_v2, %v11637_v49 }
 0x1d2   :  { %12773 = vtanh.f32 %v365_v4 }
 0x1d3   :  { %v12762_v5 = vpop.eup %12761 }
 0x1d4   :  { %v12764_v6 = vpop.eup %12763  ;;  %v378_v8 = vmul.f32 %v12762_v5, %v12750_v54  ;;  %v434_v9 = vmax.f32 %v12762_v5, 1e-15 }
 0x1d5   :  { %v433_v10 = vmax.f32 %v12764_v6, 1e-15  ;;  %v13815_v11 = vpop.eup %12765  ;;  %v377_v15 = vmul.f32 %v12764_v6, %v12752_v56 }
 0x1d6   :  { %392 = vperm.xlu0 %12731, %v378_v8   ;;  %vm442_vm2 = vcmp.gt.f32.partialorder %v434_v9, 0.996  ;;  %12775 = vrcp.f32 %v434_v9  ;;  %v367_v20 = vmul.f32 %v13815_v11, %v336_v55 }
 0x1d7   :  { %v12768_v12 = vpop.eup %12767  ;;  %v514_v13 = vsel %vm442_vm2, 1, %v17401_v40  ;;  %12777 = vtanh.f32 %v366_v7  ;;  %vm441_vm3 = vcmp.gt.f32.partialorder %v433_v10, 0.996 }
 0x1d8   :  { %v12770_v14 = vpop.eup %12769  ;;  %525 = vperm.xlu1 %12732, %v514_v13   ;;  %v436_v16 = vmax.f32 %v12768_v12, 1e-15  ;;  %12779 = vrcp.f32 %v433_v10  ;;  %v380_v21 = vmul.f32 %v12768_v12, %v12754_v60  ;;  %v513_v26 = vsel %vm441_vm3, 1, %v17401_v40 }
 0x1d9   :  { %v13818_v18 = vpop.eup %12771  ;;  %v435_v22 = vmax.f32 %v12770_v14, 1e-15  ;;  %12781 = vtanh.f32 %v367_v20  ;;  %v379_v32 = vmul.f32 %v12770_v14, %v12756_v61 }
 0x1da   :  { %387 = vperm.xlu0 %12731, %v377_v15   ;;  %v368_v24 = vmul.f32 %v13818_v18, %v11640_v53  ;;  %vm444_vm4 = vcmp.gt.f32.partialorder %v436_v16, 0.996 }
 0x1db   :  { %v516_v28 = vsel %vm444_vm4, 1, %v17401_v40  ;;  %12783 = vrcp.f32 %v435_v22  ;;  %vm443_vm5 = vcmp.gt.f32.partialorder %v435_v22, 0.996 }
 0x1dc   :  { %402 = vperm.xlu1 %12732, %v380_v21   ;;  %v12774_v27 = vpop.eup %12773  ;;  %12785 = vtanh.f32 %v368_v24  ;;  %v515_v39 = vsel %vm443_vm5, 1, %v17401_v40 }
 0x1dd   :  { %12787 = vrcp.f32 %v436_v16  ;;  %v437_v38 = vmax.f32 %v12774_v27, 1e-15  ;;  %v381_v44 = vmul.f32 %v12774_v27, %v12758_v1 }
 0x1de   :  { %522 = vperm.xlu0 %12731, %v513_v26  }
 0x1df   :  { %12789 = vrcp.f32 %v437_v38  ;;  %vm445_vm6 = vcmp.gt.f32.partialorder %v437_v38, 0.996 }
 0x1e0   :  { %v12776_v30 = vpop.eup %12775  ;;  %531 = vperm.xlu1 %12732, %v516_v28   ;;  %v517_v54 = vsel %vm445_vm6, 1, %v17401_v40 }
 0x1e1   :  { %v452_v33 = vmul.f32 0.996, %v12776_v30  ;;  %v12778_v34 = vpop.eup %12777 }
 0x1e2   :  { %397 = vperm.xlu0 %12731, %v379_v32   ;;  %v12780_v36 = vpop.eup %12779  ;;  %v438_v41 = vmax.f32 %v12778_v34, 1e-15  ;;  %v382_v47 = vmul.f32 %v12778_v34, %v12760_v2 }
 0x1e3   :  { %v450_v42 = vmul.f32 0.996, %v12780_v36  ;;  %v12782_v43 = vpop.eup %12781 }
 0x1e4   :  { %472 = vperm.xlu1 %12732, %v452_v33   ;;  %12791 = vrcp.f32 %v438_v41  ;;  %v439_v49 = vmax.f32 %v12782_v43, 1e-15  ;;  %vm446_vm7 = vcmp.gt.f32.partialorder %v438_v41, 0.996  ;;  %v383_v59 = vmul.f32 %v12782_v43, %v13815_v11 }
 0x1e5   :  { %v12784_v45 = vpop.eup %12783  ;;  %v518_v56 = vsel %vm446_vm7, 1, %v17401_v40 }
 0x1e6   :  { %528 = vperm.xlu0 %12731, %v515_v39   ;;  %v12786_v46 = vpop.eup %12785  ;;  %v454_v50 = vmul.f32 0.996, %v12784_v45  ;;  %12793 = vrcp.f32 %v439_v49  ;;  %vm447_vm8 = vcmp.gt.f32.partialorder %v439_v49, 0.996 }
 0x1e7   :  { %v12788_v48 = vpop.eup %12787  ;;  %v440_v51 = vmax.f32 %v12786_v46, 1e-15  ;;  %v384_v61 = vmul.f32 %v12786_v46, %v13818_v18  ;;  %v519_v1 = vsel %vm447_vm8, 1, %v17401_v40 }
 0x1e8   :  { %467 = vperm.xlu1 %12732, %v450_v42   ;;  %v456_v52 = vmul.f32 0.996, %v12788_v48 }
 0x1e9   :  { %v12790_v53 = vpop.eup %12789  ;;  %12795 = vrcp.f32 %v440_v51  ;;  %vm448_vm9 = vcmp.gt.f32.partialorder %v440_v51, 0.996 }
 0x1ea   :  { %407 = vperm.xlu0 %12731, %v381_v44   ;;  %v458_v57 = vmul.f32 0.996, %v12790_v53  ;;  %v520_v2 = vsel %vm448_vm9, 1, %v17401_v40 }
 0x1ec   :  { %412 = vperm.xlu1 %12732, %v382_v47  }
 0x1ee   :  { %477 = vperm.xlu0 %12731, %v454_v50   ;;  %v12792_v55 = vpop.eup %12791 }
 0x1ef   :  { %v460_v58 = vmul.f32 0.996, %v12792_v55 }
 0x1f0   :  { %482 = vperm.xlu1 %12732, %v456_v52   ;;  %v12794_v60 = vpop.eup %12793 }
 0x1f1   :  { %v462_v63 = vmul.f32 0.996, %v12794_v60 }
 0x1f2   :  { %534 = vperm.xlu0 %12731, %v517_v54  }
 0x1f3   :  { %v12796_v62 = vpop.eup %12795 }
 0x1f4   :  { %537 = vperm.xlu1 %12732, %v518_v56   ;;  %v464_v0 = vmul.f32 0.996, %v12796_v62 }
 0x1f6   :  { %487 = vperm.xlu0 %12731, %v458_v57  }
 0x1f8   :  { %492 = vperm.xlu1 %12732, %v460_v58  }
 0x1fa   :  { %417 = vperm.xlu0 %12731, %v383_v59  }
 0x1fc   :  { %422 = vperm.xlu1 %12732, %v384_v61  }
 0x1fe   :  { %497 = vperm.xlu0 %12731, %v462_v63  }
 0x200   :  { %502 = vperm.xlu1 %12732, %v464_v0  }
 0x202   :  { %540 = vperm.xlu0 %12731, %v519_v1  }
 0x204   :  { %543 = vperm.xlu1 %12732, %v520_v2  }
 0x255   :  { %v393_v4 = vpop.permute.xlu0 %392 }
 0x256   :  { %v426_v11 = vmul.f32 %v393_v4, %v13771_v17 }
 0x257   :  { %v526_v5 = vpop.permute.xlu1 %525 }
 0x258   :  { %vm546_vm10 = vcmp.eq.s32.totalorder %v526_v5, 1 }
 0x259   :  { %v388_v6 = vpop.permute.xlu0 %387 }
 0x25a   :  { %v425_v15 = vmul.f32 %v388_v6, %v13773_v19 }
 0x25b   :  { %v403_v7 = vpop.permute.xlu1 %402 }
 0x25c   :  { %v428_v28 = vmul.f32 %v403_v7, %v13779_v23 }
 0x25d   :  { %v523_v8 = vpop.permute.xlu0 %522 }
 0x25e   :  { %vm545_vm11 = vcmp.eq.s32.totalorder %v523_v8, 1 }
 0x25f   :  { %v532_v9 = vpop.permute.xlu1 %531 }
 0x260   :  { %vm548_vm13 = vcmp.eq.s32.totalorder %v532_v9, 1 }
 0x261   :  { %v398_v10 = vpop.permute.xlu0 %397 }
 0x262   :  { %v427_v17 = vmul.f32 %v398_v10, %v13781_v25 }
 0x263   :  { %v473_v12 = vpop.permute.xlu1 %472 }
 0x264   :  { %v506_v13 = vmul.f32 %v473_v12, %v426_v11 }
 0x265   :  { %v529_v14 = vpop.permute.xlu0 %528 }
 0x266   :  { %v13833_v20 = vsel %vm546_vm10, %v506_v13, %v426_v11  ;;  %vm547_vm12 = vcmp.eq.s32.totalorder %v529_v14, 1 }
 0x267   :  { %v468_v16 = vpop.permute.xlu1 %467  ;;  %v565_v27 = vmul.f32 %v13833_v20, %v13833_v20 }
 0x268   :  { %v505_v18 = vmul.f32 %v468_v16, %v425_v15 }
 0x269   :  { %v408_v21 = vpop.permute.xlu0 %407 }
 0x26a   :  { %v13835_v22 = vsel %vm545_vm11, %v505_v18, %v425_v15  ;;  %v429_v41 = vmul.f32 %v408_v21, %v13791_v31 }
 0x26b   :  { %v413_v24 = vpop.permute.xlu1 %412  ;;  %v564_v26 = vmul.f32 %v13835_v22, %v13835_v22 }
 0x26c   :  { %v430_v43 = vmul.f32 %v413_v24, %v13789_v29 }
 0x26d   :  { %11645 = vmatprep.mubr.msk.f32.mxu1 %vm215_vm1, %v564_v26  ;;  %v478_v19 = vpop.permute.xlu0 %477 }
 0x26e   :  { %v507_v30 = vmul.f32 %v478_v19, %v427_v17  ;;  %11646 = vmatmul.mubr.msk.f32.vlgmr.msra.gmra.mrb[6].mxu1 %vm215_vm1, %v565_v27 }
 0x26f   :  { %v483_v32 = vpop.permute.xlu1 %482  ;;  %12460 = vmatpush3.bf16.msra.mxu1 %v17399_v3 }
 0x270   :  { %v13846_v33 = vsel %vm547_vm12, %v507_v30, %v427_v17  ;;  %v508_v34 = vmul.f32 %v483_v32, %v428_v28  ;;  %12461 = vmatprep.subr.bf16.mxu1 %v17399_v3 }
 0x271   :  { %v535_v25 = vpop.permute.xlu0 %534  ;;  %v566_v36 = vmul.f32 %v13846_v33, %v13846_v33 }
 0x272   :  { %v13851_v38 = vsel %vm548_vm13, %v508_v34, %v428_v28  ;;  %vm549_vm14 = vcmp.eq.s32.totalorder %v535_v25, 1  ;;  %v561_v34 = vld [vmem:[%s17382_s4] sm:$0xff]  ;;  %v562_v25 = vld [vmem:[%s17382_s4 + $0x8] sm:$0xff] }
 0x273   :  { %v538_v23 = vpop.permute.xlu1 %537  ;;  %11648 = vmatprep.mubr.msk.f32.mxu1 %vm215_vm1, %v566_v36  ;;  %v567_v39 = vmul.f32 %v13851_v38, %v13851_v38  ;;  %12462 = vmatpush3.bf16.msra.mxu1 %v17399_v3 }
 0x274   :  { %vm550_vm15 = vcmp.eq.s32.totalorder %v538_v23, 1 }
 0x275   :  { %11649 = vmatmul.mubr.msk.f32.gmra.mrb[8].mxu1 %vm215_vm1, %v567_v39  ;;  %v488_v42 = vpop.permute.xlu0 %487 }
 0x276   :  { %v509_v44 = vmul.f32 %v488_v42, %v429_v41 }
 0x277   :  { %v493_v45 = vpop.permute.xlu1 %492 }
 0x278   :  { %v13860_v46 = vsel %vm549_vm14, %v509_v44, %v429_v41  ;;  %v510_v47 = vmul.f32 %v493_v45, %v430_v43 }
 0x279   :  { %v418_v48 = vpop.permute.xlu0 %417  ;;  %v568_v49 = vmul.f32 %v13860_v46, %v13860_v46 }
 0x27a   :  { %v13864_v50 = vsel %vm550_vm15, %v510_v47, %v430_v43  ;;  %v431_v52 = vmul.f32 %v418_v48, %v13804_v37  ;;  %v12455_v43 = vpack.c.bf16 %v562_v25, %v561_v34 }
 0x27b   :  { %v423_v51 = vpop.permute.xlu1 %422  ;;  %11651 = vmatprep.mubr.msk.f32.mxu1 %vm215_vm1, %v568_v49  ;;  %v569_v31 = vmul.f32 %v13864_v50, %v13864_v50 }
 0x27c   :  { %v432_v54 = vmul.f32 %v423_v51, %v13800_v35  ;;  %12456 = vmatprep.subr.bf16.mxu0 %v12455_v43 }
 0x27d   :  { %11652 = vmatmul.mubr.msk.f32.gmra.mrb[10].mxu1 %vm215_vm1, %v569_v31  ;;  %v498_v29 = vpop.permute.xlu0 %497  ;;  %12458 = vmatpush3.bf16.msra.mxu0 %v12455_v43 }
 0x27e   :  { %v511_v55 = vmul.f32 %v498_v29, %v431_v52  ;;  %12463 = vmatprep.subr.bf16.mxu0 %v17399_v3 }
 0x27f   :  { %v503_v53 = vpop.permute.xlu1 %502 }
 0x280   :  { %v512_v57 = vmul.f32 %v503_v53, %v432_v54 }
 0x281   :  { %v541_v56 = vpop.permute.xlu0 %540 }
 0x282   :  { %vm551_vm2 = vcmp.eq.s32.totalorder %v541_v56, 1 }
 0x283   :  { %v13872_v58 = vsel %vm551_vm2, %v511_v55, %v431_v52  ;;  %v544_v59 = vpop.permute.xlu1 %543 }
 0x284   :  { %v570_v60 = vmul.f32 %v13872_v58, %v13872_v58  ;;  %vm552_vm3 = vcmp.eq.s32.totalorder %v544_v59, 1 }
 0x285   :  { %v13876_v61 = vsel %vm552_vm3, %v512_v57, %v432_v54 }
 0x286   :  { %v571_v62 = vmul.f32 %v13876_v61, %v13876_v61  ;;  %11654 = vmatprep.mubr.msk.f32.mxu1 %vm215_vm1, %v570_v60 }
 0x288   :  { %11655 = vmatmul.mubr.msk.f32.gmra.mrb[12].mxu1 %vm215_vm1, %v571_v62 }
 0x341   :  { %v11647_v35 = vpop.f32.mrb[6].mxu1 }
 0x342   :  { %v702_v37 = vmax.f32 %v11647_v35, 1e-30  ;;  %v662_v63 = vpop.f32.mrb[7].mxu1 }
 0x343   :  { %v701_v0 = vmax.f32 %v662_v63, 1e-30 }
 0x344   :  { %12797 = vrsqrt.f32 %v702_v37 }
 0x345   :  { %12799 = vrsqrt.f32 %v701_v0 }
 0x348   :  { %v11650_v1 = vpop.f32.mrb[8].mxu1 }
 0x349   :  { %v704_v2 = vmax.f32 %v11650_v1, 1e-30  ;;  %v672_v4 = vpop.f32.mrb[9].mxu1 }
 0x34a   :  { %v703_v5 = vmax.f32 %v672_v4, 1e-30 }
 0x34b   :  { %12801 = vrsqrt.f32 %v704_v2 }
 0x34c   :  { %12803 = vrsqrt.f32 %v703_v5 }
 0x34e   :  { %v12798_v6 = vpop.eup %12797 }
 0x34f   :  { %v12800_v7 = vpop.eup %12799  ;;  %v718_v8 = vmul.f32 %v12798_v6, %v11647_v35  ;;  %v734_v9 = vmul.f32 0.996, %v12798_v6 }
 0x350   :  { %v717_v10 = vmul.f32 %v12800_v7, %v662_v63  ;;  %v11653_v11 = vpop.f32.mrb[10].mxu1  ;;  %v733_v12 = vmul.f32 0.996, %v12800_v7 }
 0x351   :  { %vm726_vm4 = vcmp.gt.f32.partialorder %v718_v8, 0.996  ;;  %v706_v13 = vmax.f32 %v11653_v11, 1e-30  ;;  %748 = vperm.xlu1 %12732, %v734_v9   ;;  %v682_v14 = vpop.f32.mrb[11].mxu1 }
 0x352   :  { %v13882_v15 = vsel %vm726_vm4, 0.996, %v718_v8  ;;  %v13884_v16 = vsel %vm726_vm4, 1.004016, %v12798_v6  ;;  %vm725_vm5 = vcmp.gt.f32.partialorder %v717_v10, 0.996  ;;  %743 = vperm.xlu0 %12731, %v733_v12  }
 0x353   :  { %v13886_v18 = vsel %vm725_vm5, 0.996, %v717_v10  ;;  %v13888_v21 = vsel %vm725_vm5, 1.004016, %v12800_v7  ;;  %12805 = vrsqrt.f32 %v706_v13  ;;  %v790_v24 = vsel %vm726_vm4, 1, %v17401_v40 }
 0x354   :  { %v705_v17 = vmax.f32 %v682_v14, 1e-30  ;;  %v789_v27 = vsel %vm725_vm5, 1, %v17401_v40 }
 0x355   :  { %v12802_v26 = vpop.eup %12801  ;;  %801 = vperm.xlu1 %12732, %v790_v24  }
 0x356   :  { %v12804_v19 = vpop.eup %12803  ;;  %v720_v28 = vmul.f32 %v12802_v26, %v11650_v1  ;;  %798 = vperm.xlu0 %12731, %v789_v27   ;;  %v736_v32 = vmul.f32 0.996, %v12802_v26  ;;  %12807 = vrsqrt.f32 %v705_v17 }
 0x357   :  { %v719_v30 = vmul.f32 %v12804_v19, %v672_v4  ;;  %v735_v36 = vmul.f32 0.996, %v12804_v19 }
 0x358   :  { %vm728_vm6 = vcmp.gt.f32.partialorder %v720_v28, 0.996 }
 0x359   :  { %v13898_v23 = vsel %vm728_vm6, 0.996, %v720_v28  ;;  %v13900_v39 = vsel %vm728_vm6, 1.004016, %v12802_v26  ;;  %vm727_vm7 = vcmp.gt.f32.partialorder %v719_v30, 0.996  ;;  %758 = vperm.xlu1 %12732, %v736_v32  }
 0x35a   :  { %v13902_v41 = vsel %vm727_vm7, 0.996, %v719_v30  ;;  %v13904_v42 = vsel %vm727_vm7, 1.004016, %v12804_v19  ;;  %753 = vperm.xlu0 %12731, %v735_v36   ;;  %v792_v48 = vsel %vm728_vm6, 1, %v17401_v40  ;;  %v791_v31 = vsel %vm727_vm7, 1, %v17401_v40 }
 0x35b   :  { %v11656_v44 = vpop.f32.mrb[12].mxu1  ;;  %vm13636_vm6 = vmmov 0  }
 0x35c   :  { %v708_v45 = vmax.f32 %v11656_v44, 1e-30  ;;  %v692_v47 = vpop.f32.mrb[13].mxu1 }
 0x35d   :  { %v12806_v49 = vpop.eup %12805  ;;  %v707_v51 = vmax.f32 %v692_v47, 1e-30  ;;  %807 = vperm.xlu1 %12732, %v792_v48  }
 0x35e   :  { %v722_v29 = vmul.f32 %v12806_v49, %v11653_v11  ;;  %804 = vperm.xlu0 %12731, %v791_v31   ;;  %v738_v52 = vmul.f32 0.996, %v12806_v49  ;;  %12809 = vrsqrt.f32 %v708_v45 }
 0x35f   :  { %12811 = vrsqrt.f32 %v707_v51 }
 0x360   :  { %vm730_vm8 = vcmp.gt.f32.partialorder %v722_v29, 0.996  ;;  %v12808_v55 = vpop.eup %12807 }
 0x361   :  { %v13909_v53 = vsel %vm730_vm8, 0.996, %v722_v29  ;;  %v13911_v54 = vsel %vm730_vm8, 1.004016, %v12806_v49  ;;  %768 = vperm.xlu1 %12732, %v738_v52   ;;  %v721_v56 = vmul.f32 %v12808_v55, %v682_v14  ;;  %v794_v57 = vsel %vm730_vm8, 1, %v17401_v40 }
 0x362   :  { %v737_v59 = vmul.f32 0.996, %v12808_v55 }
 0x363   :  { %vm729_vm9 = vcmp.gt.f32.partialorder %v721_v56, 0.996 }
 0x364   :  { %v13914_v60 = vsel %vm729_vm9, 0.996, %v721_v56  ;;  %v13916_v62 = vsel %vm729_vm9, 1.004016, %v12808_v55  ;;  %763 = vperm.xlu0 %12731, %v737_v59   ;;  %v793_v37 = vsel %vm729_vm9, 1, %v17401_v40 }
 0x365   :  { %813 = vperm.xlu1 %12732, %v794_v57  }
 0x368   :  { %v12810_v35 = vpop.eup %12809  ;;  %810 = vperm.xlu0 %12731, %v793_v37  }
 0x369   :  { %v12812_v63 = vpop.eup %12811  ;;  %v724_v0 = vmul.f32 %v12810_v35, %v11656_v44  ;;  %v740_v1 = vmul.f32 0.996, %v12810_v35 }
 0x36a   :  { %v723_v2 = vmul.f32 %v12812_v63, %v692_v47  ;;  %v739_v4 = vmul.f32 0.996, %v12812_v63 }
 0x36b   :  { %vm732_vm10 = vcmp.gt.f32.partialorder %v724_v0, 0.996  ;;  %778 = vperm.xlu1 %12732, %v740_v1  }
 0x36c   :  { %v13919_v5 = vsel %vm732_vm10, 0.996, %v724_v0  ;;  %v13921_v6 = vsel %vm732_vm10, 1.004016, %v12810_v35  ;;  %vm731_vm11 = vcmp.gt.f32.partialorder %v723_v2, 0.996  ;;  %773 = vperm.xlu0 %12731, %v739_v4  }
 0x36d   :  { %v13923_v7 = vsel %vm731_vm11, 0.996, %v723_v2  ;;  %v13925_v8 = vsel %vm731_vm11, 1.004016, %v12812_v63  ;;  %v796_v9 = vsel %vm732_vm10, 1, %v17401_v40  ;;  %v795_v10 = vsel %vm731_vm11, 1, %v17401_v40 }
 0x36f   :  { %819 = vperm.xlu1 %12732, %v796_v9  }
 0x370   :  { %816 = vperm.xlu0 %12731, %v795_v10  }
 0x3d0   :  { %v749_v11 = vpop.permute.xlu1 %748 }
 0x3d1   :  { %v744_v12 = vpop.permute.xlu0 %743  ;;  %v782_v26 = vmul.f32 %v749_v11, %v13833_v20 }
 0x3d2   :  { %v781_v14 = vmul.f32 %v744_v12, %v13835_v22 }
 0x3d4   :  { %v802_v13 = vpop.permute.xlu1 %801 }
 0x3d5   :  { %vm822_vm12 = vcmp.eq.s32.totalorder %v802_v13, 1  ;;  %v799_v24 = vpop.permute.xlu0 %798  ;;  %v14001_v13 = vld [vmem:[%s17383_s5] sm:$0x1] }
 0x3d6   :  { %vm821_vm13 = vcmp.eq.s32.totalorder %v799_v24, 1  ;;  %v830_v27 = vsel %vm822_vm12, %v782_v26, %v13833_v20  ;;  %v1736_v24 = vmul.f32 %v14001_v13, %v14001_v13  ;;  %v17395_v26 = vmov 0.0  }
 0x3d7   :  { %v829_v17 = vsel %vm821_vm13, %v781_v14, %v13835_v22 }
 0x3d8   :  { %v759_v19 = vpop.permute.xlu1 %758  ;;  %11661 = vmatprep.mubr.msk.f32.mxu0 %vm215_vm1, %v829_v17  ;;  %v10792_v17 = vclamps-f32 %v13882_v15, 0.9999999 }
 0x3d9   :  { %11662 = vmatmul.mubr.msk.f32.vlgmr.msra.gmra.mrb[10].mxu0 %vm215_vm1, %v830_v27  ;;  %v754_v28 = vpop.permute.xlu0 %753  ;;  %v784_v25 = vmul.f32 %v759_v19, %v13851_v38  ;;  %v10791_v27 = vclamps-f32 %v13886_v18, 0.9999999 }
 0x3da   :  { %12464 = vmatpush3.bf16.msra.mxu0 %v17399_v3  ;;  %v783_v32 = vmul.f32 %v754_v28, %v13846_v33  ;;  %v1240_v19 = vsub.f32 0.0, %v10792_v17  ;;  %v1176_v28 = vadd.f32 1.0, %v10792_v17 }
 0x3db   :  { %12465 = vmatprep.subr.bf16.mxu0 %v17399_v3 }
 0x3dc   :  { %v808_v30 = vpop.permute.xlu1 %807  ;;  %12813 = vlog2.f32 %v1176_v28 }
 0x3dd   :  { %vm824_vm14 = vcmp.eq.s32.totalorder %v808_v30, 1  ;;  %v805_v34 = vpop.permute.xlu0 %804  ;;  %v1167_v30 = vadd.f32 1.0, %v10791_v27 }
 0x3de   :  { %vm823_vm15 = vcmp.eq.s32.totalorder %v805_v34, 1  ;;  %12466 = vmatpush3.bf16.msra.mxu0 %v17399_v3  ;;  %v832_v22 = vsel %vm824_vm14, %v784_v25, %v13851_v38  ;;  %v1256_v34 = vadd.f32 1.0, %v1240_v19  ;;  %v14023_v25 = vsub.f32 0.0, %v10791_v27 }
 0x3df   :  { %v831_v20 = vsel %vm823_vm15, %v783_v32, %v13846_v33  ;;  %12471 = vmatprep.subr.bf16.mxu0 %v17399_v3  ;;  %v14021_v32 = vclamps-f32 %v13898_v23, 0.9999999  ;;  %12815 = vlog2.f32 %v1167_v30 }
 0x3e0   :  { %11664 = vmatprep.mubr.msk.f32.mxu0 %vm215_vm1, %v831_v20  ;;  %v769_v36 = vpop.permute.xlu1 %768  ;;  %12817 = vlog2.f32 %v1256_v34  ;;  %v1247_v15 = vadd.f32 1.0, %v14023_v25 }
 0x3e1   :  { %11665 = vmatmul.mubr.msk.f32.gmra.mrb[12].mxu0 %vm215_vm1, %v832_v22  ;;  %v786_v48 = vmul.f32 %v769_v36, %v13864_v50  ;;  %v1194_v20 = vadd.f32 1.0, %v14021_v32  ;;  %v1179_v22 = vmul.f32 -0.5, %v10792_v17  ;;  %v14027_v36 = vclamps-f32 %v13902_v41, 0.9999999 }
 0x3e2   :  { %v1197_v23 = vmul.f32 -0.5, %v14021_v32 }
 0x3e3   :  { %v764_v43 = vpop.permute.xlu0 %763  ;;  %12819 = vlog2.f32 %v1194_v20  ;;  %v1180_v18 = vadd.f32 1.0, %v1179_v22  ;;  %v1188_v41 = vmul.f32 -0.5, %v14027_v36 }
 0x3e4   :  { %v814_v44 = vpop.permute.xlu1 %813  ;;  %v785_v45 = vmul.f32 %v764_v43, %v13860_v46  ;;  %v1170_v43 = vmul.f32 -0.5, %v10791_v27  ;;  %12821 = vlog2.f32 %v1247_v15 }
 0x3e5   :  { %vm826_vm2 = vcmp.eq.s32.totalorder %v814_v44, 1  ;;  %v1185_v44 = vadd.f32 1.0, %v14027_v36 }
 0x3e6   :  { %v834_v51 = vsel %vm826_vm2, %v786_v48, %v13864_v50  ;;  %v17397_v50 = vmov 0.0|0.0   ;;  %v12814_v48 = vpop.eup %12813 }
 0x3e7   :  { %v811_v47 = vpop.permute.xlu0 %810  ;;  %12467 = vmatprep.subr.bf16.mxu1 %v17397_v50  ;;  %12823 = vlog2.f32 %v1185_v44 }
 0x3e8   :  { %vm825_vm3 = vcmp.eq.s32.totalorder %v811_v47, 1  ;;  %v1259_v47 = vmul.f32 -0.5, %v1240_v19 }
 0x3e9   :  { %v833_v33 = vsel %vm825_vm3, %v785_v45, %v13860_v46  ;;  %v14033_v45 = vclamps-f32 %v13909_v53, 0.9999999 }
 0x3ea   :  { %v779_v49 = vpop.permute.xlu1 %778  ;;  %11667 = vmatprep.mubr.msk.f32.mxu0 %vm215_vm1, %v833_v33  ;;  %v1182_v33 = vand.u32 2147483647, %v10792_v17 }
 0x3eb   :  { %11668 = vmatmul.mubr.msk.f32.gmra.mrb[14].mxu0 %vm215_vm1, %v834_v51  ;;  %v774_v38 = vpop.permute.xlu0 %773  ;;  %v788_v55 = vmul.f32 %v779_v49, %v13876_v61  ;;  %v14036_v49 = vsub.f32 0.0, %v14021_v32  ;;  %v1262_v51 = vand.u32 2147483647, %v1240_v19  ;;  %v1212_v53 = vadd.f32 1.0, %v14033_v45 }
 0x3ec   :  { %v787_v29 = vmul.f32 %v774_v38, %v13872_v58  ;;  %v12816_v38 = vpop.eup %12815  ;;  %vm14044_vm7 = vcmp.lt.f32.partialorder %v1182_v33, 0.0004427343  ;;  %v14063_v22 = vsub.f32 0.0, %v14033_v45  ;;  %v1200_v33 = vand.u32 2147483647, %v14021_v32 }
 0x3ed   :  { %vm14052_vm8 = vcmp.lt.f32.partialorder %v1262_v51, 0.0004427343  ;;  %v14057_v30 = vmul.f32 0.6931472, %v12816_v38  ;;  %12825 = vlog2.f32 %v1212_v53 }
 0x3ee   :  { %v820_v31 = vpop.permute.xlu1 %819  ;;  %vm14109_vm11 = vcmp.lt.f32.partialorder %v1200_v33, 0.0004427343 }
 0x3ef   :  { %vm828_vm4 = vcmp.eq.s32.totalorder %v820_v31, 1  ;;  %v817_v52 = vpop.permute.xlu0 %816  ;;  %v1171_v31 = vadd.f32 1.0, %v1170_v43 }
 0x3f0   :  { %vm827_vm5 = vcmp.eq.s32.totalorder %v817_v52, 1  ;;  %v836_v46 = vsel %vm828_vm4, %v788_v55, %v13876_v61  ;;  %v14040_v52 = vsub.f32 0.0, %v14027_v36  ;;  %v1181_v55 = vmul.f32 %v10792_v17, %v1180_v18 }
 0x3f1   :  { %v835_v56 = vsel %vm827_vm5, %v787_v29, %v13872_v58  ;;  %v1198_v29 = vadd.f32 1.0, %v1197_v23  ;;  %v14059_v34 = vmul.f32 %v10791_v27, %v1171_v31 }
 0x3f2   :  { %11670 = vmatprep.mubr.msk.f32.mxu0 %vm215_vm1, %v835_v56  ;;  %v12818_v56 = vpop.eup %12817  ;;  %v1265_v20 = vadd.f32 1.0, %v14040_v52 }
 0x3f3   :  { %11671 = vmatmul.mubr.msk.f32.gmra.mrb[16].mxu0 %vm215_vm1, %v836_v46  ;;  %v1178_v46 = vmul.f32 0.6931472, %v12814_v48  ;;  %v12820_v17 = vpop.eup %12819  ;;  %v1258_v28 = vmul.f32 0.6931472, %v12818_v56  ;;  %v14090_v56 = vclamps-f32 %v13923_v7, 0.9999999 }
 0x3f4   :  { %v14077_v48 = vmul.f32 0.6931472, %v12820_v17  ;;  %v1277_v17 = vmul.f32 -0.5, %v14036_v49 }
 0x4ac   :  { %v13958_v57 = vpop.f32.mrb[10].mxu0 }
 0x4ad   :  { %v13960_v59 = vpop.f32.mrb[11].mxu0  ;;  %v983_v37 = vmul.f32 %v13958_v57, %v13958_v57 }
 0x4ae   :  { %v982_v35 = vmul.f32 %v13960_v59, %v13960_v59 }
 0x4b0   :  { %11681 = vmatprep.mubr.msk.f32.mxu1 %vm77_vm0, %v982_v35  ;;  %v1260_v35 = vadd.f32 1.0, %v1259_v47 }
 0x4b1   :  { %11682 = vmatmul.mubr.msk.f32.vlgmr.msra.gmra.mrb[14].mxu1 %vm77_vm0, %v983_v37  ;;  %v1215_v37 = vmul.f32 -0.5, %v14033_v45 }
 0x4b2   :  { %12468 = vmatpush3.bf16.msra.mxu1 %v17399_v3  ;;  %v1261_v15 = vmul.f32 %v1260_v35, %v1240_v19  ;;  %v14081_v19 = vclamps-f32 %v13919_v5, 0.9999999  ;;  %v1191_v35 = vand.u32 2147483647, %v14027_v36 }
 0x4b3   :  { %12469 = vmatprep.subr.bf16.mxu1 %v17397_v50  ;;  %v14067_v18 = vadd.f32 1.0, %v1215_v37  ;;  %v14105_v37 = vmul.f32 %v14021_v32, %v1198_v29  ;;  %v1221_v32 = vadd.f32 1.0, %v14090_v56  ;;  %v1271_v29 = vand.u32 2147483647, %v14040_v52 }
 0x4b4   :  { %v13970_v58 = vpop.f32.mrb[12].mxu0  ;;  %v1264_v38 = vsel %vm14052_vm8, %v1261_v15, %v1258_v28  ;;  %vm14161_vm13 = vcmp.lt.f32.partialorder %v1191_v35, 0.0004427343 }
 0x4b5   :  { %v13972_v61 = vpop.f32.mrb[13].mxu0  ;;  %v985_v0 = vmul.f32 %v13970_v58, %v13970_v58  ;;  %vm14179_vm14 = vcmp.lt.f32.partialorder %v1271_v29, 0.0004427343 }
 0x4b6   :  { %v984_v63 = vmul.f32 %v13972_v61, %v13972_v61  ;;  %12470 = vmatpush3.bf16.msra.mxu1 %v17399_v3 }
 0x4b7   :  { %12475 = vmatprep.subr.bf16.mxu1 %v17397_v50 }
 0x4b8   :  { %11684 = vmatprep.mubr.msk.f32.mxu1 %vm77_vm0, %v984_v63 }
 0x4b9   :  { %11685 = vmatmul.mubr.msk.f32.gmra.mrb[16].mxu1 %vm77_vm0, %v985_v0  ;;  %v1173_v0 = vand.u32 2147483647, %v10791_v27  ;;  %v1253_v27 = vand.u32 2147483647, %v14023_v25 }
 0x4bb   :  { %vm14069_vm9 = vcmp.lt.f32.partialorder %v1173_v0, 0.0004427343  ;;  %vm14100_vm10 = vcmp.lt.f32.partialorder %v1253_v27, 0.0004427343 }
 0x4bc   :  { %v1175_v5 = vsel %vm14069_vm9, %v14059_v34, %v14057_v30  ;;  %v1233_v30 = vmul.f32 -0.5, %v14081_v19  ;;  %v14126_v34 = vsub.f32 0.0, %v14081_v19 }
 0x4be   :  { %v13982_v1 = vpop.f32.mrb[14].mxu0 }
 0x4bf   :  { %v13984_v2 = vpop.f32.mrb[15].mxu0  ;;  %v987_v9 = vmul.f32 %v13982_v1, %v13982_v1 }
 0x4c0   :  { %v986_v4 = vmul.f32 %v13984_v2, %v13984_v2 }
 0x4c2   :  { %11687 = vmatprep.mubr.msk.f32.mxu1 %vm77_vm0, %v986_v4  ;;  %v1250_v4 = vmul.f32 -0.5, %v14023_v25 }
 0x4c3   :  { %11688 = vmatmul.mubr.msk.f32.gmra.mrb[18].mxu1 %vm77_vm0, %v987_v9  ;;  %v1189_v9 = vadd.f32 1.0, %v1188_v41  ;;  %v12822_v41 = vpop.eup %12821 }
 0x4c4   :  { %v1251_v23 = vadd.f32 1.0, %v1250_v4  ;;  %v12824_v7 = vpop.eup %12823  ;;  %v1249_v0 = vmul.f32 0.6931472, %v12822_v41  ;;  %v1278_v41 = vadd.f32 1.0, %v1277_v17 }
 0x4c5   :  { %v12826_v15 = vpop.eup %12825 }
 0x4c6   :  { %v13992_v10 = vpop.f32.mrb[16].mxu0  ;;  %v1252_v4 = vmul.f32 %v1251_v23, %v14023_v25  ;;  %v14122_v25 = vmul.f32 %v14027_v36, %v1189_v9  ;;  %v1280_v9 = vand.u32 2147483647, %v14036_v49  ;;  %v1279_v36 = vmul.f32 %v1278_v41, %v14036_v49 }
 0x4c7   :  { %v13994_v11 = vpop.f32.mrb[17].mxu0  ;;  %v989_v14 = vmul.f32 %v13992_v10, %v13992_v10 }
 0x4c8   :  { %v988_v12 = vmul.f32 %v13994_v11, %v13994_v11  ;;  %v1255_v23 = vsel %vm14100_vm10, %v1252_v4, %v1249_v0  ;;  %v14145_v4 = vadd.f32 1.0, %v1233_v30  ;;  %vm14149_vm12 = vcmp.lt.f32.partialorder %v1280_v9, 0.0004427343 }
 0x4ca   :  { %11690 = vmatprep.mubr.msk.f32.mxu1 %vm77_vm0, %v988_v12  ;;  %v14050_v12 = vclamps-f32 %v13914_v60, 0.9999999  ;;  %v1184_v60 = vsel %vm14044_vm7, %v1181_v55, %v1178_v46 }
 0x4cb   :  { %11691 = vmatmul.mubr.msk.f32.gmra.mrb[20].mxu1 %vm77_vm0, %v989_v14  ;;  %v1320_v63 = vsub.f32 %v1184_v60, %v1264_v38  ;;  %v1230_v14 = vadd.f32 1.0, %v14081_v19  ;;  %v14130_v60 = vsub.f32 0.0, %v14090_v56  ;;  %v1292_v38 = vadd.f32 1.0, %v14063_v22 }
 0x4cc   :  { %11721 = vmatprep.mubr.msk.f32.mxu1 %vm13636_vm6, %v17395_v26  ;;  %v1203_v44 = vadd.f32 1.0, %v14050_v12  ;;  %v1206_v55 = vmul.f32 -0.5, %v14050_v12  ;;  %v14098_v46 = vsub.f32 0.0, %v14050_v12 }
 0x4cd   :  { %v1328_v43 = vmul.f32 0.5, %v1320_v63 }
 0x4ce   :  { %v14114_v28 = vadd.f32 1.0, %v1206_v55  ;;  %v1283_v63 = vadd.f32 1.0, %v14098_v46 }
 0x4cf   :  { %11722 = vmatmul.mubr.msk.f32.vlgmr.msra.gmra.mrb[22].mxu1 %vm77_vm0, %v1736_v24  ;;  %v1274_v24 = vadd.f32 1.0, %v14036_v49  ;;  %v14167_v49 = vmul.f32 0.6931472, %v12826_v15 }
 0x4d0   :  { %12476 = vmatpush3.bf16.msra.mxu1 %v17399_v3  ;;  %11752 = vmatprep.mubr.msk.f32.mxu1 %vm13636_vm6, %v17395_v26 }
 0x4d1   :  { %12477 = vmatprep.subr.bf16.mxu1 %v17397_v50  ;;  %12827 = vlog2.f32 %v1274_v24  ;;  %v1187_v50 = vmul.f32 0.6931472, %v12824_v7  ;;  %v1209_v24 = vand.u32 2147483647, %v14050_v12 }
 0x4d2   :  { %12829 = vlog2.f32 %v1265_v20  ;;  %v1224_v20 = vmul.f32 -0.5, %v14090_v56 }
 0x4d3   :  { %vm14234_vm3 = vcmp.lt.f32.partialorder %v1209_v24, 0.0004427343  ;;  %v1236_v24 = vand.u32 2147483647, %v14081_v19 }
 0x4d4   :  { %12478 = vmatpush3.bf16.msra.mxu1 %v17399_v3  ;;  %v14147_v26 = vadd.f32 1.0, %v1224_v20 }
 0x4d5   :  { %12479 = vmatprep.subr.bf16.mxu1 %v17399_v3  ;;  %vm1237_vm10 = vcmp.lt.f32.partialorder %v1236_v24, 0.0004427343 }
 0x4db   :  { %v12828_v55 = vpop.eup %12827 }
 0x4dc   :  { %v12830_v0 = vpop.eup %12829  ;;  %v1276_v40 = vmul.f32 0.6931472, %v12828_v55 }
 0x584   :  { %v14075_v47 = vpop.f32.mrb[14].mxu1 }
 0x585   :  { %v1120_v51 = vmax.f32 %v14075_v47, 1e-30  ;;  %v14086_v31 = vpop.f32.mrb[15].mxu1  ;;  %vm1408_vm5 = vcmp.le.f32.partialorder %v14075_v47, 0.0 }
 0x586   :  { %v1119_v53 = vmax.f32 %v14086_v31, 1e-30  ;;  %vm1407_vm7 = vcmp.le.f32.partialorder %v14086_v31, 0.0 }
 0x587   :  { %12831 = vrsqrt.f32 %v1120_v51 }
 0x588   :  { %12833 = vrsqrt.f32 %v1119_v53 }
 0x589   :  { %12835 = vlog2.f32 %v1203_v44  ;;  %v1268_v44 = vmul.f32 -0.5, %v14040_v52 }
 0x58a   :  { %12837 = vlog2.f32 %v1230_v14  ;;  %v1319_v14 = vsub.f32 %v1175_v5, %v1255_v23  ;;  %v1267_v23 = vmul.f32 0.6931472, %v12830_v0 }
 0x58b   :  { %12839 = vlog2.f32 %v1221_v32  ;;  %v1269_v32 = vadd.f32 1.0, %v1268_v44 }
 0x58c   :  { %v14134_v27 = vpop.f32.mrb[16].mxu1  ;;  %v1327_v44 = vmul.f32 0.5, %v1319_v14 }
 0x58d   :  { %v1122_v33 = vmax.f32 %v14134_v27, 1e-30  ;;  %v14139_v51 = vpop.f32.mrb[17].mxu1  ;;  %v1270_v55 = vmul.f32 %v1269_v32, %v14040_v52  ;;  %v1295_v52 = vmul.f32 -0.5, %v14063_v22  ;;  %v14205_v32 = vmul.f32 %v14050_v12, %v14114_v28 }
 0x58e   :  { %v1121_v53 = vmax.f32 %v14139_v51, 1e-30 }
 0x58f   :  { %12841 = vrsqrt.f32 %v1122_v33  ;;  %v1310_v33 = vadd.f32 1.0, %v14126_v34 }
 0x590   :  { %12843 = vrsqrt.f32 %v1121_v53  ;;  %v1218_v53 = vand.u32 2147483647, %v14033_v45 }
 0x591   :  { %v14153_v3 = vpop.eup %12831  ;;  %12845 = vlog2.f32 %v1292_v38  ;;  %v1193_v38 = vsel %vm14161_vm13, %v14122_v25, %v1187_v50  ;;  %v1273_v50 = vsel %vm14179_vm14, %v1270_v55, %v1267_v23  ;;  %v1301_v25 = vadd.f32 1.0, %v14130_v60 }
 0x592   :  { %v14157_v30 = vpop.eup %12833  ;;  %v1136_v5 = vmul.f32 %v14153_v3, %v14075_v47  ;;  %12847 = vlog2.f32 %v1283_v63  ;;  %v1282_v63 = vsel %vm14149_vm12, %v1279_v36, %v1276_v40  ;;  %v1298_v40 = vand.u32 2147483647, %v14063_v22 }
 0x593   :  { %v12836_v7 = vpop.eup %12835  ;;  %v1135_v9 = vmul.f32 %v14157_v30, %v14086_v31  ;;  %12849 = vlog2.f32 %v1310_v33  ;;  %vm14199_vm15 = vcmp.lt.f32.partialorder %v1218_v53, 0.0004427343  ;;  %v1286_v23 = vmul.f32 -0.5, %v14098_v46 }
 0x594   :  { %v1144_v41 = vmul.f32 %v1136_v5, %v13884_v16  ;;  %v14185_v16 = vmul.f32 %v14033_v45, %v14067_v18  ;;  %v14192_v29 = vmul.f32 0.6931472, %v12836_v7  ;;  %v17429_v45 = vsel %vm14109_vm11, %v14105_v37, %v14077_v48 }
 0x595   :  { %v1143_v35 = vmul.f32 %v1135_v9, %v13888_v21  ;;  %v12838_v21 = vpop.eup %12837  ;;  %v1322_v18 = vsub.f32 %v17429_v45, %v1282_v63  ;;  %v1321_v5 = vsub.f32 %v1193_v38, %v1273_v50  ;;  %v1296_v33 = vadd.f32 1.0, %v1295_v52 }
 0x596   :  { %v1336_v0 = vmul.f32 %v1328_v43, %v1144_v41  ;;  %v12840_v17 = vpop.eup %12839  ;;  %v14209_v20 = vpop.f32.mrb[18].mxu1  ;;  %v1220_v28 = vsel %vm14199_vm15, %v14185_v16, %v14167_v49  ;;  %vm14226_vm2 = vcmp.lt.f32.partialorder %v1298_v40, 0.0004427343  ;;  %v1289_v49 = vand.u32 2147483647, %v14098_v46 }
 0x597   :  { %v1335_v14 = vmul.f32 %v1327_v44, %v1143_v35  ;;  %v1124_v7 = vmax.f32 %v14209_v20, 1e-30  ;;  %v14222_v9 = vpop.f32.mrb[19].mxu1  ;;  %v1330_v35 = vmul.f32 0.5, %v1322_v18  ;;  %v1329_v15 = vmul.f32 0.5, %v1321_v5 }
 0x598   :  { %12851 = vtanh.f32 %v1336_v0  ;;  %v1123_v38 = vmax.f32 %v14222_v9, 1e-30  ;;  %v1287_v16 = vadd.f32 1.0, %v1286_v23  ;;  %vm14247_vm4 = vcmp.lt.f32.partialorder %v1289_v49, 0.0004427343 }
 0x599   :  { %v14207_v36 = vpop.eup %12841  ;;  %12853 = vtanh.f32 %v1335_v14  ;;  %v1297_v14 = vmul.f32 %v1296_v33, %v14063_v22  ;;  %v14251_v18 = vmul.f32 0.6931472, %v12838_v21  ;;  %v1313_v43 = vmul.f32 -0.5, %v14126_v34 }
 0x59a   :  { %v14213_v48 = vpop.eup %12843  ;;  %v1138_v37 = vmul.f32 %v14207_v36, %v14134_v27  ;;  %12855 = vlog2.f32 %v1301_v25  ;;  %v14240_v25 = vmul.f32 %v14081_v19, %v14145_v4  ;;  %v1288_v5 = vmul.f32 %v1287_v16, %v14098_v46 }
 0x59b   :  { %v12846_v44 = vpop.eup %12845  ;;  %v1137_v12 = vmul.f32 %v14213_v48, %v14139_v51  ;;  %12857 = vrsqrt.f32 %v1124_v7  ;;  %v1316_v21 = vand.u32 2147483647, %v14126_v34  ;;  %v1223_v33 = vmul.f32 0.6931472, %v12840_v17 }
 0x59c   :  { %v12848_v55 = vpop.eup %12847  ;;  %v1146_v53 = vmul.f32 %v1138_v37, %v13900_v39  ;;  %12859 = vrsqrt.f32 %v1123_v38  ;;  %v1294_v50 = vmul.f32 0.6931472, %v12846_v44  ;;  %v1226_v44 = vmul.f32 %v14090_v56, %v14147_v26 }
 0x59d   :  { %v1145_v63 = vmul.f32 %v1137_v12, %v13904_v42  ;;  %v1211_v42 = vsel %vm14234_vm3, %v14205_v32, %v14192_v29  ;;  %v1285_v40 = vmul.f32 0.6931472, %v12848_v55  ;;  %v12850_v4 = vpop.eup %12849  ;;  %v1304_v29 = vmul.f32 -0.5, %v14130_v60 }
 0x59e   :  { %v1338_v0 = vmul.f32 %v1330_v35, %v1146_v53  ;;  %v14255_v22 = vpop.f32.mrb[20].mxu1  ;;  %v1300_v23 = vsel %vm14226_vm2, %v1297_v14, %v1294_v50  ;;  %v1314_v55 = vadd.f32 1.0, %v1313_v43  ;;  %v1307_v53 = vand.u32 2147483647, %v14130_v60 }
 0x59f   :  { %v1337_v39 = vmul.f32 %v1329_v15, %v1145_v63  ;;  %v1126_v37 = vmax.f32 %v14255_v22, 1e-30  ;;  %v14263_v7 = vpop.f32.mrb[21].mxu1  ;;  %v1291_v12 = vsel %vm14247_vm4, %v1288_v5, %v1285_v40  ;;  %v1324_v49 = vsub.f32 %v1220_v28, %v1300_v23 }
 0x5a0   :  { %12861 = vtanh.f32 %v1338_v0  ;;  %v1125_v19 = vmax.f32 %v14263_v7, 1e-30  ;;  %v1305_v63 = vadd.f32 1.0, %v1304_v29  ;;  %v1323_v16 = vsub.f32 %v1211_v42, %v1291_v12 }
 0x5a1   :  { %12863 = vtanh.f32 %v1337_v39  ;;  %v1312_v17 = vmul.f32 0.6931472, %v12850_v4  ;;  %vm14279_vm8 = vcmp.lt.f32.partialorder %v1316_v21, 0.0004427343  ;;  %v1227_v52 = vand.u32 2147483647, %v14090_v56 }
 0x5a2   :  { %v12852_v32 = vpop.eup %12851  ;;  %12865 = vrsqrt.f32 %v1126_v37  ;;  %v1806_v26 = vpop.f32.mrb[22].mxu1  ;;  %v1315_v42 = vmul.f32 %v1314_v55, %v14126_v34  ;;  %v17440_v40 = vmov 0   ;;  %v1332_v43 = vmul.f32 0.5, %v1324_v49 }
 0x5a3   :  { %v12854_v46 = vpop.eup %12853  ;;  %v1352_v38 = vmul.f32 %v12852_v32, %v14153_v3  ;;  %12867 = vrsqrt.f32 %v1125_v19  ;;  %v1810_v0 = vmax.f32 %v1806_v26, 1e-30  ;;  %v11723_v3 = vpop.f32.mrb[23].mxu1  ;;  %v1416_v31 = vsel %vm1408_vm5, 1, %v17440_v40 }
 0x5a4   :  { %v12856_v41 = vpop.eup %12855  ;;  %v1351_v35 = vmul.f32 %v12854_v46, %v14157_v30  ;;  %v1306_v4 = vmul.f32 %v1305_v63, %v14130_v60  ;;  %v1415_v5 = vsel %vm1407_vm7, 1, %v17440_v40  ;;  %v1331_v32 = vmul.f32 0.5, %v1323_v16 }
 0x5a5   :  { %1366 = vperm.xlu1 %12732, %v1352_v38   ;;  %v14274_v15 = vpop.eup %12857  ;;  %v1303_v39 = vmul.f32 0.6931472, %v12856_v41  ;;  %12869 = vrsqrt.f32 %v1810_v0  ;;  %v1318_v34 = vsel %vm14279_vm8, %v1315_v42, %v1312_v17  ;;  %vm14295_vm9 = vcmp.lt.f32.partialorder %v1307_v53, 0.0004427343 }
 0x5a6   :  { %1361 = vperm.xlu0 %12731, %v1351_v35   ;;  %v12860_v50 = vpop.eup %12859  ;;  %v1140_v30 = vmul.f32 %v14274_v15, %v14209_v20  ;;  %vm1228_vm11 = vcmp.lt.f32.partialorder %v1227_v52, 0.0004427343  ;;  %vm1410_vm12 = vcmp.le.f32.partialorder %v14134_v27, 0.0  ;;  %vm1409_vm13 = vcmp.le.f32.partialorder %v14139_v51, 0.0 }
 0x5a7   :  { %v1139_v14 = vmul.f32 %v12860_v50, %v14222_v9  ;;  %v1309_v60 = vsel %vm14295_vm9, %v1306_v4, %v1303_v39  ;;  %v1229_v19 = vsel %vm1228_vm11, %v1226_v44, %v1223_v33  ;;  %v1417_v44 = vsel %vm1409_vm13, 1, %v17440_v40 }
 0x5a8   :  { %v1148_v45 = vmul.f32 %v1140_v30, %v13911_v54  ;;  %v1325_v24 = vsub.f32 %v1229_v19, %v1309_v60  ;;  %vm1412_vm14 = vcmp.le.f32.partialorder %v14209_v20, 0.0  ;;  %vm1411_vm15 = vcmp.le.f32.partialorder %v14222_v9, 0.0 }
 0x5a9   :  { %1427 = vperm.xlu1 %12732, %v1416_v31   ;;  %v1147_v56 = vmul.f32 %v1139_v14, %v13916_v62  ;;  %v1238_v62 = vsel %vm1237_vm10, %v14240_v25, %v14251_v18  ;;  %v1418_v18 = vsel %vm1410_vm12, 1, %v17440_v40  ;;  %vm1414_vm2 = vcmp.le.f32.partialorder %v14255_v22, 0.0 }
 0x5aa   :  { %v12862_v29 = vpop.eup %12861  ;;  %1424 = vperm.xlu0 %12731, %v1415_v5   ;;  %v1340_v54 = vmul.f32 %v1332_v43, %v1148_v45  ;;  %v1326_v12 = vsub.f32 %v1238_v62, %v1318_v34  ;;  %v1333_v53 = vmul.f32 0.5, %v1325_v24  ;;  %vm1413_vm3 = vcmp.le.f32.partialorder %v14263_v7, 0.0 }
 0x5ab   :  { %v12864_v47 = vpop.eup %12863  ;;  %v1354_v37 = vmul.f32 %v12862_v29, %v14207_v36  ;;  %v1339_v21 = vmul.f32 %v1331_v32, %v1147_v56  ;;  %v1422_v20 = vsel %vm1414_vm2, 1, %v17440_v40  ;;  %v1421_v9 = vsel %vm1413_vm3, 1, %v17440_v40 }
 0x5ac   :  { %v1353_v46 = vmul.f32 %v12864_v47, %v14213_v48  ;;  %12871 = vtanh.f32 %v1340_v54  ;;  %v12866_v38 = vpop.eup %12865  ;;  %v1334_v55 = vmul.f32 0.5, %v1326_v12  ;;  %v17443_v47 = vmov 1.0|1.0  }
 0x5ad   :  { %1376 = vperm.xlu1 %12732, %v1354_v37   ;;  %12873 = vtanh.f32 %v1339_v21  ;;  %v12868_v36 = vpop.eup %12867  ;;  %v1142_v41 = vmul.f32 %v12866_v38, %v14255_v22 }
 0x5ae   :  { %1371 = vperm.xlu0 %12731, %v1353_v46   ;;  %v1141_v25 = vmul.f32 %v12868_v36, %v14263_v7 }
 0x5af   :  { %v1150_v48 = vmul.f32 %v1142_v41, %v13921_v6  ;;  %v12870_v27 = vpop.eup %12869 }
 0x5b0   :  { %v1149_v33 = vmul.f32 %v1141_v25, %v13925_v8  ;;  %v1812_v51 = vmul.f32 %v12870_v27, %v1806_v26  ;;  %v1420_v8 = vsel %vm1412_vm14, 1, %v17440_v40  ;;  %v1419_v26 = vsel %vm1411_vm15, 1, %v17440_v40 }
 0x5b1   :  { %1433 = vperm.xlu1 %12732, %v1418_v18   ;;  %v1342_v35 = vmul.f32 %v1334_v55, %v1150_v48 }
 0x5b2   :  { %1430 = vperm.xlu0 %12731, %v1417_v44   ;;  %v1341_v49 = vmul.f32 %v1333_v53, %v1149_v33 }
 0x5b3   :  { %12875 = vtanh.f32 %v1342_v35 }
 0x5b4   :  { %12877 = vtanh.f32 %v1341_v49 }
 0x5b5   :  { %12879 = vtanh.f32 %v1812_v51 }
 0x5b6   :  { %v12872_v63 = vpop.eup %12871 }
 0x5b7   :  { %v12874_v16 = vpop.eup %12873  ;;  %v1356_v17 = vmul.f32 %v12872_v63, %v14274_v15 }
 0x5b8   :  { %v1355_v6 = vmul.f32 %v12874_v16, %v12860_v50 }
 0x5b9   :  { %1386 = vperm.xlu1 %12732, %v1356_v17  }
 0x5ba   :  { %1381 = vperm.xlu0 %12731, %v1355_v6  }
 0x5bd   :  { %1439 = vperm.xlu1 %12732, %v1420_v8   ;;  %v12876_v0 = vpop.eup %12875 }
 0x5be   :  { %1436 = vperm.xlu0 %12731, %v1419_v26   ;;  %v12878_v3 = vpop.eup %12877  ;;  %v1358_v30 = vmul.f32 %v12876_v0, %v12866_v38 }
 0x5bf   :  { %v12880_v28 = vpop.eup %12879  ;;  %v1357_v52 = vmul.f32 %v12878_v3, %v12868_v36 }
 0x5c0   :  { %v1821_v15 = vmax.f32 %v12880_v28, 1e-15  ;;  %v1814_v50 = vmul.f32 %v12880_v28, %v12870_v27 }
 0x5c1   :  { %1396 = vperm.xlu1 %12732, %v1358_v30  }
 0x5c2   :  { %1391 = vperm.xlu0 %12731, %v1357_v52   ;;  %12881 = vrcp.f32 %v1821_v15  ;;  %vm1822_vm4 = vcmp.gt.f32.partialorder %v1821_v15, 0.996 }
 0x5c3   :  { %v1831_v39 = vsel %vm1822_vm4, 1, %v17440_v40 }
 0x5c5   :  { %1445 = vperm.xlu1 %12732, %v1422_v20  }
 0x5c6   :  { %1442 = vperm.xlu0 %12731, %v1421_v9  }
 0x5ca   :  { %1817 = vperm.xlu0 %12731, %v1814_v50  }
 0x5cc   :  { %v12882_v14 = vpop.eup %12881 }
 0x5cd   :  { %v1824_v42 = vmul.f32 0.996, %v12882_v14 }
 0x5ce   :  { %1833 = vperm.xlu0 %12731, %v1831_v39  }
 0x5cf   :  { %1827 = vperm.xlu1 %12732, %v1824_v42  }
 0x624   :  { %v1367_v22 = vpop.permute.xlu1 %1366 }
 0x625   :  { %v1362_v31 = vpop.permute.xlu0 %1361  ;;  %v1400_v7 = vmul.f32 %v13958_v57, %v1367_v22 }
 0x626   :  { %v1399_v43 = vmul.f32 %v1362_v31, %v13960_v59 }
 0x628   :  { %v1428_v45 = vpop.permute.xlu1 %1427 }
 0x629   :  { %vm1448_vm5 = vcmp.eq.s32.totalorder %v1428_v45, 1  ;;  %v1425_v4 = vpop.permute.xlu0 %1424 }
 0x62a   :  { %v14325_v5 = vsel %vm1448_vm5, 0.0, %v1400_v7  ;;  %vm1447_vm7 = vcmp.eq.s32.totalorder %v1425_v4, 1 }
 0x62b   :  { %v14327_v29 = vsel %vm1447_vm7, 0.0, %v1399_v43  ;;  %v1464_v34 = vmul.f32 %v14325_v5, %v14325_v5 }
 0x62c   :  { %v1463_v56 = vmul.f32 %v14327_v29, %v14327_v29  ;;  %v1377_v32 = vpop.permute.xlu1 %1376 }
 0x62d   :  { %v1372_v23 = vpop.permute.xlu0 %1371  ;;  %v1402_v57 = vmul.f32 %v13970_v58, %v1377_v32 }
 0x62e   :  { %11701 = vmatprep.mubr.msk.f32.mxu0 %vm77_vm0, %v1463_v56  ;;  %v1401_v54 = vmul.f32 %v1372_v23, %v13972_v61 }
 0x62f   :  { %11702 = vmatmul.mubr.msk.f32.vlgmr.msra.gmra.mrb[18].mxu0 %vm77_vm0, %v1464_v34 }
 0x630   :  { %v1434_v59 = vpop.permute.xlu1 %1433  ;;  %12472 = vmatpush3.bf16.msra.mxu0 %v17443_v47 }
 0x631   :  { %vm1450_vm8 = vcmp.eq.s32.totalorder %v1434_v59, 1  ;;  %v1431_v60 = vpop.permute.xlu0 %1430  ;;  %12473 = vmatprep.subr.bf16.mxu0 %v17443_v47 }
 0x632   :  { %v14339_v37 = vsel %vm1450_vm8, 0.0, %v1402_v57  ;;  %vm1449_vm9 = vcmp.eq.s32.totalorder %v1431_v60, 1 }
 0x633   :  { %v14341_v21 = vsel %vm1449_vm9, 0.0, %v1401_v54  ;;  %v1466_v58 = vmul.f32 %v14339_v37, %v14339_v37 }
 0x634   :  { %v1465_v62 = vmul.f32 %v14341_v21, %v14341_v21  ;;  %12474 = vmatpush3.bf16.msra.mxu0 %v17443_v47 }
 0x635   :  { %12483 = vmatprep.subr.bf16.mxu0 %v17443_v47 }
 0x636   :  { %11704 = vmatprep.mubr.msk.f32.mxu0 %vm77_vm0, %v1465_v62 }
 0x637   :  { %11705 = vmatmul.mubr.msk.f32.gmra.mrb[20].mxu0 %vm77_vm0, %v1466_v58 }
 0x638   :  { %v1387_v61 = vpop.permute.xlu1 %1386 }
 0x639   :  { %v1382_v46 = vpop.permute.xlu0 %1381  ;;  %v1404_v12 = vmul.f32 %v13982_v1, %v1387_v61 }
 0x63a   :  { %v1403_v38 = vmul.f32 %v1382_v46, %v13984_v2 }
 0x63c   :  { %v1440_v19 = vpop.permute.xlu1 %1439 }
 0x63d   :  { %vm1452_vm10 = vcmp.eq.s32.totalorder %v1440_v19, 1  ;;  %v1437_v24 = vpop.permute.xlu0 %1436 }
 0x63e   :  { %v14353_v36 = vsel %vm1452_vm10, 0.0, %v1404_v12  ;;  %vm1451_vm11 = vcmp.eq.s32.totalorder %v1437_v24, 1 }
 0x63f   :  { %v14355_v41 = vsel %vm1451_vm11, 0.0, %v1403_v38  ;;  %v1468_v48 = vmul.f32 %v14353_v36, %v14353_v36 }
 0x640   :  { %v1467_v25 = vmul.f32 %v14355_v41, %v14355_v41  ;;  %v1397_v18 = vpop.permute.xlu1 %1396 }
 0x641   :  { %v1392_v55 = vpop.permute.xlu0 %1391  ;;  %v1406_v1 = vmul.f32 %v13992_v10, %v1397_v18 }
 0x642   :  { %11707 = vmatprep.mubr.msk.f32.mxu0 %vm77_vm0, %v1467_v25  ;;  %v1405_v44 = vmul.f32 %v1392_v55, %v13994_v11 }
 0x643   :  { %11708 = vmatmul.mubr.msk.f32.gmra.mrb[22].mxu0 %vm77_vm0, %v1468_v48 }
 0x644   :  { %v1446_v2 = vpop.permute.xlu1 %1445 }
 0x645   :  { %vm1454_vm12 = vcmp.eq.s32.totalorder %v1446_v2, 1  ;;  %v1443_v27 = vpop.permute.xlu0 %1442 }
 0x646   :  { %v14365_v33 = vsel %vm1454_vm12, 0.0, %v1406_v1  ;;  %vm1453_vm13 = vcmp.eq.s32.totalorder %v1443_v27, 1 }
 0x647   :  { %v14367_v53 = vsel %vm1453_vm13, 0.0, %v1405_v44  ;;  %v1470_v51 = vmul.f32 %v14365_v33, %v14365_v33 }
 0x648   :  { %v1469_v35 = vmul.f32 %v14367_v53, %v14367_v53 }
 0x649   :  { %v1818_v49 = vpop.permute.xlu0 %1817 }
 0x64a   :  { %11710 = vmatprep.mubr.msk.f32.mxu0 %vm77_vm0, %v1469_v35  ;;  %v1820_v11 = vmul.f32 %v1818_v49, %v14001_v13 }
 0x64b   :  { %11711 = vmatmul.mubr.msk.f32.gmra.mrb[24].mxu0 %vm77_vm0, %v1470_v51 }
 0x64d   :  { %v1834_v10 = vpop.permute.xlu0 %1833 }
 0x64e   :  { %v1828_v63 = vpop.permute.xlu1 %1827  ;;  %vm1835_vm14 = vcmp.eq.s32.totalorder %v1834_v10, 1 }
 0x64f   :  { %v1830_v16 = vmul.f32 %v1828_v63, %v1820_v11  ;;  %v2048_v63 = vlaneseq }
 0x651   :  { %v14376_v17 = vsel %vm1835_vm14, %v1830_v16, %v1820_v11  ;;  %v14395_v16 = vshrl.u32 %v2048_v63, 7 }
 0x652   :  { %v1974_v6 = vmul.f32 %v14376_v17, %v14376_v17 }
 0x654   :  { %11753 = vmatmul.mubr.msk.f32.vlgmr.msra.gmra.mrb[24].mxu1 %vm77_vm0, %v1974_v6 }
 0x655   :  { %12480 = vmatpush3.bf16.msra.mxu1 %v17443_v47 }
 0x656   :  { %12481 = vmatprep.subr.bf16.mxu1 %v17443_v47 }
 0x659   :  { %12482 = vmatpush3.bf16.msra.mxu1 %v17443_v47 }
 0x65a   :  { %12487 = vmatprep.subr.bf16.mxu1 %v17443_v47 }
 0x702   :  { %v11703_v8 = vpop.f32.mrb[18].mxu0 }
 0x703   :  { %v1601_v13 = vmax.f32 %v11703_v8, 1e-30  ;;  %v1561_v26 = vpop.f32.mrb[19].mxu0 }
 0x704   :  { %v1600_v0 = vmax.f32 %v1561_v26, 1e-30 }
 0x705   :  { %12883 = vrsqrt.f32 %v1601_v13  ;;  %v14398_v13 = vsub.s32 0, %v14395_v16 }
 0x706   :  { %12885 = vrsqrt.f32 %v1600_v0 }
 0x707   :  { %17444 = vst [vmem:[#allocation2_spill] sm:$0xff] %v14398_v13 }
 0x70a   :  { %v11706_v3 = vpop.f32.mrb[20].mxu0 }
 0x70b   :  { %v1603_v30 = vmax.f32 %v11706_v3, 1e-30  ;;  %v1571_v28 = vpop.f32.mrb[21].mxu0 }
 0x70c   :  { %v1602_v52 = vmax.f32 %v1571_v28, 1e-30 }
 0x70d   :  { %12887 = vrsqrt.f32 %v1603_v30 }
 0x70e   :  { %12889 = vrsqrt.f32 %v1602_v52 }
 0x70f   :  { %v12884_v15 = vpop.eup %12883 }
 0x710   :  { %v12886_v20 = vpop.eup %12885  ;;  %v1617_v9 = vmul.f32 %v12884_v15, %v11703_v8  ;;  %v1633_v50 = vmul.f32 0.996, %v12884_v15 }
 0x711   :  { %v1616_v39 = vmul.f32 %v12886_v20, %v1561_v26  ;;  %v1632_v14 = vmul.f32 0.996, %v12886_v20 }
 0x712   :  { %vm1625_vm15 = vcmp.gt.f32.partialorder %v1617_v9, 0.996  ;;  %1647 = vperm.xlu0 %12731, %v1633_v50  }
 0x713   :  { %vm1624_vm2 = vcmp.gt.f32.partialorder %v1616_v39, 0.996  ;;  %1642 = vperm.xlu1 %12732, %v1632_v14   ;;  %v1689_v42 = vsel %vm1625_vm15, 1, %v17440_v40 }
 0x714   :  { %v1688_v22 = vsel %vm1624_vm2, 1, %v17440_v40 }
 0x716   :  { %1700 = vperm.xlu0 %12731, %v1689_v42   ;;  %v11709_v7 = vpop.f32.mrb[22].mxu0 }
 0x717   :  { %v12888_v31 = vpop.eup %12887  ;;  %1697 = vperm.xlu1 %12732, %v1688_v22   ;;  %v1605_v4 = vmax.f32 %v11709_v7, 1e-30  ;;  %v1581_v56 = vpop.f32.mrb[23].mxu0 }
 0x718   :  { %v12890_v45 = vpop.eup %12889  ;;  %v1619_v43 = vmul.f32 %v12888_v31, %v11706_v3  ;;  %v1635_v32 = vmul.f32 0.996, %v12888_v31  ;;  %v1604_v23 = vmax.f32 %v1581_v56, 1e-30 }
 0x719   :  { %v1618_v34 = vmul.f32 %v12890_v45, %v1571_v28  ;;  %v1634_v57 = vmul.f32 0.996, %v12890_v45  ;;  %12891 = vrsqrt.f32 %v1605_v4  ;;  %v14404_v28 = vrot.slane %v14376_v17, %v14398_v13 }
 0x71a   :  { %vm1627_vm3 = vcmp.gt.f32.partialorder %v1619_v43, 0.996  ;;  %1657 = vperm.xlu0 %12731, %v1635_v32   ;;  %12893 = vrsqrt.f32 %v1604_v23 }
 0x71b   :  { %vm1626_vm4 = vcmp.gt.f32.partialorder %v1618_v34, 0.996  ;;  %1652 = vperm.xlu1 %12732, %v1634_v57   ;;  %v1691_v59 = vsel %vm1627_vm3, 1, %v17440_v40 }
 0x71c   :  { %v1690_v54 = vsel %vm1626_vm4, 1, %v17440_v40 }
 0x71e   :  { %1706 = vperm.xlu0 %12731, %v1691_v59   ;;  %v11712_v60 = vpop.f32.mrb[24].mxu0 }
 0x71f   :  { %1703 = vperm.xlu1 %12732, %v1690_v54   ;;  %v1607_v62 = vmax.f32 %v11712_v60, 1e-30  ;;  %v1591_v58 = vpop.f32.mrb[25].mxu0 }
 0x720   :  { %v1606_v61 = vmax.f32 %v1591_v58, 1e-30 }
 0x721   :  { %12895 = vrsqrt.f32 %v1607_v62 }
 0x722   :  { %12897 = vrsqrt.f32 %v1606_v61 }
 0x723   :  { %v12892_v46 = vpop.eup %12891 }
 0x724   :  { %v12894_v12 = vpop.eup %12893  ;;  %v1621_v19 = vmul.f32 %v12892_v46, %v11709_v7  ;;  %v1637_v38 = vmul.f32 0.996, %v12892_v46 }
 0x725   :  { %v1620_v24 = vmul.f32 %v12894_v12, %v1581_v56  ;;  %v1636_v25 = vmul.f32 0.996, %v12894_v12  ;;  %v17445_v56 = vmov 0.0|0.0  }
 0x726   :  { %vm1629_vm5 = vcmp.gt.f32.partialorder %v1621_v19, 0.996  ;;  %1667 = vperm.xlu0 %12731, %v1637_v38  }
 0x727   :  { %vm1628_vm7 = vcmp.gt.f32.partialorder %v1620_v24, 0.996  ;;  %1662 = vperm.xlu1 %12732, %v1636_v25   ;;  %v14389_v18 = vpop.f32.mrb[24].mxu1  ;;  %v1693_v55 = vsel %vm1629_vm5, 1, %v17440_v40 }
 0x728   :  { %v11754_v48 = vpop.f32.mrb[25].mxu1  ;;  %v1692_v1 = vsel %vm1628_vm7, 1, %v17440_v40 }
 0x72a   :  { %1712 = vperm.xlu0 %12731, %v1693_v55  }
 0x72b   :  { %v12896_v2 = vpop.eup %12895  ;;  %1709 = vperm.xlu1 %12732, %v1692_v1  }
 0x72c   :  { %v12898_v44 = vpop.eup %12897  ;;  %v1623_v27 = vmul.f32 %v12896_v2, %v11712_v60  ;;  %v1639_v35 = vmul.f32 0.996, %v12896_v2 }
 0x72d   :  { %v1622_v51 = vmul.f32 %v12898_v44, %v1591_v58  ;;  %v1638_v49 = vmul.f32 0.996, %v12898_v44 }
 0x72e   :  { %vm1631_vm8 = vcmp.gt.f32.partialorder %v1623_v27, 0.996  ;;  %1677 = vperm.xlu0 %12731, %v1639_v35  }
 0x72f   :  { %vm1630_vm9 = vcmp.gt.f32.partialorder %v1622_v51, 0.996  ;;  %1672 = vperm.xlu1 %12732, %v1638_v49   ;;  %v1695_v10 = vsel %vm1631_vm8, 1, %v17440_v40 }
 0x730   :  { %v1694_v11 = vsel %vm1630_vm9, 1, %v17440_v40 }
 0x732   :  { %1718 = vperm.xlu0 %12731, %v1695_v10  }
 0x733   :  { %1715 = vperm.xlu1 %12732, %v1694_v11  }
 0x791   :  { %v1648_v6 = vpop.permute.xlu0 %1647 }
 0x792   :  { %v1643_v8 = vpop.permute.xlu1 %1642  ;;  %v1681_v26 = vmul.f32 %v1648_v6, %v14325_v5 }
 0x793   :  { %v1680_v3 = vmul.f32 %v1643_v8, %v14327_v29 }
 0x795   :  { %v1701_v0 = vpop.permute.xlu0 %1700 }
 0x796   :  { %vm1721_vm10 = vcmp.eq.s32.totalorder %v1701_v0, 1  ;;  %v1698_v30 = vpop.permute.xlu1 %1697 }
 0x797   :  { %v14407_v52 = vsel %vm1721_vm10, %v1681_v26, %v14325_v5  ;;  %vm1720_vm11 = vcmp.eq.s32.totalorder %v1698_v30, 1 }
 0x798   :  { %v14410_v15 = vsel %vm1720_vm11, %v1680_v3, %v14327_v29  ;;  %v1838_v39 = vmul.f32 %v14407_v52, %v14407_v52  ;;  %v2053_v17 = vmul.f32 %v14404_v28, %v14407_v52 }
 0x799   :  { %v1837_v20 = vmul.f32 %v14410_v15, %v14410_v15  ;;  %v2052_v9 = vmul.f32 %v14404_v28, %v14410_v15  ;;  %v1658_v50 = vpop.permute.xlu0 %1657 }
 0x79a   :  { %v1653_v14 = vpop.permute.xlu1 %1652  ;;  %v1683_v5 = vmul.f32 %v1658_v50, %v14339_v37 }
 0x79b   :  { %11732 = vmatprep.mubr.msk.f32.mxu0 %vm77_vm0, %v1837_v20  ;;  %11763 = vmatprep.mubr.msk.f32.mxu1 %vm77_vm0, %v2052_v9  ;;  %v1682_v42 = vmul.f32 %v1653_v14, %v14341_v21 }
 0x79c   :  { %11733 = vmatmul.mubr.msk.f32.vlgmr.msra.gmra.mrb[26].mxu0 %vm77_vm0, %v1838_v39  ;;  %11764 = vmatmul.mubr.msk.f32.vlgmr.msra.gmra.mrb[26].mxu1 %vm77_vm0, %v2053_v17 }
 0x79d   :  { %v1707_v29 = vpop.permute.xlu0 %1706  ;;  %12484 = vmatpush3.bf16.msra.mxu0 %v17443_v47  ;;  %12488 = vmatpush3.bf16.msra.mxu1 %v17443_v47 }
 0x79e   :  { %vm1723_vm12 = vcmp.eq.s32.totalorder %v1707_v29, 1  ;;  %v1704_v22 = vpop.permute.xlu1 %1703  ;;  %12485 = vmatprep.subr.bf16.mxu0 %v17443_v47  ;;  %12489 = vmatprep.subr.bf16.mxu1 %v17443_v47 }
 0x79f   :  { %v14431_v31 = vsel %vm1723_vm12, %v1683_v5, %v14339_v37  ;;  %vm1722_vm13 = vcmp.eq.s32.totalorder %v1704_v22, 1 }
 0x7a0   :  { %v14434_v7 = vsel %vm1722_vm13, %v1682_v42, %v14341_v21  ;;  %v1840_v4 = vmul.f32 %v14431_v31, %v14431_v31  ;;  %v2055_v37 = vmul.f32 %v14404_v28, %v14431_v31 }
 0x7a1   :  { %v1839_v45 = vmul.f32 %v14434_v7, %v14434_v7  ;;  %v2054_v43 = vmul.f32 %v14404_v28, %v14434_v7  ;;  %12486 = vmatpush3.bf16.msra.mxu0 %v17443_v47  ;;  %12490 = vmatpush3.bf16.msra.mxu1 %v17443_v47 }
 0x7a2   :  { %12499 = vmatprep.subr.bf16.mxu1 %v17445_v56 }
 0x7a3   :  { %11735 = vmatprep.mubr.msk.f32.mxu0 %vm77_vm0, %v1839_v45  ;;  %11766 = vmatprep.mubr.msk.f32.mxu1 %vm77_vm0, %v2054_v43 }
 0x7a4   :  { %11736 = vmatmul.mubr.msk.f32.gmra.mrb[28].mxu0 %vm77_vm0, %v1840_v4  ;;  %11767 = vmatmul.mubr.msk.f32.gmra.mrb[28].mxu1 %vm77_vm0, %v2055_v37 }
 0x7a5   :  { %v1668_v21 = vpop.permute.xlu0 %1667 }
 0x7a6   :  { %v1663_v32 = vpop.permute.xlu1 %1662  ;;  %v1685_v34 = vmul.f32 %v1668_v21, %v14353_v36 }
 0x7a7   :  { %v1684_v57 = vmul.f32 %v1663_v32, %v14355_v41 }
 0x7a9   :  { %v1713_v23 = vpop.permute.xlu0 %1712 }
 0x7aa   :  { %vm1725_vm14 = vcmp.eq.s32.totalorder %v1713_v23, 1  ;;  %v1710_v59 = vpop.permute.xlu1 %1709 }
 0x7ab   :  { %v14454_v54 = vsel %vm1725_vm14, %v1685_v34, %v14353_v36  ;;  %vm1724_vm15 = vcmp.eq.s32.totalorder %v1710_v59, 1 }
 0x7ac   :  { %v14457_v60 = vsel %vm1724_vm15, %v1684_v57, %v14355_v41  ;;  %v1842_v46 = vmul.f32 %v14454_v54, %v14454_v54  ;;  %v2057_v12 = vmul.f32 %v14404_v28, %v14454_v54 }
 0x7ad   :  { %v1841_v62 = vmul.f32 %v14457_v60, %v14457_v60  ;;  %v2056_v58 = vmul.f32 %v14404_v28, %v14457_v60  ;;  %v1678_v61 = vpop.permute.xlu0 %1677 }
 0x7ae   :  { %v1673_v19 = vpop.permute.xlu1 %1672  ;;  %v1687_v36 = vmul.f32 %v1678_v61, %v14365_v33 }
 0x7af   :  { %11738 = vmatprep.mubr.msk.f32.mxu0 %vm77_vm0, %v1841_v62  ;;  %11769 = vmatprep.mubr.msk.f32.mxu1 %vm77_vm0, %v2056_v58  ;;  %v1686_v38 = vmul.f32 %v1673_v19, %v14367_v53 }
 0x7b0   :  { %11739 = vmatmul.mubr.msk.f32.gmra.mrb[30].mxu0 %vm77_vm0, %v1842_v46  ;;  %11770 = vmatmul.mubr.msk.f32.gmra.mrb[30].mxu1 %vm77_vm0, %v2057_v12 }
 0x7b1   :  { %v1719_v41 = vpop.permute.xlu0 %1718 }
 0x7b2   :  { %vm1727_vm2 = vcmp.eq.s32.totalorder %v1719_v41, 1  ;;  %v1716_v24 = vpop.permute.xlu1 %1715 }
 0x7b3   :  { %v14474_v25 = vsel %vm1727_vm2, %v1687_v36, %v14365_v33  ;;  %vm1726_vm3 = vcmp.eq.s32.totalorder %v1716_v24, 1  ;;  %v14493_v33 = vrot.slane %v14389_v18, %v14398_v13 }
 0x7b4   :  { %v14477_v48 = vsel %vm1726_vm3, %v1686_v38, %v14367_v53  ;;  %v1844_v2 = vmul.f32 %v14474_v25, %v14474_v25  ;;  %v2059_v44 = vmul.f32 %v14404_v28, %v14474_v25 }
 0x7b5   :  { %v1843_v55 = vmul.f32 %v14477_v48, %v14477_v48  ;;  %v2058_v1 = vmul.f32 %v14404_v28, %v14477_v48 }
 0x7b7   :  { %11741 = vmatprep.mubr.msk.f32.mxu0 %vm77_vm0, %v1843_v55  ;;  %11772 = vmatprep.mubr.msk.f32.mxu1 %vm77_vm0, %v2058_v1 }
 0x7b8   :  { %11742 = vmatmul.mubr.msk.f32.gmra.mrb[32].mxu0 %vm77_vm0, %v1844_v2  ;;  %11773 = vmatmul.mubr.msk.f32.gmra.mrb[32].mxu1 %vm77_vm0, %v2059_v44 }
 0x86f   :  { %v11734_v53 = vpop.f32.mrb[26].mxu0  ;;  %v11765_v27 = vpop.f32.mrb[26].mxu1 }
 0x870   :  { %v2266_v35 = vsub.f32 1.0, %v11734_v53  ;;  %v2330_v51 = vmul.f32 %v11734_v53, %v14493_v33  ;;  %v2190_v49 = vmul.f32 2.0, %v11765_v27  ;;  %v1935_v10 = vpop.f32.mrb[27].mxu0  ;;  %v2150_v11 = vpop.f32.mrb[27].mxu1 }
 0x871   :  { %v2329_v63 = vmul.f32 %v14493_v33, %v1935_v10  ;;  %v2189_v6 = vmul.f32 2.0, %v2150_v11  ;;  %v2265_v30 = vsub.f32 1.0, %v1935_v10 }
 0x872   :  { %v2198_v8 = vadd.f32 1.0, %v2190_v49  ;;  %2280 = vperm.xlu0 %12731, %v2266_v35  }
 0x873   :  { %v2197_v26 = vadd.f32 1.0, %v2189_v6 }
 0x874   :  { %v2210_v0 = vadd.f32 %v14493_v33, %v2198_v8  ;;  %v2338_v3 = vadd.f32 %v2330_v51, %v2198_v8 }
 0x875   :  { %v2209_v18 = vadd.f32 %v14493_v33, %v2197_v26  ;;  %v2337_v20 = vadd.f32 %v2329_v63, %v2197_v26 }
 0x876   :  { %2224 = vperm.xlu1 %12732, %v2210_v0   ;;  %2275 = vperm.xlu0 %12731, %v2265_v30   ;;  %v2346_v32 = vmax.f32 %v2338_v3, 1e-15 }
 0x877   :  { %v11737_v9 = vpop.f32.mrb[28].mxu0  ;;  %v11768_v50 = vpop.f32.mrb[28].mxu1  ;;  %v2345_v57 = vmax.f32 %v2337_v20, 1e-15 }
 0x878   :  { %v2268_v39 = vsub.f32 1.0, %v11737_v9  ;;  %v2332_v17 = vmul.f32 %v11737_v9, %v14493_v33  ;;  %v2192_v14 = vmul.f32 2.0, %v11768_v50  ;;  %v1945_v5 = vpop.f32.mrb[29].mxu0  ;;  %v2160_v29 = vpop.f32.mrb[29].mxu1  ;;  %12899 = vrcp.f32 %v2346_v32 }
 0x879   :  { %v2331_v42 = vmul.f32 %v14493_v33, %v1945_v5  ;;  %v2191_v22 = vmul.f32 2.0, %v2160_v29  ;;  %v2267_v21 = vsub.f32 1.0, %v1945_v5  ;;  %12901 = vrcp.f32 %v2345_v57 }
 0x87a   :  { %v2200_v45 = vadd.f32 1.0, %v2192_v14  ;;  %2219 = vperm.xlu1 %12732, %v2209_v18   ;;  %2290 = vperm.xlu0 %12731, %v2268_v39  }
 0x87b   :  { %v2199_v43 = vadd.f32 1.0, %v2191_v22 }
 0x87c   :  { %v2212_v4 = vadd.f32 %v14493_v33, %v2200_v45  ;;  %v2340_v37 = vadd.f32 %v2332_v17, %v2200_v45 }
 0x87d   :  { %v2211_v34 = vadd.f32 %v14493_v33, %v2199_v43  ;;  %v2339_v23 = vadd.f32 %v2331_v42, %v2199_v43 }
 0x87e   :  { %2234 = vperm.xlu1 %12732, %v2212_v4   ;;  %2285 = vperm.xlu0 %12731, %v2267_v21   ;;  %v2348_v58 = vmax.f32 %v2340_v37, 1e-15 }
 0x87f   :  { %v2347_v1 = vmax.f32 %v2339_v23, 1e-15 }
 0x880   :  { %12903 = vrcp.f32 %v2348_v58 }
 0x881   :  { %12905 = vrcp.f32 %v2347_v1 }
 0x882   :  { %2229 = vperm.xlu1 %12732, %v2211_v34   ;;  %v12900_v35 = vpop.eup %12899 }
 0x883   :  { %v11740_v59 = vpop.f32.mrb[30].mxu0  ;;  %v11771_v62 = vpop.f32.mrb[30].mxu1 }
 0x884   :  { %v2334_v61 = vmul.f32 %v11740_v59, %v14493_v33  ;;  %v2194_v46 = vmul.f32 2.0, %v11771_v62  ;;  %v1955_v12 = vpop.f32.mrb[31].mxu0  ;;  %v2170_v19 = vpop.f32.mrb[31].mxu1  ;;  %v2270_v26 = vsub.f32 1.0, %v11740_v59 }
 0x885   :  { %v2269_v36 = vsub.f32 1.0, %v1955_v12  ;;  %v2333_v41 = vmul.f32 %v14493_v33, %v1955_v12  ;;  %v2193_v38 = vmul.f32 2.0, %v2170_v19  ;;  %v12902_v30 = vpop.eup %12901 }
 0x886   :  { %v2202_v24 = vadd.f32 1.0, %v2194_v46 }
 0x887   :  { %v2201_v55 = vadd.f32 1.0, %v2193_v38  ;;  %2295 = vperm.xlu0 %12731, %v2269_v36  }
 0x888   :  { %v2214_v2 = vadd.f32 %v14493_v33, %v2202_v24  ;;  %v2342_v44 = vadd.f32 %v2334_v61, %v2202_v24 }
 0x889   :  { %v2213_v53 = vadd.f32 %v14493_v33, %v2201_v55  ;;  %v2341_v27 = vadd.f32 %v2333_v41, %v2201_v55 }
 0x88a   :  { %v2350_v10 = vmax.f32 %v2342_v44, 1e-15  ;;  %v12904_v5 = vpop.eup %12903 }
 0x88b   :  { %2239 = vperm.xlu1 %12732, %v2213_v53   ;;  %2376 = vperm.xlu0 %12731, %v12900_v35   ;;  %v11743_v51 = vpop.f32.mrb[32].mxu0  ;;  %v11774_v49 = vpop.f32.mrb[32].mxu1  ;;  %v2349_v9 = vmax.f32 %v2341_v27, 1e-15 }
 0x88c   :  { %v2336_v11 = vmul.f32 %v11743_v51, %v14493_v33  ;;  %v2196_v63 = vmul.f32 2.0, %v11774_v49  ;;  %v1965_v6 = vpop.f32.mrb[33].mxu0  ;;  %v2180_v8 = vpop.f32.mrb[33].mxu1  ;;  %12907 = vrcp.f32 %v2350_v10  ;;  %v2272_v4 = vsub.f32 1.0, %v11743_v51 }
 0x88d   :  { %v2335_v0 = vmul.f32 %v14493_v33, %v1965_v6  ;;  %v2195_v3 = vmul.f32 2.0, %v2180_v8  ;;  %12909 = vrcp.f32 %v2349_v9  ;;  %v2271_v42 = vsub.f32 1.0, %v1965_v6  ;;  %v12906_v22 = vpop.eup %12905 }
 0x88e   :  { %v2204_v18 = vadd.f32 1.0, %v2196_v63 }
 0x88f   :  { %v2203_v20 = vadd.f32 1.0, %v2195_v3  ;;  %2371 = vperm.xlu1 %12732, %v12902_v30   ;;  %2300 = vperm.xlu0 %12731, %v2270_v26  }
 0x890   :  { %v2216_v50 = vadd.f32 %v14493_v33, %v2204_v18  ;;  %v2344_v39 = vadd.f32 %v2336_v11, %v2204_v18 }
 0x891   :  { %v2215_v17 = vadd.f32 %v14493_v33, %v2203_v20  ;;  %v2343_v14 = vadd.f32 %v2335_v0, %v2203_v20 }
 0x892   :  { %v2352_v29 = vmax.f32 %v2344_v39, 1e-15 }
 0x893   :  { %2244 = vperm.xlu1 %12732, %v2214_v2   ;;  %2386 = vperm.xlu0 %12731, %v12904_v5   ;;  %v2351_v45 = vmax.f32 %v2343_v14, 1e-15 }
 0x894   :  { %12911 = vrcp.f32 %v2352_v29 }
 0x895   :  { %12913 = vrcp.f32 %v2351_v45 }
 0x896   :  { %v12908_v43 = vpop.eup %12907 }
 0x897   :  { %2381 = vperm.xlu1 %12732, %v12906_v22   ;;  %2305 = vperm.xlu0 %12731, %v2271_v42   ;;  %v12910_v37 = vpop.eup %12909 }
 0x89b   :  { %2249 = vperm.xlu1 %12732, %v2215_v17   ;;  %2396 = vperm.xlu0 %12731, %v12908_v43  }
 0x89e   :  { %v12912_v33 = vpop.eup %12911 }
 0x89f   :  { %2391 = vperm.xlu1 %12732, %v12910_v37   ;;  %2310 = vperm.xlu0 %12731, %v2272_v4   ;;  %v12914_v21 = vpop.eup %12913 }
 0x8a3   :  { %2254 = vperm.xlu1 %12732, %v2216_v50   ;;  %2406 = vperm.xlu0 %12731, %v12912_v33  }
 0x8a7   :  { %2401 = vperm.xlu1 %12732, %v12914_v21  }
 0x8f1   :  { %v2281_v32 = vpop.permute.xlu0 %2280 }
 0x8f2   :  { %v2314_v36 = vmul.f32 %v2281_v32, %v14404_v28 }
 0x8f5   :  { %v2225_v34 = vpop.permute.xlu1 %2224  ;;  %v2276_v23 = vpop.permute.xlu0 %2275 }
 0x8f6   :  { %v2258_v12 = vmul.f32 %v2225_v34, %v14407_v52  ;;  %v2313_v24 = vmul.f32 %v2276_v23, %v14404_v28 }
 0x8f8   :  { %v2322_v55 = vadd.f32 %v2314_v36, %v2258_v12 }
 0x8f9   :  { %v2220_v57 = vpop.permute.xlu1 %2219  ;;  %v2291_v59 = vpop.permute.xlu0 %2290 }
 0x8fa   :  { %v2257_v19 = vmul.f32 %v2220_v57, %v14410_v15  ;;  %v2316_v51 = vmul.f32 %v2291_v59, %v14404_v28 }
 0x8fc   :  { %v2321_v1 = vadd.f32 %v2313_v24, %v2257_v19 }
 0x8fd   :  { %v2235_v62 = vpop.permute.xlu1 %2234  ;;  %v2286_v58 = vpop.permute.xlu0 %2285 }
 0x8fe   :  { %v2260_v35 = vmul.f32 %v2235_v62, %v14431_v31  ;;  %v2315_v63 = vmul.f32 %v2286_v58, %v14404_v28 }
 0x900   :  { %v2324_v6 = vadd.f32 %v2316_v51, %v2260_v35 }
 0x901   :  { %v2230_v61 = vpop.permute.xlu1 %2229 }
 0x902   :  { %v2259_v52 = vmul.f32 %v2230_v61, %v14434_v7 }
 0x904   :  { %v2323_v31 = vadd.f32 %v2315_v63, %v2259_v52 }
 0x906   :  { %v2296_v46 = vpop.permute.xlu0 %2295 }
 0x907   :  { %v2317_v17 = vmul.f32 %v2296_v46, %v14404_v28 }
 0x90a   :  { %v2240_v41 = vpop.permute.xlu1 %2239  ;;  %v2377_v38 = vpop.permute.xlu0 %2376 }
 0x90b   :  { %v14515_v2 = vmul.f32 %v2377_v38, %v2322_v55  ;;  %v2261_v30 = vmul.f32 %v2240_v41, %v14457_v60 }
 0x90d   :  { %v2418_v49 = vmul.f32 %v14515_v2, %v14515_v2 }
 0x90e   :  { %v2372_v44 = vpop.permute.xlu1 %2371  ;;  %v2301_v53 = vpop.permute.xlu0 %2300 }
 0x90f   :  { %v14517_v27 = vmul.f32 %v2372_v44, %v2321_v1  ;;  %v2318_v20 = vmul.f32 %v2301_v53, %v14404_v28 }
 0x911   :  { %v2417_v15 = vmul.f32 %v14517_v27, %v14517_v27 }
 0x912   :  { %v2245_v10 = vpop.permute.xlu1 %2244  ;;  %v2387_v11 = vpop.permute.xlu0 %2386 }
 0x913   :  { %11783 = vmatprep.mubr.msk.f32.mxu0 %vm77_vm0, %v2417_v15  ;;  %v14529_v8 = vmul.f32 %v2387_v11, %v2324_v6  ;;  %v2262_v3 = vmul.f32 %v2245_v10, %v14454_v54  ;;  %v2325_v54 = vadd.f32 %v2317_v17, %v2261_v30 }
 0x914   :  { %11784 = vmatmul.mubr.msk.f32.vlgmr.msra.gmra.mrb[34].mxu0 %vm77_vm0, %v2418_v49 }
 0x915   :  { %v2420_v9 = vmul.f32 %v14529_v8, %v14529_v8  ;;  %v2326_v14 = vadd.f32 %v2318_v20, %v2262_v3 }
 0x916   :  { %v2382_v7 = vpop.permute.xlu1 %2381  ;;  %v2306_v26 = vpop.permute.xlu0 %2305 }
 0x917   :  { %v14531_v0 = vmul.f32 %v2382_v7, %v2323_v31  ;;  %v2319_v37 = vmul.f32 %v2306_v26, %v14404_v28 }
 0x919   :  { %v2419_v18 = vmul.f32 %v14531_v0, %v14531_v0 }
 0x91a   :  { %v2250_v50 = vpop.permute.xlu1 %2249  ;;  %v2397_v39 = vpop.permute.xlu0 %2396 }
 0x91b   :  { %11786 = vmatprep.mubr.msk.f32.mxu0 %vm77_vm0, %v2419_v18  ;;  %v14543_v5 = vmul.f32 %v2397_v39, %v2326_v14  ;;  %v2263_v22 = vmul.f32 %v2250_v50, %v14477_v48 }
 0x91c   :  { %11787 = vmatmul.mubr.msk.f32.gmra.mrb[36].mxu0 %vm77_vm0, %v2420_v9 }
 0x91d   :  { %v2422_v43 = vmul.f32 %v14543_v5, %v14543_v5  ;;  %v2327_v34 = vadd.f32 %v2319_v37, %v2263_v22 }
 0x91e   :  { %v2392_v60 = vpop.permute.xlu1 %2391  ;;  %v2311_v42 = vpop.permute.xlu0 %2310 }
 0x91f   :  { %v14545_v29 = vmul.f32 %v2392_v60, %v2325_v54  ;;  %v2320_v33 = vmul.f32 %v2311_v42, %v14404_v28 }
 0x921   :  { %v2421_v45 = vmul.f32 %v14545_v29, %v14545_v29 }
 0x922   :  { %v2255_v4 = vpop.permute.xlu1 %2254  ;;  %v2407_v48 = vpop.permute.xlu0 %2406 }
 0x923   :  { %v2264_v21 = vmul.f32 %v2255_v4, %v14474_v25  ;;  %11789 = vmatprep.mubr.msk.f32.mxu0 %vm77_vm0, %v2421_v45 }
 0x924   :  { %11790 = vmatmul.mubr.msk.f32.gmra.mrb[38].mxu0 %vm77_vm0, %v2422_v43 }
 0x925   :  { %v2328_v32 = vadd.f32 %v2320_v33, %v2264_v21 }
 0x926   :  { %v2402_v23 = vpop.permute.xlu1 %2401 }
 0x927   :  { %v14557_v57 = vmul.f32 %v2407_v48, %v2328_v32  ;;  %v14559_v59 = vmul.f32 %v2402_v23, %v2327_v34 }
 0x929   :  { %v2424_v62 = vmul.f32 %v14557_v57, %v14557_v57  ;;  %v2423_v28 = vmul.f32 %v14559_v59, %v14559_v59 }
 0x92b   :  { %11792 = vmatprep.mubr.msk.f32.mxu0 %vm77_vm0, %v2423_v28 }
 0x92c   :  { %11793 = vmatmul.mubr.msk.f32.gmra.mrb[40].mxu0 %vm77_vm0, %v2424_v62 }
 0x9e7   :  { %v11785_v25 = vpop.f32.mrb[34].mxu0 }
 0x9e8   :  { %v2555_v58 = vmax.f32 %v11785_v25, 1e-30  ;;  %v2515_v61 = vpop.f32.mrb[35].mxu0 }
 0x9e9   :  { %v2554_v46 = vmax.f32 %v2515_v61, 1e-30 }
 0x9ea   :  { %12915 = vrsqrt.f32 %v2555_v58 }
 0x9eb   :  { %12917 = vrsqrt.f32 %v2554_v46 }
 0x9ef   :  { %v11788_v12 = vpop.f32.mrb[36].mxu0 }
 0x9f0   :  { %v2557_v19 = vmax.f32 %v11788_v12, 1e-30  ;;  %v2525_v36 = vpop.f32.mrb[37].mxu0 }
 0x9f1   :  { %v2556_v41 = vmax.f32 %v2525_v36, 1e-30 }
 0x9f2   :  { %12919 = vrsqrt.f32 %v2557_v19 }
 0x9f3   :  { %12921 = vrsqrt.f32 %v2556_v41 }
 0x9f4   :  { %v12916_v38 = vpop.eup %12915 }
 0x9f5   :  { %v12918_v24 = vpop.eup %12917  ;;  %v2571_v55 = vmul.f32 %v12916_v38, %v11785_v25  ;;  %v2587_v1 = vmul.f32 0.996, %v12916_v38 }
 0x9f6   :  { %v2570_v44 = vmul.f32 %v12918_v24, %v2515_v61  ;;  %v2586_v53 = vmul.f32 0.996, %v12918_v24 }
 0x9f7   :  { %vm2579_vm4 = vcmp.gt.f32.partialorder %v2571_v55, 0.996  ;;  %2601 = vperm.xlu0 %12731, %v2587_v1   ;;  %v11791_v35 = vpop.f32.mrb[38].mxu0 }
 0x9f8   :  { %vm2578_vm5 = vcmp.gt.f32.partialorder %v2570_v44, 0.996  ;;  %v2559_v52 = vmax.f32 %v11791_v35, 1e-30  ;;  %2596 = vperm.xlu1 %12732, %v2586_v53   ;;  %v2535_v15 = vpop.f32.mrb[39].mxu0  ;;  %v2643_v49 = vsel %vm2579_vm4, 1, %v17440_v40 }
 0x9f9   :  { %v2558_v51 = vmax.f32 %v2535_v15, 1e-30  ;;  %v2642_v10 = vsel %vm2578_vm5, 1, %v17440_v40 }
 0x9fa   :  { %12923 = vrsqrt.f32 %v2559_v52 }
 0x9fb   :  { %12925 = vrsqrt.f32 %v2558_v51  ;;  %2654 = vperm.xlu0 %12731, %v2643_v49  }
 0x9fc   :  { %v12920_v11 = vpop.eup %12919  ;;  %2651 = vperm.xlu1 %12732, %v2642_v10  }
 0x9fd   :  { %v12922_v63 = vpop.eup %12921  ;;  %v2573_v6 = vmul.f32 %v12920_v11, %v11788_v12  ;;  %v2589_v31 = vmul.f32 0.996, %v12920_v11 }
 0x9fe   :  { %v2572_v7 = vmul.f32 %v12922_v63, %v2525_v36  ;;  %v2588_v26 = vmul.f32 0.996, %v12922_v63 }
 0x9ff   :  { %vm2581_vm7 = vcmp.gt.f32.partialorder %v2573_v6, 0.996  ;;  %2611 = vperm.xlu0 %12731, %v2589_v31   ;;  %v11794_v3 = vpop.f32.mrb[40].mxu0 }
 0xa00   :  { %vm2580_vm8 = vcmp.gt.f32.partialorder %v2572_v7, 0.996  ;;  %v2561_v30 = vmax.f32 %v11794_v3, 1e-30  ;;  %2606 = vperm.xlu1 %12732, %v2588_v26   ;;  %v2545_v18 = vpop.f32.mrb[41].mxu0  ;;  %v2645_v9 = vsel %vm2581_vm7, 1, %v17440_v40 }
 0xa01   :  { %v2560_v20 = vmax.f32 %v2545_v18, 1e-30  ;;  %v2644_v50 = vsel %vm2580_vm8, 1, %v17440_v40 }
 0xa02   :  { %12927 = vrsqrt.f32 %v2561_v30 }
 0xa03   :  { %12929 = vrsqrt.f32 %v2560_v20  ;;  %2660 = vperm.xlu0 %12731, %v2645_v9  }
 0xa04   :  { %v12924_v39 = vpop.eup %12923  ;;  %2657 = vperm.xlu1 %12732, %v2644_v50   ;;  %v17446_v50 = vmov 0.0  }
 0xa05   :  { %v12926_v17 = vpop.eup %12925  ;;  %v2575_v14 = vmul.f32 %v12924_v39, %v11791_v35  ;;  %v2591_v54 = vmul.f32 0.996, %v12924_v39 }
 0xa06   :  { %v2574_v60 = vmul.f32 %v12926_v17, %v2535_v15  ;;  %v2590_v42 = vmul.f32 0.996, %v12926_v17 }
 0xa07   :  { %vm2583_vm9 = vcmp.gt.f32.partialorder %v2575_v14, 0.996  ;;  %2621 = vperm.xlu0 %12731, %v2591_v54  }
 0xa08   :  { %vm2582_vm10 = vcmp.gt.f32.partialorder %v2574_v60, 0.996  ;;  %2616 = vperm.xlu1 %12732, %v2590_v42   ;;  %v2647_v22 = vsel %vm2583_vm9, 1, %v17440_v40 }
 0xa09   :  { %v2646_v45 = vsel %vm2582_vm10, 1, %v17440_v40 }
 0xa0b   :  { %2666 = vperm.xlu0 %12731, %v2647_v22  }
 0xa0c   :  { %v12928_v43 = vpop.eup %12927  ;;  %2663 = vperm.xlu1 %12732, %v2646_v45  }
 0xa0d   :  { %v12930_v4 = vpop.eup %12929  ;;  %v2577_v37 = vmul.f32 %v12928_v43, %v11794_v3  ;;  %v2593_v33 = vmul.f32 0.996, %v12928_v43 }
 0xa0e   :  { %v2576_v21 = vmul.f32 %v12930_v4, %v2545_v18  ;;  %v2592_v32 = vmul.f32 0.996, %v12930_v4 }
 0xa0f   :  { %vm2585_vm11 = vcmp.gt.f32.partialorder %v2577_v37, 0.996  ;;  %2631 = vperm.xlu0 %12731, %v2593_v33  }
 0xa10   :  { %vm2584_vm12 = vcmp.gt.f32.partialorder %v2576_v21, 0.996  ;;  %2626 = vperm.xlu1 %12732, %v2592_v32   ;;  %v2649_v34 = vsel %vm2585_vm11, 1, %v17440_v40 }
 0xa11   :  { %v2648_v48 = vsel %vm2584_vm12, 1, %v17440_v40 }
 0xa13   :  { %2672 = vperm.xlu0 %12731, %v2649_v34  }
 0xa14   :  { %2669 = vperm.xlu1 %12732, %v2648_v48  }
 0xa76   :  { %v2602_v23 = vpop.permute.xlu0 %2601 }
 0xa77   :  { %v2597_v62 = vpop.permute.xlu1 %2596  ;;  %v2635_v28 = vmul.f32 %v2602_v23, %v14515_v2 }
 0xa78   :  { %v2634_v58 = vmul.f32 %v2597_v62, %v14517_v27 }
 0xa7a   :  { %v2655_v25 = vpop.permute.xlu0 %2654 }
 0xa7b   :  { %vm2675_vm13 = vcmp.eq.s32.totalorder %v2655_v25, 1  ;;  %v2652_v61 = vpop.permute.xlu1 %2651 }
 0xa7c   :  { %v14578_v46 = vsel %vm2675_vm13, %v2635_v28, %v14515_v2  ;;  %vm2674_vm14 = vcmp.eq.s32.totalorder %v2652_v61, 1 }
 0xa7d   :  { %v14581_v12 = vsel %vm2674_vm14, %v2634_v58, %v14517_v27  ;;  %v2691_v41 = vmul.f32 %v14578_v46, %v14578_v46 }
 0xa7e   :  { %v2690_v19 = vmul.f32 %v14581_v12, %v14581_v12  ;;  %v2612_v36 = vpop.permute.xlu0 %2611 }
 0xa7f   :  { %v2607_v38 = vpop.permute.xlu1 %2606  ;;  %v2637_v24 = vmul.f32 %v2612_v36, %v14529_v8 }
 0xa80   :  { %11803 = vmatprep.mubr.msk.f32.mxu1 %vm77_vm0, %v2690_v19  ;;  %v2636_v55 = vmul.f32 %v2607_v38, %v14531_v0 }
 0xa81   :  { %11804 = vmatmul.mubr.msk.f32.vlgmr.msra.gmra.mrb[34].mxu1 %vm77_vm0, %v2691_v41 }
 0xa82   :  { %v2661_v2 = vpop.permute.xlu0 %2660 }
 0xa83   :  { %vm2677_vm15 = vcmp.eq.s32.totalorder %v2661_v2, 1  ;;  %v2658_v27 = vpop.permute.xlu1 %2657 }
 0xa84   :  { %v14592_v1 = vsel %vm2677_vm15, %v2637_v24, %v14529_v8  ;;  %vm2676_vm2 = vcmp.eq.s32.totalorder %v2658_v27, 1 }
 0xa85   :  { %v14595_v44 = vsel %vm2676_vm2, %v2636_v55, %v14531_v0  ;;  %v2693_v52 = vmul.f32 %v14592_v1, %v14592_v1 }
 0xa86   :  { %v2692_v53 = vmul.f32 %v14595_v44, %v14595_v44  ;;  %v2622_v35 = vpop.permute.xlu0 %2621 }
 0xa87   :  { %v2617_v15 = vpop.permute.xlu1 %2616  ;;  %v2639_v51 = vmul.f32 %v2622_v35, %v14543_v5 }
 0xa88   :  { %11806 = vmatprep.mubr.msk.f32.mxu1 %vm77_vm0, %v2692_v53  ;;  %v2638_v49 = vmul.f32 %v2617_v15, %v14545_v29 }
 0xa89   :  { %11807 = vmatmul.mubr.msk.f32.gmra.mrb[36].mxu1 %vm77_vm0, %v2693_v52 }
 0xa8a   :  { %v2667_v8 = vpop.permute.xlu0 %2666 }
 0xa8b   :  { %vm2679_vm3 = vcmp.eq.s32.totalorder %v2667_v8, 1  ;;  %v2664_v0 = vpop.permute.xlu1 %2663 }
 0xa8c   :  { %v14606_v10 = vsel %vm2679_vm3, %v2639_v51, %v14543_v5  ;;  %vm2678_vm4 = vcmp.eq.s32.totalorder %v2664_v0, 1 }
 0xa8d   :  { %v14609_v11 = vsel %vm2678_vm4, %v2638_v49, %v14545_v29  ;;  %v2695_v31 = vmul.f32 %v14606_v10, %v14606_v10 }
 0xa8e   :  { %v2694_v63 = vmul.f32 %v14609_v11, %v14609_v11  ;;  %v2632_v6 = vpop.permute.xlu0 %2631 }
 0xa8f   :  { %v2627_v7 = vpop.permute.xlu1 %2626  ;;  %v2641_v26 = vmul.f32 %v2632_v6, %v14557_v57 }
 0xa90   :  { %11809 = vmatprep.mubr.msk.f32.mxu1 %vm77_vm0, %v2694_v63  ;;  %v2640_v3 = vmul.f32 %v2627_v7, %v14559_v59 }
 0xa91   :  { %11810 = vmatmul.mubr.msk.f32.gmra.mrb[38].mxu1 %vm77_vm0, %v2695_v31 }
 0xa92   :  { %v2673_v5 = vpop.permute.xlu0 %2672 }
 0xa93   :  { %vm2681_vm5 = vcmp.eq.s32.totalorder %v2673_v5, 1  ;;  %v2670_v29 = vpop.permute.xlu1 %2669 }
 0xa94   :  { %v14620_v30 = vsel %vm2681_vm5, %v2641_v26, %v14557_v57  ;;  %vm2680_vm7 = vcmp.eq.s32.totalorder %v2670_v29, 1  ;;  %v3091_v57 = vld [vmem:[%s17384_s6] sm:$0xff] }
 0xa95   :  { %v14623_v18 = vsel %vm2680_vm7, %v2640_v3, %v14559_v59  ;;  %v2697_v9 = vmul.f32 %v14620_v30, %v14620_v30  ;;  %v3092_v59 = vld [vmem:[%s17384_s6 + $0x8] sm:$0xff] }
 0xa96   :  { %v2696_v20 = vmul.f32 %v14623_v18, %v14623_v18  ;;  %v12491_v39 = vpack.c.bf16 %v3092_v59, %v3091_v57 }
 0xa98   :  { %11812 = vmatprep.mubr.msk.f32.mxu1 %vm77_vm0, %v2696_v20  ;;  %12492 = vmatprep.subr.bf16.mxu0 %v12491_v39 }
 0xa99   :  { %11813 = vmatmul.mubr.msk.f32.gmra.mrb[40].mxu1 %vm77_vm0, %v2697_v9  ;;  %12494 = vmatpush3.bf16.msra.mxu0 %v12491_v39 }
 0xa9a   :  { %11851 = vmatprep.mubr.msk.f32.mxu1 %vm13636_vm6, %v17446_v50 }
 0xb54   :  { %v11805_v17 = vpop.f32.mrb[34].mxu1 }
 0xb55   :  { %v2828_v14 = vmax.f32 %v11805_v17, 1e-30  ;;  %v2788_v54 = vpop.f32.mrb[35].mxu1 }
 0xb56   :  { %v2827_v60 = vmax.f32 %v2788_v54, 1e-30 }
 0xb57   :  { %12931 = vrsqrt.f32 %v2828_v14 }
 0xb58   :  { %12933 = vrsqrt.f32 %v2827_v60 }
 0xb5c   :  { %v11808_v42 = vpop.f32.mrb[36].mxu1 }
 0xb5d   :  { %v2830_v22 = vmax.f32 %v11808_v42, 1e-30  ;;  %v2798_v45 = vpop.f32.mrb[37].mxu1 }
 0xb5e   :  { %v2829_v43 = vmax.f32 %v2798_v45, 1e-30 }
 0xb5f   :  { %12935 = vrsqrt.f32 %v2830_v22 }
 0xb60   :  { %12937 = vrsqrt.f32 %v2829_v43 }
 0xb61   :  { %v14639_v4 = vpop.eup %12931 }
 0xb62   :  { %v14641_v37 = vpop.eup %12933  ;;  %v2844_v33 = vmul.f32 %v14639_v4, %v11805_v17 }
 0xb63   :  { %v2843_v21 = vmul.f32 %v14641_v37, %v2788_v54 }
 0xb64   :  { %v10842_v32 = vclamps-f32 %v2844_v33, 0.9999999  ;;  %v11811_v34 = vpop.f32.mrb[38].mxu1 }
 0xb65   :  { %v2832_v48 = vmax.f32 %v11811_v34, 1e-30  ;;  %v2808_v23 = vpop.f32.mrb[39].mxu1  ;;  %v14645_v25 = vclamps-f32 %v2843_v21, 0.9999999 }
 0xb66   :  { %v2876_v62 = vadd.f32 1.0, %v10842_v32  ;;  %v2940_v28 = vsub.f32 0.0, %v10842_v32  ;;  %v2831_v58 = vmax.f32 %v2808_v23, 1e-30  ;;  %v2879_v53 = vmul.f32 -0.5, %v10842_v32 }
 0xb67   :  { %12939 = vrsqrt.f32 %v2832_v48  ;;  %v2867_v41 = vadd.f32 1.0, %v14645_v25  ;;  %v14654_v24 = vsub.f32 0.0, %v14645_v25  ;;  %v2870_v0 = vmul.f32 -0.5, %v14645_v25 }
 0xb68   :  { %12941 = vlog2.f32 %v2876_v62  ;;  %v2956_v61 = vadd.f32 1.0, %v2940_v28  ;;  %v2959_v8 = vmul.f32 -0.5, %v2940_v28  ;;  %v2880_v31 = vadd.f32 1.0, %v2879_v53 }
 0xb69   :  { %v14647_v19 = vpop.eup %12935  ;;  %12943 = vrsqrt.f32 %v2831_v58  ;;  %v2947_v49 = vadd.f32 1.0, %v14654_v24  ;;  %v2882_v26 = vand.u32 2147483647, %v10842_v32  ;;  %v2962_v20 = vand.u32 2147483647, %v2940_v28 }
 0xb6a   :  { %v14649_v36 = vpop.eup %12937  ;;  %v2846_v38 = vmul.f32 %v14647_v19, %v11808_v42  ;;  %12945 = vlog2.f32 %v2956_v61  ;;  %v2960_v3 = vadd.f32 1.0, %v2959_v8  ;;  %v2871_v57 = vadd.f32 1.0, %v2870_v0 }
 0xb6b   :  { %v2845_v55 = vmul.f32 %v14649_v36, %v2798_v45  ;;  %12947 = vlog2.f32 %v2867_v41  ;;  %v2881_v14 = vmul.f32 %v10842_v32, %v2880_v31  ;;  %vm14677_vm8 = vcmp.lt.f32.partialorder %v2882_v26, 0.0004427343 }
 0xb6c   :  { %v14656_v2 = vclamps-f32 %v2846_v38, 0.9999999  ;;  %v11814_v27 = vpop.f32.mrb[40].mxu1  ;;  %v2961_v43 = vmul.f32 %v2960_v3, %v2940_v28  ;;  %v2950_v33 = vmul.f32 -0.5, %v14654_v24  ;;  %vm2963_vm9 = vcmp.lt.f32.partialorder %v2962_v20, 0.0004427343 }
 0xb6d   :  { %v2834_v35 = vmax.f32 %v11814_v27, 1e-30  ;;  %v14659_v52 = vpop.f32.mrb[41].mxu1  ;;  %v14665_v63 = vclamps-f32 %v2845_v55, 0.9999999  ;;  %v2872_v38 = vmul.f32 %v14645_v25, %v2871_v57 }
 0xb6e   :  { %v2894_v15 = vadd.f32 1.0, %v14656_v2  ;;  %v2833_v51 = vmax.f32 %v14659_v52, 1e-30  ;;  %v14670_v7 = vsub.f32 0.0, %v14656_v2  ;;  %v2897_v29 = vmul.f32 -0.5, %v14656_v2 }
 0xb6f   :  { %12949 = vrsqrt.f32 %v2834_v35  ;;  %v2888_v59 = vmul.f32 -0.5, %v14665_v63  ;;  %v2885_v22 = vadd.f32 1.0, %v14665_v63  ;;  %v2873_v48 = vand.u32 2147483647, %v14645_v25 }
 0xb70   :  { %12951 = vlog2.f32 %v2894_v15  ;;  %v2974_v42 = vadd.f32 1.0, %v14670_v7  ;;  %v2898_v21 = vadd.f32 1.0, %v2897_v29  ;;  %v2953_v53 = vand.u32 2147483647, %v14654_v24 }
 0xb71   :  { %v14667_v6 = vpop.eup %12939  ;;  %12953 = vrsqrt.f32 %v2833_v51  ;;  %v2889_v62 = vadd.f32 1.0, %v2888_v59  ;;  %v2951_v15 = vadd.f32 1.0, %v2950_v33  ;;  %v2977_v51 = vmul.f32 -0.5, %v14670_v7 }
 0xb72   :  { %v12942_v5 = vpop.eup %12941  ;;  %12955 = vlog2.f32 %v2947_v49  ;;  %v2848_v54 = vmul.f32 %v14667_v6, %v11811_v34  ;;  %v2899_v8 = vmul.f32 %v14656_v2, %v2898_v21  ;;  %v14698_v49 = vsub.f32 0.0, %v14665_v63 }
 0xb73   :  { %v14673_v9 = vpop.eup %12943  ;;  %v2878_v39 = vmul.f32 0.6931472, %v12942_v5  ;;  %12957 = vlog2.f32 %v2974_v42  ;;  %v2900_v25 = vand.u32 2147483647, %v14656_v2  ;;  %v14704_v26 = vmul.f32 %v14665_v63, %v2889_v62 }
 0xb74   :  { %v12946_v17 = vpop.eup %12945  ;;  %v2847_v34 = vmul.f32 %v14673_v9, %v2808_v23  ;;  %v14691_v28 = vclamps-f32 %v2848_v54, 0.9999999  ;;  %12959 = vlog2.f32 %v2885_v22  ;;  %vm14708_vm10 = vcmp.lt.f32.partialorder %v2873_v48, 0.0004427343 }
 0xb75   :  { %v2958_v45 = vmul.f32 0.6931472, %v12946_v17  ;;  %v12948_v32 = vpop.eup %12947  ;;  %v2884_v58 = vsel %vm14677_vm8, %v2881_v14, %v2878_v39  ;;  %vm14716_vm11 = vcmp.lt.f32.partialorder %v2953_v53, 0.0004427343  ;;  %v2952_v14 = vmul.f32 %v2951_v15, %v14654_v24 }
 0xb76   :  { %v14706_v5 = vclamps-f32 %v2847_v34, 0.9999999  ;;  %v2912_v20 = vadd.f32 1.0, %v14691_v28  ;;  %v2978_v54 = vadd.f32 1.0, %v2977_v51  ;;  %v2915_v60 = vmul.f32 -0.5, %v14691_v28 }
 0xb77   :  { %v2964_v61 = vsel %vm2963_vm9, %v2961_v43, %v2958_v45  ;;  %v14725_v42 = vsub.f32 0.0, %v14691_v28  ;;  %vm2901_vm12 = vcmp.lt.f32.partialorder %v2900_v25, 0.0004427343 }
 0xb78   :  { %v3020_v55 = vsub.f32 %v2884_v58, %v2964_v61  ;;  %v2903_v22 = vadd.f32 1.0, %v14706_v5  ;;  %12961 = vlog2.f32 %v2912_v20  ;;  %v2906_v21 = vmul.f32 -0.5, %v14706_v5 }
 0xb79   :  { %v14688_v41 = vpop.eup %12949  ;;  %v2979_v58 = vmul.f32 %v2978_v54, %v14670_v7  ;;  %v2916_v61 = vadd.f32 1.0, %v2915_v60  ;;  %v14740_v53 = vsub.f32 0.0, %v14706_v5  ;;  %v2992_v25 = vadd.f32 1.0, %v14725_v42 }
 0xb7a   :  { %v2850_v35 = vmul.f32 %v14688_v41, %v11814_v27  ;;  %v12952_v23 = vpop.eup %12951  ;;  %v3028_v0 = vmul.f32 0.5, %v3020_v55  ;;  %v2869_v27 = vmul.f32 0.6931472, %v12948_v32 }
 0xb7b   :  { %v14701_v31 = vpop.eup %12953  ;;  %v2896_v24 = vmul.f32 0.6931472, %v12952_v23  ;;  %v2983_v59 = vadd.f32 1.0, %v14740_v53 }
 0xb7c   :  { %v12956_v29 = vpop.eup %12955  ;;  %v2849_v57 = vmul.f32 %v14701_v31, %v14659_v52  ;;  %v3036_v2 = vmul.f32 %v14639_v4, %v3028_v0  ;;  %v14720_v39 = vclamps-f32 %v2850_v35, 0.9999999  ;;  %v2980_v52 = vand.u32 2147483647, %v14670_v7 }
 0xb7d   :  { %v2949_v17 = vmul.f32 0.6931472, %v12956_v29  ;;  %v2965_v4 = vadd.f32 1.0, %v14698_v49  ;;  %v2875_v45 = vsel %vm14708_vm10, %v2872_v38, %v2869_v27  ;;  %v12958_v33 = vpop.eup %12957  ;;  %v2902_v35 = vsel %vm2901_vm12, %v2899_v8, %v2896_v24 }
 0xb7e   :  { %3050 = vperm.xlu0 %12731, %v3036_v2   ;;  %v14735_v48 = vclamps-f32 %v2849_v57, 0.9999999  ;;  %v2930_v62 = vadd.f32 1.0, %v14720_v39  ;;  %v2976_v34 = vmul.f32 0.6931472, %v12958_v33  ;;  %v12960_v38 = vpop.eup %12959  ;;  %v2968_v27 = vmul.f32 -0.5, %v14698_v49 }
 0xb7f   :  { %v2955_v43 = vsel %vm14716_vm11, %v2952_v14, %v2949_v17  ;;  %12963 = vlog2.f32 %v2965_v4  ;;  %vm2981_vm13 = vcmp.lt.f32.partialorder %v2980_v52, 0.0004427343  ;;  %v2907_v7 = vadd.f32 1.0, %v2906_v21  ;;  %vm14842_vm11 = vmpackc.low %vm77_vm0, %vm77_vm0 }
 0xb80   :  { %v3019_v32 = vsub.f32 %v2875_v45, %v2955_v43  ;;  %12965 = vlog2.f32 %v2903_v22  ;;  %v2982_v15 = vsel %vm2981_vm13, %v2979_v58, %v2976_v34  ;;  %v2921_v51 = vadd.f32 1.0, %v14735_v48 }
 0xb81   :  { %v3022_v0 = vsub.f32 %v2902_v35, %v2982_v15  ;;  %12967 = vlog2.f32 %v2930_v62  ;;  %v2933_v3 = vmul.f32 -0.5, %v14720_v39  ;;  %v14748_v29 = vsub.f32 0.0, %v14720_v39 }
 0xb82   :  { %v3027_v55 = vmul.f32 0.5, %v3019_v32  ;;  %v2887_v8 = vmul.f32 0.6931472, %v12960_v38  ;;  %v2891_v57 = vand.u32 2147483647, %v14665_v63  ;;  %v2924_v2 = vmul.f32 -0.5, %v14735_v48  ;;  %v12962_v4 = vpop.eup %12961 }
 0xb83   :  { %v3030_v20 = vmul.f32 0.5, %v3022_v0  ;;  %12969 = vlog2.f32 %v2992_v25  ;;  %v14757_v17 = vmul.f32 %v14691_v28, %v2916_v61  ;;  %v2969_v54 = vadd.f32 1.0, %v2968_v27 }
 0xb84   :  { %v3035_v23 = vmul.f32 %v14641_v37, %v3027_v55  ;;  %v14753_v37 = vsub.f32 0.0, %v14735_v48  ;;  %12971 = vlog2.f32 %v2921_v51  ;;  %v14761_v60 = vmul.f32 %v14706_v5, %v2907_v7  ;;  %v3094_v55 = vld [vmem:[%s17384_s6 + $0x18] sm:$0xff] }
 0xb85   :  { %v3038_v14 = vmul.f32 %v14647_v19, %v3030_v20  ;;  %v2934_v52 = vadd.f32 1.0, %v2933_v3  ;;  %v2971_v63 = vand.u32 2147483647, %v14698_v49  ;;  %12973 = vlog2.f32 %v2983_v59 }
 0xb86   :  { %3045 = vperm.xlu1 %12732, %v3035_v23   ;;  %vm14764_vm14 = vcmp.lt.f32.partialorder %v2891_v57, 0.0004427343  ;;  %v2918_v45 = vand.u32 2147483647, %v14691_v28  ;;  %v2995_v43 = vmul.f32 -0.5, %v14725_v42  ;;  %v3010_v19 = vadd.f32 1.0, %v14748_v29 }
 0xb87   :  { %3060 = vperm.xlu0 %12731, %v3038_v14   ;;  %v2925_v33 = vadd.f32 1.0, %v2924_v2  ;;  %v2893_v21 = vsel %vm14764_vm14, %v14704_v26, %v2887_v8  ;;  %v2986_v32 = vmul.f32 -0.5, %v14740_v53  ;;  %v3001_v62 = vadd.f32 1.0, %v14753_v37  ;;  %v3093_v28 = vld [vmem:[%s17384_s6 + $0x10] sm:$0xff] }
 0xb88   :  { %v2970_v58 = vmul.f32 %v2969_v54, %v14698_v49  ;;  %v2998_v61 = vand.u32 2147483647, %v14725_v42  ;;  %12975 = vlog2.f32 %v3010_v19  ;;  %v14785_v26 = vmul.f32 %v14720_v39, %v2934_v52 }
 0xb89   :  { %v12964_v24 = vpop.eup %12963  ;;  %vm2972_vm15 = vcmp.lt.f32.partialorder %v2971_v63, 0.0004427343  ;;  %v2914_v35 = vmul.f32 0.6931472, %v12962_v4  ;;  %12977 = vlog2.f32 %v3001_v62  ;;  %vm14787_vm2 = vcmp.lt.f32.partialorder %v2918_v45, 0.0004427343 }
 0xb8a   :  { %v2967_v34 = vmul.f32 0.6931472, %v12964_v24  ;;  %v12966_v38 = vpop.eup %12965  ;;  %v2996_v51 = vadd.f32 1.0, %v2995_v43  ;;  %v2909_v23 = vand.u32 2147483647, %v14706_v5  ;;  %v2987_v7 = vadd.f32 1.0, %v2986_v32 }
 0xb8b   :  { %v12968_v0 = vpop.eup %12967  ;;  %v3013_v3 = vmul.f32 -0.5, %v14748_v29  ;;  %v12495_v25 = vpack.c.bf16 %v3094_v55, %v3093_v28  ;;  %v2926_v20 = vmul.f32 %v14735_v48, %v2925_v33  ;;  %vm14794_vm3 = vcmp.lt.f32.partialorder %v2998_v61, 0.0004427343 }
 0xb8c   :  { %v2973_v15 = vsel %vm2972_vm15, %v2970_v58, %v2967_v34  ;;  %v2905_v57 = vmul.f32 0.6931472, %v12966_v38  ;;  %v3004_v2 = vmul.f32 -0.5, %v14753_v37  ;;  %v2920_v5 = vsel %vm14787_vm2, %v14757_v17, %v2914_v35 }
 0xb8d   :  { %v3021_v27 = vsub.f32 %v2893_v21, %v2973_v15  ;;  %v12970_v59 = vpop.eup %12969  ;;  %v2989_v54 = vand.u32 2147483647, %v14740_v53  ;;  %v2936_v52 = vand.u32 2147483647, %v14720_v39  ;;  %12496 = vmatprep.subr.bf16.mxu0 %v12495_v25  ;;  %v2997_v22 = vmul.f32 %v2996_v51, %v14725_v42 }
 0xb8e   :  { %v12972_v63 = vpop.eup %12971  ;;  %v2994_v4 = vmul.f32 0.6931472, %v12970_v59  ;;  %vm14805_vm4 = vcmp.lt.f32.partialorder %v2909_v23, 0.0004427343  ;;  %v2932_v43 = vmul.f32 0.6931472, %v12968_v0  ;;  %12498 = vmatpush3.bf16.msra.mxu0 %v12495_v25  ;;  %v2988_v17 = vmul.f32 %v2987_v7, %v14740_v53 }
 0xb8f   :  { %v3029_v14 = vmul.f32 0.5, %v3021_v27  ;;  %v12974_v19 = vpop.eup %12973  ;;  %v3014_v33 = vadd.f32 1.0, %v3013_v3  ;;  %v3016_v21 = vand.u32 2147483647, %v14748_v29  ;;  %12515 = vmatprep.subr.bf16.mxu0 %v17443_v47  ;;  %v2927_v32 = vand.u32 2147483647, %v14735_v48 }
 0xb90   :  { %v3000_v39 = vsel %vm14794_vm3, %v2997_v22, %v2994_v4  ;;  %v2985_v42 = vmul.f32 0.6931472, %v12974_v19  ;;  %v3005_v62 = vadd.f32 1.0, %v3004_v2  ;;  %vm2990_vm5 = vcmp.lt.f32.partialorder %v2989_v54, 0.0004427343 }
 0xb91   :  { %v3037_v24 = vmul.f32 %v14649_v36, %v3029_v14  ;;  %v3024_v34 = vsub.f32 %v2920_v5, %v3000_v39  ;;  %vm14816_vm7 = vcmp.lt.f32.partialorder %v2936_v52, 0.0004427343  ;;  %v3007_v36 = vand.u32 2147483647, %v14753_v37 }
 0xb92   :  { %v12976_v53 = vpop.eup %12975  ;;  %v2911_v61 = vsel %vm14805_vm4, %v14761_v60, %v2905_v57  ;;  %v2991_v28 = vsel %vm2990_vm5, %v2988_v17, %v2985_v42  ;;  %v2938_v48 = vsel %vm14816_vm7, %v14785_v26, %v2932_v43  ;;  %v2923_v55 = vmul.f32 0.6931472, %v12972_v63 }
 0xb93   :  { %3055 = vperm.xlu1 %12732, %v3037_v24   ;;  %v12978_v38 = vpop.eup %12977  ;;  %v3032_v35 = vmul.f32 0.5, %v3024_v34  ;;  %v3023_v15 = vsub.f32 %v2911_v61, %v2991_v28  ;;  %v3012_v49 = vmul.f32 0.6931472, %v12976_v53  ;;  %v3015_v51 = vmul.f32 %v3014_v33, %v14748_v29 }
 0xb94   :  { %vm3017_vm8 = vcmp.lt.f32.partialorder %v3016_v21, 0.0004427343  ;;  %vm2928_vm9 = vcmp.lt.f32.partialorder %v2927_v32, 0.0004427343  ;;  %v3003_v23 = vmul.f32 0.6931472, %v12978_v38  ;;  %v3006_v0 = vmul.f32 %v3005_v62, %v14753_v37 }
 0xb95   :  { %v3040_v27 = vmul.f32 %v14667_v6, %v3032_v35  ;;  %v3031_v60 = vmul.f32 0.5, %v3023_v15  ;;  %v3018_v7 = vsel %vm3017_vm8, %v3015_v51, %v3012_v49  ;;  %vm3008_vm10 = vcmp.lt.f32.partialorder %v3007_v36, 0.0004427343  ;;  %v3095_v38 = vld [vmem:[%s17386_s7] sm:$0x3] }
 0xb96   :  { %v3026_v3 = vsub.f32 %v2938_v48, %v3018_v7  ;;  %v2929_v25 = vsel %vm2928_vm9, %v2926_v20, %v2923_v55  ;;  %v3009_v26 = vsel %vm3008_vm10, %v3006_v0, %v3003_v23  ;;  %v17403_v6 = vmov 1  }
 0xb97   :  { %3070 = vperm.xlu0 %12731, %v3040_v27   ;;  %v3039_v8 = vmul.f32 %v14673_v9, %v3031_v60  ;;  %v3025_v57 = vsub.f32 %v2929_v25, %v3009_v26  ;;  %v17463_v54 = vmov 0  ;;  %v14882_v24 = vsub.s32 1, %v14395_v16 }
 0xb98   :  { %v3034_v2 = vmul.f32 0.5, %v3026_v3  ;;  %v17464_v54 = vsel %vm14842_vm11, 4294967295, %v17463_v54  ;;  %vm3299_vm12 = vcmask 517120   ;;  %vm3303_vm13 = vcmask 1041408  }
 0xb99   :  { %3065 = vperm.xlu1 %12732, %v3039_v8   ;;  %v3033_v29 = vmul.f32 0.5, %v3025_v57  ;;  %17465 = vst [vmem:[#allocation3_spill] sm:$0xff] %v17464_v54  ;;  %17466 = vst [vmem:[#allocation4_spill] sm:$0xff] %v14882_v24 }
 0xb9a   :  { %v3042_v59 = vmul.f32 %v14688_v41, %v3034_v2 }
 0xb9b   :  { %v3041_v14 = vmul.f32 %v14701_v31, %v3033_v29 }
 0xb9c   :  { %3080 = vperm.xlu0 %12731, %v3042_v59  }
 0xb9d   :  { %3075 = vperm.xlu1 %12732, %v3041_v14  }
 0xba0   :  { %12734 = vset.pattern.permute.xlu0 %v17403_v6 }
 0xbfd   :  { %v3051_v37 = vpop.permute.xlu0 %3050 }
 0xbfe   :  { %v14835_v20 = vmul.f32 %v3051_v37, %v14578_v46 }
 0xc05   :  { %v3046_v5 = vpop.permute.xlu1 %3045 }
 0xc06   :  { %v14838_v9 = vmul.f32 %v3046_v5, %v14581_v12  ;;  %v3061_v46 = vpop.permute.xlu0 %3060  ;;  %v3096_v12 = vld [vmem:[%s17385_s8] sm:$0x3] }
 0xc07   :  { %v3086_v31 = vmul.f32 %v3061_v46, %v14592_v1  ;;  %v14865_v52 = vrot.slane %v3096_v12, %v14398_v13  ;;  %v14889_v62 = vrot.slane %v3096_v12, %v14882_v24 }
 0xc08   :  { %v12500_v41 = vpack.c.bf16 %v14835_v20, %v14838_v9  ;;  %11823 = vmatprep.mubr.msk.f32.mxu0 %vm77_vm0, %v14838_v9 }
 0xc09   :  { %11824 = vmatmul.mubr.msk.f32.vlgmr.msra.gmra.mrb[42].mxu0 %vm77_vm0, %v14835_v20  ;;  %v3628_v22 = vmul.f32 %v14865_v52, %v3086_v31  ;;  %v3963_v53 = vmul.f32 %v14889_v62, %v14835_v20  ;;  %v3965_v55 = vmul.f32 %v14889_v62, %v3086_v31  ;;  %v3625_v60 = vmul.f32 %v14865_v52, %v14838_v9 }
 0xc0a   :  { %12502 = vmatpush3.bf16.xpose.msk.msra.mxu1 %vm14842_vm11, %v12500_v41  ;;  %12516 = vmatpush3.bf16.msra.mxu0 %v17443_v47  ;;  %v3626_v7 = vmul.f32 %v14865_v52, %v14835_v20 }
 0xc0b   :  { %12503 = vmatprep.subr.bf16.mxu1 %v17445_v56  ;;  %12517 = vmatprep.subr.bf16.mxu0 %v17443_v47 }
 0xc0c   :  { %v14925_v3 = vpack.c.bf16 %v3626_v7, %v3625_v60 }
 0xc0e   :  { %12518 = vmatpush3.bf16.msra.mxu0 %v17443_v47 }
 0xc0f   :  { %12519 = vmatprep.subr.bf16.mxu0 %v17443_v47 }
 0xc12   :  { %12520 = vmatpush3.bf16.msra.mxu0 %v17443_v47  ;;  %v3056_v63 = vpop.permute.xlu1 %3055 }
 0xc13   :  { %12521 = vmatprep.subr.bf16.mxu0 %v17443_v47  ;;  %v3085_v4 = vmul.f32 %v3056_v63, %v14595_v44 }
 0xc15   :  { %v12504_v45 = vpack.c.bf16 %v3086_v31, %v3085_v4  ;;  %11826 = vmatprep.mubr.msk.f32.mxu0 %vm77_vm0, %v3085_v4  ;;  %v3627_v1 = vmul.f32 %v14865_v52, %v3085_v4  ;;  %v3964_v48 = vmul.f32 %v14889_v62, %v3085_v4 }
 0xc16   :  { %12522 = vmatpush3.bf16.msra.mxu0 %v17443_v47  ;;  %v3071_v19 = vpop.permute.xlu0 %3070 }
 0xc17   :  { %12523 = vmatprep.subr.bf16.mxu0 %v17443_v47  ;;  %11827 = vmatmul.mubr.msk.f32.gmra.mrb[44].mxu0 %vm77_vm0, %v3086_v31  ;;  %v14877_v43 = vpack.c.bf16 %v3628_v22, %v3627_v1  ;;  %v3088_v44 = vmul.f32 %v3071_v19, %v14606_v10  ;;  %v12535_v35 = vpack.c.bf16 %v3965_v55, %v3964_v48 }
 0xc18   :  { %12506 = vmatpush3.bf16.xpose.msk.msra.mxu1 %vm14842_vm11, %v12504_v45  ;;  %v3066_v17 = vpop.permute.xlu1 %3065 }
 0xc19   :  { %12507 = vmatprep.subr.bf16.mxu1 %v17445_v56  ;;  %v3087_v33 = vmul.f32 %v3066_v17, %v14609_v11  ;;  %v3630_v21 = vmul.f32 %v14865_v52, %v3088_v44  ;;  %v3967_v49 = vmul.f32 %v14889_v62, %v3088_v44 }
 0xc1b   :  { %v12508_v39 = vpack.c.bf16 %v3088_v44, %v3087_v33  ;;  %11829 = vmatprep.mubr.msk.f32.mxu0 %vm77_vm0, %v3087_v33  ;;  %v3081_v42 = vpop.permute.xlu0 %3080  ;;  %v3629_v32 = vmul.f32 %v14865_v52, %v3087_v33  ;;  %v3966_v15 = vmul.f32 %v14889_v62, %v3087_v33 }
 0xc1c   :  { %11830 = vmatmul.mubr.msk.f32.gmra.mrb[46].mxu0 %vm77_vm0, %v3088_v44  ;;  %v3090_v10 = vmul.f32 %v3081_v42, %v14620_v30  ;;  %v3076_v16 = vpop.permute.xlu1 %3075  ;;  %v3962_v30 = vmul.f32 %v14889_v62, %v14838_v9 }
 0xc1d   :  { %v3089_v11 = vmul.f32 %v3076_v16, %v14623_v18  ;;  %v14896_v34 = vpack.c.bf16 %v3630_v21, %v3629_v32  ;;  %v12539_v51 = vpack.c.bf16 %v3967_v49, %v3966_v15 }
 0xc1e   :  { %v3632_v58 = vmul.f32 %v14865_v52, %v3090_v10  ;;  %v12531_v28 = vpack.c.bf16 %v3963_v53, %v3962_v30  ;;  %v3969_v0 = vmul.f32 %v14889_v62, %v3090_v10 }
 0xc1f   :  { %11832 = vmatprep.mubr.msk.f32.mxu0 %vm77_vm0, %v3089_v11  ;;  %v3631_v36 = vmul.f32 %v14865_v52, %v3089_v11  ;;  %v12512_v61 = vpack.c.bf16 %v3090_v10, %v3089_v11  ;;  %v3968_v23 = vmul.f32 %v14889_v62, %v3089_v11 }
 0xc20   :  { %12510 = vmatpush3.bf16.xpose.msk.msra.mxu1 %vm14842_vm11, %v12508_v39  ;;  %11833 = vmatmul.mubr.msk.f32.gmra.mrb[48].mxu0 %vm77_vm0, %v3090_v10 }
 0xc21   :  { %12511 = vmatprep.subr.bf16.mxu1 %v17445_v56  ;;  %v14907_v18 = vpack.c.bf16 %v3632_v58, %v3631_v36  ;;  %v12543_v27 = vpack.c.bf16 %v3969_v0, %v3968_v23 }
 0xc28   :  { %12514 = vmatpush3.bf16.xpose.msk.msra.mxu1 %vm14842_vm11, %v12512_v61 }
 0xc29   :  { %12532 = vmatprep.subr.bf16.mxu1 %v12531_v28 }
 0xc2f   :  { %11852 = vmatmul.mubr.msk.f32.vlgmr.msra.gmra.mrb[42].mxu1 %vm77_vm0, %v3095_v38 }
 0xc30   :  { %12534 = vmatpush3.bf16.msra.mxu1 %v12531_v28 }
 0xc31   :  { %12536 = vmatprep.subr.bf16.mxu1 %v12535_v35 }
 0xc34   :  { %12538 = vmatpush3.bf16.msra.mxu1 %v12535_v35 }
 0xc35   :  { %12540 = vmatprep.subr.bf16.mxu1 %v12539_v51 }
 0xc38   :  { %12542 = vmatpush3.bf16.msra.mxu1 %v12539_v51 }
 0xc39   :  { %12544 = vmatprep.subr.bf16.mxu1 %v12543_v27 }
 0xc3c   :  { %12546 = vmatpush3.bf16.msra.mxu1 %v12543_v27 }
 0xc3d   :  { %12548 = vmatprep.subr.bf16.mxu1 %v14925_v3 }
 0xcdc   :  { %v11825_v25 = vpop.f32.mrb[42].mxu0 }
 0xcdd   :  { %3702 = vperm.xlu0 %12734, %v11825_v25   ;;  %v3187_v26 = vpop.f32.mrb[43].mxu0 }
 0xce1   :  { %12735 = vset.pattern.permute.xlu0 %v17440_v40 }
 0xce2   :  { %3345 = vperm.xlu0 %12735, %v3187_v26  }
 0xce6   :  { %3350 = vperm.xlu0 %12735, %v11825_v25  }
 0xcea   :  { %v14929_v8 = vpop.f32.mrb[44].mxu0 }
 0xceb   :  { %v3197_v57 = vpop.f32.mrb[45].mxu0 }
 0xcec   :  { %3355 = vperm.xlu0 %12735, %v3197_v57  }
 0xcef   :  { %v14932_v2 = vpop.f32.mrb[46].mxu0 }
 0xcf0   :  { %3360 = vperm.xlu0 %12735, %v14929_v8   ;;  %v14934_v29 = vpop.f32.mrb[47].mxu0 }
 0xcf3   :  { %v14937_v59 = vpop.f32.mrb[48].mxu0 }
 0xcf4   :  { %3365 = vperm.xlu0 %12735, %v14934_v29   ;;  %v14939_v14 = vpop.f32.mrb[49].mxu0 }
 0xcf8   :  { %3370 = vperm.xlu0 %12735, %v14932_v2  }
 0xcfc   :  { %3380 = vperm.xlu0 %12735, %v14937_v59  }
 0xd02   :  { %v14943_v37 = vpop.f32.mrb[42].mxu1 }
 0xd03   :  { %v11853_v20 = vpop.f32.mrb[43].mxu1  ;;  %v3300_v5 = vsel %vm3299_vm12, %v14943_v37, -inf  ;;  %v3386_v7 = vrot.slane %v14943_v37, %v14398_v13 }
 0xd04   :  { %3301 = vmax.xlane.f32.xlu1 %v3300_v5  ;;  %v14972_v5 = vld [vmem:[%s17387_s1] sm:$0xff] }
 0xd15   :  { %3375 = vperm.xlu1 %12732, %v14939_v14  }
 0xd19   :  { %12733 = vset.pattern.permute.xlu1 %v17403_v6 }
 0xd1a   :  { %3698 = vperm.xlu1 %12733, %v3187_v26  }
 0xd1e   :  { %12736 = vset.pattern.permute.xlu1 %v17440_v40 }
 0xd5c   :  { %v14965_v49 = vpop.permute.xlu0 %3702 }
 0xd61   :  { %v3346_v51 = vpop.permute.xlu0 %3345 }
 0xd65   :  { %v3351_v23 = vpop.permute.xlu0 %3350 }
 0xd6b   :  { %v3356_v0 = vpop.permute.xlu0 %3355 }
 0xd6f   :  { %v3361_v27 = vpop.permute.xlu0 %3360 }
 0xd73   :  { %v3366_v60 = vpop.permute.xlu0 %3365 }
 0xd91   :  { %v3302_v9 = vpop.xlane.xlu1 %3301 }
 0xd92   :  { %v3304_v41 = vsel %vm3303_vm13, %v3302_v9, -inf }
 0xd93   :  { %v3305_v46 = vrot.slane %v3304_v41, 4 }
 0xd95   :  { %v3306_v12 = vmax.f32 %v3304_v41, %v3305_v46 }
 0xd97   :  { %v3307_v31 = vrot.slane %v3306_v12, 2 }
 0xd99   :  { %v3308_v63 = vmax.f32 %v3306_v12, %v3307_v31  ;;  %v3390_v12 = vadd.f32 %v3386_v7, %v3361_v27 }
 0xd9b   :  { %v3309_v4 = vrot.slane %v3308_v63, 1 }
 0xd9d   :  { %v3310_v22 = vmax.f32 %v3308_v63, %v3309_v4 }
 0xd9f   :  { %v3311_v45 = vadd.f32 %v3310_v22, %v3187_v26  ;;  %v3317_v1 = vadd.f32 %v3310_v22, %v14939_v14  ;;  %v3312_v19 = vadd.f32 %v11825_v25, %v3310_v22  ;;  %v3318_v44 = vadd.f32 %v14937_v59, %v3310_v22  ;;  %v3371_v26 = vpop.permute.xlu0 %3370 }
 0xda0   :  { %v3313_v21 = vadd.f32 %v3310_v22, %v3197_v57  ;;  %v3314_v36 = vadd.f32 %v14929_v8, %v3310_v22  ;;  %v3315_v61 = vadd.f32 %v3310_v22, %v14934_v29  ;;  %v3316_v55 = vadd.f32 %v14932_v2, %v3310_v22 }
 0xda1   :  { %vm3319_vm14 = vcmp.ge.f32.partialorder %v3311_v45, 0.0  ;;  %v3327_v17 = vmul.f32 0.2, %v3311_v45  ;;  %vm3325_vm15 = vcmp.ge.f32.partialorder %v3317_v1, 0.0  ;;  %v3333_v33 = vmul.f32 0.2, %v3317_v1 }
 0xda2   :  { %v3328_v32 = vmul.f32 0.2, %v3312_v19  ;;  %v3334_v10 = vmul.f32 0.2, %v3318_v44  ;;  %vm3320_vm2 = vcmp.ge.f32.partialorder %v3312_v19, 0.0  ;;  %vm3326_vm3 = vcmp.ge.f32.partialorder %v3318_v44, 0.0 }
 0xda3   :  { %v3335_v39 = vsel %vm3319_vm14, %v3311_v45, %v3327_v17  ;;  %v3341_v42 = vsel %vm3325_vm15, %v3317_v1, %v3333_v33  ;;  %v3329_v58 = vmul.f32 0.2, %v3313_v21  ;;  %vm3321_vm4 = vcmp.ge.f32.partialorder %v3313_v21, 0.0  ;;  %v14980_v45 = vld [vmem:[%s17387_s1 + $0x8] sm:$0xff] }
 0xda4   :  { %3429 = vperm.xlu0 %12735, %v3335_v39   ;;  %3459 = vperm.xlu1 %12736, %v3341_v42   ;;  %v3336_v16 = vsel %vm3320_vm2, %v3312_v19, %v3328_v32  ;;  %v3342_v11 = vsel %vm3326_vm3, %v3318_v44, %v3334_v10  ;;  %v3330_v53 = vmul.f32 0.2, %v3314_v36  ;;  %vm3322_vm5 = vcmp.ge.f32.partialorder %v3314_v36, 0.0 }
 0xda5   :  { %v3337_v30 = vsel %vm3321_vm4, %v3313_v21, %v3329_v58  ;;  %v3331_v48 = vmul.f32 0.2, %v3315_v61  ;;  %vm3323_vm7 = vcmp.ge.f32.partialorder %v3315_v61, 0.0  ;;  %v3332_v35 = vmul.f32 0.2, %v3316_v55 }
 0xda6   :  { %v3338_v28 = vsel %vm3322_vm5, %v3314_v36, %v3330_v53  ;;  %vm3324_vm8 = vcmp.ge.f32.partialorder %v3316_v55, 0.0  ;;  %v3387_v25 = vadd.f32 %v3386_v7, %v3346_v51  ;;  %v3391_v1 = vadd.f32 %v3386_v7, %v3366_v60 }
 0xda7   :  { %v3339_v38 = vsel %vm3323_vm7, %v3315_v61, %v3331_v48  ;;  %v3340_v15 = vsel %vm3324_vm8, %v3316_v55, %v3332_v35  ;;  %v3406_v17 = vmul.f32 0.2, %v3390_v12  ;;  %vm3398_vm15 = vcmp.ge.f32.partialorder %v3390_v12, 0.0  ;;  %v14994_v61 = vld [vmem:[%s17387_s1 + $0x18] sm:$0xff] }
 0xda8   :  { %3434 = vperm.xlu0 %12735, %v3336_v16   ;;  %3464 = vperm.xlu1 %12736, %v3342_v11   ;;  %vm3395_vm9 = vcmp.ge.f32.partialorder %v3387_v25, 0.0  ;;  %vm3399_vm2 = vcmp.ge.f32.partialorder %v3391_v1, 0.0  ;;  %v3392_v36 = vadd.f32 %v3386_v7, %v3371_v26  ;;  %v14998_v35 = vrot.slane %v14943_v37, %v14882_v24  ;;  %v15010_v37 = vld [vmem:[%s17387_s1 + $0x30] sm:$0xff] }
 0xda9   :  { %vm3491_vm7 = vcmask 523264  }
 0xdaa   :  { %vm3400_vm4 = vcmp.ge.f32.partialorder %v3392_v36, 0.0 }
 0xdac   :  { %3439 = vperm.xlu0 %12735, %v3337_v30   ;;  %12737 = vset.pattern.permute.xlu1 %v17403_v6 }
 0xdad   :  { %3706 = vperm.xlu1 %12737, %v3197_v57   ;;  %v3403_v57 = vmul.f32 0.2, %v3387_v25 }
 0xdaf   :  { %v3411_v9 = vsel %vm3395_vm9, %v3387_v25, %v3403_v57  ;;  %v15005_v25 = vld [vmem:[%s17387_s1 + $0x20] sm:$0xff] }
 0xdb0   :  { %3444 = vperm.xlu0 %12735, %v3338_v28   ;;  %v3419_v41 = vadd.f32 %v3411_v9, %v14972_v5 }
 0xdb1   :  { %3710 = vperm.xlu1 %12737, %v14929_v8   ;;  %v3376_v8 = vpop.permute.xlu1 %3375 }
 0xdb2   :  { %v3393_v32 = vadd.f32 %v3386_v7, %v3376_v8 }
 0xdb4   :  { %3449 = vperm.xlu0 %12735, %v3339_v38   ;;  %v3409_v48 = vmul.f32 0.2, %v3393_v32  ;;  %vm3401_vm3 = vcmp.ge.f32.partialorder %v3393_v32, 0.0 }
 0xdb5   :  { %3714 = vperm.xlu1 %12737, %v14934_v29   ;;  %v3699_v20 = vpop.permute.xlu1 %3698 }
 0xdb6   :  { %v3733_v60 = vadd.f32 %v14998_v35, %v3699_v20  ;;  %v3417_v26 = vsel %vm3401_vm3, %v3393_v32, %v3409_v48 }
 0xdb7   :  { %v3425_v9 = vadd.f32 %v3417_v26, %v15010_v37 }
 0xdb8   :  { %3454 = vperm.xlu0 %12735, %v3340_v15   ;;  %v3749_v20 = vmul.f32 0.2, %v3733_v60  ;;  %vm3741_vm8 = vcmp.ge.f32.partialorder %v3733_v60, 0.0 }
 0xdb9   :  { %3718 = vperm.xlu1 %12737, %v14932_v2   ;;  %v3388_v2 = vadd.f32 %v3386_v7, %v3351_v23 }
 0xdbb   :  { %v3404_v29 = vmul.f32 0.2, %v3388_v2  ;;  %vm3396_vm10 = vcmp.ge.f32.partialorder %v3388_v2, 0.0 }
 0xdbc   :  { %12738 = vset.pattern.permute.xlu0 %v17403_v6 }
 0xdbd   :  { %3774 = vperm.xlu0 %12738, %v3335_v39   ;;  %3722 = vperm.xlu1 %12737, %v14939_v14   ;;  %v3381_v14 = vpop.permute.xlu0 %3380  ;;  %v3412_v4 = vsel %vm3396_vm10, %v3388_v2, %v3404_v29  ;;  %v14988_v39 = vld [vmem:[%s17387_s1 + $0x10] sm:$0xff]  ;;  %v3734_v2 = vadd.f32 %v14998_v35, %v14965_v49 }
 0xdbe   :  { %v3420_v44 = vadd.f32 %v3412_v4, %v14980_v45 }
 0xdbf   :  { %vm3742_vm9 = vcmp.ge.f32.partialorder %v3734_v2, 0.0 }
 0xdc1   :  { %3778 = vperm.xlu0 %12738, %v3336_v16   ;;  %3726 = vperm.xlu1 %12737, %v14937_v59   ;;  %v3389_v59 = vadd.f32 %v3386_v7, %v3356_v0  ;;  %v3407_v16 = vmul.f32 0.2, %v3391_v1  ;;  %v3408_v0 = vmul.f32 0.2, %v3392_v36 }
 0xdc3   :  { %v3405_v46 = vmul.f32 0.2, %v3389_v59  ;;  %vm3397_vm14 = vcmp.ge.f32.partialorder %v3389_v59, 0.0  ;;  %v3415_v23 = vsel %vm3399_vm2, %v3391_v1, %v3407_v16  ;;  %v3416_v49 = vsel %vm3400_vm4, %v3392_v36, %v3408_v0 }
 0xdc5   :  { %3782 = vperm.xlu0 %12738, %v3337_v30   ;;  %3802 = vperm.xlu1 %12737, %v3342_v11   ;;  %v3394_v30 = vadd.f32 %v3386_v7, %v3381_v14 }
 0xdc7   :  { %v3410_v27 = vmul.f32 0.2, %v3394_v30  ;;  %vm3402_vm5 = vcmp.ge.f32.partialorder %v3394_v30, 0.0 }
 0xdc9   :  { %3786 = vperm.xlu0 %12738, %v3338_v28   ;;  %12740 = vset.pattern.permute.xlu1 %v17440_v40  ;;  %v3414_v28 = vsel %vm3398_vm15, %v3390_v12, %v3406_v17 }
 0xdca   :  { %v3422_v51 = vadd.f32 %v3414_v28, %v14994_v61 }
 0xdcd   :  { %3790 = vperm.xlu0 %12738, %v3339_v38  }
 0xdd1   :  { %3794 = vperm.xlu0 %12738, %v3340_v15  }
 0xdd5   :  { %3798 = vperm.xlu0 %12738, %v3341_v42   ;;  %v3413_v42 = vsel %vm3397_vm14, %v3389_v59, %v3405_v46  ;;  %v3423_v59 = vadd.f32 %v3415_v23, %v15005_v25  ;;  %v3418_v46 = vsel %vm3402_vm5, %v3394_v30, %v3410_v27 }
 0xdd6   :  { %v3421_v58 = vadd.f32 %v3413_v42, %v14988_v39  ;;  %v3750_v42 = vmul.f32 0.2, %v3734_v2 }
 0xdd8   :  { %v3758_v28 = vsel %vm3742_vm9, %v3734_v2, %v3750_v42 }
 0xdd9   :  { %12739 = vset.pattern.permute.xlu0 %v17440_v40 }
 0xe23   :  { %v14975_v31 = vpop.permute.xlu1 %3459  ;;  %v3430_v63 = vpop.permute.xlu0 %3429 }
 0xe24   :  { %v3467_v22 = vsub.f32 %v3419_v41, %v3430_v63  ;;  %v15021_v41 = vld [vmem:[%s17387_s1 + $0x38] sm:$0xff]  ;;  %v15026_v63 = vld [vmem:[%s17387_s1 + $0x28] sm:$0xff]  ;;  %v3473_v1 = vsub.f32 %v3425_v9, %v14975_v31 }
 0xe25   :  { %v3424_v17 = vadd.f32 %v3416_v49, %v15026_v63 }
 0xe26   :  { %v3475_v19 = vmul.f32 1.442695, %v3467_v22  ;;  %v3487_v36 = vmul.f32 1.442695, %v3473_v1 }
 0xe27   :  { %v14983_v33 = vpop.permute.xlu1 %3464  ;;  %v3435_v21 = vpop.permute.xlu0 %3434 }
 0xe28   :  { %v3468_v10 = vsub.f32 %v3420_v44, %v3435_v21  ;;  %12979 = vpow2.f32 %v3475_v19  ;;  %v3426_v19 = vadd.f32 %v3418_v46, %v15021_v41 }
 0xe2a   :  { %v3477_v11 = vmul.f32 1.442695, %v3468_v10  ;;  %v3757_v10 = vsel %vm3741_vm8, %v3733_v60, %v3749_v20  ;;  %v3474_v16 = vsub.f32 %v3426_v19, %v14983_v33 }
 0xe2b   :  { %v3440_v53 = vpop.permute.xlu0 %3439  ;;  %v3765_v33 = vadd.f32 %v3757_v10, %v14972_v5  ;;  %v3766_v5 = vadd.f32 %v3758_v28, %v14980_v45 }
 0xe2c   :  { %v3469_v55 = vsub.f32 %v3421_v58, %v3440_v53  ;;  %v3707_v38 = vpop.permute.xlu1 %3706  ;;  %12981 = vpow2.f32 %v3477_v11  ;;  %v3489_v48 = vmul.f32 1.442695, %v3474_v16 }
 0xe2d   :  { %v3735_v11 = vadd.f32 %v14998_v35, %v3707_v38 }
 0xe2e   :  { %v3479_v15 = vmul.f32 1.442695, %v3469_v55 }
 0xe2f   :  { %v3445_v7 = vpop.permute.xlu0 %3444  ;;  %v3751_v55 = vmul.f32 0.2, %v3735_v11  ;;  %vm3743_vm10 = vcmp.ge.f32.partialorder %v3735_v11, 0.0 }
 0xe30   :  { %12983 = vpow2.f32 %v3479_v15  ;;  %v3470_v8 = vsub.f32 %v3422_v51, %v3445_v7  ;;  %v3711_v57 = vpop.permute.xlu1 %3710 }
 0xe31   :  { %v3736_v38 = vadd.f32 %v14998_v35, %v3711_v57  ;;  %v3759_v57 = vsel %vm3743_vm10, %v3735_v11, %v3751_v55 }
 0xe32   :  { %v3481_v29 = vmul.f32 1.442695, %v3470_v8  ;;  %v15015_v14 = vpop.eup %12979  ;;  %v3767_v45 = vadd.f32 %v3759_v57, %v14988_v39 }
 0xe33   :  { %v3450_v12 = vpop.permute.xlu0 %3449  ;;  %11870 = vmatprep.mubr.msk.f32.mxu0 %vm3491_vm7, %v15015_v14  ;;  %v3752_v60 = vmul.f32 0.2, %v3736_v38  ;;  %vm3744_vm14 = vcmp.ge.f32.partialorder %v3736_v38, 0.0 }
 0xe34   :  { %12985 = vpow2.f32 %v3481_v29  ;;  %v3471_v4 = vsub.f32 %v3423_v59, %v3450_v12  ;;  %v3715_v22 = vpop.permute.xlu1 %3714 }
 0xe35   :  { %v3737_v7 = vadd.f32 %v14998_v35, %v3715_v22  ;;  %v3760_v49 = vsel %vm3744_vm14, %v3736_v38, %v3752_v60 }
 0xe36   :  { %v3483_v44 = vmul.f32 1.442695, %v3471_v4  ;;  %v15034_v21 = vpop.eup %12981  ;;  %v3768_v39 = vadd.f32 %v3760_v49, %v14994_v61 }
 0xe37   :  { %v3455_v32 = vpop.permute.xlu0 %3454  ;;  %11871 = vmatmul.mubr.msk.f32.vlgmr.msra.gmra.mrb[50].mxu0 %vm3491_vm7, %v15034_v21  ;;  %v3753_v9 = vmul.f32 0.2, %v3737_v7  ;;  %vm3745_vm15 = vcmp.ge.f32.partialorder %v3737_v7, 0.0 }
 0xe38   :  { %12987 = vpow2.f32 %v3483_v44  ;;  %v3472_v31 = vsub.f32 %v3424_v17, %v3455_v32  ;;  %v3719_v58 = vpop.permute.xlu1 %3718  ;;  %12524 = vmatpush3.bf16.msra.mxu0 %v17443_v47 }
 0xe39   :  { %12525 = vmatprep.subr.bf16.mxu0 %v17443_v47  ;;  %v3738_v46 = vadd.f32 %v14998_v35, %v3719_v58  ;;  %v3761_v10 = vsel %vm3745_vm15, %v3737_v7, %v3753_v9 }
 0xe3a   :  { %v15041_v30 = vpop.eup %12983  ;;  %v3485_v53 = vmul.f32 1.442695, %v3472_v31  ;;  %v3769_v61 = vadd.f32 %v3761_v10, %v15005_v25 }
 0xe3b   :  { %11873 = vmatprep.mubr.msk.f32.mxu0 %vm3491_vm7, %v15041_v30  ;;  %v3754_v17 = vmul.f32 0.2, %v3738_v46  ;;  %vm3746_vm3 = vcmp.ge.f32.partialorder %v3738_v46, 0.0 }
 0xe3c   :  { %12989 = vpow2.f32 %v3485_v53  ;;  %v3723_v15 = vpop.permute.xlu1 %3722  ;;  %v3775_v51 = vpop.permute.xlu0 %3774  ;;  %12526 = vmatpush3.bf16.msra.mxu0 %v17443_v47 }
 0xe3d   :  { %12991 = vpow2.f32 %v3487_v36  ;;  %v3805_v23 = vsub.f32 %v3765_v33, %v3775_v51  ;;  %12527 = vmatprep.subr.bf16.mxu0 %v17443_v47  ;;  %v3739_v42 = vadd.f32 %v14998_v35, %v3723_v15  ;;  %v3762_v33 = vsel %vm3746_vm3, %v3738_v46, %v3754_v17 }
 0xe3e   :  { %v15050_v0 = vpop.eup %12985  ;;  %12993 = vpow2.f32 %v3489_v48  ;;  %v3770_v15 = vadd.f32 %v3762_v33, %v15026_v63 }
 0xe3f   :  { %v3813_v27 = vmul.f32 1.442695, %v3805_v23  ;;  %11874 = vmatmul.mubr.msk.f32.gmra.mrb[52].mxu0 %vm3491_vm7, %v15050_v0  ;;  %vm3747_vm4 = vcmp.ge.f32.partialorder %v3739_v42, 0.0 }
 0xe40   :  { %v3727_v26 = vpop.permute.xlu1 %3726  ;;  %v3779_v8 = vpop.permute.xlu0 %3778  ;;  %12528 = vmatpush3.bf16.msra.mxu0 %v17443_v47 }
 0xe41   :  { %12995 = vpow2.f32 %v3813_v27  ;;  %v3806_v2 = vsub.f32 %v3766_v5, %v3779_v8  ;;  %12529 = vmatprep.subr.bf16.mxu0 %v17443_v47  ;;  %v3740_v59 = vadd.f32 %v14998_v35, %v3727_v26  ;;  %v3755_v35 = vmul.f32 0.2, %v3739_v42 }
 0xe42   :  { %v15058_v29 = vpop.eup %12987 }
 0xe43   :  { %v3815_v20 = vmul.f32 1.442695, %v3806_v2  ;;  %11876 = vmatprep.mubr.msk.f32.mxu0 %vm3491_vm7, %v15058_v29  ;;  %v3756_v19 = vmul.f32 0.2, %v3740_v59  ;;  %vm3748_vm2 = vcmp.ge.f32.partialorder %v3740_v59, 0.0  ;;  %v3763_v51 = vsel %vm3747_vm4, %v3739_v42, %v3755_v35 }
 0xe44   :  { %v3783_v12 = vpop.permute.xlu0 %3782  ;;  %12530 = vmatpush3.bf16.msra.mxu0 %v17443_v47  ;;  %v3803_v23 = vpop.permute.xlu1 %3802  ;;  %v3771_v60 = vadd.f32 %v3763_v51, %v15010_v37 }
 0xe45   :  { %12997 = vpow2.f32 %v3815_v20  ;;  %v3807_v4 = vsub.f32 %v3767_v45, %v3783_v12  ;;  %12563 = vmatprep.subr.bf16.mxu0 %v17443_v47  ;;  %v3764_v58 = vsel %vm3748_vm2, %v3740_v59, %v3756_v19 }
 0xe46   :  { %v15067_v22 = vpop.eup %12989  ;;  %v3772_v48 = vadd.f32 %v3764_v58, %v15021_v41 }
 0xe47   :  { %v15070_v1 = vpop.eup %12991  ;;  %v3817_v44 = vmul.f32 1.442695, %v3807_v4  ;;  %11877 = vmatmul.mubr.msk.f32.gmra.mrb[54].mxu0 %vm3491_vm7, %v15067_v22 }
 0xe48   :  { %11879 = vmatprep.mubr.msk.f32.mxu0 %vm3491_vm7, %v15070_v1  ;;  %v3787_v32 = vpop.permute.xlu0 %3786  ;;  %v15079_v11 = vpop.eup %12993  ;;  %v3812_v5 = vsub.f32 %v3772_v48, %v3803_v23 }
 0xe49   :  { %12999 = vpow2.f32 %v3817_v44  ;;  %v3808_v16 = vsub.f32 %v3768_v39, %v3787_v32 }
 0xe4a   :  { %v3827_v26 = vmul.f32 1.442695, %v3812_v5 }
 0xe4b   :  { %v12996_v31 = vpop.eup %12995  ;;  %v3819_v36 = vmul.f32 1.442695, %v3808_v16  ;;  %11880 = vmatmul.mubr.msk.f32.gmra.mrb[56].mxu0 %vm3491_vm7, %v15079_v11 }
 0xe4c   :  { %11898 = vmatprep.mubr.msk.f32.mxu0 %vm3491_vm7, %v12996_v31  ;;  %11926 = vmatprep.mubr.msk.f32.mxu1 %vm3491_vm7, %v12996_v31  ;;  %v3791_v53 = vpop.permute.xlu0 %3790 }
 0xe4d   :  { %13001 = vpow2.f32 %v3819_v36  ;;  %v3809_v28 = vsub.f32 %v3769_v61, %v3791_v53 }
 0xe4f   :  { %v12998_v55 = vpop.eup %12997  ;;  %v3821_v38 = vmul.f32 1.442695, %v3809_v28 }
 0xe50   :  { %11899 = vmatmul.mubr.msk.f32.vlgmr.msra.gmra.mrb[58].mxu0 %vm3491_vm7, %v12998_v55  ;;  %11927 = vmatmul.mubr.msk.f32.vlgmr.msra.gmra.mrb[44].mxu1 %vm3491_vm7, %v12998_v55  ;;  %v3795_v25 = vpop.permute.xlu0 %3794 }
 0xe51   :  { %13003 = vpow2.f32 %v3821_v38  ;;  %12550 = vmatpush3.bf16.msra.mxu1 %v14925_v3  ;;  %v3810_v27 = vsub.f32 %v3770_v15, %v3795_v25  ;;  %12564 = vmatpush3.bf16.msra.mxu0 %v17443_v47 }
 0xe52   :  { %12552 = vmatprep.subr.bf16.mxu1 %v14877_v43  ;;  %12565 = vmatprep.subr.bf16.mxu0 %v17443_v47 }
 0xe53   :  { %v13000_v41 = vpop.eup %12999  ;;  %v3823_v63 = vmul.f32 1.442695, %v3810_v27 }
 0xe54   :  { %11901 = vmatprep.mubr.msk.f32.mxu0 %vm3491_vm7, %v13000_v41  ;;  %11929 = vmatprep.mubr.msk.f32.mxu1 %vm3491_vm7, %v13000_v41  ;;  %v3799_v7 = vpop.permute.xlu0 %3798 }
 0xe55   :  { %13005 = vpow2.f32 %v3823_v63  ;;  %12554 = vmatpush3.bf16.msra.mxu1 %v14877_v43  ;;  %v3811_v3 = vsub.f32 %v3771_v60, %v3799_v7  ;;  %12566 = vmatpush3.bf16.msra.mxu0 %v17443_v47 }
 0xe56   :  { %12556 = vmatprep.subr.bf16.mxu1 %v14896_v34  ;;  %12567 = vmatprep.subr.bf16.mxu0 %v17443_v47 }
 0xe57   :  { %v13002_v8 = vpop.eup %13001  ;;  %v3825_v57 = vmul.f32 1.442695, %v3811_v3 }
 0xe58   :  { %11902 = vmatmul.mubr.msk.f32.gmra.mrb[60].mxu0 %vm3491_vm7, %v13002_v8  ;;  %11930 = vmatmul.mubr.msk.f32.gmra.mrb[46].mxu1 %vm3491_vm7, %v13002_v8 }
 0xe59   :  { %13007 = vpow2.f32 %v3825_v57  ;;  %12558 = vmatpush3.bf16.msra.mxu1 %v14896_v34 }
 0xe5a   :  { %13009 = vpow2.f32 %v3827_v26  ;;  %12560 = vmatprep.subr.bf16.mxu1 %v14907_v18 }
 0xe5b   :  { %v13004_v43 = vpop.eup %13003 }
 0xe5c   :  { %11904 = vmatprep.mubr.msk.f32.mxu0 %vm3491_vm7, %v13004_v43  ;;  %11932 = vmatprep.mubr.msk.f32.mxu1 %vm3491_vm7, %v13004_v43 }
 0xe5d   :  { %12562 = vmatpush3.bf16.msra.mxu1 %v14907_v18 }
 0xe5e   :  { %12571 = vmatprep.subr.bf16.mxu1 %v17443_v47 }
 0xe5f   :  { %v13006_v37 = vpop.eup %13005 }
 0xe60   :  { %11905 = vmatmul.mubr.msk.f32.gmra.mrb[62].mxu0 %vm3491_vm7, %v13006_v37  ;;  %11933 = vmatmul.mubr.msk.f32.gmra.mrb[48].mxu1 %vm3491_vm7, %v13006_v37 }
 0xe63   :  { %v13008_v2 = vpop.eup %13007 }
 0xe64   :  { %v13010_v59 = vpop.eup %13009  ;;  %11907 = vmatprep.mubr.msk.f32.mxu0 %vm3491_vm7, %v13008_v2  ;;  %11935 = vmatprep.mubr.msk.f32.mxu1 %vm3491_vm7, %v13008_v2 }
 0xe65   :  { %11908 = vmatmul.mubr.msk.f32.gmra.mrb[64].mxu0 %vm3491_vm7, %v13010_v59  ;;  %11936 = vmatmul.mubr.msk.f32.gmra.mrb[50].mxu1 %vm3491_vm7, %v13010_v59 }
 0xe66   :  { %11954 = vmatprep.mubr.msk.f32.mxu1 %vm3491_vm7, %v15015_v14 }
 0xe69   :  { %11955 = vmatmul.mubr.msk.f32.vlgmr.msra.gmra.mrb[44].mxu1 %vm3491_vm7, %v15034_v21 }
 0xe6a   :  { %11957 = vmatprep.mubr.msk.f32.mxu1 %vm3491_vm7, %v15041_v30  ;;  %12572 = vmatpush3.bf16.msra.mxu1 %v17443_v47 }
 0xe6b   :  { %12573 = vmatprep.subr.bf16.mxu1 %v17443_v47 }
 0xe6d   :  { %11958 = vmatmul.mubr.msk.f32.gmra.mrb[46].mxu1 %vm3491_vm7, %v15050_v0 }
 0xe6e   :  { %11960 = vmatprep.mubr.msk.f32.mxu1 %vm3491_vm7, %v15058_v29  ;;  %12574 = vmatpush3.bf16.msra.mxu1 %v17443_v47 }
 0xe71   :  { %11961 = vmatmul.mubr.msk.f32.gmra.mrb[48].mxu1 %vm3491_vm7, %v15067_v22 }
 0xe72   :  { %11963 = vmatprep.mubr.msk.f32.mxu1 %vm3491_vm7, %v15070_v1 }
 0xe75   :  { %11964 = vmatmul.mubr.msk.f32.gmra.mrb[50].mxu1 %vm3491_vm7, %v15079_v11 }
 0xf0a   :  { %v11872_v34 = vpop.f32.mrb[50].mxu0 }
 0xf0b   :  { %v3582_v18 = vpop.f32.mrb[51].mxu0 }
 0xf0c   :  { %13011 = vrcp.f32 %v3582_v18 }
 0xf12   :  { %v11875_v14 = vpop.f32.mrb[52].mxu0 }
 0xf13   :  { %v3592_v21 = vpop.f32.mrb[53].mxu0 }
 0xf16   :  { %v13012_v30 = vpop.eup %13011 }
 0xf17   :  { %3643 = vperm.xlu0 %12739, %v13012_v30  }
 0xf1a   :  { %v11878_v0 = vpop.f32.mrb[54].mxu0 }
 0xf1b   :  { %v3602_v29 = vpop.f32.mrb[55].mxu0 }
 0xf1e   :  { %v11881_v20 = vpop.f32.mrb[56].mxu0 }
 0xf1f   :  { %v3612_v45 = vpop.f32.mrb[57].mxu0 }
 0xf23   :  { %v11900_v9 = vpop.f32.mrb[58].mxu0 }
 0xf24   :  { %13013 = vrcp.f32 %v11900_v9  ;;  %v3919_v46 = vpop.f32.mrb[59].mxu0 }
 0xf25   :  { %13015 = vrcp.f32 %v3919_v46 }
 0xf26   :  { %13017 = vrcp.f32 %v11872_v34 }
 0xf27   :  { %13019 = vrcp.f32 %v3592_v21 }
 0xf2b   :  { %v11903_v12 = vpop.f32.mrb[60].mxu0 }
 0xf2c   :  { %v3929_v49 = vpop.f32.mrb[61].mxu0 }
 0xf2d   :  { %13021 = vrcp.f32 %v3929_v49 }
 0xf2e   :  { %v13014_v4 = vpop.eup %13013  ;;  %13023 = vrcp.f32 %v11875_v14 }
 0xf2f   :  { %v13016_v22 = vpop.eup %13015  ;;  %4195 = vperm.xlu0 %12739, %v13014_v4   ;;  %13025 = vrcp.f32 %v11903_v12 }
 0xf30   :  { %4190 = vperm.xlu1 %12740, %v13016_v22   ;;  %v13018_v1 = vpop.eup %13017  ;;  %13027 = vrcp.f32 %v3602_v29 }
 0xf31   :  { %v13020_v39 = vpop.eup %13019 }
 0xf33   :  { %v11906_v19 = vpop.f32.mrb[62].mxu0 }
 0xf34   :  { %3648 = vperm.xlu1 %12740, %v13018_v1   ;;  %v3939_v44 = vpop.f32.mrb[63].mxu0 }
 0xf35   :  { %13029 = vrcp.f32 %v3939_v44 }
 0xf36   :  { %13031 = vrcp.f32 %v11878_v0 }
 0xf37   :  { %v13022_v17 = vpop.eup %13021  ;;  %13033 = vrcp.f32 %v11906_v19 }
 0xf38   :  { %3653 = vperm.xlu1 %12740, %v13020_v39   ;;  %4200 = vperm.xlu0 %12739, %v13022_v17   ;;  %v11909_v42 = vpop.f32.mrb[64].mxu0  ;;  %v13024_v10 = vpop.eup %13023  ;;  %13035 = vrcp.f32 %v3612_v45 }
 0xf39   :  { %v3949_v32 = vpop.f32.mrb[65].mxu0  ;;  %v13026_v16 = vpop.eup %13025 }
 0xf3a   :  { %13037 = vrcp.f32 %v3949_v32  ;;  %v13028_v58 = vpop.eup %13027 }
 0xf3b   :  { %13039 = vrcp.f32 %v11881_v20 }
 0xf3c   :  { %3658 = vperm.xlu1 %12740, %v13024_v10   ;;  %4205 = vperm.xlu0 %12739, %v13026_v16   ;;  %v11956_v11 = vpop.f32.mrb[44].mxu1  ;;  %13041 = vrcp.f32 %v11909_v42 }
 0xf3d   :  { %v4141_v31 = vpop.f32.mrb[45].mxu1 }
 0xf3f   :  { %v13030_v36 = vpop.eup %13029 }
 0xf40   :  { %3663 = vperm.xlu1 %12740, %v13028_v58   ;;  %4210 = vperm.xlu0 %12739, %v13030_v36   ;;  %v11959_v61 = vpop.f32.mrb[46].mxu1  ;;  %v13032_v53 = vpop.eup %13031 }
 0xf41   :  { %v4151_v35 = vpop.f32.mrb[47].mxu1  ;;  %v13034_v33 = vpop.eup %13033 }
 0xf42   :  { %v13036_v55 = vpop.eup %13035 }
 0xf44   :  { %3668 = vperm.xlu1 %12740, %v13032_v53   ;;  %4215 = vperm.xlu0 %12739, %v13034_v33   ;;  %v11962_v28 = vpop.f32.mrb[48].mxu1  ;;  %v13038_v38 = vpop.eup %13037 }
 0xf45   :  { %v4161_v48 = vpop.f32.mrb[49].mxu1  ;;  %v13040_v51 = vpop.eup %13039 }
 0xf46   :  { %v13042_v23 = vpop.eup %13041 }
 0xf48   :  { %3673 = vperm.xlu1 %12740, %v13036_v55   ;;  %v15134_v15 = vpop.f32.mrb[50].mxu1  ;;  %4220 = vperm.xlu0 %12739, %v13038_v38  }
 0xf49   :  { %v15136_v25 = vpop.f32.mrb[51].mxu1 }
 0xf4c   :  { %3678 = vperm.xlu1 %12740, %v13040_v51   ;;  %4225 = vperm.xlu0 %12739, %v13042_v23  }
 0xf96   :  { %v3644_v27 = vpop.permute.xlu0 %3643 }
 0xf97   :  { %v3681_v41 = vmul.f32 %v3644_v27, %v14865_v52 }
 0xfae   :  { %v4196_v60 = vpop.permute.xlu0 %4195 }
 0xfaf   :  { %v4191_v5 = vpop.permute.xlu1 %4190  ;;  %v4229_v26 = vmul.f32 %v4196_v60, %v14889_v62 }
 0xfb0   :  { %v4228_v63 = vmul.f32 %v4191_v5, %v14889_v62 }
 0xfb2   :  { %v4236_v7 = vadd.f32 %v4228_v63, %v3681_v41 }
 0xfb3   :  { %v3649_v3 = vpop.permute.xlu1 %3648 }
 0xfb4   :  { %v15141_v8 = vmul.f32 %v4236_v7, %v4141_v31  ;;  %v3682_v57 = vmul.f32 %v3649_v3, %v14865_v52 }
 0xfb6   :  { %v4237_v43 = vadd.f32 %v4229_v26, %v3682_v57  ;;  %v4252_v37 = vmul.f32 %v15141_v8, %v15141_v8 }
 0xfb7   :  { %v3654_v2 = vpop.permute.xlu1 %3653  ;;  %v4201_v59 = vpop.permute.xlu0 %4200 }
 0xfb8   :  { %v15146_v34 = vmul.f32 %v11956_v11, %v4237_v43  ;;  %v3683_v18 = vmul.f32 %v3654_v2, %v14865_v52  ;;  %v4230_v14 = vmul.f32 %v4201_v59, %v14889_v62  ;;  %11974 = vmatprep.mubr.msk.f32.mxu0 %vm77_vm0, %v4252_v37 }
 0xfba   :  { %v4253_v21 = vmul.f32 %v15146_v34, %v15146_v34  ;;  %v4238_v30 = vadd.f32 %v4230_v14, %v3683_v18 }
 0xfbb   :  { %v3659_v0 = vpop.permute.xlu1 %3658  ;;  %v4206_v29 = vpop.permute.xlu0 %4205 }
 0xfbc   :  { %v15153_v20 = vmul.f32 %v4238_v30, %v4151_v35  ;;  %v3684_v45 = vmul.f32 %v3659_v0, %v14865_v52  ;;  %v4231_v9 = vmul.f32 %v4206_v29, %v14889_v62  ;;  %11975 = vmatmul.mubr.msk.f32.vlgmr.msra.gmra.mrb[66].mxu0 %vm77_vm0, %v4253_v21 }
 0xfbd   :  { %12568 = vmatpush3.bf16.msra.mxu0 %v17443_v47 }
 0xfbe   :  { %v4239_v46 = vadd.f32 %v4231_v9, %v3684_v45  ;;  %v4254_v12 = vmul.f32 %v15153_v20, %v15153_v20  ;;  %12569 = vmatprep.subr.bf16.mxu0 %v17443_v47 }
 0xfbf   :  { %v3664_v49 = vpop.permute.xlu1 %3663  ;;  %v4211_v4 = vpop.permute.xlu0 %4210 }
 0xfc0   :  { %v15162_v22 = vmul.f32 %v11959_v61, %v4239_v46  ;;  %v3685_v1 = vmul.f32 %v3664_v49, %v14865_v52  ;;  %v4232_v19 = vmul.f32 %v4211_v4, %v14889_v62  ;;  %11977 = vmatprep.mubr.msk.f32.mxu0 %vm77_vm0, %v4254_v12 }
 0xfc1   :  { %12570 = vmatpush3.bf16.msra.mxu0 %v17443_v47 }
 0xfc2   :  { %v4240_v44 = vadd.f32 %v4232_v19, %v3685_v1  ;;  %v4255_v39 = vmul.f32 %v15162_v22, %v15162_v22  ;;  %12575 = vmatprep.subr.bf16.mxu0 %v17443_v47 }
 0xfc3   :  { %v3669_v17 = vpop.permute.xlu1 %3668  ;;  %v4216_v42 = vpop.permute.xlu0 %4215 }
 0xfc4   :  { %v15171_v32 = vmul.f32 %v4240_v44, %v4161_v48  ;;  %v3686_v10 = vmul.f32 %v3669_v17, %v14865_v52  ;;  %v4233_v16 = vmul.f32 %v4216_v42, %v14889_v62  ;;  %11978 = vmatmul.mubr.msk.f32.gmra.mrb[68].mxu0 %vm77_vm0, %v4255_v39 }
 0xfc6   :  { %v4241_v11 = vadd.f32 %v4233_v16, %v3686_v10  ;;  %v4256_v31 = vmul.f32 %v15171_v32, %v15171_v32 }
 0xfc7   :  { %v3674_v58 = vpop.permute.xlu1 %3673  ;;  %v4221_v36 = vpop.permute.xlu0 %4220 }
 0xfc8   :  { %v15178_v61 = vmul.f32 %v11962_v28, %v4241_v11  ;;  %v3687_v35 = vmul.f32 %v3674_v58, %v14865_v52  ;;  %v4234_v53 = vmul.f32 %v4221_v36, %v14889_v62  ;;  %11980 = vmatprep.mubr.msk.f32.mxu0 %vm77_vm0, %v4256_v31 }
 0xfca   :  { %v4242_v33 = vadd.f32 %v4234_v53, %v3687_v35  ;;  %v4257_v48 = vmul.f32 %v15178_v61, %v15178_v61 }
 0xfcb   :  { %v3679_v55 = vpop.permute.xlu1 %3678  ;;  %v4226_v38 = vpop.permute.xlu0 %4225 }
 0xfcc   :  { %v15186_v51 = vmul.f32 %v4242_v33, %v15136_v25  ;;  %v3688_v23 = vmul.f32 %v3679_v55, %v14865_v52  ;;  %v4235_v28 = vmul.f32 %v4226_v38, %v14889_v62  ;;  %11981 = vmatmul.mubr.msk.f32.gmra.mrb[70].mxu0 %vm77_vm0, %v4257_v48 }
 0xfce   :  { %v4243_v27 = vadd.f32 %v4235_v28, %v3688_v23  ;;  %v4258_v5 = vmul.f32 %v15186_v51, %v15186_v51 }
 0xfd0   :  { %v15194_v41 = vmul.f32 %v15134_v15, %v4243_v27  ;;  %11983 = vmatprep.mubr.msk.f32.mxu0 %vm77_vm0, %v4258_v5 }
 0xfd2   :  { %v4259_v63 = vmul.f32 %v15194_v41, %v15194_v41 }
 0xfd4   :  { %11984 = vmatmul.mubr.msk.f32.gmra.mrb[72].mxu0 %vm77_vm0, %v4259_v63 }
0x108f   :  { %v11976_v25 = vpop.f32.mrb[66].mxu0 }
0x1090   :  { %v4390_v52 = vmax.f32 %v11976_v25, 1e-30  ;;  %v4350_v60 = vpop.f32.mrb[67].mxu0 }
0x1091   :  { %v4389_v62 = vmax.f32 %v4350_v60, 1e-30 }
0x1092   :  { %13043 = vrsqrt.f32 %v4390_v52 }
0x1093   :  { %13045 = vrsqrt.f32 %v4389_v62 }
0x1097   :  { %v11979_v7 = vpop.f32.mrb[68].mxu0 }
0x1098   :  { %v4392_v3 = vmax.f32 %v11979_v7, 1e-30  ;;  %v4360_v26 = vpop.f32.mrb[69].mxu0 }
0x1099   :  { %v4391_v57 = vmax.f32 %v4360_v26, 1e-30 }
0x109a   :  { %13047 = vrsqrt.f32 %v4392_v3 }
0x109b   :  { %13049 = vrsqrt.f32 %v4391_v57 }
0x109c   :  { %v13044_v15 = vpop.eup %13043 }
0x109d   :  { %v13046_v43 = vpop.eup %13045  ;;  %v4406_v37 = vmul.f32 %v13044_v15, %v11976_v25 }
0x109e   :  { %v4405_v2 = vmul.f32 %v13046_v43, %v4350_v60 }
0x109f   :  { %13051 = vtanh.f32 %v4406_v37  ;;  %v11982_v59 = vpop.f32.mrb[70].mxu0 }
0x10a0   :  { %13053 = vtanh.f32 %v4405_v2  ;;  %v4394_v18 = vmax.f32 %v11982_v59, 1e-30  ;;  %v4370_v14 = vpop.f32.mrb[71].mxu0 }
0x10a1   :  { %v4393_v21 = vmax.f32 %v4370_v14, 1e-30 }
0x10a2   :  { %13055 = vrsqrt.f32 %v4394_v18 }
0x10a3   :  { %13057 = vrsqrt.f32 %v4393_v21 }
0x10a4   :  { %v13048_v30 = vpop.eup %13047 }
0x10a5   :  { %v13050_v0 = vpop.eup %13049  ;;  %v4408_v29 = vmul.f32 %v13048_v30, %v11979_v7 }
0x10a6   :  { %v4407_v45 = vmul.f32 %v13050_v0, %v4360_v26 }
0x10a7   :  { %13059 = vtanh.f32 %v4408_v29  ;;  %v11985_v9 = vpop.f32.mrb[72].mxu0 }
0x10a8   :  { %13061 = vtanh.f32 %v4407_v45  ;;  %v4396_v46 = vmax.f32 %v11985_v9, 1e-30  ;;  %v4380_v12 = vpop.f32.mrb[73].mxu0 }
0x10a9   :  { %v13052_v49 = vpop.eup %13051  ;;  %v4395_v4 = vmax.f32 %v4380_v12, 1e-30 }
0x10aa   :  { %v13054_v1 = vpop.eup %13053  ;;  %13063 = vrsqrt.f32 %v4396_v46  ;;  %v4422_v19 = vmul.f32 %v13052_v49, %v13044_v15  ;;  %v4478_v44 = vmax.f32 %v13052_v49, 1e-15 }
0x10ab   :  { %13065 = vrsqrt.f32 %v4395_v4  ;;  %v4421_v39 = vmul.f32 %v13054_v1, %v13046_v43  ;;  %v4477_v17 = vmax.f32 %v13054_v1, 1e-15 }
0x10ac   :  { %v13056_v42 = vpop.eup %13055  ;;  %4436 = vperm.xlu0 %12739, %v4422_v19   ;;  %vm4486_vm5 = vcmp.gt.f32.partialorder %v4478_v44, 0.996  ;;  %13067 = vrcp.f32 %v4478_v44 }
0x10ad   :  { %v13058_v10 = vpop.eup %13057  ;;  %v4410_v16 = vmul.f32 %v13056_v42, %v11982_v59  ;;  %4431 = vperm.xlu1 %12740, %v4421_v39   ;;  %vm4485_vm8 = vcmp.gt.f32.partialorder %v4477_v17, 0.996  ;;  %13069 = vrcp.f32 %v4477_v17  ;;  %v4558_v31 = vsel %vm4486_vm5, 1, %v17440_v40 }
0x10ae   :  { %v4409_v11 = vmul.f32 %v13058_v10, %v4370_v14  ;;  %v4557_v58 = vsel %vm4485_vm8, 1, %v17440_v40 }
0x10af   :  { %13071 = vtanh.f32 %v4410_v16 }
0x10b0   :  { %13073 = vtanh.f32 %v4409_v11  ;;  %4569 = vperm.xlu0 %12739, %v4558_v31  }
0x10b1   :  { %v13060_v36 = vpop.eup %13059  ;;  %4566 = vperm.xlu1 %12740, %v4557_v58  }
0x10b2   :  { %v13062_v35 = vpop.eup %13061  ;;  %v4424_v53 = vmul.f32 %v13060_v36, %v13048_v30  ;;  %v4480_v33 = vmax.f32 %v13060_v36, 1e-15 }
0x10b3   :  { %v4423_v48 = vmul.f32 %v13062_v35, %v13050_v0  ;;  %v4479_v55 = vmax.f32 %v13062_v35, 1e-15 }
0x10b4   :  { %v13064_v38 = vpop.eup %13063  ;;  %4446 = vperm.xlu0 %12739, %v4424_v53   ;;  %vm4488_vm9 = vcmp.gt.f32.partialorder %v4480_v33, 0.996  ;;  %13075 = vrcp.f32 %v4480_v33 }
0x10b5   :  { %v13066_v23 = vpop.eup %13065  ;;  %v4412_v28 = vmul.f32 %v13064_v38, %v11985_v9  ;;  %4441 = vperm.xlu1 %12740, %v4423_v48   ;;  %vm4487_vm10 = vcmp.gt.f32.partialorder %v4479_v55, 0.996  ;;  %13077 = vrcp.f32 %v4479_v55  ;;  %v4560_v63 = vsel %vm4488_vm9, 1, %v17440_v40 }
0x10b6   :  { %v4411_v27 = vmul.f32 %v13066_v23, %v4380_v12  ;;  %v13068_v5 = vpop.eup %13067  ;;  %v4559_v52 = vsel %vm4487_vm10, 1, %v17440_v40 }
0x10b7   :  { %13079 = vtanh.f32 %v4412_v28  ;;  %v13070_v25 = vpop.eup %13069  ;;  %v4496_v7 = vmul.f32 0.996, %v13068_v5 }
0x10b8   :  { %13081 = vtanh.f32 %v4411_v27  ;;  %4575 = vperm.xlu0 %12739, %v4560_v63   ;;  %v4494_v26 = vmul.f32 0.996, %v13070_v25 }
0x10b9   :  { %v13072_v60 = vpop.eup %13071  ;;  %4572 = vperm.xlu1 %12740, %v4559_v52  }
0x10ba   :  { %v13074_v62 = vpop.eup %13073  ;;  %v4482_v3 = vmax.f32 %v13072_v60, 1e-15  ;;  %v4426_v15 = vmul.f32 %v13072_v60, %v13056_v42 }
0x10bb   :  { %v4481_v57 = vmax.f32 %v13074_v62, 1e-15  ;;  %v4425_v37 = vmul.f32 %v13074_v62, %v13058_v10 }
0x10bc   :  { %4516 = vperm.xlu0 %12739, %v4496_v7   ;;  %13083 = vrcp.f32 %v4482_v3  ;;  %vm4490_vm14 = vcmp.gt.f32.partialorder %v4482_v3, 0.996 }
0x10bd   :  { %4511 = vperm.xlu1 %12740, %v4494_v26   ;;  %13085 = vrcp.f32 %v4481_v57  ;;  %vm4489_vm15 = vcmp.gt.f32.partialorder %v4481_v57, 0.996  ;;  %v4562_v45 = vsel %vm4490_vm14, 1, %v17440_v40 }
0x10be   :  { %v13076_v43 = vpop.eup %13075  ;;  %v4561_v46 = vsel %vm4489_vm15, 1, %v17440_v40 }
0x10bf   :  { %v13078_v2 = vpop.eup %13077  ;;  %v4500_v14 = vmul.f32 0.996, %v13076_v43 }
0x10c0   :  { %4456 = vperm.xlu0 %12739, %v4426_v15   ;;  %v4498_v30 = vmul.f32 0.996, %v13078_v2 }
0x10c1   :  { %v13080_v59 = vpop.eup %13079  ;;  %4451 = vperm.xlu1 %12740, %v4425_v37  }
0x10c2   :  { %v13082_v18 = vpop.eup %13081  ;;  %v4484_v21 = vmax.f32 %v13080_v59, 1e-15  ;;  %v4428_v4 = vmul.f32 %v13080_v59, %v13064_v38 }
0x10c3   :  { %v4483_v0 = vmax.f32 %v13082_v18, 1e-15  ;;  %v4427_v19 = vmul.f32 %v13082_v18, %v13066_v23 }
0x10c4   :  { %4526 = vperm.xlu0 %12739, %v4500_v14   ;;  %13087 = vrcp.f32 %v4484_v21  ;;  %vm4492_vm2 = vcmp.gt.f32.partialorder %v4484_v21, 0.996 }
0x10c5   :  { %4521 = vperm.xlu1 %12740, %v4498_v30   ;;  %13089 = vrcp.f32 %v4483_v0  ;;  %vm4491_vm3 = vcmp.gt.f32.partialorder %v4483_v0, 0.996  ;;  %v4564_v42 = vsel %vm4492_vm2, 1, %v17440_v40 }
0x10c6   :  { %v13084_v29 = vpop.eup %13083  ;;  %v4563_v10 = vsel %vm4491_vm3, 1, %v17440_v40 }
0x10c7   :  { %v13086_v9 = vpop.eup %13085  ;;  %v4504_v12 = vmul.f32 0.996, %v13084_v29 }
0x10c8   :  { %4581 = vperm.xlu0 %12739, %v4562_v45   ;;  %v4502_v49 = vmul.f32 0.996, %v13086_v9 }
0x10c9   :  { %4578 = vperm.xlu1 %12740, %v4561_v46  }
0x10cc   :  { %4536 = vperm.xlu0 %12739, %v4504_v12  }
0x10cd   :  { %4531 = vperm.xlu1 %12740, %v4502_v49  }
0x10ce   :  { %v13088_v1 = vpop.eup %13087 }
0x10cf   :  { %v13090_v44 = vpop.eup %13089  ;;  %v4508_v39 = vmul.f32 0.996, %v13088_v1 }
0x10d0   :  { %4466 = vperm.xlu0 %12739, %v4428_v4   ;;  %v4506_v17 = vmul.f32 0.996, %v13090_v44 }
0x10d1   :  { %4461 = vperm.xlu1 %12740, %v4427_v19  }
0x10d4   :  { %4546 = vperm.xlu0 %12739, %v4508_v39  }
0x10d5   :  { %4541 = vperm.xlu1 %12740, %v4506_v17  }
0x10d8   :  { %4587 = vperm.xlu0 %12739, %v4564_v42  }
0x10d9   :  { %4584 = vperm.xlu1 %12740, %v4563_v10  }
0x112b   :  { %v4437_v16 = vpop.permute.xlu0 %4436 }
0x112c   :  { %v4432_v11 = vpop.permute.xlu1 %4431  ;;  %v4470_v48 = vmul.f32 %v4437_v16, %v15146_v34 }
0x112d   :  { %v4469_v55 = vmul.f32 %v4432_v11, %v15141_v8 }
0x112f   :  { %v4570_v31 = vpop.permute.xlu0 %4569 }
0x1130   :  { %v4567_v58 = vpop.permute.xlu1 %4566  ;;  %vm4590_vm4 = vcmp.eq.s32.totalorder %v4570_v31, 1 }
0x1131   :  { %vm4589_vm5 = vcmp.eq.s32.totalorder %v4567_v58, 1 }
0x1133   :  { %v4447_v36 = vpop.permute.xlu0 %4446 }
0x1134   :  { %v4442_v35 = vpop.permute.xlu1 %4441  ;;  %v4472_v8 = vmul.f32 %v4447_v36, %v15162_v22 }
0x1135   :  { %v4471_v62 = vmul.f32 %v4442_v35, %v15153_v20 }
0x1137   :  { %v4576_v53 = vpop.permute.xlu0 %4575 }
0x1138   :  { %v4573_v33 = vpop.permute.xlu1 %4572  ;;  %vm4592_vm8 = vcmp.eq.s32.totalorder %v4576_v53, 1 }
0x1139   :  { %vm4591_vm9 = vcmp.eq.s32.totalorder %v4573_v33, 1 }
0x113b   :  { %v4517_v38 = vpop.permute.xlu0 %4516 }
0x113c   :  { %v4550_v23 = vmul.f32 %v4517_v38, %v4470_v48  ;;  %v4512_v28 = vpop.permute.xlu1 %4511 }
0x113d   :  { %v4549_v27 = vmul.f32 %v4512_v28, %v4469_v55 }
0x113e   :  { %v15210_v5 = vsel %vm4590_vm4, %v4550_v23, %v4470_v48 }
0x113f   :  { %v15212_v63 = vsel %vm4589_vm5, %v4549_v27, %v4469_v55  ;;  %v4457_v25 = vpop.permute.xlu0 %4456  ;;  %v4606_v34 = vmul.f32 %v15210_v5, %v15210_v5 }
0x1140   :  { %v4605_v52 = vmul.f32 %v15212_v63, %v15212_v63  ;;  %v4452_v60 = vpop.permute.xlu1 %4451  ;;  %v4474_v59 = vmul.f32 %v4457_v25, %v15178_v61 }
0x1141   :  { %v4473_v18 = vmul.f32 %v4452_v60, %v15171_v32 }
0x1142   :  { %11994 = vmatprep.mubr.msk.f32.mxu0 %vm77_vm0, %v4605_v52 }
0x1143   :  { %11995 = vmatmul.mubr.msk.f32.vlgmr.msra.gmra.mrb[74].mxu0 %vm77_vm0, %v4606_v34  ;;  %v4527_v7 = vpop.permute.xlu0 %4526 }
0x1144   :  { %v4552_v3 = vmul.f32 %v4527_v7, %v4472_v8  ;;  %v4522_v26 = vpop.permute.xlu1 %4521  ;;  %12576 = vmatpush3.bf16.msra.mxu0 %v17443_v47 }
0x1145   :  { %v4551_v57 = vmul.f32 %v4522_v26, %v4471_v62  ;;  %12577 = vmatprep.subr.bf16.mxu0 %v17443_v47 }
0x1146   :  { %v15224_v15 = vsel %vm4592_vm8, %v4552_v3, %v4472_v8 }
0x1147   :  { %v15226_v43 = vsel %vm4591_vm9, %v4551_v57, %v4471_v62  ;;  %v4582_v22 = vpop.permute.xlu0 %4581  ;;  %v4608_v2 = vmul.f32 %v15224_v15, %v15224_v15 }
0x1148   :  { %v4607_v20 = vmul.f32 %v15226_v43, %v15226_v43  ;;  %v4579_v37 = vpop.permute.xlu1 %4578  ;;  %12578 = vmatpush3.bf16.msra.mxu0 %v17443_v47  ;;  %vm4594_vm10 = vcmp.eq.s32.totalorder %v4582_v22, 1 }
0x1149   :  { %12587 = vmatprep.subr.bf16.mxu0 %v17443_v47  ;;  %vm4593_vm14 = vcmp.eq.s32.totalorder %v4579_v37, 1 }
0x114a   :  { %11997 = vmatprep.mubr.msk.f32.mxu0 %vm77_vm0, %v4607_v20 }
0x114b   :  { %11998 = vmatmul.mubr.msk.f32.gmra.mrb[76].mxu0 %vm77_vm0, %v4608_v2  ;;  %v4537_v14 = vpop.permute.xlu0 %4536 }
0x114c   :  { %v4554_v21 = vmul.f32 %v4537_v14, %v4474_v59  ;;  %v4532_v30 = vpop.permute.xlu1 %4531 }
0x114d   :  { %v4553_v0 = vmul.f32 %v4532_v30, %v4473_v18 }
0x114e   :  { %v15238_v29 = vsel %vm4594_vm10, %v4554_v21, %v4474_v59 }
0x114f   :  { %v15240_v45 = vsel %vm4593_vm14, %v4553_v0, %v4473_v18  ;;  %v4467_v9 = vpop.permute.xlu0 %4466  ;;  %v4610_v32 = vmul.f32 %v15238_v29, %v15238_v29 }
0x1150   :  { %v4609_v61 = vmul.f32 %v15240_v45, %v15240_v45  ;;  %v4462_v46 = vpop.permute.xlu1 %4461  ;;  %v4476_v4 = vmul.f32 %v4467_v9, %v15194_v41 }
0x1151   :  { %v4475_v1 = vmul.f32 %v4462_v46, %v15186_v51 }
0x1152   :  { %12000 = vmatprep.mubr.msk.f32.mxu0 %vm77_vm0, %v4609_v61 }
0x1153   :  { %12001 = vmatmul.mubr.msk.f32.gmra.mrb[78].mxu0 %vm77_vm0, %v4610_v32  ;;  %v4547_v12 = vpop.permute.xlu0 %4546 }
0x1154   :  { %v4542_v49 = vpop.permute.xlu1 %4541  ;;  %v4556_v19 = vmul.f32 %v4547_v12, %v4476_v4 }
0x1155   :  { %v4555_v39 = vmul.f32 %v4542_v49, %v4475_v1 }
0x1157   :  { %v4588_v44 = vpop.permute.xlu0 %4587 }
0x1158   :  { %vm4596_vm15 = vcmp.eq.s32.totalorder %v4588_v44, 1  ;;  %v4585_v17 = vpop.permute.xlu1 %4584 }
0x1159   :  { %v15250_v42 = vsel %vm4596_vm15, %v4556_v19, %v4476_v4  ;;  %vm4595_vm2 = vcmp.eq.s32.totalorder %v4585_v17, 1 }
0x115a   :  { %v15252_v10 = vsel %vm4595_vm2, %v4555_v39, %v4475_v1  ;;  %v4612_v11 = vmul.f32 %v15250_v42, %v15250_v42 }
0x115b   :  { %v4611_v16 = vmul.f32 %v15252_v10, %v15252_v10 }
0x115d   :  { %12003 = vmatprep.mubr.msk.f32.mxu0 %vm77_vm0, %v4611_v16 }
0x115e   :  { %12004 = vmatmul.mubr.msk.f32.gmra.mrb[80].mxu0 %vm77_vm0, %v4612_v11 }
0x1216   :  { %v11996_v51 = vpop.f32.mrb[74].mxu0 }
0x1217   :  { %v4743_v41 = vmax.f32 %v11996_v51, 1e-30  ;;  %v4703_v31 = vpop.f32.mrb[75].mxu0 }
0x1218   :  { %v4742_v58 = vmax.f32 %v4703_v31, 1e-30 }
0x1219   :  { %13091 = vrsqrt.f32 %v4743_v41 }
0x121a   :  { %13093 = vrsqrt.f32 %v4742_v58 }
0x121e   :  { %v11999_v36 = vpop.f32.mrb[76].mxu0 }
0x121f   :  { %v4745_v35 = vmax.f32 %v11999_v36, 1e-30  ;;  %v4713_v53 = vpop.f32.mrb[77].mxu0 }
0x1220   :  { %v4744_v33 = vmax.f32 %v4713_v53, 1e-30 }
0x1221   :  { %13095 = vrsqrt.f32 %v4745_v35 }
0x1222   :  { %13097 = vrsqrt.f32 %v4744_v33 }
0x1223   :  { %v15260_v48 = vpop.eup %13091 }
0x1224   :  { %v15262_v55 = vpop.eup %13093  ;;  %v4759_v38 = vmul.f32 %v15260_v48, %v11996_v51 }
0x1225   :  { %v4758_v23 = vmul.f32 %v15262_v55, %v4703_v31 }
0x1226   :  { %v10915_v28 = vclamps-f32 %v4759_v38, 0.9999999  ;;  %v12002_v27 = vpop.f32.mrb[78].mxu0 }
0x1227   :  { %v15266_v25 = vclamps-f32 %v4758_v23, 0.9999999  ;;  %v4747_v52 = vmax.f32 %v12002_v27, 1e-30  ;;  %v15268_v60 = vpop.f32.mrb[79].mxu0 }
0x1228   :  { %v4791_v34 = vadd.f32 1.0, %v10915_v28  ;;  %v4855_v8 = vsub.f32 0.0, %v10915_v28  ;;  %v4746_v7 = vmax.f32 %v15268_v60, 1e-30  ;;  %v4794_v37 = vmul.f32 -0.5, %v10915_v28 }
0x1229   :  { %v4782_v62 = vadd.f32 1.0, %v15266_v25  ;;  %13099 = vrsqrt.f32 %v4747_v52  ;;  %v15275_v57 = vsub.f32 0.0, %v15266_v25  ;;  %v4785_v30 = vmul.f32 -0.5, %v15266_v25 }
0x122a   :  { %13101 = vlog2.f32 %v4791_v34  ;;  %v4871_v3 = vadd.f32 1.0, %v4855_v8  ;;  %v4874_v21 = vmul.f32 -0.5, %v4855_v8  ;;  %v4795_v9 = vadd.f32 1.0, %v4794_v37 }
0x122b   :  { %v15272_v26 = vpop.eup %13095  ;;  %13103 = vlog2.f32 %v4782_v62  ;;  %v4862_v18 = vadd.f32 1.0, %v15275_v57  ;;  %v4797_v32 = vand.u32 2147483647, %v10915_v28  ;;  %v4877_v39 = vand.u32 2147483647, %v4855_v8 }
0x122c   :  { %v15277_v22 = vpop.eup %13097  ;;  %v4761_v20 = vmul.f32 %v15272_v26, %v11999_v36  ;;  %13105 = vlog2.f32 %v4871_v3  ;;  %v4875_v44 = vadd.f32 1.0, %v4874_v21  ;;  %v4865_v17 = vmul.f32 -0.5, %v15275_v57 }
0x122d   :  { %13107 = vrsqrt.f32 %v4746_v7  ;;  %v4760_v59 = vmul.f32 %v15277_v22, %v4713_v53  ;;  %v4786_v11 = vadd.f32 1.0, %v4785_v30  ;;  %v4796_v58 = vmul.f32 %v10915_v28, %v4795_v9 }
0x122e   :  { %v15280_v2 = vclamps-f32 %v4761_v20, 0.9999999  ;;  %13109 = vlog2.f32 %v4862_v18  ;;  %vm15296_vm3 = vcmp.lt.f32.partialorder %v4797_v32, 0.0004427343  ;;  %v4876_v23 = vmul.f32 %v4875_v44, %v4855_v8 }
0x122f   :  { %v15291_v4 = vclamps-f32 %v4760_v59, 0.9999999  ;;  %vm4878_vm4 = vcmp.lt.f32.partialorder %v4877_v39, 0.0004427343  ;;  %v4866_v52 = vadd.f32 1.0, %v4865_v17  ;;  %v4787_v59 = vmul.f32 %v15266_v25, %v4786_v11 }
0x1230   :  { %v4809_v14 = vadd.f32 1.0, %v15280_v2  ;;  %v15289_v49 = vsub.f32 0.0, %v15280_v2  ;;  %v4812_v34 = vmul.f32 -0.5, %v15280_v2  ;;  %v4868_v28 = vand.u32 2147483647, %v15275_v57 }
0x1231   :  { %v12005_v0 = vpop.f32.mrb[80].mxu0  ;;  %v4800_v36 = vadd.f32 1.0, %v15291_v4  ;;  %v4867_v30 = vmul.f32 %v4866_v52, %v15275_v57 }
0x1232   :  { %v4749_v61 = vmax.f32 %v12005_v0, 1e-30  ;;  %v4733_v46 = vpop.f32.mrb[81].mxu0  ;;  %13111 = vlog2.f32 %v4809_v14  ;;  %v4889_v53 = vadd.f32 1.0, %v15289_v49  ;;  %v15314_v14 = vsub.f32 0.0, %v15291_v4 }
0x1233   :  { %v15286_v12 = vpop.eup %13099  ;;  %v4748_v1 = vmax.f32 %v4733_v46, 1e-30  ;;  %v4892_v9 = vmul.f32 -0.5, %v15289_v49  ;;  %vm4869_vm8 = vcmp.lt.f32.partialorder %v4868_v28, 0.0004427343 }
0x1234   :  { %v13102_v19 = vpop.eup %13101  ;;  %13113 = vrsqrt.f32 %v4749_v61  ;;  %v4763_v51 = vmul.f32 %v15286_v12, %v12002_v27  ;;  %v4788_v27 = vand.u32 2147483647, %v15266_v25  ;;  %v4813_v25 = vadd.f32 1.0, %v4812_v34 }
0x1235   :  { %13115 = vrsqrt.f32 %v4748_v1  ;;  %v13104_v16 = vpop.eup %13103  ;;  %v4793_v41 = vmul.f32 0.6931472, %v13102_v19 }
0x1236   :  { %v13106_v31 = vpop.eup %13105  ;;  %13117 = vlog2.f32 %v4889_v53  ;;  %v15306_v62 = vclamps-f32 %v4763_v51, 0.9999999  ;;  %v4784_v20 = vmul.f32 0.6931472, %v13104_v16  ;;  %vm4789_vm5 = vcmp.lt.f32.partialorder %v4788_v27, 0.0004427343 }
0x1237   :  { %v15301_v33 = vpop.eup %13107  ;;  %v4873_v38 = vmul.f32 0.6931472, %v13106_v31  ;;  %v4799_v7 = vsel %vm15296_vm3, %v4796_v58, %v4793_v41  ;;  %13119 = vlog2.f32 %v4800_v36  ;;  %v4815_v41 = vand.u32 2147483647, %v15280_v2 }
0x1238   :  { %v13110_v37 = vpop.eup %13109  ;;  %v4762_v8 = vmul.f32 %v15301_v33, %v15268_v60  ;;  %v4827_v19 = vadd.f32 1.0, %v15306_v62  ;;  %v4790_v44 = vsel %vm4789_vm5, %v4787_v59, %v4784_v20  ;;  %v4893_v31 = vadd.f32 1.0, %v4892_v9 }
0x1239   :  { %v4879_v3 = vsel %vm4878_vm4, %v4876_v23, %v4873_v38  ;;  %v4864_v21 = vmul.f32 0.6931472, %v13110_v37  ;;  %v4880_v58 = vadd.f32 1.0, %v15314_v14  ;;  %v4895_v53 = vand.u32 2147483647, %v15289_v49 }
0x123a   :  { %v4935_v18 = vsub.f32 %v4799_v7, %v4879_v3  ;;  %v15323_v17 = vclamps-f32 %v4762_v8, 0.9999999  ;;  %v4814_v38 = vmul.f32 %v15280_v2, %v4813_v25  ;;  %vm15342_vm9 = vcmp.lt.f32.partialorder %v4815_v41, 0.0004427343 }
0x123b   :  { %v4870_v60 = vsel %vm4869_vm8, %v4867_v30, %v4864_v21  ;;  %13121 = vlog2.f32 %v4880_v58  ;;  %v4894_v7 = vmul.f32 %v4893_v31, %v15289_v49  ;;  %vm4896_vm10 = vcmp.lt.f32.partialorder %v4895_v53, 0.0004427343 }
0x123c   :  { %v13112_v61 = vpop.eup %13111  ;;  %v4943_v32 = vmul.f32 0.5, %v4935_v18  ;;  %v4934_v11 = vsub.f32 %v4790_v44, %v4870_v60  ;;  %13123 = vlog2.f32 %v4827_v19  ;;  %v4818_v52 = vadd.f32 1.0, %v15323_v17 }
0x123d   :  { %v4811_v23 = vmul.f32 0.6931472, %v13112_v61  ;;  %v15348_v20 = vsub.f32 0.0, %v15323_v17  ;;  %v4883_v59 = vmul.f32 -0.5, %v15314_v14  ;;  %v4806_v21 = vand.u32 2147483647, %v15291_v4 }
0x123e   :  { %v15318_v1 = vpop.eup %13113  ;;  %v4951_v57 = vmul.f32 %v15260_v48, %v4943_v32  ;;  %v4942_v35 = vmul.f32 0.5, %v4934_v11  ;;  %v4830_v30 = vmul.f32 -0.5, %v15306_v62  ;;  %13125 = vlog2.f32 %v4818_v52 }
0x123f   :  { %v15321_v39 = vpop.eup %13115  ;;  %v4765_v16 = vmul.f32 %v15318_v1, %v12005_v0  ;;  %v4803_v0 = vmul.f32 -0.5, %v15291_v4  ;;  %v4817_v8 = vsel %vm15342_vm9, %v4814_v38, %v4811_v23  ;;  %v4821_v49 = vmul.f32 -0.5, %v15323_v17 }
0x1240   :  { %v4764_v51 = vmul.f32 %v15321_v39, %v4733_v46  ;;  %4965 = vperm.xlu0 %12739, %v4951_v57   ;;  %v13118_v48 = vpop.eup %13117  ;;  %v15336_v46 = vsub.f32 0.0, %v15306_v62  ;;  %v4950_v34 = vmul.f32 %v15262_v55, %v4942_v35  ;;  %v4884_v60 = vadd.f32 1.0, %v4883_v59 }
0x1241   :  { %v15330_v36 = vclamps-f32 %v4765_v16, 0.9999999  ;;  %v4891_v2 = vmul.f32 0.6931472, %v13118_v48  ;;  %v13120_v3 = vpop.eup %13119  ;;  %v4804_v55 = vadd.f32 1.0, %v4803_v0  ;;  %v4898_v16 = vadd.f32 1.0, %v15348_v20 }
0x1242   :  { %v15340_v27 = vclamps-f32 %v4764_v51, 0.9999999  ;;  %4960 = vperm.xlu1 %12740, %v4950_v34   ;;  %v4802_v25 = vmul.f32 0.6931472, %v13120_v3  ;;  %v4907_v19 = vadd.f32 1.0, %v15336_v46  ;;  %v4831_v53 = vadd.f32 1.0, %v4830_v30 }
0x1243   :  { %v4845_v37 = vadd.f32 1.0, %v15330_v36  ;;  %v4897_v18 = vsel %vm4896_vm10, %v4894_v7, %v4891_v2  ;;  %v15358_v61 = vsub.f32 0.0, %v15330_v36  ;;  %v4805_v57 = vmul.f32 %v15291_v4, %v4804_v55 }
0x1244   :  { %v4937_v9 = vsub.f32 %v4817_v8, %v4897_v18  ;;  %v4836_v32 = vadd.f32 1.0, %v15340_v27  ;;  %vm15364_vm14 = vcmp.lt.f32.partialorder %v4806_v21, 0.0004427343  ;;  %v4886_v51 = vand.u32 2147483647, %v15314_v14 }
0x1245   :  { %13127 = vlog2.f32 %v4845_v37  ;;  %v4848_v41 = vmul.f32 -0.5, %v15330_v36  ;;  %v15371_v31 = vsub.f32 0.0, %v15340_v27  ;;  %v13122_v35 = vpop.eup %13121  ;;  %v4822_v38 = vadd.f32 1.0, %v4821_v49 }
0x1246   :  { %v4945_v44 = vmul.f32 0.5, %v4937_v9  ;;  %13129 = vlog2.f32 %v4907_v19  ;;  %v4808_v4 = vsel %vm15364_vm14, %v4805_v57, %v4802_v25  ;;  %v13124_v0 = vpop.eup %13123  ;;  %v4882_v23 = vmul.f32 0.6931472, %v13122_v35 }
0x1247   :  { %13131 = vlog2.f32 %v4898_v16  ;;  %v4885_v48 = vmul.f32 %v4884_v60, %v15314_v14  ;;  %v4910_v52 = vmul.f32 -0.5, %v15336_v46  ;;  %v4925_v34 = vadd.f32 1.0, %v15358_v61 }
0x1248   :  { %v4953_v58 = vmul.f32 %v15272_v26, %v4945_v44  ;;  %13133 = vlog2.f32 %v4836_v32  ;;  %v4839_v28 = vmul.f32 -0.5, %v15340_v27  ;;  %vm4887_vm15 = vcmp.lt.f32.partialorder %v4886_v51, 0.0004427343  ;;  %v13126_v8 = vpop.eup %13125 }
0x1249   :  { %v4833_v26 = vand.u32 2147483647, %v15306_v62  ;;  %v4901_v2 = vmul.f32 -0.5, %v15348_v20  ;;  %v4849_v7 = vadd.f32 1.0, %v4848_v41  ;;  %v4888_v3 = vsel %vm4887_vm15, %v4885_v48, %v4882_v23 }
0x124a   :  { %4975 = vperm.xlu0 %12739, %v4953_v58   ;;  %13135 = vlog2.f32 %v4925_v34  ;;  %v4916_v37 = vadd.f32 1.0, %v15371_v31  ;;  %v4832_v59 = vmul.f32 %v15306_v62, %v4831_v53  ;;  %v4936_v55 = vsub.f32 %v4808_v4, %v4888_v3 }
0x124b   :  { %v4829_v14 = vmul.f32 0.6931472, %v13124_v0  ;;  %v4823_v18 = vmul.f32 %v15323_v17, %v4822_v38  ;;  %v4911_v21 = vadd.f32 1.0, %v4910_v52  ;;  %v4913_v30 = vand.u32 2147483647, %v15336_v46 }
0x124c   :  { %13137 = vlog2.f32 %v4916_v37  ;;  %v4944_v49 = vmul.f32 0.5, %v4936_v55  ;;  %v4824_v9 = vand.u32 2147483647, %v15323_v17  ;;  %v4902_v32 = vadd.f32 1.0, %v4901_v2 }
0x124d   :  { %v4928_v25 = vmul.f32 -0.5, %v15358_v61  ;;  %v4850_v44 = vmul.f32 %v15330_v36, %v4849_v7  ;;  %v4840_v60 = vadd.f32 1.0, %v4839_v28  ;;  %vm15389_vm2 = vcmp.lt.f32.partialorder %v4833_v26, 0.0004427343 }
0x124e   :  { %v4904_v16 = vand.u32 2147483647, %v15348_v20  ;;  %v4952_v11 = vmul.f32 %v15277_v22, %v4944_v49  ;;  %v4835_v51 = vsel %vm15389_vm2, %v4832_v59, %v4829_v14  ;;  %v4820_v17 = vmul.f32 0.6931472, %v13126_v8 }
0x124f   :  { %v13128_v19 = vpop.eup %13127  ;;  %v4919_v41 = vmul.f32 -0.5, %v15371_v31  ;;  %v4912_v53 = vmul.f32 %v4911_v21, %v15336_v46  ;;  %vm4914_vm3 = vcmp.lt.f32.partialorder %v4913_v30, 0.0004427343  ;;  %v4851_v38 = vand.u32 2147483647, %v15330_v36 }
0x1250   :  { %v13130_v57 = vpop.eup %13129  ;;  %4970 = vperm.xlu1 %12740, %v4952_v11   ;;  %vm4825_vm4 = vcmp.lt.f32.partialorder %v4824_v9, 0.0004427343  ;;  %v4903_v23 = vmul.f32 %v4902_v32, %v15348_v20  ;;  %v4929_v22 = vadd.f32 1.0, %v4928_v25  ;;  %vm4905_vm5 = vcmp.lt.f32.partialorder %v4904_v16, 0.0004427343 }
0x1251   :  { %v13132_v58 = vpop.eup %13131  ;;  %v4909_v35 = vmul.f32 0.6931472, %v13130_v57  ;;  %v4847_v52 = vmul.f32 0.6931472, %v13128_v19  ;;  %v4931_v34 = vand.u32 2147483647, %v15358_v61  ;;  %v4826_v26 = vsel %vm4825_vm4, %v4823_v18, %v4820_v17 }
0x1252   :  { %v13134_v4 = vpop.eup %13133  ;;  %v4900_v0 = vmul.f32 0.6931472, %v13132_v58  ;;  %v4920_v7 = vadd.f32 1.0, %v4919_v41  ;;  %vm15402_vm8 = vcmp.lt.f32.partialorder %v4851_v38, 0.0004427343  ;;  %v4930_v14 = vmul.f32 %v4929_v22, %v15358_v61 }
0x1253   :  { %v4915_v48 = vsel %vm4914_vm3, %v4912_v53, %v4909_v35  ;;  %v4842_v37 = vand.u32 2147483647, %v15340_v27  ;;  %v4922_v20 = vand.u32 2147483647, %v15371_v31  ;;  %v4838_v8 = vmul.f32 0.6931472, %v13134_v4 }
0x1254   :  { %v4939_v28 = vsub.f32 %v4835_v51, %v4915_v48  ;;  %v4906_v2 = vsel %vm4905_vm5, %v4903_v23, %v4900_v0  ;;  %v13136_v46 = vpop.eup %13135  ;;  %v4841_v18 = vmul.f32 %v15340_v27, %v4840_v60  ;;  %v4853_v49 = vsel %vm15402_vm8, %v4850_v44, %v4847_v52 }
0x1255   :  { %v4938_v3 = vsub.f32 %v4826_v26, %v4906_v2  ;;  %v4927_v55 = vmul.f32 0.6931472, %v13136_v46  ;;  %vm4932_vm9 = vcmp.lt.f32.partialorder %v4931_v34, 0.0004427343  ;;  %v4921_v19 = vmul.f32 %v4920_v7, %v15371_v31 }
0x1256   :  { %v4947_v59 = vmul.f32 0.5, %v4939_v28  ;;  %v13138_v21 = vpop.eup %13137  ;;  %vm4843_vm10 = vcmp.lt.f32.partialorder %v4842_v37, 0.0004427343  ;;  %vm4923_vm14 = vcmp.lt.f32.partialorder %v4922_v20, 0.0004427343 }
0x1257   :  { %v4946_v30 = vmul.f32 0.5, %v4938_v3  ;;  %v4933_v32 = vsel %vm4932_vm9, %v4930_v14, %v4927_v55  ;;  %v4918_v25 = vmul.f32 0.6931472, %v13138_v21  ;;  %v4844_v61 = vsel %vm4843_vm10, %v4841_v18, %v4838_v8 }
0x1258   :  { %v4955_v9 = vmul.f32 %v15286_v12, %v4947_v59  ;;  %v4941_v16 = vsub.f32 %v4853_v49, %v4933_v32 }
0x1259   :  { %v4954_v62 = vmul.f32 %v15301_v33, %v4946_v30  ;;  %v4924_v57 = vsel %vm4923_vm14, %v4921_v19, %v4918_v25 }
0x125a   :  { %4985 = vperm.xlu0 %12739, %v4955_v9   ;;  %v4949_v27 = vmul.f32 0.5, %v4941_v16  ;;  %v4940_v60 = vsub.f32 %v4844_v61, %v4924_v57 }
0x125b   :  { %4980 = vperm.xlu1 %12740, %v4954_v62  }
0x125c   :  { %v4957_v44 = vmul.f32 %v15318_v1, %v4949_v27  ;;  %v4948_v11 = vmul.f32 0.5, %v4940_v60 }
0x125e   :  { %4995 = vperm.xlu0 %12739, %v4957_v44   ;;  %v4956_v12 = vmul.f32 %v15321_v39, %v4948_v11 }
0x1260   :  { %4990 = vperm.xlu1 %12740, %v4956_v12  }
0x12bf   :  { %v4966_v51 = vpop.permute.xlu0 %4965 }
0x12c0   :  { %v4999_v31 = vmul.f32 %v4966_v51, %v15210_v5 }
0x12c1   :  { %v4961_v17 = vpop.permute.xlu1 %4960 }
0x12c2   :  { %v5015_v33 = vmul.f32 0.01, %v4999_v31  ;;  %vm5007_vm15 = vcmp.ge.f32.partialorder %v4999_v31, 0.0  ;;  %v4998_v41 = vmul.f32 %v4961_v17, %v15212_v63 }
0x12c4   :  { %vm5006_vm2 = vcmp.ge.f32.partialorder %v4998_v41, 0.0  ;;  %v5014_v58 = vmul.f32 0.01, %v4998_v41  ;;  %v15419_v35 = vsel %vm5007_vm15, %v4999_v31, %v5015_v33 }
0x12c5   :  { %v5031_v39 = vmul.f32 %v15419_v35, %v15419_v35 }
0x12c6   :  { %v15421_v53 = vsel %vm5006_vm2, %v4998_v41, %v5014_v58 }
0x12c7   :  { %v5030_v1 = vmul.f32 %v15421_v53, %v15421_v53 }
0x12c9   :  { %12014 = vmatprep.mubr.msk.f32.mxu1 %vm77_vm0, %v5030_v1  ;;  %v4976_v5 = vpop.permute.xlu0 %4975 }
0x12ca   :  { %12015 = vmatmul.mubr.msk.f32.vlgmr.msra.gmra.mrb[52].mxu1 %vm77_vm0, %v5031_v39  ;;  %v5001_v38 = vmul.f32 %v4976_v5, %v15224_v15 }
0x12cc   :  { %v5017_v63 = vmul.f32 0.01, %v5001_v38  ;;  %vm5009_vm3 = vcmp.ge.f32.partialorder %v5001_v38, 0.0 }
0x12ce   :  { %v15431_v22 = vsel %vm5009_vm3, %v5001_v38, %v5017_v63 }
0x12cf   :  { %v4971_v4 = vpop.permute.xlu1 %4970  ;;  %v5033_v34 = vmul.f32 %v15431_v22, %v15431_v22 }
0x12d0   :  { %v5000_v0 = vmul.f32 %v4971_v4, %v15226_v43 }
0x12d2   :  { %vm5008_vm4 = vcmp.ge.f32.partialorder %v5000_v0, 0.0  ;;  %v5016_v23 = vmul.f32 0.01, %v5000_v0 }
0x12d4   :  { %v15433_v48 = vsel %vm5008_vm4, %v5000_v0, %v5016_v23 }
0x12d5   :  { %v5032_v52 = vmul.f32 %v15433_v48, %v15433_v48 }
0x12d7   :  { %12017 = vmatprep.mubr.msk.f32.mxu1 %vm77_vm0, %v5032_v52 }
0x12d8   :  { %12018 = vmatmul.mubr.msk.f32.gmra.mrb[54].mxu1 %vm77_vm0, %v5033_v34 }
0x12d9   :  { %v4986_v28 = vpop.permute.xlu0 %4985 }
0x12da   :  { %v5003_v15 = vmul.f32 %v4986_v28, %v15238_v29  ;;  %v4981_v26 = vpop.permute.xlu1 %4980 }
0x12db   :  { %v5002_v43 = vmul.f32 %v4981_v26, %v15240_v45 }
0x12dc   :  { %vm5011_vm5 = vcmp.ge.f32.partialorder %v5003_v15, 0.0  ;;  %v5019_v2 = vmul.f32 0.01, %v5003_v15 }
0x12dd   :  { %vm5010_vm8 = vcmp.ge.f32.partialorder %v5002_v43, 0.0  ;;  %v5018_v7 = vmul.f32 0.01, %v5002_v43  ;;  %v4996_v3 = vpop.permute.xlu0 %4995 }
0x12de   :  { %v15443_v46 = vsel %vm5011_vm5, %v5003_v15, %v5019_v2  ;;  %v5005_v37 = vmul.f32 %v4996_v3, %v15250_v42 }
0x12df   :  { %v15445_v36 = vsel %vm5010_vm8, %v5002_v43, %v5018_v7  ;;  %v4991_v29 = vpop.permute.xlu1 %4990  ;;  %v5035_v59 = vmul.f32 %v15443_v46, %v15443_v46 }
0x12e0   :  { %v5034_v20 = vmul.f32 %v15445_v36, %v15445_v36  ;;  %vm5013_vm9 = vcmp.ge.f32.partialorder %v5005_v37, 0.0  ;;  %v5021_v45 = vmul.f32 0.01, %v5005_v37  ;;  %v5004_v55 = vmul.f32 %v4991_v29, %v15252_v10 }
0x12e2   :  { %12020 = vmatprep.mubr.msk.f32.mxu1 %vm77_vm0, %v5034_v20  ;;  %vm5012_vm10 = vcmp.ge.f32.partialorder %v5004_v55, 0.0  ;;  %v5020_v14 = vmul.f32 0.01, %v5004_v55  ;;  %v15455_v8 = vsel %vm5013_vm9, %v5005_v37, %v5021_v45 }
0x12e3   :  { %12021 = vmatmul.mubr.msk.f32.gmra.mrb[56].mxu1 %vm77_vm0, %v5035_v59  ;;  %v5037_v18 = vmul.f32 %v15455_v8, %v15455_v8 }
0x12e4   :  { %v15457_v42 = vsel %vm5012_vm10, %v5004_v55, %v5020_v14 }
0x12e5   :  { %v5036_v21 = vmul.f32 %v15457_v42, %v15457_v42 }
0x12e7   :  { %12023 = vmatprep.mubr.msk.f32.mxu1 %vm77_vm0, %v5036_v21 }
0x12e8   :  { %12024 = vmatmul.mubr.msk.f32.gmra.mrb[58].mxu1 %vm77_vm0, %v5037_v18 }
0x139d   :  { %v12016_v10 = vpop.f32.mrb[52].mxu1 }
0x139e   :  { %v5168_v30 = vmax.f32 %v12016_v10, 1e-30  ;;  %v5128_v49 = vpop.f32.mrb[53].mxu1 }
0x139f   :  { %v5167_v9 = vmax.f32 %v5128_v49, 1e-30 }
0x13a0   :  { %13139 = vrsqrt.f32 %v5168_v30 }
0x13a1   :  { %13141 = vrsqrt.f32 %v5167_v9 }
0x13aa   :  { %v13140_v32 = vpop.eup %13139 }
0x13ab   :  { %v13142_v25 = vpop.eup %13141  ;;  %v5184_v19 = vmul.f32 %v13140_v32, %v12016_v10  ;;  %v12019_v16 = vpop.f32.mrb[54].mxu1 }
0x13ac   :  { %v5183_v62 = vmul.f32 %v13142_v25, %v5128_v49  ;;  %v5170_v61 = vmax.f32 %v12019_v16, 1e-30  ;;  %v5138_v57 = vpop.f32.mrb[55].mxu1 }
0x13ad   :  { %13143 = vtanh.f32 %v5184_v19  ;;  %v5169_v27 = vmax.f32 %v5138_v57, 1e-30 }
0x13ae   :  { %13145 = vtanh.f32 %v5183_v62 }
0x13af   :  { %13147 = vrsqrt.f32 %v5170_v61 }
0x13b0   :  { %13149 = vrsqrt.f32 %v5169_v27 }
0x13b6   :  { %v12022_v44 = vpop.f32.mrb[56].mxu1 }
0x13b7   :  { %v13144_v60 = vpop.eup %13143  ;;  %v5172_v12 = vmax.f32 %v12022_v44, 1e-30  ;;  %v5148_v51 = vpop.f32.mrb[57].mxu1 }
0x13b8   :  { %v13146_v11 = vpop.eup %13145  ;;  %v5200_v31 = vmul.f32 %v13144_v60, %v13140_v32  ;;  %v5256_v33 = vmax.f32 %v13144_v60, 1e-15  ;;  %v5171_v17 = vmax.f32 %v5148_v51, 1e-30 }
0x13b9   :  { %v5199_v41 = vmul.f32 %v13146_v11, %v13142_v25  ;;  %v5255_v58 = vmax.f32 %v13146_v11, 1e-15  ;;  %13151 = vrsqrt.f32 %v5172_v12  ;;  %v13148_v1 = vpop.eup %13147 }
0x13ba   :  { %5214 = vperm.xlu0 %12739, %v5200_v31   ;;  %vm5264_vm14 = vcmp.gt.f32.partialorder %v5256_v33, 0.996  ;;  %13153 = vrsqrt.f32 %v5171_v17  ;;  %v13150_v39 = vpop.eup %13149  ;;  %v5186_v5 = vmul.f32 %v13148_v1, %v12019_v16 }
0x13bb   :  { %5209 = vperm.xlu1 %12740, %v5199_v41   ;;  %vm5263_vm15 = vcmp.gt.f32.partialorder %v5255_v58, 0.996  ;;  %v5185_v38 = vmul.f32 %v13150_v39, %v5138_v57  ;;  %v12025_v63 = vpop.f32.mrb[58].mxu1  ;;  %v5336_v4 = vsel %vm5264_vm14, 1, %v17440_v40 }
0x13bc   :  { %13155 = vtanh.f32 %v5186_v5  ;;  %v5174_v0 = vmax.f32 %v12025_v63, 1e-30  ;;  %v5158_v23 = vpop.f32.mrb[59].mxu1  ;;  %v5335_v52 = vsel %vm5263_vm15, 1, %v17440_v40 }
0x13bd   :  { %13157 = vtanh.f32 %v5185_v38  ;;  %v5173_v34 = vmax.f32 %v5158_v23, 1e-30 }
0x13be   :  { %5347 = vperm.xlu0 %12739, %v5336_v4   ;;  %13159 = vrsqrt.f32 %v5174_v0 }
0x13bf   :  { %5344 = vperm.xlu1 %12740, %v5335_v52   ;;  %13161 = vrsqrt.f32 %v5173_v34 }
0x13c0   :  { %13163 = vrcp.f32 %v5256_v33 }
0x13c1   :  { %13165 = vrcp.f32 %v5255_v58 }
0x13c3   :  { %v13152_v28 = vpop.eup %13151 }
0x13c4   :  { %v13154_v15 = vpop.eup %13153  ;;  %v5188_v26 = vmul.f32 %v13152_v28, %v12022_v44 }
0x13c5   :  { %v5187_v43 = vmul.f32 %v13154_v15, %v5148_v51 }
0x13c6   :  { %13167 = vtanh.f32 %v5188_v26  ;;  %v13156_v2 = vpop.eup %13155 }
0x13c7   :  { %13169 = vtanh.f32 %v5187_v43  ;;  %v13158_v7 = vpop.eup %13157  ;;  %v5202_v3 = vmul.f32 %v13156_v2, %v13148_v1  ;;  %v5258_v37 = vmax.f32 %v13156_v2, 1e-15 }
0x13c8   :  { %v13160_v20 = vpop.eup %13159  ;;  %v5201_v29 = vmul.f32 %v13158_v7, %v13150_v39  ;;  %v5257_v59 = vmax.f32 %v13158_v7, 1e-15 }
0x13c9   :  { %v13162_v45 = vpop.eup %13161  ;;  %v5190_v55 = vmul.f32 %v13160_v20, %v12025_v63  ;;  %5224 = vperm.xlu0 %12739, %v5202_v3   ;;  %vm5266_vm2 = vcmp.gt.f32.partialorder %v5258_v37, 0.996  ;;  %13171 = vrcp.f32 %v5258_v37 }
0x13ca   :  { %v5189_v14 = vmul.f32 %v13162_v45, %v5158_v23  ;;  %5219 = vperm.xlu1 %12740, %v5201_v29   ;;  %vm5265_vm3 = vcmp.gt.f32.partialorder %v5257_v59, 0.996  ;;  %13173 = vrcp.f32 %v5257_v59  ;;  %v13164_v21 = vpop.eup %13163  ;;  %v5338_v18 = vsel %vm5266_vm2, 1, %v17440_v40 }
0x13cb   :  { %13175 = vtanh.f32 %v5190_v55  ;;  %v13166_v10 = vpop.eup %13165  ;;  %v5337_v30 = vsel %vm5265_vm3, 1, %v17440_v40  ;;  %v5274_v9 = vmul.f32 0.996, %v13164_v21 }
0x13cc   :  { %13177 = vtanh.f32 %v5189_v14  ;;  %v5272_v25 = vmul.f32 0.996, %v13166_v10 }
0x13cd   :  { %5353 = vperm.xlu0 %12739, %v5338_v18  }
0x13ce   :  { %5350 = vperm.xlu1 %12740, %v5337_v30  }
0x13d0   :  { %v13168_v49 = vpop.eup %13167 }
0x13d1   :  { %v13170_v32 = vpop.eup %13169  ;;  %v5260_v19 = vmax.f32 %v13168_v49, 1e-15  ;;  %5294 = vperm.xlu0 %12739, %v5274_v9   ;;  %v5204_v61 = vmul.f32 %v13168_v49, %v13152_v28 }
0x13d2   :  { %v5259_v62 = vmax.f32 %v13170_v32, 1e-15  ;;  %5289 = vperm.xlu1 %12740, %v5272_v25   ;;  %v5203_v27 = vmul.f32 %v13170_v32, %v13154_v15 }
0x13d3   :  { %13179 = vrcp.f32 %v5260_v19  ;;  %v13172_v16 = vpop.eup %13171  ;;  %vm5268_vm4 = vcmp.gt.f32.partialorder %v5260_v19, 0.996 }
0x13d4   :  { %13181 = vrcp.f32 %v5259_v62  ;;  %v13174_v57 = vpop.eup %13173  ;;  %v5278_v12 = vmul.f32 0.996, %v13172_v16  ;;  %vm5267_vm5 = vcmp.gt.f32.partialorder %v5259_v62, 0.996  ;;  %v5340_v17 = vsel %vm5268_vm4, 1, %v17440_v40 }
0x13d5   :  { %v13176_v60 = vpop.eup %13175  ;;  %5234 = vperm.xlu0 %12739, %v5204_v61   ;;  %v5276_v31 = vmul.f32 0.996, %v13174_v57  ;;  %v5339_v58 = vsel %vm5267_vm5, 1, %v17440_v40 }
0x13d6   :  { %v13178_v44 = vpop.eup %13177  ;;  %5229 = vperm.xlu1 %12740, %v5203_v27   ;;  %v5262_v11 = vmax.f32 %v13176_v60, 1e-15  ;;  %v5206_v63 = vmul.f32 %v13176_v60, %v13160_v20 }
0x13d7   :  { %v5261_v51 = vmax.f32 %v13178_v44, 1e-15  ;;  %v5205_v4 = vmul.f32 %v13178_v44, %v13162_v45 }
0x13d8   :  { %13183 = vrcp.f32 %v5262_v11  ;;  %vm5270_vm8 = vcmp.gt.f32.partialorder %v5262_v11, 0.996 }
0x13d9   :  { %5304 = vperm.xlu0 %12739, %v5278_v12   ;;  %13185 = vrcp.f32 %v5261_v51  ;;  %vm5269_vm9 = vcmp.gt.f32.partialorder %v5261_v51, 0.996  ;;  %v5342_v52 = vsel %vm5270_vm8, 1, %v17440_v40 }
0x13da   :  { %5299 = vperm.xlu1 %12740, %v5276_v31   ;;  %v5341_v34 = vsel %vm5269_vm9, 1, %v17440_v40 }
0x13dd   :  { %v13180_v33 = vpop.eup %13179  ;;  %5359 = vperm.xlu0 %12739, %v5340_v17  }
0x13de   :  { %v13182_v41 = vpop.eup %13181  ;;  %5356 = vperm.xlu1 %12740, %v5339_v58   ;;  %v5282_v1 = vmul.f32 0.996, %v13180_v33 }
0x13df   :  { %v5280_v39 = vmul.f32 0.996, %v13182_v41 }
0x13e1   :  { %5314 = vperm.xlu0 %12739, %v5282_v1  }
0x13e2   :  { %v13184_v5 = vpop.eup %13183  ;;  %5309 = vperm.xlu1 %12740, %v5280_v39  }
0x13e3   :  { %v13186_v38 = vpop.eup %13185  ;;  %v5286_v0 = vmul.f32 0.996, %v13184_v5 }
0x13e4   :  { %v5284_v23 = vmul.f32 0.996, %v13186_v38 }
0x13e5   :  { %5244 = vperm.xlu0 %12739, %v5206_v63  }
0x13e6   :  { %5239 = vperm.xlu1 %12740, %v5205_v4  }
0x13e9   :  { %5324 = vperm.xlu0 %12739, %v5286_v0  }
0x13ea   :  { %5319 = vperm.xlu1 %12740, %v5284_v23  }
0x13ed   :  { %5365 = vperm.xlu0 %12739, %v5342_v52  }
0x13ee   :  { %5362 = vperm.xlu1 %12740, %v5341_v34  }
0x1439   :  { %v5215_v28 = vpop.permute.xlu0 %5214 }
0x143a   :  { %v5210_v15 = vpop.permute.xlu1 %5209  ;;  %v5248_v20 = vmul.f32 %v5215_v28, %v15419_v35 }
0x143b   :  { %v5247_v29 = vmul.f32 %v5210_v15, %v15421_v53 }
0x143d   :  { %v5348_v26 = vpop.permute.xlu0 %5347 }
0x143e   :  { %v5345_v43 = vpop.permute.xlu1 %5344  ;;  %vm5368_vm10 = vcmp.eq.s32.totalorder %v5348_v26, 1  ;;  %v5385_v26 = vld [vmem:[%s17388_s9 + $0x10] sm:$0xff] }
0x143f   :  { %vm5367_vm14 = vcmp.eq.s32.totalorder %v5345_v43, 1 }
0x1448   :  { %v5225_v2 = vpop.permute.xlu0 %5224 }
0x1449   :  { %v5220_v7 = vpop.permute.xlu1 %5219  ;;  %v5250_v53 = vmul.f32 %v5225_v2, %v15431_v22  ;;  %v5386_v2 = vld [vmem:[%s17388_s9 + $0x18] sm:$0xff] }
0x144a   :  { %v5249_v9 = vmul.f32 %v5220_v7, %v15433_v48  ;;  %v12583_v7 = vpack.c.bf16 %v5386_v2, %v5385_v26 }
0x144c   :  { %v5354_v3 = vpop.permute.xlu0 %5353 }
0x144d   :  { %v5351_v37 = vpop.permute.xlu1 %5350  ;;  %vm5370_vm15 = vcmp.eq.s32.totalorder %v5354_v3, 1 }
0x144e   :  { %vm5369_vm2 = vcmp.eq.s32.totalorder %v5351_v37, 1 }
0x1450   :  { %v5295_v59 = vpop.permute.xlu0 %5294 }
0x1451   :  { %v5328_v45 = vmul.f32 %v5295_v59, %v5248_v20  ;;  %v5290_v55 = vpop.permute.xlu1 %5289 }
0x1452   :  { %v5327_v14 = vmul.f32 %v5290_v55, %v5247_v29 }
0x1453   :  { %v15475_v21 = vsel %vm5368_vm10, %v5328_v45, %v5248_v20 }
0x1454   :  { %v15477_v18 = vsel %vm5367_vm14, %v5327_v14, %v5247_v29  ;;  %v5235_v10 = vpop.permute.xlu0 %5234  ;;  %v5389_v35 = vmul.f32 %v15475_v21, %v15475_v21 }
0x1455   :  { %v5230_v30 = vpop.permute.xlu1 %5229  ;;  %v5388_v49 = vmul.f32 %v15477_v18, %v15477_v18  ;;  %v5252_v60 = vmul.f32 %v5235_v10, %v15443_v46 }
0x1456   :  { %v5251_v44 = vmul.f32 %v5230_v30, %v15445_v36 }
0x1457   :  { %12034 = vmatprep.mubr.msk.f32.mxu0 %vm77_vm0, %v5388_v49 }
0x1458   :  { %12035 = vmatmul.mubr.msk.f32.vlgmr.msra.gmra.mrb[82].mxu0 %vm77_vm0, %v5389_v35  ;;  %v5305_v32 = vpop.permute.xlu0 %5304 }
0x1459   :  { %v5330_v25 = vmul.f32 %v5305_v32, %v5250_v53  ;;  %v5300_v19 = vpop.permute.xlu1 %5299  ;;  %12588 = vmatpush3.bf16.msra.mxu0 %v17443_v47 }
0x145a   :  { %v5329_v62 = vmul.f32 %v5300_v19, %v5249_v9  ;;  %12589 = vmatprep.subr.bf16.mxu0 %v17443_v47 }
0x145b   :  { %v15489_v16 = vsel %vm5370_vm15, %v5330_v25, %v5250_v53 }
0x145c   :  { %v15491_v61 = vsel %vm5369_vm2, %v5329_v62, %v5249_v9  ;;  %v5360_v22 = vpop.permute.xlu0 %5359  ;;  %v5391_v27 = vmul.f32 %v15489_v16, %v15489_v16 }
0x145d   :  { %v5357_v57 = vpop.permute.xlu1 %5356  ;;  %v5390_v48 = vmul.f32 %v15491_v61, %v15491_v61  ;;  %12590 = vmatpush3.bf16.msra.mxu0 %v17443_v47  ;;  %vm5372_vm3 = vcmp.eq.s32.totalorder %v5360_v22, 1 }
0x145e   :  { %12595 = vmatprep.subr.bf16.mxu0 %v17445_v56  ;;  %vm5371_vm4 = vcmp.eq.s32.totalorder %v5357_v57, 1 }
0x145f   :  { %12037 = vmatprep.mubr.msk.f32.mxu0 %vm77_vm0, %v5390_v48 }
0x1460   :  { %12038 = vmatmul.mubr.msk.f32.gmra.mrb[84].mxu0 %vm77_vm0, %v5391_v27  ;;  %v5315_v11 = vpop.permute.xlu0 %5314 }
0x1461   :  { %v5332_v12 = vmul.f32 %v5315_v11, %v5252_v60  ;;  %v5310_v51 = vpop.permute.xlu1 %5309 }
0x1462   :  { %v5331_v31 = vmul.f32 %v5310_v51, %v5251_v44 }
0x1463   :  { %v15503_v33 = vsel %vm5372_vm3, %v5332_v12, %v5252_v60 }
0x1464   :  { %v15505_v17 = vsel %vm5371_vm4, %v5331_v31, %v5251_v44  ;;  %v5245_v41 = vpop.permute.xlu0 %5244  ;;  %v5393_v36 = vmul.f32 %v15503_v33, %v15503_v33 }
0x1465   :  { %v5240_v58 = vpop.permute.xlu1 %5239  ;;  %v5392_v46 = vmul.f32 %v15505_v17, %v15505_v17  ;;  %v5254_v5 = vmul.f32 %v5245_v41, %v15455_v8  ;;  %v5383_v8 = vld [vmem:[%s17388_s9] sm:$0xff] }
0x1466   :  { %v5253_v38 = vmul.f32 %v5240_v58, %v15457_v42  ;;  %v5384_v42 = vld [vmem:[%s17388_s9 + $0x8] sm:$0xff] }
0x1467   :  { %12040 = vmatprep.mubr.msk.f32.mxu0 %vm77_vm0, %v5392_v46  ;;  %v12579_v43 = vpack.c.bf16 %v5384_v42, %v5383_v8 }
0x1468   :  { %12041 = vmatmul.mubr.msk.f32.gmra.mrb[86].mxu0 %vm77_vm0, %v5393_v36  ;;  %v5325_v1 = vpop.permute.xlu0 %5324 }
0x1469   :  { %v5320_v39 = vpop.permute.xlu1 %5319  ;;  %v5334_v63 = vmul.f32 %v5325_v1, %v5254_v5  ;;  %12580 = vmatprep.subr.bf16.mxu1 %v12579_v43 }
0x146a   :  { %v5333_v0 = vmul.f32 %v5320_v39, %v5253_v38  ;;  %12582 = vmatpush3.bf16.msra.mxu1 %v12579_v43 }
0x146b   :  { %12584 = vmatprep.subr.bf16.mxu1 %v12583_v7 }
0x146c   :  { %v5366_v4 = vpop.permute.xlu0 %5365 }
0x146d   :  { %vm5374_vm5 = vcmp.eq.s32.totalorder %v5366_v4, 1  ;;  %v5363_v23 = vpop.permute.xlu1 %5362 }
0x146e   :  { %v15515_v52 = vsel %vm5374_vm5, %v5334_v63, %v5254_v5  ;;  %vm5373_vm8 = vcmp.eq.s32.totalorder %v5363_v23, 1  ;;  %12586 = vmatpush3.bf16.msra.mxu1 %v12583_v7 }
0x146f   :  { %v15517_v34 = vsel %vm5373_vm8, %v5333_v0, %v5253_v38  ;;  %v5395_v15 = vmul.f32 %v15515_v52, %v15515_v52  ;;  %12591 = vmatprep.subr.bf16.mxu1 %v17443_v47 }
0x1470   :  { %v5394_v28 = vmul.f32 %v15517_v34, %v15517_v34 }
0x1472   :  { %12043 = vmatprep.mubr.msk.f32.mxu0 %vm77_vm0, %v5394_v28 }
0x1473   :  { %12044 = vmatmul.mubr.msk.f32.gmra.mrb[88].mxu0 %vm77_vm0, %v5395_v15 }
0x152b   :  { %v12036_v3 = vpop.f32.mrb[82].mxu0 }
0x152c   :  { %v5526_v37 = vmax.f32 %v12036_v3, 1e-30  ;;  %v5486_v20 = vpop.f32.mrb[83].mxu0 }
0x152d   :  { %v5525_v29 = vmax.f32 %v5486_v20, 1e-30 }
0x152e   :  { %13187 = vrsqrt.f32 %v5526_v37 }
0x152f   :  { %13189 = vrsqrt.f32 %v5525_v29 }
0x1533   :  { %v12039_v59 = vpop.f32.mrb[84].mxu0 }
0x1534   :  { %v5528_v45 = vmax.f32 %v12039_v59, 1e-30  ;;  %v5496_v55 = vpop.f32.mrb[85].mxu0 }
0x1535   :  { %v5527_v14 = vmax.f32 %v5496_v55, 1e-30 }
0x1536   :  { %13191 = vrsqrt.f32 %v5528_v45 }
0x1537   :  { %13193 = vrsqrt.f32 %v5527_v14 }
0x1538   :  { %v13188_v10 = vpop.eup %13187 }
0x1539   :  { %v13190_v30 = vpop.eup %13189  ;;  %v5542_v49 = vmul.f32 %v13188_v10, %v12036_v3  ;;  %v5558_v35 = vmul.f32 0.996, %v13188_v10 }
0x153a   :  { %v5541_v53 = vmul.f32 %v13190_v30, %v5486_v20  ;;  %v5557_v9 = vmul.f32 0.996, %v13190_v30 }
0x153b   :  { %vm5550_vm9 = vcmp.gt.f32.partialorder %v5542_v49, 0.996  ;;  %5572 = vperm.xlu0 %12739, %v5558_v35   ;;  %v12042_v32 = vpop.f32.mrb[86].mxu0 }
0x153c   :  { %v15538_v25 = vsel %vm5550_vm9, 0.996, %v5542_v49  ;;  %v15540_v19 = vsel %vm5550_vm9, 1.004016, %v13188_v10  ;;  %vm5549_vm10 = vcmp.gt.f32.partialorder %v5541_v53, 0.996  ;;  %5567 = vperm.xlu1 %12740, %v5557_v9  }
0x153d   :  { %v15542_v62 = vsel %vm5549_vm10, 0.996, %v5541_v53  ;;  %v15544_v22 = vsel %vm5549_vm10, 1.004016, %v13190_v30  ;;  %v5530_v57 = vmax.f32 %v12042_v32, 1e-30 }
0x153e   :  { %v5506_v48 = vpop.f32.mrb[87].mxu0  ;;  %v5614_v27 = vsel %vm5550_vm9, 1, %v17440_v40  ;;  %v5613_v51 = vsel %vm5549_vm10, 1, %v17440_v40 }
0x153f   :  { %v5529_v60 = vmax.f32 %v5506_v48, 1e-30  ;;  %5625 = vperm.xlu0 %12739, %v5614_v27   ;;  %13195 = vrsqrt.f32 %v5530_v57 }
0x1540   :  { %v13192_v44 = vpop.eup %13191  ;;  %5622 = vperm.xlu1 %12740, %v5613_v51  }
0x1541   :  { %v13194_v11 = vpop.eup %13193  ;;  %v5544_v12 = vmul.f32 %v13192_v44, %v12039_v59  ;;  %v5560_v41 = vmul.f32 0.996, %v13192_v44  ;;  %13197 = vrsqrt.f32 %v5529_v60 }
0x1542   :  { %v5543_v31 = vmul.f32 %v13194_v11, %v5496_v55  ;;  %v5559_v58 = vmul.f32 0.996, %v13194_v11 }
0x1543   :  { %vm5552_vm14 = vcmp.gt.f32.partialorder %v5544_v12, 0.996  ;;  %5582 = vperm.xlu0 %12739, %v5560_v41  }
0x1544   :  { %v15548_v46 = vsel %vm5552_vm14, 0.996, %v5544_v12  ;;  %v15550_v36 = vsel %vm5552_vm14, 1.004016, %v13192_v44  ;;  %vm5551_vm15 = vcmp.gt.f32.partialorder %v5543_v31, 0.996  ;;  %5577 = vperm.xlu1 %12740, %v5559_v58  }
0x1545   :  { %v15552_v1 = vsel %vm5551_vm15, 0.996, %v5543_v31  ;;  %v15554_v39 = vsel %vm5551_vm15, 1.004016, %v13194_v11  ;;  %v5616_v63 = vsel %vm5552_vm14, 1, %v17440_v40  ;;  %v5615_v23 = vsel %vm5551_vm15, 1, %v17440_v40 }
0x1546   :  { %v12045_v5 = vpop.f32.mrb[88].mxu0 }
0x1547   :  { %v5532_v38 = vmax.f32 %v12045_v5, 1e-30  ;;  %v5516_v4 = vpop.f32.mrb[89].mxu0  ;;  %5631 = vperm.xlu0 %12739, %v5616_v63  }
0x1548   :  { %v5531_v0 = vmax.f32 %v5516_v4, 1e-30  ;;  %5628 = vperm.xlu1 %12740, %v5615_v23  }
0x1549   :  { %v13196_v28 = vpop.eup %13195  ;;  %13199 = vrsqrt.f32 %v5532_v38 }
0x154a   :  { %v5546_v15 = vmul.f32 %v13196_v28, %v12042_v32  ;;  %v5562_v8 = vmul.f32 0.996, %v13196_v28  ;;  %13201 = vrsqrt.f32 %v5531_v0 }
0x154b   :  { %v13198_v42 = vpop.eup %13197 }
0x154c   :  { %vm5554_vm2 = vcmp.gt.f32.partialorder %v5546_v15, 0.996  ;;  %5592 = vperm.xlu0 %12739, %v5562_v8   ;;  %v5545_v2 = vmul.f32 %v13198_v42, %v5506_v48  ;;  %v5561_v7 = vmul.f32 0.996, %v13198_v42 }
0x154d   :  { %v15558_v26 = vsel %vm5554_vm2, 0.996, %v5546_v15  ;;  %v15560_v43 = vsel %vm5554_vm2, 1.004016, %v13196_v28  ;;  %v5618_v3 = vsel %vm5554_vm2, 1, %v17440_v40 }
0x154e   :  { %vm5553_vm3 = vcmp.gt.f32.partialorder %v5545_v2, 0.996  ;;  %5587 = vperm.xlu1 %12740, %v5561_v7  }
0x154f   :  { %v15563_v37 = vsel %vm5553_vm3, 0.996, %v5545_v2  ;;  %v15565_v20 = vsel %vm5553_vm3, 1.004016, %v13198_v42  ;;  %v5617_v29 = vsel %vm5553_vm3, 1, %v17440_v40 }
0x1550   :  { %5637 = vperm.xlu0 %12739, %v5618_v3  }
0x1552   :  { %5634 = vperm.xlu1 %12740, %v5617_v29  }
0x1553   :  { %v13200_v59 = vpop.eup %13199 }
0x1554   :  { %v13202_v45 = vpop.eup %13201  ;;  %v5548_v55 = vmul.f32 %v13200_v59, %v12045_v5  ;;  %v5564_v14 = vmul.f32 0.996, %v13200_v59 }
0x1555   :  { %v5547_v10 = vmul.f32 %v13202_v45, %v5516_v4  ;;  %v5563_v30 = vmul.f32 0.996, %v13202_v45 }
0x1556   :  { %vm5556_vm4 = vcmp.gt.f32.partialorder %v5548_v55, 0.996  ;;  %5602 = vperm.xlu0 %12739, %v5564_v14  }
0x1557   :  { %v15568_v49 = vsel %vm5556_vm4, 0.996, %v5548_v55  ;;  %v15570_v35 = vsel %vm5556_vm4, 1.004016, %v13200_v59  ;;  %vm5555_vm5 = vcmp.gt.f32.partialorder %v5547_v10, 0.996  ;;  %5597 = vperm.xlu1 %12740, %v5563_v30  }
0x1558   :  { %v15572_v53 = vsel %vm5555_vm5, 0.996, %v5547_v10  ;;  %v15574_v9 = vsel %vm5555_vm5, 1.004016, %v13202_v45  ;;  %v5620_v32 = vsel %vm5556_vm4, 1, %v17440_v40  ;;  %v5619_v57 = vsel %vm5555_vm5, 1, %v17440_v40 }
0x155a   :  { %5643 = vperm.xlu0 %12739, %v5620_v32  }
0x155b   :  { %5640 = vperm.xlu1 %12740, %v5619_v57  }
0x15ba   :  { %v5573_v48 = vpop.permute.xlu0 %5572 }
0x15bb   :  { %v5568_v27 = vpop.permute.xlu1 %5567  ;;  %v5606_v12 = vmul.f32 %v5573_v48, %v15475_v21 }
0x15bc   :  { %v5605_v44 = vmul.f32 %v5568_v27, %v15477_v18 }
0x15be   :  { %v5626_v60 = vpop.permute.xlu0 %5625 }
0x15bf   :  { %vm5646_vm8 = vcmp.eq.s32.totalorder %v5626_v60, 1  ;;  %v5623_v11 = vpop.permute.xlu1 %5622 }
0x15c0   :  { %vm5645_vm9 = vcmp.eq.s32.totalorder %v5623_v11, 1  ;;  %v5654_v41 = vsel %vm5646_vm8, %v5606_v12, %v15475_v21 }
0x15c1   :  { %v5653_v51 = vsel %vm5645_vm9, %v5605_v44, %v15477_v18 }
0x15c2   :  { %v5583_v31 = vpop.permute.xlu0 %5582  ;;  %12054 = vmatprep.mubr.msk.f32.mxu1 %vm77_vm0, %v5653_v51 }
0x15c3   :  { %v5578_v58 = vpop.permute.xlu1 %5577  ;;  %12055 = vmatmul.mubr.msk.f32.vlgmr.msra.gmra.mrb[60].mxu1 %vm77_vm0, %v5654_v41  ;;  %v5608_v4 = vmul.f32 %v5583_v31, %v15489_v16  ;;  %v15649_v31 = vld [vmem:[%s17389_s10] sm:$0x1] }
0x15c4   :  { %12592 = vmatpush3.bf16.msra.mxu1 %v17443_v47  ;;  %v5607_v38 = vmul.f32 %v5578_v58, %v15491_v61  ;;  %17477 = vst [vmem:[#allocation5_spill] sm:$0xff] %v15649_v31  ;;  %v6560_v58 = vmul.f32 %v15649_v31, %v15649_v31 }
0x15c5   :  { %12593 = vmatprep.subr.bf16.mxu1 %v17443_v47 }
0x15c6   :  { %v5632_v5 = vpop.permute.xlu0 %5631 }
0x15c7   :  { %vm5648_vm10 = vcmp.eq.s32.totalorder %v5632_v5, 1  ;;  %v5629_v63 = vpop.permute.xlu1 %5628  ;;  %v10955_v5 = vclamps-f32 %v15538_v25, 0.9999999 }
0x15c8   :  { %vm5647_vm14 = vcmp.eq.s32.totalorder %v5629_v63, 1  ;;  %12594 = vmatpush3.bf16.msra.mxu1 %v17443_v47  ;;  %v5656_v0 = vsel %vm5648_vm10, %v5608_v4, %v15489_v16 }
0x15c9   :  { %v5655_v21 = vsel %vm5647_vm14, %v5607_v38, %v15491_v61  ;;  %12603 = vmatprep.subr.bf16.mxu1 %v17445_v56  ;;  %v10954_v38 = vclamps-f32 %v15542_v62, 0.9999999  ;;  %v6000_v63 = vadd.f32 1.0, %v10955_v5  ;;  %v6064_v4 = vsub.f32 0.0, %v10955_v5 }
0x15ca   :  { %12057 = vmatprep.mubr.msk.f32.mxu1 %vm77_vm0, %v5655_v21  ;;  %v15674_v62 = vclamps-f32 %v15552_v1, 0.9999999 }
0x15cb   :  { %v5593_v18 = vpop.permute.xlu0 %5592  ;;  %12058 = vmatmul.mubr.msk.f32.gmra.mrb[62].mxu1 %vm77_vm0, %v5656_v0  ;;  %v5991_v21 = vadd.f32 1.0, %v10954_v38  ;;  %13203 = vlog2.f32 %v6000_v63  ;;  %v6080_v0 = vadd.f32 1.0, %v6064_v4 }
0x15cc   :  { %v5610_v42 = vmul.f32 %v5593_v18, %v15503_v33  ;;  %v15667_v18 = vclamps-f32 %v15548_v46, 0.9999999  ;;  %v6083_v46 = vmul.f32 -0.5, %v6064_v4 }
0x15cd   :  { %v5588_v23 = vpop.permute.xlu1 %5587  ;;  %13205 = vlog2.f32 %v5991_v21 }
0x15ce   :  { %v5609_v15 = vmul.f32 %v5588_v23, %v15505_v17  ;;  %v15669_v23 = vsub.f32 0.0, %v10954_v38  ;;  %13207 = vlog2.f32 %v6080_v0  ;;  %v15699_v0 = vclamps-f32 %v15563_v37, 0.9999999 }
0x15cf   :  { %v5638_v28 = vpop.permute.xlu0 %5637 }
0x15d0   :  { %vm5650_vm15 = vcmp.eq.s32.totalorder %v5638_v28, 1  ;;  %v6018_v28 = vadd.f32 1.0, %v15667_v18  ;;  %v6071_v25 = vadd.f32 1.0, %v15669_v23 }
0x15d1   :  { %v5635_v8 = vpop.permute.xlu1 %5634  ;;  %v5658_v2 = vsel %vm5650_vm15, %v5610_v42, %v15503_v33 }
0x15d2   :  { %vm5649_vm2 = vcmp.eq.s32.totalorder %v5635_v8, 1  ;;  %v5994_v8 = vmul.f32 -0.5, %v10954_v38  ;;  %13209 = vlog2.f32 %v6018_v28 }
0x15d3   :  { %v5657_v61 = vsel %vm5649_vm2, %v5609_v15, %v15505_v17  ;;  %v6003_v15 = vmul.f32 -0.5, %v10955_v5  ;;  %13211 = vlog2.f32 %v6071_v25 }
0x15d4   :  { %12060 = vmatprep.mubr.msk.f32.mxu1 %vm77_vm0, %v5657_v61 }
0x15d5   :  { %12061 = vmatmul.mubr.msk.f32.gmra.mrb[64].mxu1 %vm77_vm0, %v5658_v2  ;;  %v5603_v16 = vpop.permute.xlu0 %5602  ;;  %v6004_v42 = vadd.f32 1.0, %v6003_v15  ;;  %v13204_v61 = vpop.eup %13203  ;;  %v5995_v2 = vadd.f32 1.0, %v5994_v8 }
0x15d6   :  { %v5598_v7 = vpop.permute.xlu1 %5597  ;;  %v5612_v45 = vmul.f32 %v5603_v16, %v15515_v52 }
0x15d7   :  { %v5611_v29 = vmul.f32 %v5598_v7, %v15517_v34  ;;  %v13206_v16 = vpop.eup %13205  ;;  %v6021_v7 = vmul.f32 -0.5, %v15667_v18  ;;  %v6005_v1 = vmul.f32 %v10955_v5, %v6004_v42 }
0x15d9   :  { %v5644_v3 = vpop.permute.xlu0 %5643 }
0x15da   :  { %vm5652_vm3 = vcmp.eq.s32.totalorder %v5644_v3, 1  ;;  %v5641_v59 = vpop.permute.xlu1 %5640  ;;  %v15678_v3 = vsub.f32 0.0, %v15667_v18 }
0x15db   :  { %vm5651_vm4 = vcmp.eq.s32.totalorder %v5641_v59, 1  ;;  %v5660_v17 = vsel %vm5652_vm3, %v5612_v45, %v15515_v52  ;;  %v6012_v59 = vmul.f32 -0.5, %v15674_v62  ;;  %v15683_v45 = vclamps-f32 %v15558_v26, 0.9999999 }
0x15dc   :  { %v5659_v55 = vsel %vm5651_vm4, %v5611_v29, %v15517_v34  ;;  %v6009_v29 = vadd.f32 1.0, %v15674_v62  ;;  %v6098_v26 = vadd.f32 1.0, %v15678_v3 }
0x15dd   :  { %12063 = vmatprep.mubr.msk.f32.mxu1 %vm77_vm0, %v5659_v55  ;;  %v6006_v55 = vand.u32 2147483647, %v10955_v5  ;;  %v15694_v63 = vadd.f32 1.0, %v6012_v59  ;;  %v6036_v5 = vadd.f32 1.0, %v15683_v45  ;;  %v6039_v21 = vmul.f32 -0.5, %v15683_v45 }
0x15de   :  { %12064 = vmatmul.mubr.msk.f32.gmra.mrb[66].mxu1 %vm77_vm0, %v5660_v17  ;;  %v6086_v17 = vand.u32 2147483647, %v6064_v4  ;;  %13213 = vlog2.f32 %v6009_v29  ;;  %v15724_v29 = vsub.f32 0.0, %v15683_v45  ;;  %v6027_v59 = vadd.f32 1.0, %v15699_v0 }
0x15df   :  { %vm15701_vm5 = vcmp.lt.f32.partialorder %v6006_v55, 0.0004427343  ;;  %13215 = vlog2.f32 %v6098_v26  ;;  %v15729_v55 = vsub.f32 0.0, %v15699_v0 }
0x15e0   :  { %vm15705_vm8 = vcmp.lt.f32.partialorder %v6086_v17, 0.0004427343  ;;  %13217 = vlog2.f32 %v6036_v5  ;;  %v15732_v17 = vclamps-f32 %v15568_v49, 0.9999999 }
0x15e2   :  { %v6054_v28 = vadd.f32 1.0, %v15732_v17  ;;  %v6057_v15 = vmul.f32 -0.5, %v15732_v17 }
0x1696   :  { %v15606_v33 = vpop.f32.mrb[60].mxu1 }
0x1697   :  { %v15608_v14 = vpop.f32.mrb[61].mxu1  ;;  %v5807_v30 = vmul.f32 %v15606_v33, %v15606_v33 }
0x1698   :  { %v5806_v10 = vmul.f32 %v15608_v14, %v15608_v14 }
0x169a   :  { %12074 = vmatprep.mubr.msk.f32.mxu0 %vm77_vm0, %v5806_v10  ;;  %v5997_v10 = vand.u32 2147483647, %v10954_v38 }
0x169b   :  { %12075 = vmatmul.mubr.msk.f32.vlgmr.msra.gmra.mrb[90].mxu0 %vm77_vm0, %v5807_v30  ;;  %v6002_v30 = vmul.f32 0.6931472, %v13204_v61 }
0x169c   :  { %12596 = vmatpush3.bf16.msra.mxu0 %v17443_v47  ;;  %vm15709_vm9 = vcmp.lt.f32.partialorder %v5997_v10, 0.0004427343 }
0x169d   :  { %12597 = vmatprep.subr.bf16.mxu0 %v17445_v56  ;;  %v6008_v25 = vsel %vm15701_vm5, %v6005_v1, %v6002_v30  ;;  %v6030_v1 = vmul.f32 -0.5, %v15699_v0  ;;  %v15737_v30 = vclamps-f32 %v15572_v53, 0.9999999 }
0x169e   :  { %v15618_v52 = vpop.f32.mrb[62].mxu1 }
0x169f   :  { %v15620_v34 = vpop.f32.mrb[63].mxu1  ;;  %v5809_v57 = vmul.f32 %v15618_v52, %v15618_v52 }
0x16a0   :  { %v5808_v32 = vmul.f32 %v15620_v34, %v15620_v34  ;;  %12598 = vmatpush3.bf16.msra.mxu0 %v17443_v47 }
0x16a1   :  { %12599 = vmatprep.subr.bf16.mxu0 %v17443_v47 }
0x16a2   :  { %12077 = vmatprep.mubr.msk.f32.mxu0 %vm77_vm0, %v5808_v32  ;;  %v6084_v32 = vadd.f32 1.0, %v6083_v46  ;;  %v6077_v46 = vand.u32 2147483647, %v15669_v23 }
0x16a3   :  { %12078 = vmatmul.mubr.msk.f32.gmra.mrb[92].mxu0 %vm77_vm0, %v5809_v57  ;;  %v15685_v57 = vmul.f32 0.6931472, %v13206_v16 }
0x16a4   :  { %v6085_v37 = vmul.f32 %v6084_v32, %v6064_v4  ;;  %vm15749_vm10 = vcmp.lt.f32.partialorder %v6077_v46, 0.0004427343  ;;  %v15764_v46 = vadd.f32 1.0, %v6030_v1  ;;  %v6107_v1 = vadd.f32 1.0, %v15729_v55 }
0x16a8   :  { %v15630_v48 = vpop.f32.mrb[64].mxu1 }
0x16a9   :  { %v15632_v27 = vpop.f32.mrb[65].mxu1  ;;  %v5811_v44 = vmul.f32 %v15630_v48, %v15630_v48 }
0x16aa   :  { %v5810_v60 = vmul.f32 %v15632_v27, %v15632_v27 }
0x16ac   :  { %12080 = vmatprep.mubr.msk.f32.mxu0 %vm77_vm0, %v5810_v60  ;;  %v15687_v60 = vmul.f32 %v10954_v38, %v5995_v2 }
0x16ad   :  { %12081 = vmatmul.mubr.msk.f32.gmra.mrb[94].mxu0 %vm77_vm0, %v5811_v44  ;;  %v13208_v44 = vpop.eup %13207 }
0x16ae   :  { %v13210_v8 = vpop.eup %13209  ;;  %v6082_v42 = vmul.f32 0.6931472, %v13208_v44  ;;  %v5999_v61 = vsel %vm15709_vm9, %v15687_v60, %v15685_v57  ;;  %v6024_v60 = vand.u32 2147483647, %v15667_v18  ;;  %v6101_v44 = vmul.f32 -0.5, %v15678_v3 }
0x16af   :  { %v13212_v4 = vpop.eup %13211  ;;  %v15734_v10 = vmul.f32 0.6931472, %v13210_v8 }
0x16b0   :  { %v6088_v57 = vsel %vm15705_vm8, %v6085_v37, %v6082_v42  ;;  %vm15760_vm14 = vcmp.lt.f32.partialorder %v6024_v60, 0.0004427343  ;;  %v6102_v37 = vadd.f32 1.0, %v6101_v44  ;;  %v15781_v60 = vadd.f32 1.0, %v6057_v15 }
0x16b1   :  { %v15640_v11 = vpop.f32.mrb[66].mxu1  ;;  %v6144_v8 = vsub.f32 %v6008_v25, %v6088_v57  ;;  %v6116_v25 = vadd.f32 1.0, %v15724_v29  ;;  %v6015_v42 = vand.u32 2147483647, %v15674_v62 }
0x16b2   :  { %v15642_v12 = vpop.f32.mrb[67].mxu1  ;;  %v5813_v41 = vmul.f32 %v15640_v11, %v15640_v11 }
0x16b3   :  { %v5812_v51 = vmul.f32 %v15642_v12, %v15642_v12  ;;  %v6152_v44 = vmul.f32 0.5, %v6144_v8  ;;  %vm15802_vm2 = vcmp.lt.f32.partialorder %v6015_v42, 0.0004427343 }
0x16b5   :  { %12083 = vmatprep.mubr.msk.f32.mxu0 %vm77_vm0, %v5812_v51  ;;  %v6022_v51 = vadd.f32 1.0, %v6021_v7  ;;  %v15721_v7 = vadd.f32 1.0, %v6039_v21  ;;  %v6073_v21 = vmul.f32 0.6931472, %v13212_v4 }
0x16b6   :  { %12084 = vmatmul.mubr.msk.f32.gmra.mrb[96].mxu0 %vm77_vm0, %v5813_v41  ;;  %v15690_v41 = vsub.f32 0.0, %v15674_v62 }
0x16b7   :  { %12114 = vmatprep.mubr.msk.f32.mxu0 %vm13636_vm6, %v17446_v50  ;;  %v15755_v38 = vmul.f32 %v15667_v18, %v6022_v51  ;;  %v6048_v18 = vmul.f32 -0.5, %v15737_v30 }
0x16b8   :  { %v6089_v16 = vadd.f32 1.0, %v15690_v41  ;;  %v6092_v5 = vmul.f32 -0.5, %v15690_v41 }
0x16b9   :  { %v6026_v51 = vsel %vm15760_vm14, %v15755_v38, %v15734_v10  ;;  %v6104_v10 = vand.u32 2147483647, %v15678_v3  ;;  %v6103_v38 = vmul.f32 %v6102_v37, %v15678_v3  ;;  %v6014_v37 = vmul.f32 %v15674_v62, %v15694_v63 }
0x16ba   :  { %12115 = vmatmul.mubr.msk.f32.vlgmr.msra.gmra.mrb[98].mxu0 %vm77_vm0, %v6560_v58  ;;  %v6074_v58 = vmul.f32 -0.5, %v15669_v23  ;;  %13219 = vlog2.f32 %v6089_v16  ;;  %v15773_v16 = vsub.f32 0.0, %v15732_v17  ;;  %v6042_v62 = vand.u32 2147483647, %v15683_v45 }
0x16bb   :  { %12600 = vmatpush3.bf16.msra.mxu0 %v17443_v47  ;;  %13221 = vlog2.f32 %v6027_v59  ;;  %v15776_v59 = vsub.f32 0.0, %v15737_v30  ;;  %vm15795_vm15 = vcmp.lt.f32.partialorder %v6104_v10, 0.0004427343  ;;  %v15812_v10 = vmul.f32 %v15683_v45, %v15721_v7 }
0x16bc   :  { %12601 = vmatprep.subr.bf16.mxu0 %v17443_v47  ;;  %v6075_v2 = vadd.f32 1.0, %v6074_v58  ;;  %v6119_v63 = vmul.f32 -0.5, %v15724_v29  ;;  %vm15838_vm4 = vcmp.lt.f32.partialorder %v6042_v62, 0.0004427343  ;;  %v6110_v62 = vmul.f32 -0.5, %v15729_v55 }
0x16bd   :  { %v6125_v54 = vadd.f32 1.0, %v15776_v59 }
0x16be   :  { %v6076_v49 = vmul.f32 %v6075_v2, %v15669_v23  ;;  %v6045_v23 = vadd.f32 1.0, %v15737_v30  ;;  %v13214_v2 = vpop.eup %13213 }
0x16bf   :  { %12602 = vmatpush3.bf16.msra.mxu0 %v17443_v47  ;;  %v13216_v57 = vpop.eup %13215 }
0x16c0   :  { %12611 = vmatprep.subr.bf16.mxu0 %v17443_v47  ;;  %v6079_v4 = vsel %vm15749_vm10, %v6076_v49, %v6073_v21  ;;  %v15789_v49 = vadd.f32 1.0, %v6048_v18  ;;  %v6100_v8 = vmul.f32 0.6931472, %v13216_v57 }
0x16c1   :  { %v6143_v21 = vsub.f32 %v5999_v61, %v6079_v4  ;;  %v6095_v61 = vand.u32 2147483647, %v15690_v41  ;;  %v6093_v4 = vadd.f32 1.0, %v6092_v5  ;;  %v6134_v5 = vadd.f32 1.0, %v15773_v16 }
0x16c3   :  { %v6151_v57 = vmul.f32 0.5, %v6143_v21  ;;  %vm15827_vm3 = vcmp.lt.f32.partialorder %v6095_v61, 0.0004427343  ;;  %v6094_v3 = vmul.f32 %v6093_v4, %v15690_v41  ;;  %v6033_v41 = vand.u32 2147483647, %v15699_v0 }
0x16c5   :  { %vm15872_vm8 = vcmp.lt.f32.partialorder %v6033_v41, 0.0004427343 }
0x176e   :  { %v15739_v32 = vpop.f32.mrb[90].mxu0 }
0x176f   :  { %v5944_v58 = vmax.f32 %v15739_v32, 1e-30  ;;  %v15746_v26 = vpop.f32.mrb[91].mxu0  ;;  %vm6232_vm10 = vcmp.le.f32.partialorder %v15739_v32, 0.0 }
0x1770   :  { %v5943_v53 = vmax.f32 %v15746_v26, 1e-30 }
0x1771   :  { %13223 = vrsqrt.f32 %v5944_v58  ;;  %v13218_v58 = vpop.eup %13217 }
0x1772   :  { %13225 = vrsqrt.f32 %v5943_v53  ;;  %v13220_v24 = vpop.eup %13219 }
0x1773   :  { %13227 = vlog2.f32 %v6054_v28  ;;  %v13222_v18 = vpop.eup %13221  ;;  %v6091_v42 = vmul.f32 0.6931472, %v13220_v24  ;;  %v6122_v24 = vand.u32 2147483647, %v15724_v29 }
0x1774   :  { %13229 = vlog2.f32 %v6045_v23  ;;  %v6011_v23 = vmul.f32 0.6931472, %v13214_v2  ;;  %v15806_v2 = vmul.f32 0.6931472, %v13218_v58  ;;  %v6106_v58 = vsel %vm15795_vm15, %v6103_v38, %v6100_v8 }
0x1775   :  { %13231 = vlog2.f32 %v6116_v25  ;;  %v15835_v38 = vmul.f32 0.6931472, %v13222_v18  ;;  %v6146_v50 = vsub.f32 %v6026_v51, %v6106_v58  ;;  %v6032_v58 = vmul.f32 %v15699_v0, %v15764_v46 }
0x1776   :  { %v15784_v53 = vpop.f32.mrb[92].mxu0  ;;  %13233 = vlog2.f32 %v6107_v1  ;;  %v6017_v7 = vsel %vm15802_vm2, %v6014_v37, %v6011_v23  ;;  %v6120_v37 = vadd.f32 1.0, %v6119_v63  ;;  %vm15861_vm5 = vcmp.lt.f32.partialorder %v6122_v24, 0.0004427343 }
0x1777   :  { %v5946_v28 = vmax.f32 %v15784_v53, 1e-30  ;;  %v15792_v15 = vpop.f32.mrb[93].mxu0  ;;  %vm6231_vm15 = vcmp.le.f32.partialorder %v15746_v26, 0.0 }
0x1778   :  { %v5945_v6 = vmax.f32 %v15792_v15, 1e-30 }
0x1779   :  { %13235 = vrsqrt.f32 %v5946_v28 }
0x177a   :  { %13237 = vrsqrt.f32 %v5945_v6 }
0x177b   :  { %v15808_v1 = vpop.eup %13223  ;;  %13239 = vlog2.f32 %v6134_v5 }
0x177c   :  { %v15816_v28 = vpop.eup %13225  ;;  %v5960_v6 = vmul.f32 %v15808_v1, %v15739_v32  ;;  %13241 = vlog2.f32 %v6125_v54  ;;  %v6131_v54 = vand.u32 2147483647, %v15776_v59 }
0x177d   :  { %v5959_v21 = vmul.f32 %v15816_v28, %v15746_v26  ;;  %v13228_v8 = vpop.eup %13227 }
0x177e   :  { %v5968_v13 = vmul.f32 %v5960_v6, %v15540_v19  ;;  %v13230_v61 = vpop.eup %13229  ;;  %v6097_v19 = vsel %vm15827_vm3, %v6094_v3, %v6091_v42  ;;  %v6121_v42 = vmul.f32 %v6120_v37, %v15724_v29  ;;  %v6111_v29 = vadd.f32 1.0, %v6110_v62 }
0x177f   :  { %v5967_v31 = vmul.f32 %v5959_v21, %v15544_v22  ;;  %v13232_v18 = vpop.eup %13231  ;;  %v6113_v21 = vand.u32 2147483647, %v15729_v55  ;;  %v15877_v3 = vmul.f32 0.6931472, %v13228_v8  ;;  %v6035_v37 = vsel %vm15872_vm8, %v6032_v58, %v15835_v38 }
0x1780   :  { %v6160_v25 = vmul.f32 %v6152_v44, %v5968_v13  ;;  %v15844_v6 = vpop.f32.mrb[94].mxu0  ;;  %v13234_v63 = vpop.eup %13233  ;;  %v6044_v13 = vsel %vm15838_vm4, %v15812_v10, %v15806_v2  ;;  %v6154_v10 = vmul.f32 0.5, %v6146_v50  ;;  %v6118_v45 = vmul.f32 0.6931472, %v13232_v18 }
0x1781   :  { %v6159_v4 = vmul.f32 %v6151_v57, %v5967_v31  ;;  %v5948_v22 = vmax.f32 %v15844_v6, 1e-30  ;;  %v15848_v51 = vpop.f32.mrb[95].mxu0  ;;  %v6145_v57 = vsub.f32 %v6017_v7, %v6097_v19  ;;  %v15881_v50 = vmul.f32 %v15732_v17, %v15781_v60 }
0x1782   :  { %13243 = vtanh.f32 %v6160_v25  ;;  %v5947_v44 = vmax.f32 %v15848_v51, 1e-30  ;;  %v6109_v25 = vmul.f32 0.6931472, %v13234_v63  ;;  %vm15887_vm9 = vcmp.lt.f32.partialorder %v6113_v21, 0.0004427343 }
0x1783   :  { %v15858_v31 = vpop.eup %13235  ;;  %13245 = vtanh.f32 %v6159_v4  ;;  %v6153_v23 = vmul.f32 0.5, %v6145_v57  ;;  %v6137_v8 = vmul.f32 -0.5, %v15773_v16  ;;  %v6112_v60 = vmul.f32 %v6111_v29, %v15729_v55 }
0x1784   :  { %v15865_v5 = vpop.eup %13237  ;;  %v5962_v2 = vmul.f32 %v15858_v31, %v15784_v53  ;;  %13247 = vrsqrt.f32 %v5948_v22  ;;  %v6128_v22 = vmul.f32 -0.5, %v15776_v59  ;;  %v6124_v62 = vsel %vm15861_vm5, %v6121_v42, %v6118_v45 }
0x1785   :  { %v5961_v0 = vmul.f32 %v15865_v5, %v15792_v15  ;;  %13249 = vrsqrt.f32 %v5947_v44  ;;  %v13240_v38 = vpop.eup %13239  ;;  %v6115_v55 = vsel %vm15887_vm9, %v6112_v60, %v6109_v25  ;;  %v6138_v21 = vadd.f32 1.0, %v6137_v8 }
0x1786   :  { %v5970_v7 = vmul.f32 %v5962_v2, %v15550_v36  ;;  %v6060_v36 = vand.u32 2147483647, %v15732_v17  ;;  %v6047_v17 = vmul.f32 0.6931472, %v13230_v61  ;;  %v13242_v58 = vpop.eup %13241  ;;  %v6050_v2 = vmul.f32 %v15737_v30, %v15789_v49 }
0x1787   :  { %v5969_v24 = vmul.f32 %v5961_v0, %v15554_v39  ;;  %v6140_v39 = vand.u32 2147483647, %v15773_v16  ;;  %v6051_v42 = vand.u32 2147483647, %v15737_v30  ;;  %v6148_v46 = vsub.f32 %v6044_v13, %v6124_v62 }
0x1788   :  { %v6162_v19 = vmul.f32 %v6154_v10, %v5970_v7  ;;  %v6129_v61 = vadd.f32 1.0, %v6128_v22  ;;  %vm15929_vm2 = vcmp.lt.f32.partialorder %v6131_v54, 0.0004427343  ;;  %vm6061_vm3 = vcmp.lt.f32.partialorder %v6060_v36, 0.0004427343 }
0x1789   :  { %v6161_v18 = vmul.f32 %v6153_v23, %v5969_v24  ;;  %v15894_v4 = vpop.f32.mrb[96].mxu0  ;;  %v6147_v24 = vsub.f32 %v6035_v37, %v6115_v55  ;;  %v6136_v23 = vmul.f32 0.6931472, %v13240_v38  ;;  %vm15919_vm14 = vcmp.lt.f32.partialorder %v6140_v39, 0.0004427343 }
0x178a   :  { %13251 = vtanh.f32 %v6162_v19  ;;  %v5950_v63 = vmax.f32 %v15894_v4, 1e-30  ;;  %v15901_v44 = vpop.f32.mrb[97].mxu0  ;;  %v6130_v60 = vmul.f32 %v6129_v61, %v15776_v59  ;;  %v6239_v59 = vsel %vm6231_vm15, 1, %v17440_v40 }
0x178b   :  { %13253 = vtanh.f32 %v6161_v18  ;;  %v5949_v57 = vmax.f32 %v15901_v44, 1e-30  ;;  %v6156_v18 = vmul.f32 0.5, %v6148_v46  ;;  %v6155_v38 = vmul.f32 0.5, %v6147_v24 }
0x178c   :  { %v13244_v10 = vpop.eup %13243  ;;  %13255 = vrsqrt.f32 %v5950_v63  ;;  %v6062_v55 = vsel %vm6061_vm3, %v15881_v50, %v15877_v3  ;;  %vm6052_vm4 = vcmp.lt.f32.partialorder %v6051_v42, 0.0004427343  ;;  %vm6234_vm5 = vcmp.le.f32.partialorder %v15784_v53, 0.0 }
0x178d   :  { %v13246_v0 = vpop.eup %13245  ;;  %13257 = vrsqrt.f32 %v5949_v57  ;;  %v6630_v29 = vpop.f32.mrb[98].mxu0  ;;  %v6176_v7 = vmul.f32 %v13244_v10, %v15808_v1  ;;  %v6127_v1 = vmul.f32 0.6931472, %v13242_v58  ;;  %v6053_v10 = vsel %vm6052_vm4, %v6050_v2, %v6047_v17 }
0x178e   :  { %v15911_v45 = vpop.eup %13247  ;;  %v6634_v25 = vmax.f32 %v6630_v29, 1e-30  ;;  %v6175_v49 = vmul.f32 %v13246_v0, %v15816_v28  ;;  %v12116_v19 = vpop.f32.mrb[99].mxu0  ;;  %v6139_v28 = vmul.f32 %v6138_v21, %v15773_v16  ;;  %v6240_v16 = vsel %vm6232_vm10, 1, %v17440_v40 }
0x178f   :  { %v15914_v41 = vpop.eup %13249  ;;  %v5964_v30 = vmul.f32 %v15911_v45, %v15844_v6  ;;  %6190 = vperm.xlu0 %12739, %v6176_v7   ;;  %vm6233_vm8 = vcmp.le.f32.partialorder %v15792_v15, 0.0  ;;  %vm6236_vm9 = vcmp.le.f32.partialorder %v15844_v6, 0.0  ;;  %vm6235_vm10 = vcmp.le.f32.partialorder %v15848_v51, 0.0 }
0x1790   :  { %v5963_v37 = vmul.f32 %v15914_v41, %v15848_v51  ;;  %13259 = vrsqrt.f32 %v6634_v25  ;;  %6185 = vperm.xlu1 %12740, %v6175_v49   ;;  %v6142_v62 = vsel %vm15919_vm14, %v6139_v28, %v6136_v23  ;;  %v6241_v53 = vsel %vm6233_vm8, 1, %v17440_v40 }
0x1791   :  { %v5972_v8 = vmul.f32 %v5964_v30, %v15560_v43  ;;  %v6133_v43 = vsel %vm15929_vm2, %v6130_v60, %v6127_v1  ;;  %v6150_v32 = vsub.f32 %v6062_v55, %v6142_v62  ;;  %vm6238_vm14 = vcmp.le.f32.partialorder %v15894_v4, 0.0 }
0x1792   :  { %v5971_v22 = vmul.f32 %v5963_v37, %v15565_v20  ;;  %v6149_v54 = vsub.f32 %v6053_v10, %v6133_v43  ;;  %vm6237_vm15 = vcmp.le.f32.partialorder %v15901_v44, 0.0  ;;  %v6246_v6 = vsel %vm6238_vm14, 1, %v17440_v40 }
0x1793   :  { %v6164_v63 = vmul.f32 %v6156_v18, %v5972_v8  ;;  %6251 = vperm.xlu0 %12739, %v6240_v16   ;;  %v6158_v17 = vmul.f32 0.5, %v6150_v32  ;;  %v6245_v51 = vsel %vm6237_vm15, 1, %v17440_v40 }
0x1794   :  { %v13252_v58 = vpop.eup %13251  ;;  %v6163_v20 = vmul.f32 %v6155_v38, %v5971_v22  ;;  %6248 = vperm.xlu1 %12740, %v6239_v59   ;;  %v6157_v42 = vmul.f32 0.5, %v6149_v54 }
0x1795   :  { %v13254_v57 = vpop.eup %13253  ;;  %13261 = vtanh.f32 %v6164_v63  ;;  %v6178_v36 = vmul.f32 %v13252_v58, %v15858_v31 }
0x1796   :  { %v13256_v21 = vpop.eup %13255  ;;  %13263 = vtanh.f32 %v6163_v20  ;;  %v6177_v0 = vmul.f32 %v13254_v57, %v15865_v5  ;;  %v6242_v5 = vsel %vm6234_vm5, 1, %v17440_v40 }
0x1797   :  { %v13258_v26 = vpop.eup %13257  ;;  %v5966_v46 = vmul.f32 %v13256_v21, %v15894_v4  ;;  %6200 = vperm.xlu0 %12739, %v6178_v36  }
0x1798   :  { %v5965_v3 = vmul.f32 %v13258_v26, %v15901_v44  ;;  %6195 = vperm.xlu1 %12740, %v6177_v0  }
0x1799   :  { %v5974_v50 = vmul.f32 %v5966_v46, %v15570_v35 }
0x179a   :  { %v13260_v31 = vpop.eup %13259  ;;  %v5973_v2 = vmul.f32 %v5965_v3, %v15574_v9  ;;  %v6244_v9 = vsel %vm6236_vm9, 1, %v17440_v40 }
0x179b   :  { %v6166_v61 = vmul.f32 %v6158_v17, %v5974_v50  ;;  %v6636_v7 = vmul.f32 %v13260_v31, %v6630_v29  ;;  %6257 = vperm.xlu0 %12739, %v6242_v5   ;;  %v6243_v29 = vsel %vm6235_vm10, 1, %v17440_v40 }
0x179c   :  { %v6165_v24 = vmul.f32 %v6157_v42, %v5973_v2  ;;  %6254 = vperm.xlu1 %12740, %v6241_v53  }
0x179d   :  { %13265 = vtanh.f32 %v6166_v61 }
0x179e   :  { %13267 = vtanh.f32 %v6165_v24 }
0x179f   :  { %v13262_v15 = vpop.eup %13261  ;;  %13269 = vtanh.f32 %v6636_v7 }
0x17a0   :  { %v13264_v23 = vpop.eup %13263  ;;  %v6180_v35 = vmul.f32 %v13262_v15, %v15911_v45  ;;  %v17507_v15 = vld [vmem:[#allocation5_spill] sm:$0xff] }
0x17a1   :  { %v6179_v25 = vmul.f32 %v13264_v23, %v15914_v41 }
0x17a2   :  { %6210 = vperm.xlu0 %12739, %v6180_v35  }
0x17a3   :  { %6205 = vperm.xlu1 %12740, %v6179_v25  }
0x17a6   :  { %6263 = vperm.xlu0 %12739, %v6244_v9  }
0x17a7   :  { %v13266_v49 = vpop.eup %13265  ;;  %6260 = vperm.xlu1 %12740, %v6243_v29  }
0x17a8   :  { %v13268_v19 = vpop.eup %13267  ;;  %v6182_v30 = vmul.f32 %v13266_v49, %v13256_v21 }
0x17a9   :  { %v13270_v13 = vpop.eup %13269  ;;  %v6181_v1 = vmul.f32 %v13268_v19, %v13258_v26 }
0x17aa   :  { %6220 = vperm.xlu0 %12739, %v6182_v30   ;;  %v6645_v45 = vmax.f32 %v13270_v13, 1e-15  ;;  %v6638_v41 = vmul.f32 %v13270_v13, %v13260_v31 }
0x17ab   :  { %6215 = vperm.xlu1 %12740, %v6181_v1  }
0x17ac   :  { %13271 = vrcp.f32 %v6645_v45  ;;  %vm6646_vm2 = vcmp.gt.f32.partialorder %v6645_v45, 0.996 }
0x17ad   :  { %v6655_v37 = vsel %vm6646_vm2, 1, %v17440_v40 }
0x17ae   :  { %6269 = vperm.xlu0 %12739, %v6246_v6  }
0x17af   :  { %6266 = vperm.xlu1 %12740, %v6245_v51  }
0x17b3   :  { %6641 = vperm.xlu1 %12740, %v6638_v41  }
0x17b6   :  { %v13272_v28 = vpop.eup %13271 }
0x17b7   :  { %v6648_v8 = vmul.f32 0.996, %v13272_v28  ;;  %6657 = vperm.xlu1 %12740, %v6655_v37  }
0x17b9   :  { %6651 = vperm.xlu0 %12739, %v6648_v8  }
0x180e   :  { %v6191_v4 = vpop.permute.xlu0 %6190 }
0x180f   :  { %v6186_v18 = vpop.permute.xlu1 %6185  ;;  %v6224_v44 = vmul.f32 %v15606_v33, %v6191_v4 }
0x1810   :  { %v6223_v39 = vmul.f32 %v6186_v18, %v15608_v14 }
0x1812   :  { %v6252_v60 = vpop.permute.xlu0 %6251 }
0x1813   :  { %vm6272_vm3 = vcmp.eq.s32.totalorder %v6252_v60, 1  ;;  %v6249_v22 = vpop.permute.xlu1 %6248 }
0x1814   :  { %v15969_v38 = vsel %vm6272_vm3, 0.0, %v6224_v44  ;;  %vm6271_vm4 = vcmp.eq.s32.totalorder %v6249_v22, 1 }
0x1815   :  { %v15971_v62 = vsel %vm6271_vm4, 0.0, %v6223_v39  ;;  %v6288_v43 = vmul.f32 %v15969_v38, %v15969_v38 }
0x1816   :  { %v6287_v16 = vmul.f32 %v15971_v62, %v15971_v62  ;;  %v6201_v63 = vpop.permute.xlu0 %6200 }
0x1817   :  { %v6196_v59 = vpop.permute.xlu1 %6195  ;;  %v6226_v33 = vmul.f32 %v15618_v52, %v6201_v63 }
0x1818   :  { %12094 = vmatprep.mubr.msk.f32.mxu1 %vm77_vm0, %v6287_v16  ;;  %v6225_v58 = vmul.f32 %v6196_v59, %v15620_v34 }
0x1819   :  { %12095 = vmatmul.mubr.msk.f32.vlgmr.msra.gmra.mrb[68].mxu1 %vm77_vm0, %v6288_v43 }
0x181a   :  { %v6258_v14 = vpop.permute.xlu0 %6257  ;;  %12604 = vmatpush3.bf16.msra.mxu1 %v17443_v47 }
0x181b   :  { %vm6274_vm5 = vcmp.eq.s32.totalorder %v6258_v14, 1  ;;  %v6255_v20 = vpop.permute.xlu1 %6254  ;;  %12605 = vmatprep.subr.bf16.mxu1 %v17445_v56 }
0x181c   :  { %v15983_v55 = vsel %vm6274_vm5, 0.0, %v6226_v33  ;;  %vm6273_vm8 = vcmp.eq.s32.totalorder %v6255_v20, 1 }
0x181d   :  { %v15985_v57 = vsel %vm6273_vm8, 0.0, %v6225_v58  ;;  %v6290_v52 = vmul.f32 %v15983_v55, %v15983_v55 }
0x181e   :  { %v6289_v32 = vmul.f32 %v15985_v57, %v15985_v57  ;;  %12606 = vmatpush3.bf16.msra.mxu1 %v17443_v47 }
0x181f   :  { %12607 = vmatprep.subr.bf16.mxu1 %v17443_v47 }
0x1820   :  { %12097 = vmatprep.mubr.msk.f32.mxu1 %vm77_vm0, %v6289_v32 }
0x1821   :  { %v6211_v34 = vpop.permute.xlu0 %6210  ;;  %12098 = vmatmul.mubr.msk.f32.gmra.mrb[70].mxu1 %vm77_vm0, %v6290_v52 }
0x1822   :  { %v6206_v10 = vpop.permute.xlu1 %6205  ;;  %v6228_v36 = vmul.f32 %v15630_v48, %v6211_v34 }
0x1823   :  { %v6227_v54 = vmul.f32 %v6206_v10, %v15632_v27 }
0x1825   :  { %v6264_v21 = vpop.permute.xlu0 %6263 }
0x1826   :  { %vm6276_vm9 = vcmp.eq.s32.totalorder %v6264_v21, 1  ;;  %v6261_v0 = vpop.permute.xlu1 %6260 }
0x1827   :  { %v15997_v26 = vsel %vm6276_vm9, 0.0, %v6228_v36  ;;  %vm6275_vm10 = vcmp.eq.s32.totalorder %v6261_v0, 1 }
0x1828   :  { %v15999_v46 = vsel %vm6275_vm10, 0.0, %v6227_v54  ;;  %v6292_v17 = vmul.f32 %v15997_v26, %v15997_v26 }
0x1829   :  { %v6291_v3 = vmul.f32 %v15999_v46, %v15999_v46  ;;  %v6221_v50 = vpop.permute.xlu0 %6220 }
0x182a   :  { %v6216_v31 = vpop.permute.xlu1 %6215  ;;  %v6230_v48 = vmul.f32 %v15640_v11, %v6221_v50  ;;  %v17506_v11 = vmov 0.0  }
0x182b   :  { %12100 = vmatprep.mubr.msk.f32.mxu1 %vm77_vm0, %v6291_v3  ;;  %v6229_v2 = vmul.f32 %v6216_v31, %v15642_v12 }
0x182c   :  { %12101 = vmatmul.mubr.msk.f32.gmra.mrb[72].mxu1 %vm77_vm0, %v6292_v17 }
0x182d   :  { %v6270_v27 = vpop.permute.xlu0 %6269 }
0x182e   :  { %vm6278_vm14 = vcmp.eq.s32.totalorder %v6270_v27, 1  ;;  %v6267_v42 = vpop.permute.xlu1 %6266 }
0x182f   :  { %v16009_v5 = vsel %vm6278_vm14, 0.0, %v6230_v48  ;;  %vm6277_vm15 = vcmp.eq.s32.totalorder %v6267_v42, 1 }
0x1830   :  { %v16011_v61 = vsel %vm6277_vm15, 0.0, %v6229_v2  ;;  %v6294_v53 = vmul.f32 %v16009_v5, %v16009_v5 }
0x1831   :  { %v6293_v7 = vmul.f32 %v16011_v61, %v16011_v61 }
0x1832   :  { %v6642_v24 = vpop.permute.xlu1 %6641 }
0x1833   :  { %12103 = vmatprep.mubr.msk.f32.mxu1 %vm77_vm0, %v6293_v7  ;;  %v6644_v23 = vmul.f32 %v6642_v24, %v17507_v15 }
0x1834   :  { %12104 = vmatmul.mubr.msk.f32.gmra.mrb[74].mxu1 %vm77_vm0, %v6294_v53 }
0x1835   :  { %12145 = vmatprep.mubr.msk.f32.mxu1 %vm13636_vm6, %v17506_v11 }
0x1836   :  { %v6658_v12 = vpop.permute.xlu1 %6657 }
0x1837   :  { %vm6659_vm2 = vcmp.eq.s32.totalorder %v6658_v12, 1 }
0x1838   :  { %v6652_v35 = vpop.permute.xlu0 %6651 }
0x1839   :  { %v6654_v25 = vmul.f32 %v6652_v35, %v6644_v23 }
0x183b   :  { %v16022_v9 = vsel %vm6659_vm2, %v6654_v25, %v6644_v23 }
0x183c   :  { %v6798_v29 = vmul.f32 %v16022_v9, %v16022_v9 }
0x183e   :  { %12146 = vmatmul.mubr.msk.f32.vlgmr.msra.gmra.mrb[76].mxu1 %vm77_vm0, %v6798_v29 }
0x183f   :  { %12608 = vmatpush3.bf16.msra.mxu1 %v17443_v47 }
0x1840   :  { %12609 = vmatprep.subr.bf16.mxu1 %v17443_v47 }
0x1843   :  { %12610 = vmatpush3.bf16.msra.mxu1 %v17443_v47 }
0x1844   :  { %12615 = vmatprep.subr.bf16.mxu1 %v17443_v47 }
0x18ec   :  { %v12096_v49 = vpop.f32.mrb[68].mxu1 }
0x18ed   :  { %v6425_v19 = vmax.f32 %v12096_v49, 1e-30  ;;  %v6385_v30 = vpop.f32.mrb[69].mxu1 }
0x18ee   :  { %v6424_v13 = vmax.f32 %v6385_v30, 1e-30 }
0x18ef   :  { %13273 = vrsqrt.f32 %v6425_v19 }
0x18f0   :  { %13275 = vrsqrt.f32 %v6424_v13 }
0x18f4   :  { %v12099_v1 = vpop.f32.mrb[70].mxu1 }
0x18f5   :  { %v6427_v45 = vmax.f32 %v12099_v1, 1e-30  ;;  %v6395_v6 = vpop.f32.mrb[71].mxu1 }
0x18f6   :  { %v6426_v51 = vmax.f32 %v6395_v6, 1e-30 }
0x18f7   :  { %13277 = vrsqrt.f32 %v6427_v45  ;;  %v17508_v45 = vld [vmem:[#allocation2_spill] sm:$0xff] }
0x18f8   :  { %13279 = vrsqrt.f32 %v6426_v51 }
0x18f9   :  { %v13274_v41 = vpop.eup %13273 }
0x18fa   :  { %v13276_v37 = vpop.eup %13275  ;;  %v6441_v28 = vmul.f32 %v13274_v41, %v12096_v49  ;;  %v6457_v8 = vmul.f32 0.996, %v13274_v41 }
0x18fb   :  { %v6440_v4 = vmul.f32 %v13276_v37, %v6385_v30  ;;  %v6456_v18 = vmul.f32 0.996, %v13276_v37 }
0x18fc   :  { %vm6449_vm3 = vcmp.gt.f32.partialorder %v6441_v28, 0.996  ;;  %6471 = vperm.xlu1 %12740, %v6457_v8  }
0x18fd   :  { %vm6448_vm4 = vcmp.gt.f32.partialorder %v6440_v4, 0.996  ;;  %6466 = vperm.xlu0 %12739, %v6456_v18   ;;  %v6513_v44 = vsel %vm6449_vm3, 1, %v17440_v40 }
0x18fe   :  { %v6512_v39 = vsel %vm6448_vm4, 1, %v17440_v40 }
0x18ff   :  { %v12102_v60 = vpop.f32.mrb[72].mxu1 }
0x1900   :  { %v6429_v22 = vmax.f32 %v12102_v60, 1e-30  ;;  %v6405_v16 = vpop.f32.mrb[73].mxu1  ;;  %6524 = vperm.xlu1 %12740, %v6513_v44  }
0x1901   :  { %v13278_v63 = vpop.eup %13277  ;;  %v6428_v43 = vmax.f32 %v6405_v16, 1e-30  ;;  %6521 = vperm.xlu0 %12739, %v6512_v39  }
0x1902   :  { %v13280_v59 = vpop.eup %13279  ;;  %v6443_v33 = vmul.f32 %v13278_v63, %v12099_v1  ;;  %13281 = vrsqrt.f32 %v6429_v22  ;;  %v6459_v14 = vmul.f32 0.996, %v13278_v63 }
0x1903   :  { %v6442_v58 = vmul.f32 %v13280_v59, %v6395_v6  ;;  %13283 = vrsqrt.f32 %v6428_v43  ;;  %v6458_v20 = vmul.f32 0.996, %v13280_v59  ;;  %v16045_v6 = vrot.slane %v16022_v9, %v17508_v45 }
0x1904   :  { %vm6451_vm5 = vcmp.gt.f32.partialorder %v6443_v33, 0.996  ;;  %6481 = vperm.xlu1 %12740, %v6459_v14  }
0x1905   :  { %vm6450_vm8 = vcmp.gt.f32.partialorder %v6442_v58, 0.996  ;;  %6476 = vperm.xlu0 %12739, %v6458_v20   ;;  %v6515_v32 = vsel %vm6451_vm5, 1, %v17440_v40 }
0x1906   :  { %v6514_v34 = vsel %vm6450_vm8, 1, %v17440_v40 }
0x1907   :  { %v12105_v52 = vpop.f32.mrb[74].mxu1 }
0x1908   :  { %v6431_v10 = vmax.f32 %v12105_v52, 1e-30  ;;  %6530 = vperm.xlu1 %12740, %v6515_v32   ;;  %v6415_v36 = vpop.f32.mrb[75].mxu1 }
0x1909   :  { %v6430_v21 = vmax.f32 %v6415_v36, 1e-30  ;;  %6527 = vperm.xlu0 %12739, %v6514_v34  }
0x190a   :  { %13285 = vrsqrt.f32 %v6431_v10 }
0x190b   :  { %13287 = vrsqrt.f32 %v6430_v21 }
0x190c   :  { %v13282_v54 = vpop.eup %13281 }
0x190d   :  { %v13284_v0 = vpop.eup %13283  ;;  %v6445_v3 = vmul.f32 %v13282_v54, %v12102_v60  ;;  %v6461_v50 = vmul.f32 0.996, %v13282_v54 }
0x190e   :  { %v6444_v17 = vmul.f32 %v13284_v0, %v6405_v16  ;;  %v6460_v31 = vmul.f32 0.996, %v13284_v0 }
0x190f   :  { %vm6453_vm9 = vcmp.gt.f32.partialorder %v6445_v3, 0.996  ;;  %6491 = vperm.xlu1 %12740, %v6461_v50  }
0x1910   :  { %vm6452_vm10 = vcmp.gt.f32.partialorder %v6444_v17, 0.996  ;;  %6486 = vperm.xlu0 %12739, %v6460_v31   ;;  %v6517_v27 = vsel %vm6453_vm9, 1, %v17440_v40 }
0x1911   :  { %v16035_v48 = vpop.f32.mrb[76].mxu1  ;;  %v6516_v42 = vsel %vm6452_vm10, 1, %v17440_v40 }
0x1912   :  { %v12147_v2 = vpop.f32.mrb[77].mxu1 }
0x1913   :  { %6536 = vperm.xlu1 %12740, %v6517_v27  }
0x1914   :  { %v13286_v7 = vpop.eup %13285  ;;  %6533 = vperm.xlu0 %12739, %v6516_v42  }
0x1915   :  { %v13288_v53 = vpop.eup %13287  ;;  %v6447_v24 = vmul.f32 %v13286_v7, %v12105_v52  ;;  %v6463_v12 = vmul.f32 0.996, %v13286_v7 }
0x1916   :  { %v6446_v15 = vmul.f32 %v13288_v53, %v6415_v36  ;;  %v6462_v23 = vmul.f32 0.996, %v13288_v53 }
0x1917   :  { %vm6455_vm14 = vcmp.gt.f32.partialorder %v6447_v24, 0.996  ;;  %6501 = vperm.xlu1 %12740, %v6463_v12  }
0x1918   :  { %vm6454_vm15 = vcmp.gt.f32.partialorder %v6446_v15, 0.996  ;;  %6496 = vperm.xlu0 %12739, %v6462_v23   ;;  %v6519_v35 = vsel %vm6455_vm14, 1, %v17440_v40 }
0x1919   :  { %v6518_v25 = vsel %vm6454_vm15, 1, %v17440_v40 }
0x191b   :  { %6542 = vperm.xlu1 %12740, %v6519_v35  }
0x191c   :  { %6539 = vperm.xlu0 %12739, %v6518_v25  }
0x197b   :  { %v6472_v29 = vpop.permute.xlu1 %6471 }
0x197c   :  { %v6467_v49 = vpop.permute.xlu0 %6466  ;;  %v6505_v19 = vmul.f32 %v6472_v29, %v15969_v38 }
0x197d   :  { %v6504_v13 = vmul.f32 %v6467_v49, %v15971_v62 }
0x197f   :  { %v6525_v30 = vpop.permute.xlu1 %6524 }
0x1980   :  { %vm6545_vm2 = vcmp.eq.s32.totalorder %v6525_v30, 1  ;;  %v6522_v1 = vpop.permute.xlu0 %6521 }
0x1981   :  { %v16048_v51 = vsel %vm6545_vm2, %v6505_v19, %v15969_v38  ;;  %vm6544_vm3 = vcmp.eq.s32.totalorder %v6522_v1, 1 }
0x1982   :  { %v16051_v41 = vsel %vm6544_vm3, %v6504_v13, %v15971_v62  ;;  %v6662_v4 = vmul.f32 %v16048_v51, %v16048_v51  ;;  %v6877_v9 = vmul.f32 %v16045_v6, %v16048_v51 }
0x1983   :  { %v6661_v37 = vmul.f32 %v16051_v41, %v16051_v41  ;;  %v6876_v28 = vmul.f32 %v16045_v6, %v16051_v41  ;;  %v6482_v8 = vpop.permute.xlu1 %6481 }
0x1984   :  { %v6477_v18 = vpop.permute.xlu0 %6476  ;;  %v6507_v38 = vmul.f32 %v6482_v8, %v15983_v55 }
0x1985   :  { %12125 = vmatprep.mubr.msk.f32.mxu0 %vm77_vm0, %v6661_v37  ;;  %12156 = vmatprep.mubr.msk.f32.mxu1 %vm77_vm0, %v6876_v28  ;;  %v6506_v44 = vmul.f32 %v6477_v18, %v15985_v57 }
0x1986   :  { %12126 = vmatmul.mubr.msk.f32.vlgmr.msra.gmra.mrb[100].mxu0 %vm77_vm0, %v6662_v4  ;;  %12157 = vmatmul.mubr.msk.f32.vlgmr.msra.gmra.mrb[78].mxu1 %vm77_vm0, %v6877_v9 }
0x1987   :  { %v6531_v62 = vpop.permute.xlu1 %6530  ;;  %12612 = vmatpush3.bf16.msra.mxu0 %v17443_v47  ;;  %12616 = vmatpush3.bf16.msra.mxu1 %v17443_v47 }
0x1988   :  { %vm6547_vm4 = vcmp.eq.s32.totalorder %v6531_v62, 1  ;;  %v6528_v60 = vpop.permute.xlu0 %6527  ;;  %12613 = vmatprep.subr.bf16.mxu0 %v17443_v47  ;;  %12617 = vmatprep.subr.bf16.mxu1 %v17443_v47 }
0x1989   :  { %v16072_v39 = vsel %vm6547_vm4, %v6507_v38, %v15983_v55  ;;  %vm6546_vm5 = vcmp.eq.s32.totalorder %v6528_v60, 1 }
0x198a   :  { %v16075_v22 = vsel %vm6546_vm5, %v6506_v44, %v15985_v57  ;;  %v6664_v43 = vmul.f32 %v16072_v39, %v16072_v39  ;;  %v6879_v55 = vmul.f32 %v16045_v6, %v16072_v39 }
0x198b   :  { %v6663_v16 = vmul.f32 %v16075_v22, %v16075_v22  ;;  %v6878_v63 = vmul.f32 %v16045_v6, %v16075_v22  ;;  %12614 = vmatpush3.bf16.msra.mxu0 %v17443_v47  ;;  %12618 = vmatpush3.bf16.msra.mxu1 %v17443_v47 }
0x198c   :  { %12627 = vmatprep.subr.bf16.mxu1 %v17445_v56 }
0x198d   :  { %12128 = vmatprep.mubr.msk.f32.mxu0 %vm77_vm0, %v6663_v16  ;;  %12159 = vmatprep.mubr.msk.f32.mxu1 %vm77_vm0, %v6878_v63 }
0x198e   :  { %v6492_v57 = vpop.permute.xlu1 %6491  ;;  %12129 = vmatmul.mubr.msk.f32.gmra.mrb[102].mxu0 %vm77_vm0, %v6664_v43  ;;  %12160 = vmatmul.mubr.msk.f32.gmra.mrb[80].mxu1 %vm77_vm0, %v6879_v55 }
0x198f   :  { %v6487_v59 = vpop.permute.xlu0 %6486  ;;  %v6509_v33 = vmul.f32 %v6492_v57, %v15997_v26 }
0x1990   :  { %v6508_v58 = vmul.f32 %v6487_v59, %v15999_v46 }
0x1992   :  { %v6537_v14 = vpop.permute.xlu1 %6536 }
0x1993   :  { %vm6549_vm8 = vcmp.eq.s32.totalorder %v6537_v14, 1  ;;  %v6534_v20 = vpop.permute.xlu0 %6533 }
0x1994   :  { %v16095_v32 = vsel %vm6549_vm8, %v6509_v33, %v15997_v26  ;;  %vm6548_vm9 = vcmp.eq.s32.totalorder %v6534_v20, 1 }
0x1995   :  { %v16098_v52 = vsel %vm6548_vm9, %v6508_v58, %v15999_v46  ;;  %v6666_v21 = vmul.f32 %v16095_v32, %v16095_v32  ;;  %v6881_v54 = vmul.f32 %v16045_v6, %v16095_v32 }
0x1996   :  { %v6665_v34 = vmul.f32 %v16098_v52, %v16098_v52  ;;  %v6880_v10 = vmul.f32 %v16045_v6, %v16098_v52  ;;  %v6502_v36 = vpop.permute.xlu1 %6501 }
0x1997   :  { %v6497_v0 = vpop.permute.xlu0 %6496  ;;  %v6511_v26 = vmul.f32 %v6502_v36, %v16009_v5 }
0x1998   :  { %12131 = vmatprep.mubr.msk.f32.mxu0 %vm77_vm0, %v6665_v34  ;;  %12162 = vmatprep.mubr.msk.f32.mxu1 %vm77_vm0, %v6880_v10  ;;  %v6510_v3 = vmul.f32 %v6497_v0, %v16011_v61 }
0x1999   :  { %12132 = vmatmul.mubr.msk.f32.gmra.mrb[104].mxu0 %vm77_vm0, %v6666_v21  ;;  %12163 = vmatmul.mubr.msk.f32.gmra.mrb[82].mxu1 %vm77_vm0, %v6881_v54 }
0x199a   :  { %v6543_v46 = vpop.permute.xlu1 %6542 }
0x199b   :  { %vm6551_vm10 = vcmp.eq.s32.totalorder %v6543_v46, 1  ;;  %v6540_v50 = vpop.permute.xlu0 %6539 }
0x199c   :  { %v16115_v17 = vsel %vm6551_vm10, %v6511_v26, %v16009_v5  ;;  %vm6550_vm14 = vcmp.eq.s32.totalorder %v6540_v50, 1  ;;  %v16134_v5 = vrot.slane %v16035_v48, %v17508_v45 }
0x199d   :  { %v16118_v31 = vsel %vm6550_vm14, %v6510_v3, %v16011_v61  ;;  %v6668_v42 = vmul.f32 %v16115_v17, %v16115_v17  ;;  %v6883_v7 = vmul.f32 %v16045_v6, %v16115_v17 }
0x199e   :  { %v6667_v27 = vmul.f32 %v16118_v31, %v16118_v31  ;;  %v6882_v2 = vmul.f32 %v16045_v6, %v16118_v31 }
0x19a0   :  { %12134 = vmatprep.mubr.msk.f32.mxu0 %vm77_vm0, %v6667_v27  ;;  %12165 = vmatprep.mubr.msk.f32.mxu1 %vm77_vm0, %v6882_v2 }
0x19a1   :  { %12135 = vmatmul.mubr.msk.f32.gmra.mrb[106].mxu0 %vm77_vm0, %v6668_v42  ;;  %12166 = vmatmul.mubr.msk.f32.gmra.mrb[84].mxu1 %vm77_vm0, %v6883_v7 }
0x1a59   :  { %v12127_v61 = vpop.f32.mrb[100].mxu0  ;;  %v12158_v53 = vpop.f32.mrb[78].mxu1 }
0x1a5a   :  { %v7090_v24 = vsub.f32 1.0, %v12127_v61  ;;  %v7154_v12 = vmul.f32 %v12127_v61, %v16134_v5  ;;  %v7014_v15 = vmul.f32 2.0, %v12158_v53  ;;  %v6759_v23 = vpop.f32.mrb[101].mxu0  ;;  %v6974_v35 = vpop.f32.mrb[79].mxu1 }
0x1a5b   :  { %v7153_v25 = vmul.f32 %v16134_v5, %v6759_v23  ;;  %v7013_v29 = vmul.f32 2.0, %v6974_v35  ;;  %v7089_v1 = vsub.f32 1.0, %v6759_v23 }
0x1a5c   :  { %v7022_v49 = vadd.f32 1.0, %v7014_v15  ;;  %7104 = vperm.xlu1 %12740, %v7090_v24  }
0x1a5d   :  { %v7021_v19 = vadd.f32 1.0, %v7013_v29 }
0x1a5e   :  { %v7034_v30 = vadd.f32 %v16134_v5, %v7022_v49  ;;  %v7162_v13 = vadd.f32 %v7154_v12, %v7022_v49 }
0x1a5f   :  { %v7033_v48 = vadd.f32 %v16134_v5, %v7021_v19  ;;  %v7161_v37 = vadd.f32 %v7153_v25, %v7021_v19 }
0x1a60   :  { %7048 = vperm.xlu0 %12739, %v7034_v30   ;;  %7099 = vperm.xlu1 %12740, %v7089_v1   ;;  %v7170_v63 = vmax.f32 %v7162_v13, 1e-15 }
0x1a61   :  { %v12130_v28 = vpop.f32.mrb[102].mxu0  ;;  %v12161_v8 = vpop.f32.mrb[80].mxu1  ;;  %v7169_v58 = vmax.f32 %v7161_v37, 1e-15 }
0x1a62   :  { %v7092_v4 = vsub.f32 1.0, %v12130_v28  ;;  %v7156_v9 = vmul.f32 %v12130_v28, %v16134_v5  ;;  %v7016_v18 = vmul.f32 2.0, %v12161_v8  ;;  %v6769_v38 = vpop.f32.mrb[103].mxu0  ;;  %v6984_v62 = vpop.f32.mrb[81].mxu1  ;;  %13289 = vrcp.f32 %v7170_v63 }
0x1a63   :  { %v7155_v44 = vmul.f32 %v16134_v5, %v6769_v38  ;;  %v7015_v60 = vmul.f32 2.0, %v6984_v62  ;;  %v7091_v59 = vsub.f32 1.0, %v6769_v38  ;;  %13291 = vrcp.f32 %v7169_v58 }
0x1a64   :  { %v7024_v16 = vadd.f32 1.0, %v7016_v18  ;;  %7043 = vperm.xlu0 %12739, %v7033_v48   ;;  %7114 = vperm.xlu1 %12740, %v7092_v4  }
0x1a65   :  { %v7023_v43 = vadd.f32 1.0, %v7015_v60 }
0x1a66   :  { %v7036_v55 = vadd.f32 %v16134_v5, %v7024_v16  ;;  %v7164_v57 = vadd.f32 %v7156_v9, %v7024_v16 }
0x1a67   :  { %v7035_v33 = vadd.f32 %v16134_v5, %v7023_v43  ;;  %v7163_v14 = vadd.f32 %v7155_v44, %v7023_v43 }
0x1a68   :  { %7058 = vperm.xlu0 %12739, %v7036_v55   ;;  %7109 = vperm.xlu1 %12740, %v7091_v59   ;;  %v7172_v10 = vmax.f32 %v7164_v57, 1e-15 }
0x1a69   :  { %v7171_v2 = vmax.f32 %v7163_v14, 1e-15 }
0x1a6a   :  { %13293 = vrcp.f32 %v7172_v10 }
0x1a6b   :  { %13295 = vrcp.f32 %v7171_v2 }
0x1a6c   :  { %v12133_v20 = vpop.f32.mrb[104].mxu0  ;;  %v12164_v34 = vpop.f32.mrb[82].mxu1  ;;  %7053 = vperm.xlu0 %12739, %v7035_v33  }
0x1a6d   :  { %v7158_v36 = vmul.f32 %v12133_v20, %v16134_v5  ;;  %v7018_v21 = vmul.f32 2.0, %v12164_v34  ;;  %v6779_v54 = vpop.f32.mrb[105].mxu0  ;;  %v6994_v0 = vpop.f32.mrb[83].mxu1  ;;  %v7094_v19 = vsub.f32 1.0, %v12133_v20 }
0x1a6e   :  { %v7093_v26 = vsub.f32 1.0, %v6779_v54  ;;  %v7157_v46 = vmul.f32 %v16134_v5, %v6779_v54  ;;  %v7017_v3 = vmul.f32 2.0, %v6994_v0  ;;  %v13290_v24 = vpop.eup %13289 }
0x1a6f   :  { %v7026_v50 = vadd.f32 1.0, %v7018_v21  ;;  %v13292_v1 = vpop.eup %13291 }
0x1a70   :  { %v7025_v27 = vadd.f32 1.0, %v7017_v3  ;;  %7119 = vperm.xlu1 %12740, %v7093_v26  }
0x1a71   :  { %v7038_v42 = vadd.f32 %v16134_v5, %v7026_v50  ;;  %v7166_v7 = vadd.f32 %v7158_v36, %v7026_v50 }
0x1a72   :  { %v7037_v61 = vadd.f32 %v16134_v5, %v7025_v27  ;;  %v7165_v53 = vadd.f32 %v7157_v46, %v7025_v27 }
0x1a73   :  { %v7174_v23 = vmax.f32 %v7166_v7, 1e-15 }
0x1a74   :  { %7063 = vperm.xlu0 %12739, %v7037_v61   ;;  %7200 = vperm.xlu1 %12740, %v13290_v24   ;;  %v12136_v12 = vpop.f32.mrb[106].mxu0  ;;  %v12167_v15 = vpop.f32.mrb[84].mxu1  ;;  %v7173_v28 = vmax.f32 %v7165_v53, 1e-15 }
0x1a75   :  { %v7160_v35 = vmul.f32 %v12136_v12, %v16134_v5  ;;  %v7020_v25 = vmul.f32 2.0, %v12167_v15  ;;  %v6789_v29 = vpop.f32.mrb[107].mxu0  ;;  %v7004_v49 = vpop.f32.mrb[85].mxu1  ;;  %13297 = vrcp.f32 %v7174_v23  ;;  %v7096_v43 = vsub.f32 1.0, %v12136_v12 }
0x1a76   :  { %v7159_v30 = vmul.f32 %v16134_v5, %v6789_v29  ;;  %v7019_v13 = vmul.f32 2.0, %v7004_v49  ;;  %v13294_v38 = vpop.eup %13293  ;;  %13299 = vrcp.f32 %v7173_v28  ;;  %v7095_v44 = vsub.f32 1.0, %v6789_v29 }
0x1a77   :  { %v7028_v48 = vadd.f32 1.0, %v7020_v25  ;;  %v13296_v60 = vpop.eup %13295 }
0x1a78   :  { %7195 = vperm.xlu0 %12739, %v13292_v1   ;;  %7124 = vperm.xlu1 %12740, %v7094_v19   ;;  %v7027_v37 = vadd.f32 1.0, %v7019_v13 }
0x1a79   :  { %v7040_v8 = vadd.f32 %v16134_v5, %v7028_v48  ;;  %v7168_v4 = vadd.f32 %v7160_v35, %v7028_v48 }
0x1a7a   :  { %v7039_v9 = vadd.f32 %v16134_v5, %v7027_v37  ;;  %v7167_v18 = vadd.f32 %v7159_v30, %v7027_v37 }
0x1a7b   :  { %v7176_v62 = vmax.f32 %v7168_v4, 1e-15 }
0x1a7c   :  { %7068 = vperm.xlu0 %12739, %v7038_v42   ;;  %7210 = vperm.xlu1 %12740, %v13294_v38   ;;  %v7175_v16 = vmax.f32 %v7167_v18, 1e-15 }
0x1a7d   :  { %13301 = vrcp.f32 %v7176_v62 }
0x1a7e   :  { %13303 = vrcp.f32 %v7175_v16 }
0x1a7f   :  { %v13298_v63 = vpop.eup %13297 }
0x1a80   :  { %7205 = vperm.xlu0 %12739, %v13296_v60   ;;  %7129 = vperm.xlu1 %12740, %v7095_v44   ;;  %v13300_v55 = vpop.eup %13299 }
0x1a84   :  { %7073 = vperm.xlu0 %12739, %v7039_v9   ;;  %7220 = vperm.xlu1 %12740, %v13298_v63  }
0x1a87   :  { %v13302_v5 = vpop.eup %13301 }
0x1a88   :  { %7215 = vperm.xlu0 %12739, %v13300_v55   ;;  %7134 = vperm.xlu1 %12740, %v7096_v43   ;;  %v13304_v57 = vpop.eup %13303 }
0x1a8c   :  { %7078 = vperm.xlu0 %12739, %v7040_v8   ;;  %7230 = vperm.xlu1 %12740, %v13302_v5  }
0x1a90   :  { %7225 = vperm.xlu0 %12739, %v13304_v57  }
0x1adb   :  { %v7105_v59 = vpop.permute.xlu1 %7104 }
0x1adc   :  { %v7138_v26 = vmul.f32 %v7105_v59, %v16045_v6 }
0x1adf   :  { %v7100_v33 = vpop.permute.xlu1 %7099  ;;  %v7049_v14 = vpop.permute.xlu0 %7048 }
0x1ae0   :  { %v7082_v54 = vmul.f32 %v7049_v14, %v16048_v51  ;;  %v7137_v50 = vmul.f32 %v7100_v33, %v16045_v6 }
0x1ae2   :  { %v7146_v27 = vadd.f32 %v7138_v26, %v7082_v54 }
0x1ae3   :  { %v7115_v58 = vpop.permute.xlu1 %7114  ;;  %v7044_v20 = vpop.permute.xlu0 %7043 }
0x1ae4   :  { %v7081_v0 = vmul.f32 %v7044_v20, %v16051_v41  ;;  %v7140_v12 = vmul.f32 %v7115_v58, %v16045_v6 }
0x1ae6   :  { %v7145_v2 = vadd.f32 %v7137_v50, %v7081_v0 }
0x1ae7   :  { %v7059_v34 = vpop.permute.xlu0 %7058  ;;  %v7110_v10 = vpop.permute.xlu1 %7109 }
0x1ae8   :  { %v7084_v24 = vmul.f32 %v7059_v34, %v16072_v39  ;;  %v7139_v25 = vmul.f32 %v7110_v10, %v16045_v6 }
0x1aea   :  { %v7148_v29 = vadd.f32 %v7140_v12, %v7084_v24 }
0x1aeb   :  { %v7054_v36 = vpop.permute.xlu0 %7053 }
0x1aec   :  { %v7083_v51 = vmul.f32 %v7054_v36, %v16075_v22 }
0x1aee   :  { %v7147_v39 = vadd.f32 %v7139_v25, %v7083_v51 }
0x1aef   :  { %v7120_v21 = vpop.permute.xlu1 %7119 }
0x1af0   :  { %v7141_v9 = vmul.f32 %v7120_v21, %v16045_v6 }
0x1af3   :  { %v7201_v46 = vpop.permute.xlu1 %7200  ;;  %v7064_v3 = vpop.permute.xlu0 %7063 }
0x1af4   :  { %v16156_v42 = vmul.f32 %v7201_v46, %v7146_v27  ;;  %v7085_v1 = vmul.f32 %v7064_v3, %v16098_v52 }
0x1af6   :  { %v7242_v15 = vmul.f32 %v16156_v42, %v16156_v42 }
0x1af7   :  { %v7125_v7 = vpop.permute.xlu1 %7124  ;;  %v7196_v61 = vpop.permute.xlu0 %7195 }
0x1af8   :  { %v16158_v53 = vmul.f32 %v7196_v61, %v7145_v2  ;;  %v7142_v37 = vmul.f32 %v7125_v7, %v16045_v6 }
0x1afa   :  { %v7241_v41 = vmul.f32 %v16158_v53, %v16158_v53 }
0x1afb   :  { %v7211_v23 = vpop.permute.xlu1 %7210  ;;  %v7069_v35 = vpop.permute.xlu0 %7068 }
0x1afc   :  { %12176 = vmatprep.mubr.msk.f32.mxu0 %vm77_vm0, %v7241_v41  ;;  %v16170_v49 = vmul.f32 %v7211_v23, %v7148_v29  ;;  %v7086_v13 = vmul.f32 %v7069_v35, %v16095_v32  ;;  %v7149_v32 = vadd.f32 %v7141_v9, %v7085_v1 }
0x1afd   :  { %12177 = vmatmul.mubr.msk.f32.vlgmr.msra.gmra.mrb[108].mxu0 %vm77_vm0, %v7242_v15 }
0x1afe   :  { %v7244_v28 = vmul.f32 %v16170_v49, %v16170_v49  ;;  %v7150_v18 = vadd.f32 %v7142_v37, %v7086_v13 }
0x1aff   :  { %v7130_v22 = vpop.permute.xlu1 %7129  ;;  %v7206_v19 = vpop.permute.xlu0 %7205 }
0x1b00   :  { %v16172_v30 = vmul.f32 %v7206_v19, %v7147_v39  ;;  %v7143_v55 = vmul.f32 %v7130_v22, %v16045_v6 }
0x1b02   :  { %v7243_v48 = vmul.f32 %v16172_v30, %v16172_v30 }
0x1b03   :  { %v7221_v8 = vpop.permute.xlu1 %7220  ;;  %v7074_v4 = vpop.permute.xlu0 %7073 }
0x1b04   :  { %12179 = vmatprep.mubr.msk.f32.mxu0 %vm77_vm0, %v7243_v48  ;;  %v16184_v38 = vmul.f32 %v7221_v8, %v7150_v18  ;;  %v7087_v60 = vmul.f32 %v7074_v4, %v16118_v31 }
0x1b05   :  { %12180 = vmatmul.mubr.msk.f32.gmra.mrb[110].mxu0 %vm77_vm0, %v7244_v28 }
0x1b06   :  { %v7246_v63 = vmul.f32 %v16184_v38, %v16184_v38  ;;  %v7151_v33 = vadd.f32 %v7143_v55, %v7087_v60 }
0x1b07   :  { %v7216_v52 = vpop.permute.xlu0 %7215  ;;  %v7135_v44 = vpop.permute.xlu1 %7134 }
0x1b08   :  { %v16186_v62 = vmul.f32 %v7216_v52, %v7149_v32  ;;  %v7144_v5 = vmul.f32 %v7135_v44, %v16045_v6 }
0x1b0a   :  { %v7245_v16 = vmul.f32 %v16186_v62, %v16186_v62 }
0x1b0b   :  { %v7079_v43 = vpop.permute.xlu0 %7078  ;;  %v7231_v31 = vpop.permute.xlu1 %7230 }
0x1b0c   :  { %v7088_v57 = vmul.f32 %v7079_v43, %v16115_v17  ;;  %12182 = vmatprep.mubr.msk.f32.mxu0 %vm77_vm0, %v7245_v16 }
0x1b0d   :  { %12183 = vmatmul.mubr.msk.f32.gmra.mrb[112].mxu0 %vm77_vm0, %v7246_v63 }
0x1b0e   :  { %v7152_v59 = vadd.f32 %v7144_v5, %v7088_v57 }
0x1b0f   :  { %v7226_v14 = vpop.permute.xlu0 %7225 }
0x1b10   :  { %v16198_v58 = vmul.f32 %v7231_v31, %v7152_v59  ;;  %v16200_v20 = vmul.f32 %v7226_v14, %v7151_v33 }
0x1b12   :  { %v7247_v34 = vmul.f32 %v16200_v20, %v16200_v20  ;;  %v7248_v6 = vmul.f32 %v16198_v58, %v16198_v58 }
0x1b14   :  { %12185 = vmatprep.mubr.msk.f32.mxu0 %vm77_vm0, %v7247_v34 }
0x1b15   :  { %12186 = vmatmul.mubr.msk.f32.gmra.mrb[114].mxu0 %vm77_vm0, %v7248_v6 }
0x1bd0   :  { %v12178_v17 = vpop.f32.mrb[108].mxu0 }
0x1bd1   :  { %v7379_v10 = vmax.f32 %v12178_v17, 1e-30  ;;  %v7339_v36 = vpop.f32.mrb[109].mxu0 }
0x1bd2   :  { %v7378_v21 = vmax.f32 %v7339_v36, 1e-30 }
0x1bd3   :  { %13305 = vrsqrt.f32 %v7379_v10 }
0x1bd4   :  { %13307 = vrsqrt.f32 %v7378_v21 }
0x1bd8   :  { %v12181_v54 = vpop.f32.mrb[110].mxu0 }
0x1bd9   :  { %v7381_v0 = vmax.f32 %v12181_v54, 1e-30  ;;  %v7349_v26 = vpop.f32.mrb[111].mxu0 }
0x1bda   :  { %v7380_v46 = vmax.f32 %v7349_v26, 1e-30 }
0x1bdb   :  { %13309 = vrsqrt.f32 %v7381_v0 }
0x1bdc   :  { %13311 = vrsqrt.f32 %v7380_v46 }
0x1bdd   :  { %v13306_v3 = vpop.eup %13305 }
0x1bde   :  { %v13308_v50 = vpop.eup %13307  ;;  %v7395_v27 = vmul.f32 %v13306_v3, %v12178_v17  ;;  %v7411_v2 = vmul.f32 0.996, %v13306_v3 }
0x1bdf   :  { %v7394_v7 = vmul.f32 %v13308_v50, %v7339_v36  ;;  %v7410_v61 = vmul.f32 0.996, %v13308_v50 }
0x1be0   :  { %vm7403_vm15 = vcmp.gt.f32.partialorder %v7395_v27, 0.996  ;;  %7425 = vperm.xlu1 %12740, %v7411_v2   ;;  %v12184_v24 = vpop.f32.mrb[112].mxu0 }
0x1be1   :  { %vm7402_vm2 = vcmp.gt.f32.partialorder %v7394_v7, 0.996  ;;  %v7383_v51 = vmax.f32 %v12184_v24, 1e-30  ;;  %7420 = vperm.xlu0 %12739, %v7410_v61   ;;  %v7359_v41 = vpop.f32.mrb[113].mxu0  ;;  %v7467_v15 = vsel %vm7403_vm15, 1, %v17440_v40 }
0x1be2   :  { %v7382_v12 = vmax.f32 %v7359_v41, 1e-30  ;;  %v7466_v23 = vsel %vm7402_vm2, 1, %v17440_v40 }
0x1be3   :  { %13313 = vrsqrt.f32 %v7383_v51 }
0x1be4   :  { %13315 = vrsqrt.f32 %v7382_v12  ;;  %7478 = vperm.xlu1 %12740, %v7467_v15  }
0x1be5   :  { %v13310_v35 = vpop.eup %13309  ;;  %7475 = vperm.xlu0 %12739, %v7466_v23  }
0x1be6   :  { %v13312_v25 = vpop.eup %13311  ;;  %v7397_v29 = vmul.f32 %v13310_v35, %v12181_v54  ;;  %v7413_v39 = vmul.f32 0.996, %v13310_v35 }
0x1be7   :  { %v7396_v22 = vmul.f32 %v13312_v25, %v7349_v26  ;;  %v7412_v19 = vmul.f32 0.996, %v13312_v25 }
0x1be8   :  { %vm7405_vm3 = vcmp.gt.f32.partialorder %v7397_v29, 0.996  ;;  %7435 = vperm.xlu1 %12740, %v7413_v39   ;;  %v12187_v13 = vpop.f32.mrb[114].mxu0 }
0x1be9   :  { %vm7404_vm4 = vcmp.gt.f32.partialorder %v7396_v22, 0.996  ;;  %v7385_v1 = vmax.f32 %v12187_v13, 1e-30  ;;  %7430 = vperm.xlu0 %12739, %v7412_v19   ;;  %v7369_v48 = vpop.f32.mrb[115].mxu0  ;;  %v7469_v28 = vsel %vm7405_vm3, 1, %v17440_v40 }
0x1bea   :  { %v7384_v37 = vmax.f32 %v7369_v48, 1e-30  ;;  %v7468_v8 = vsel %vm7404_vm4, 1, %v17440_v40 }
0x1beb   :  { %13317 = vrsqrt.f32 %v7385_v1 }
0x1bec   :  { %13319 = vrsqrt.f32 %v7384_v37  ;;  %7484 = vperm.xlu1 %12740, %v7469_v28  }
0x1bed   :  { %v13314_v4 = vpop.eup %13313  ;;  %7481 = vperm.xlu0 %12739, %v7468_v8  }
0x1bee   :  { %v13316_v9 = vpop.eup %13315  ;;  %v7399_v18 = vmul.f32 %v13314_v4, %v12184_v24  ;;  %v7415_v32 = vmul.f32 0.996, %v13314_v4 }
0x1bef   :  { %v7398_v52 = vmul.f32 %v13316_v9, %v7359_v41  ;;  %v7414_v44 = vmul.f32 0.996, %v13316_v9 }
0x1bf0   :  { %vm7407_vm5 = vcmp.gt.f32.partialorder %v7399_v18, 0.996  ;;  %7445 = vperm.xlu1 %12740, %v7415_v32  }
0x1bf1   :  { %vm7406_vm8 = vcmp.gt.f32.partialorder %v7398_v52, 0.996  ;;  %7440 = vperm.xlu0 %12739, %v7414_v44   ;;  %v7471_v60 = vsel %vm7407_vm5, 1, %v17440_v40 }
0x1bf2   :  { %v7470_v16 = vsel %vm7406_vm8, 1, %v17440_v40 }
0x1bf4   :  { %7490 = vperm.xlu1 %12740, %v7471_v60  }
0x1bf5   :  { %v13318_v63 = vpop.eup %13317  ;;  %7487 = vperm.xlu0 %12739, %v7470_v16  }
0x1bf6   :  { %v13320_v43 = vpop.eup %13319  ;;  %v7401_v55 = vmul.f32 %v13318_v63, %v12187_v13  ;;  %v7417_v5 = vmul.f32 0.996, %v13318_v63 }
0x1bf7   :  { %v7400_v57 = vmul.f32 %v13320_v43, %v7369_v48  ;;  %v7416_v59 = vmul.f32 0.996, %v13320_v43 }
0x1bf8   :  { %vm7409_vm9 = vcmp.gt.f32.partialorder %v7401_v55, 0.996  ;;  %7455 = vperm.xlu1 %12740, %v7417_v5  }
0x1bf9   :  { %vm7408_vm10 = vcmp.gt.f32.partialorder %v7400_v57, 0.996  ;;  %7450 = vperm.xlu0 %12739, %v7416_v59   ;;  %v7473_v33 = vsel %vm7409_vm9, 1, %v17440_v40 }
0x1bfa   :  { %v7472_v31 = vsel %vm7408_vm10, 1, %v17440_v40 }
0x1bfc   :  { %7496 = vperm.xlu1 %12740, %v7473_v33  }
0x1bfd   :  { %7493 = vperm.xlu0 %12739, %v7472_v31  }
0x1c5f   :  { %v7426_v14 = vpop.permute.xlu1 %7425 }
0x1c60   :  { %v7421_v34 = vpop.permute.xlu0 %7420  ;;  %v7459_v6 = vmul.f32 %v7426_v14, %v16156_v42 }
0x1c61   :  { %v7458_v10 = vmul.f32 %v7421_v34, %v16158_v53 }
0x1c63   :  { %v7479_v17 = vpop.permute.xlu1 %7478 }
0x1c64   :  { %vm7499_vm14 = vcmp.eq.s32.totalorder %v7479_v17, 1  ;;  %v7476_v36 = vpop.permute.xlu0 %7475 }
0x1c65   :  { %v16219_v21 = vsel %vm7499_vm14, %v7459_v6, %v16156_v42  ;;  %vm7498_vm15 = vcmp.eq.s32.totalorder %v7476_v36, 1 }
0x1c66   :  { %v16222_v54 = vsel %vm7498_vm15, %v7458_v10, %v16158_v53  ;;  %v7515_v46 = vmul.f32 %v16219_v21, %v16219_v21 }
0x1c67   :  { %v7514_v0 = vmul.f32 %v16222_v54, %v16222_v54  ;;  %v7436_v26 = vpop.permute.xlu1 %7435 }
0x1c68   :  { %v7431_v3 = vpop.permute.xlu0 %7430  ;;  %v7461_v50 = vmul.f32 %v7436_v26, %v16170_v49 }
0x1c69   :  { %12196 = vmatprep.mubr.msk.f32.mxu1 %vm77_vm0, %v7514_v0  ;;  %v7460_v27 = vmul.f32 %v7431_v3, %v16172_v30 }
0x1c6a   :  { %12197 = vmatmul.mubr.msk.f32.vlgmr.msra.gmra.mrb[86].mxu1 %vm77_vm0, %v7515_v46 }
0x1c6b   :  { %v7485_v42 = vpop.permute.xlu1 %7484 }
0x1c6c   :  { %vm7501_vm2 = vcmp.eq.s32.totalorder %v7485_v42, 1  ;;  %v7482_v53 = vpop.permute.xlu0 %7481 }
0x1c6d   :  { %v16233_v2 = vsel %vm7501_vm2, %v7461_v50, %v16170_v49  ;;  %vm7500_vm3 = vcmp.eq.s32.totalorder %v7482_v53, 1 }
0x1c6e   :  { %v16236_v7 = vsel %vm7500_vm3, %v7460_v27, %v16172_v30  ;;  %v7517_v51 = vmul.f32 %v16233_v2, %v16233_v2 }
0x1c6f   :  { %v7516_v61 = vmul.f32 %v16236_v7, %v16236_v7  ;;  %v7446_v24 = vpop.permute.xlu1 %7445 }
0x1c70   :  { %v7441_v41 = vpop.permute.xlu0 %7440  ;;  %v7463_v12 = vmul.f32 %v7446_v24, %v16184_v38 }
0x1c71   :  { %12199 = vmatprep.mubr.msk.f32.mxu1 %vm77_vm0, %v7516_v61  ;;  %v7462_v15 = vmul.f32 %v7441_v41, %v16186_v62 }
0x1c72   :  { %12200 = vmatmul.mubr.msk.f32.gmra.mrb[88].mxu1 %vm77_vm0, %v7517_v51 }
0x1c73   :  { %v7491_v49 = vpop.permute.xlu1 %7490 }
0x1c74   :  { %vm7503_vm4 = vcmp.eq.s32.totalorder %v7491_v49, 1  ;;  %v7488_v30 = vpop.permute.xlu0 %7487 }
0x1c75   :  { %v16247_v23 = vsel %vm7503_vm4, %v7463_v12, %v16184_v38  ;;  %vm7502_vm5 = vcmp.eq.s32.totalorder %v7488_v30, 1 }
0x1c76   :  { %v16250_v35 = vsel %vm7502_vm5, %v7462_v15, %v16186_v62  ;;  %v7519_v39 = vmul.f32 %v16247_v23, %v16247_v23 }
0x1c77   :  { %v7518_v25 = vmul.f32 %v16250_v35, %v16250_v35  ;;  %v7456_v29 = vpop.permute.xlu1 %7455 }
0x1c78   :  { %v7451_v22 = vpop.permute.xlu0 %7450  ;;  %v7465_v19 = vmul.f32 %v7456_v29, %v16198_v58 }
0x1c79   :  { %12202 = vmatprep.mubr.msk.f32.mxu1 %vm77_vm0, %v7518_v25  ;;  %v7464_v13 = vmul.f32 %v7451_v22, %v16200_v20 }
0x1c7a   :  { %12203 = vmatmul.mubr.msk.f32.gmra.mrb[90].mxu1 %vm77_vm0, %v7519_v39 }
0x1c7b   :  { %v7497_v38 = vpop.permute.xlu1 %7496 }
0x1c7c   :  { %vm7505_vm8 = vcmp.eq.s32.totalorder %v7497_v38, 1  ;;  %v7494_v62 = vpop.permute.xlu0 %7493 }
0x1c7d   :  { %v16261_v1 = vsel %vm7505_vm8, %v7465_v19, %v16198_v58  ;;  %vm7504_vm9 = vcmp.eq.s32.totalorder %v7494_v62, 1  ;;  %v7915_v58 = vld [vmem:[%s17390_s11] sm:$0xff] }
0x1c7e   :  { %v16264_v48 = vsel %vm7504_vm9, %v7464_v13, %v16200_v20  ;;  %v7521_v28 = vmul.f32 %v16261_v1, %v16261_v1  ;;  %v7916_v20 = vld [vmem:[%s17390_s11 + $0x8] sm:$0xff] }
0x1c7f   :  { %v7520_v37 = vmul.f32 %v16264_v48, %v16264_v48  ;;  %v12619_v8 = vpack.c.bf16 %v7916_v20, %v7915_v58 }
0x1c81   :  { %12205 = vmatprep.mubr.msk.f32.mxu1 %vm77_vm0, %v7520_v37  ;;  %12620 = vmatprep.subr.bf16.mxu0 %v12619_v8 }
0x1c82   :  { %12206 = vmatmul.mubr.msk.f32.gmra.mrb[92].mxu1 %vm77_vm0, %v7521_v28  ;;  %12622 = vmatpush3.bf16.msra.mxu0 %v12619_v8 }
0x1c83   :  { %12244 = vmatprep.mubr.msk.f32.mxu1 %vm13636_vm6, %v17506_v11 }
0x1d3d   :  { %v12198_v4 = vpop.f32.mrb[86].mxu1 }
0x1d3e   :  { %v7652_v9 = vmax.f32 %v12198_v4, 1e-30  ;;  %v7612_v18 = vpop.f32.mrb[87].mxu1 }
0x1d3f   :  { %v7651_v32 = vmax.f32 %v7612_v18, 1e-30 }
0x1d40   :  { %13321 = vrsqrt.f32 %v7652_v9 }
0x1d41   :  { %13323 = vrsqrt.f32 %v7651_v32 }
0x1d45   :  { %v12201_v52 = vpop.f32.mrb[88].mxu1 }
0x1d46   :  { %v7654_v44 = vmax.f32 %v12201_v52, 1e-30  ;;  %v7622_v11 = vpop.f32.mrb[89].mxu1 }
0x1d47   :  { %v7653_v60 = vmax.f32 %v7622_v11, 1e-30 }
0x1d48   :  { %13325 = vrsqrt.f32 %v7654_v44 }
0x1d49   :  { %13327 = vrsqrt.f32 %v7653_v60 }
0x1d4a   :  { %v16280_v16 = vpop.eup %13321 }
0x1d4b   :  { %v16282_v63 = vpop.eup %13323  ;;  %v7668_v43 = vmul.f32 %v16280_v16, %v12198_v4 }
0x1d4c   :  { %v7667_v55 = vmul.f32 %v16282_v63, %v7612_v18 }
0x1d4d   :  { %v11005_v5 = vclamps-f32 %v7668_v43, 0.9999999  ;;  %v12204_v57 = vpop.f32.mrb[90].mxu1 }
0x1d4e   :  { %v7656_v59 = vmax.f32 %v12204_v57, 1e-30  ;;  %v7632_v33 = vpop.f32.mrb[91].mxu1  ;;  %v16286_v34 = vclamps-f32 %v7667_v55, 0.9999999 }
0x1d4f   :  { %v7700_v31 = vadd.f32 1.0, %v11005_v5  ;;  %v7764_v14 = vsub.f32 0.0, %v11005_v5  ;;  %v7655_v6 = vmax.f32 %v7632_v33, 1e-30  ;;  %v7703_v27 = vmul.f32 -0.5, %v11005_v5 }
0x1d50   :  { %13329 = vrsqrt.f32 %v7656_v59  ;;  %v7691_v0 = vadd.f32 1.0, %v16286_v34  ;;  %v16295_v46 = vsub.f32 0.0, %v16286_v34  ;;  %v7694_v49 = vmul.f32 -0.5, %v16286_v34 }
0x1d51   :  { %13331 = vlog2.f32 %v7700_v31  ;;  %v7780_v17 = vadd.f32 1.0, %v7764_v14  ;;  %v7783_v41 = vmul.f32 -0.5, %v7764_v14  ;;  %v7704_v25 = vadd.f32 1.0, %v7703_v27 }
0x1d52   :  { %v16288_v10 = vpop.eup %13325  ;;  %13333 = vrsqrt.f32 %v7655_v6  ;;  %v7771_v12 = vadd.f32 1.0, %v16295_v46  ;;  %v7706_v39 = vand.u32 2147483647, %v11005_v5  ;;  %v7786_v13 = vand.u32 2147483647, %v7764_v14 }
0x1d53   :  { %v16290_v36 = vpop.eup %13327  ;;  %v7670_v26 = vmul.f32 %v16288_v10, %v12201_v52  ;;  %13335 = vlog2.f32 %v7780_v17  ;;  %v7784_v19 = vadd.f32 1.0, %v7783_v41  ;;  %v7695_v37 = vadd.f32 1.0, %v7694_v49 }
0x1d54   :  { %v7669_v50 = vmul.f32 %v16290_v36, %v7622_v11  ;;  %13337 = vlog2.f32 %v7691_v0  ;;  %v7705_v8 = vmul.f32 %v11005_v5, %v7704_v25  ;;  %vm16318_vm6 = vcmp.lt.f32.partialorder %v7706_v39, 0.0004427343 }
0x1d55   :  { %v16297_v3 = vclamps-f32 %v7670_v26, 0.9999999  ;;  %v12207_v42 = vpop.f32.mrb[92].mxu1  ;;  %v7785_v44 = vmul.f32 %v7784_v19, %v7764_v14  ;;  %v7774_v11 = vmul.f32 -0.5, %v16295_v46  ;;  %vm7787_vm10 = vcmp.lt.f32.partialorder %v7786_v13, 0.0004427343 }
0x1d56   :  { %v7658_v53 = vmax.f32 %v12207_v42, 1e-30  ;;  %v16300_v61 = vpop.f32.mrb[93].mxu1  ;;  %v16306_v15 = vclamps-f32 %v7669_v50, 0.9999999  ;;  %v7696_v17 = vmul.f32 %v16286_v34, %v7695_v37 }
0x1d57   :  { %v7718_v24 = vadd.f32 1.0, %v16297_v3  ;;  %v7657_v51 = vmax.f32 %v16300_v61, 1e-30  ;;  %v16311_v29 = vsub.f32 0.0, %v16297_v3  ;;  %v7721_v38 = vmul.f32 -0.5, %v16297_v3 }
0x1d58   :  { %13339 = vrsqrt.f32 %v7658_v53  ;;  %v7712_v28 = vmul.f32 -0.5, %v16306_v15  ;;  %v7709_v32 = vadd.f32 1.0, %v16306_v15  ;;  %v7697_v43 = vand.u32 2147483647, %v16286_v34 }
0x1d59   :  { %13341 = vlog2.f32 %v7718_v24  ;;  %v7798_v18 = vadd.f32 1.0, %v16311_v29  ;;  %v7722_v60 = vadd.f32 1.0, %v7721_v38  ;;  %v7777_v26 = vand.u32 2147483647, %v16295_v46 }
0x1d5a   :  { %v16308_v30 = vpop.eup %13329  ;;  %13343 = vrsqrt.f32 %v7657_v51  ;;  %v7713_v5 = vadd.f32 1.0, %v7712_v28  ;;  %v7775_v27 = vadd.f32 1.0, %v7774_v11  ;;  %v7801_v53 = vmul.f32 -0.5, %v16311_v29 }
0x1d5b   :  { %v13332_v22 = vpop.eup %13331  ;;  %13345 = vlog2.f32 %v7771_v12  ;;  %v7672_v4 = vmul.f32 %v16308_v30, %v12204_v57  ;;  %v7723_v24 = vmul.f32 %v16297_v3, %v7722_v60  ;;  %v16339_v51 = vsub.f32 0.0, %v16306_v15 }
0x1d5c   :  { %v16314_v62 = vpop.eup %13333  ;;  %v7702_v58 = vmul.f32 0.6931472, %v13332_v22  ;;  %13347 = vlog2.f32 %v7798_v18  ;;  %v7724_v34 = vand.u32 2147483647, %v16297_v3  ;;  %v16345_v49 = vmul.f32 %v16306_v15, %v7713_v5 }
0x1d5d   :  { %v13336_v20 = vpop.eup %13335  ;;  %v7671_v57 = vmul.f32 %v16314_v62, %v7632_v33  ;;  %v16332_v14 = vclamps-f32 %v7672_v4, 0.9999999  ;;  %13349 = vlog2.f32 %v7709_v32  ;;  %vm16349_vm14 = vcmp.lt.f32.partialorder %v7697_v43, 0.0004427343 }
0x1d5e   :  { %v7782_v52 = vmul.f32 0.6931472, %v13336_v20  ;;  %v13338_v55 = vpop.eup %13337  ;;  %v7708_v59 = vsel %vm16318_vm6, %v7705_v8, %v7702_v58  ;;  %vm16357_vm15 = vcmp.lt.f32.partialorder %v7777_v26, 0.0004427343  ;;  %v7776_v58 = vmul.f32 %v7775_v27, %v16295_v46 }
0x1d5f   :  { %v16347_v25 = vclamps-f32 %v7671_v57, 0.9999999  ;;  %v7736_v19 = vadd.f32 1.0, %v16332_v14  ;;  %v7802_v20 = vadd.f32 1.0, %v7801_v53  ;;  %v7739_v8 = vmul.f32 -0.5, %v16332_v14 }
0x1d60   :  { %v7788_v31 = vsel %vm7787_vm10, %v7785_v44, %v7782_v52  ;;  %v16366_v4 = vsub.f32 0.0, %v16332_v14  ;;  %vm7725_vm2 = vcmp.lt.f32.partialorder %v7724_v34, 0.0004427343 }
0x1d61   :  { %v7844_v0 = vsub.f32 %v7708_v59, %v7788_v31  ;;  %v7727_v9 = vadd.f32 1.0, %v16347_v25  ;;  %13351 = vlog2.f32 %v7736_v19  ;;  %v7730_v44 = vmul.f32 -0.5, %v16347_v25 }
0x1d62   :  { %v16329_v6 = vpop.eup %13339  ;;  %v7803_v5 = vmul.f32 %v7802_v20, %v16311_v29  ;;  %v7740_v57 = vadd.f32 1.0, %v7739_v8  ;;  %v7816_v34 = vadd.f32 1.0, %v16366_v4 }
0x1d63   :  { %v7674_v50 = vmul.f32 %v16329_v6, %v12207_v42  ;;  %v13342_v33 = vpop.eup %13341  ;;  %v7852_v41 = vmul.f32 0.5, %v7844_v0  ;;  %v7693_v42 = vmul.f32 0.6931472, %v13338_v55 }
0x1d64   :  { %v16342_v12 = vpop.eup %13343  ;;  %v7720_v46 = vmul.f32 0.6931472, %v13342_v33  ;;  %v7792_v33 = vmul.f32 -0.5, %v16339_v51 }
0x1d65   :  { %v13346_v22 = vpop.eup %13345  ;;  %v7673_v38 = vmul.f32 %v16342_v12, %v16300_v61  ;;  %v7860_v3 = vmul.f32 %v16280_v16, %v7852_v41  ;;  %v16361_v37 = vclamps-f32 %v7674_v50, 0.9999999  ;;  %v7804_v61 = vand.u32 2147483647, %v16311_v29 }
0x1d66   :  { %v7773_v28 = vmul.f32 0.6931472, %v13346_v22  ;;  %v7789_v16 = vadd.f32 1.0, %v16339_v51  ;;  %v7699_v18 = vsel %vm16349_vm14, %v7696_v17, %v7693_v42  ;;  %v13348_v52 = vpop.eup %13347  ;;  %v16381_v17 = vsub.f32 0.0, %v16347_v25 }
0x1d67   :  { %7874 = vperm.xlu1 %12740, %v7860_v3   ;;  %v16376_v11 = vclamps-f32 %v7673_v38, 0.9999999  ;;  %v7754_v43 = vadd.f32 1.0, %v16361_v37  ;;  %v7800_v55 = vmul.f32 0.6931472, %v13348_v52  ;;  %v13350_v31 = vpop.eup %13349  ;;  %v7726_v0 = vsel %vm7725_vm2, %v7723_v24, %v7720_v46 }
0x1d68   :  { %v7779_v32 = vsel %vm16357_vm15, %v7776_v58, %v7773_v28  ;;  %13353 = vlog2.f32 %v7789_v16  ;;  %vm7805_vm3 = vcmp.lt.f32.partialorder %v7804_v61, 0.0004427343  ;;  %v7731_v29 = vadd.f32 1.0, %v7730_v44 }
0x1d69   :  { %v7843_v60 = vsub.f32 %v7699_v18, %v7779_v32  ;;  %13355 = vlog2.f32 %v7727_v9  ;;  %v7806_v26 = vsel %vm7805_vm3, %v7803_v5, %v7800_v55  ;;  %v7745_v50 = vadd.f32 1.0, %v16376_v11  ;;  %v7918_v5 = vld [vmem:[%s17390_s11 + $0x18] sm:$0xff] }
0x1d6a   :  { %v7846_v53 = vsub.f32 %v7726_v0, %v7806_v26  ;;  %13357 = vlog2.f32 %v7754_v43  ;;  %v7757_v41 = vmul.f32 -0.5, %v16361_v37  ;;  %v16389_v42 = vsub.f32 0.0, %v16361_v37 }
0x1d6b   :  { %v7851_v59 = vmul.f32 0.5, %v7843_v60  ;;  %v7711_v24 = vmul.f32 0.6931472, %v13350_v31  ;;  %v7715_v22 = vand.u32 2147483647, %v16306_v15  ;;  %v7748_v19 = vmul.f32 -0.5, %v16376_v11  ;;  %v13352_v8 = vpop.eup %13351 }
0x1d6c   :  { %v7854_v39 = vmul.f32 0.5, %v7846_v53  ;;  %13359 = vlog2.f32 %v7816_v34  ;;  %v7807_v38 = vadd.f32 1.0, %v16381_v17  ;;  %v16398_v3 = vmul.f32 %v16332_v14, %v7740_v57 }
0x1d6d   :  { %v7859_v27 = vmul.f32 %v16282_v63, %v7851_v59  ;;  %v16394_v63 = vsub.f32 0.0, %v16376_v11  ;;  %13361 = vlog2.f32 %v7745_v50  ;;  %v7793_v28 = vadd.f32 1.0, %v7792_v33 }
0x1d6e   :  { %v7862_v13 = vmul.f32 %v16288_v10, %v7854_v39  ;;  %v16402_v58 = vmul.f32 %v16347_v25, %v7731_v29  ;;  %v7758_v20 = vadd.f32 1.0, %v7757_v41  ;;  %v7795_v15 = vand.u32 2147483647, %v16339_v51 }
0x1d6f   :  { %7869 = vperm.xlu0 %12739, %v7859_v27   ;;  %13363 = vlog2.f32 %v7807_v38  ;;  %vm16405_vm4 = vcmp.lt.f32.partialorder %v7715_v22, 0.0004427343  ;;  %v7742_v16 = vand.u32 2147483647, %v16332_v14  ;;  %v7819_v9 = vmul.f32 -0.5, %v16366_v4  ;;  %v7917_v14 = vld [vmem:[%s17390_s11 + $0x10] sm:$0xff] }
0x1d70   :  { %7884 = vperm.xlu1 %12740, %v7862_v13   ;;  %v7834_v10 = vadd.f32 1.0, %v16389_v42  ;;  %v7749_v32 = vadd.f32 1.0, %v7748_v19  ;;  %v7717_v46 = vsel %vm16405_vm4, %v16345_v49, %v7711_v24  ;;  %v7810_v52 = vmul.f32 -0.5, %v16381_v17 }
0x1d71   :  { %v7825_v44 = vadd.f32 1.0, %v16394_v63  ;;  %v7794_v43 = vmul.f32 %v7793_v28, %v16339_v51  ;;  %v7822_v55 = vand.u32 2147483647, %v16366_v4  ;;  %v16426_v49 = vmul.f32 %v16361_v37, %v7758_v20 }
0x1d72   :  { %v13354_v18 = vpop.eup %13353  ;;  %13365 = vlog2.f32 %v7834_v10  ;;  %vm7796_vm5 = vcmp.lt.f32.partialorder %v7795_v15, 0.0004427343  ;;  %v7738_v59 = vmul.f32 0.6931472, %v13352_v8  ;;  %vm16428_vm8 = vcmp.lt.f32.partialorder %v7742_v16, 0.0004427343 }
0x1d73   :  { %v7791_v60 = vmul.f32 0.6931472, %v13354_v18  ;;  %v13356_v57 = vpop.eup %13355  ;;  %13367 = vlog2.f32 %v7825_v44  ;;  %v7820_v0 = vadd.f32 1.0, %v7819_v9  ;;  %v7733_v26 = vand.u32 2147483647, %v16347_v25 }
0x1d74   :  { %v13358_v50 = vpop.eup %13357  ;;  %v7811_v53 = vadd.f32 1.0, %v7810_v52  ;;  %v7837_v33 = vmul.f32 -0.5, %v16389_v42  ;;  %v12623_v29 = vpack.c.bf16 %v7918_v5, %v7917_v14  ;;  %v7750_v41 = vmul.f32 %v16376_v11, %v7749_v32 }
0x1d75   :  { %v7797_v31 = vsel %vm7796_vm5, %v7794_v43, %v7791_v60  ;;  %vm16435_vm9 = vcmp.lt.f32.partialorder %v7822_v55, 0.0004427343  ;;  %v7729_v39 = vmul.f32 0.6931472, %v13356_v57  ;;  %v7828_v24 = vmul.f32 -0.5, %v16394_v63 }
0x1d76   :  { %v7845_v27 = vsub.f32 %v7717_v46, %v7797_v31  ;;  %v13360_v22 = vpop.eup %13359  ;;  %v7744_v25 = vsel %vm16428_vm8, %v16398_v3, %v7738_v59  ;;  %v7813_v38 = vand.u32 2147483647, %v16381_v17  ;;  %v7760_v13 = vand.u32 2147483647, %v16361_v37  ;;  %12624 = vmatprep.subr.bf16.mxu0 %v12623_v29 }
0x1d77   :  { %v13362_v28 = vpop.eup %13361  ;;  %v7818_v20 = vmul.f32 0.6931472, %v13360_v22  ;;  %v7821_v15 = vmul.f32 %v7820_v0, %v16366_v4  ;;  %vm16446_vm6 = vcmp.lt.f32.partialorder %v7733_v26, 0.0004427343  ;;  %v7756_v61 = vmul.f32 0.6931472, %v13358_v50  ;;  %12626 = vmatpush3.bf16.msra.mxu0 %v12623_v29 }
0x1d78   :  { %v7853_v19 = vmul.f32 0.5, %v7845_v27  ;;  %v7812_v3 = vmul.f32 %v7811_v53, %v16381_v17  ;;  %v7838_v10 = vadd.f32 1.0, %v7837_v33  ;;  %v7840_v18 = vand.u32 2147483647, %v16389_v42  ;;  %12643 = vmatprep.subr.bf16.mxu0 %v17443_v47 }
0x1d79   :  { %v13364_v16 = vpop.eup %13363  ;;  %v7824_v37 = vsel %vm16435_vm9, %v7821_v15, %v7818_v20  ;;  %v7751_v32 = vand.u32 2147483647, %v16376_v11  ;;  %v7829_v46 = vadd.f32 1.0, %v7828_v24  ;;  %vm7814_vm10 = vcmp.lt.f32.partialorder %v7813_v38, 0.0004427343 }
0x1d7a   :  { %v7861_v9 = vmul.f32 %v16290_v36, %v7853_v19  ;;  %v7809_v4 = vmul.f32 0.6931472, %v13364_v16  ;;  %v7848_v52 = vsub.f32 %v7744_v25, %v7824_v37  ;;  %vm16457_vm14 = vcmp.lt.f32.partialorder %v7760_v13, 0.0004427343  ;;  %v17527_v37 = vld [vmem:[#allocation4_spill] sm:$0xff] }
0x1d7b   :  { %v7831_v36 = vand.u32 2147483647, %v16394_v63  ;;  %v7735_v60 = vsel %vm16446_vm6, %v16402_v58, %v7729_v39  ;;  %v7762_v11 = vsel %vm16457_vm14, %v16426_v49, %v7756_v61  ;;  %v7747_v55 = vmul.f32 0.6931472, %v13362_v28 }
0x1d7c   :  { %7879 = vperm.xlu0 %12739, %v7861_v9   ;;  %v13366_v17 = vpop.eup %13365  ;;  %v7815_v43 = vsel %vm7814_vm10, %v7812_v3, %v7809_v4  ;;  %v7856_v5 = vmul.f32 0.5, %v7848_v52  ;;  %v7839_v31 = vmul.f32 %v7838_v10, %v16389_v42  ;;  %vm7841_vm15 = vcmp.lt.f32.partialorder %v7840_v18, 0.0004427343 }
0x1d7d   :  { %v13368_v14 = vpop.eup %13367  ;;  %v7847_v57 = vsub.f32 %v7735_v60, %v7815_v43  ;;  %v7836_v59 = vmul.f32 0.6931472, %v13366_v17  ;;  %vm7752_vm2 = vcmp.lt.f32.partialorder %v7751_v32, 0.0004427343  ;;  %v7830_v0 = vmul.f32 %v7829_v46, %v16394_v63 }
0x1d7e   :  { %v7827_v51 = vmul.f32 0.6931472, %v13368_v14  ;;  %v7864_v26 = vmul.f32 %v16308_v30, %v7856_v5  ;;  %vm7832_vm3 = vcmp.lt.f32.partialorder %v7831_v36, 0.0004427343  ;;  %v7753_v53 = vsel %vm7752_vm2, %v7750_v41, %v7747_v55 }
0x1d7f   :  { %v7855_v58 = vmul.f32 0.5, %v7847_v57  ;;  %v7842_v50 = vsel %vm7841_vm15, %v7839_v31, %v7836_v59  ;;  %v17525_v30 = vmov 1  }
0x1d80   :  { %v7850_v27 = vsub.f32 %v7762_v11, %v7842_v50  ;;  %v7833_v49 = vsel %vm7832_vm3, %v7830_v0, %v7827_v51  ;;  %7894 = vperm.xlu1 %12740, %v7864_v26   ;;  %v7919_v11 = vld [vmem:[%s17392_s12] sm:$0x3] }
0x1d81   :  { %v7863_v33 = vmul.f32 %v16314_v62, %v7855_v58  ;;  %v7849_v29 = vsub.f32 %v7753_v53, %v7833_v49 }
0x1d82   :  { %v7858_v34 = vmul.f32 0.5, %v7850_v27 }
0x1d83   :  { %7889 = vperm.xlu0 %12739, %v7863_v33   ;;  %v7857_v42 = vmul.f32 0.5, %v7849_v29 }
0x1d84   :  { %v7866_v39 = vmul.f32 %v16329_v6, %v7858_v34 }
0x1d85   :  { %v7865_v24 = vmul.f32 %v16342_v12, %v7857_v42 }
0x1d86   :  { %7904 = vperm.xlu1 %12740, %v7866_v39  }
0x1d87   :  { %7899 = vperm.xlu0 %12739, %v7865_v24  }
0x1d8b   :  { %12741 = vset.pattern.permute.xlu0 %v17525_v30 }
0x1de6   :  { %v7875_v63 = vpop.permute.xlu1 %7874 }
0x1de7   :  { %v16476_v22 = vmul.f32 %v7875_v63, %v16219_v21 }
0x1dee   :  { %v7870_v41 = vpop.permute.xlu0 %7869 }
0x1def   :  { %v16479_v19 = vmul.f32 %v7870_v41, %v16222_v54  ;;  %v7885_v21 = vpop.permute.xlu1 %7884  ;;  %v7920_v54 = vld [vmem:[%s17391_s13] sm:$0x3] }
0x1df0   :  { %v7910_v12 = vmul.f32 %v7885_v21, %v16233_v2  ;;  %v16500_v25 = vrot.slane %v7920_v54, %v17508_v45  ;;  %v16521_v4 = vrot.slane %v7920_v54, %v17527_v37 }
0x1df1   :  { %v12628_v62 = vpack.c.bf16 %v16476_v22, %v16479_v19  ;;  %12216 = vmatprep.mubr.msk.f32.mxu0 %vm77_vm0, %v16479_v19 }
0x1df2   :  { %12217 = vmatmul.mubr.msk.f32.vlgmr.msra.gmra.mrb[116].mxu0 %vm77_vm0, %v16476_v22  ;;  %v8449_v28 = vmul.f32 %v16500_v25, %v7910_v12  ;;  %v8784_v36 = vmul.f32 %v16521_v4, %v16476_v22  ;;  %v8786_v43 = vmul.f32 %v16521_v4, %v7910_v12  ;;  %v8446_v0 = vmul.f32 %v16500_v25, %v16479_v19 }
0x1df3   :  { %12630 = vmatpush3.bf16.xpose.msk.msra.mxu1 %vm14842_vm11, %v12628_v62  ;;  %12644 = vmatpush3.bf16.msra.mxu0 %v17443_v47  ;;  %v8447_v26 = vmul.f32 %v16500_v25, %v16476_v22 }
0x1df4   :  { %12631 = vmatprep.subr.bf16.mxu1 %v17445_v56  ;;  %12645 = vmatprep.subr.bf16.mxu0 %v17443_v47 }
0x1df5   :  { %v16557_v58 = vpack.c.bf16 %v8447_v26, %v8446_v0 }
0x1df7   :  { %12646 = vmatpush3.bf16.msra.mxu0 %v17443_v47 }
0x1df8   :  { %12647 = vmatprep.subr.bf16.mxu0 %v17443_v47 }
0x1dfb   :  { %12648 = vmatpush3.bf16.msra.mxu0 %v17443_v47  ;;  %v7880_v38 = vpop.permute.xlu0 %7879 }
0x1dfc   :  { %12649 = vmatprep.subr.bf16.mxu0 %v17443_v47  ;;  %v7909_v13 = vmul.f32 %v7880_v38, %v16236_v7 }
0x1dfe   :  { %v12632_v20 = vpack.c.bf16 %v7910_v12, %v7909_v13  ;;  %12219 = vmatprep.mubr.msk.f32.mxu0 %vm77_vm0, %v7909_v13  ;;  %v8448_v2 = vmul.f32 %v16500_v25, %v7909_v13 }
0x1dff   :  { %12650 = vmatpush3.bf16.msra.mxu0 %v17443_v47  ;;  %v7895_v8 = vpop.permute.xlu1 %7894 }
0x1e00   :  { %12651 = vmatprep.subr.bf16.mxu0 %v17443_v47  ;;  %12220 = vmatmul.mubr.msk.f32.gmra.mrb[118].mxu0 %vm77_vm0, %v7910_v12  ;;  %v16512_v15 = vpack.c.bf16 %v8449_v28, %v8448_v2  ;;  %v7912_v7 = vmul.f32 %v7895_v8, %v16247_v23 }
0x1e01   :  { %12634 = vmatpush3.bf16.xpose.msk.msra.mxu1 %vm14842_vm11, %v12632_v20 }
0x1e02   :  { %12635 = vmatprep.subr.bf16.mxu1 %v17445_v56  ;;  %v7890_v61 = vpop.permute.xlu0 %7889  ;;  %v8451_v9 = vmul.f32 %v16500_v25, %v7912_v7  ;;  %v8788_v5 = vmul.f32 %v16521_v4, %v7912_v7 }
0x1e03   :  { %v7911_v16 = vmul.f32 %v7890_v61, %v16250_v35 }
0x1e05   :  { %v12636_v3 = vpack.c.bf16 %v7912_v7, %v7911_v16  ;;  %12222 = vmatprep.mubr.msk.f32.mxu0 %vm77_vm0, %v7911_v16  ;;  %v7905_v10 = vpop.permute.xlu1 %7904  ;;  %v8450_v18 = vmul.f32 %v16500_v25, %v7911_v16  ;;  %v8787_v14 = vmul.f32 %v16521_v4, %v7911_v16 }
0x1e06   :  { %12223 = vmatmul.mubr.msk.f32.gmra.mrb[120].mxu0 %vm77_vm0, %v7912_v7  ;;  %v7914_v32 = vmul.f32 %v7905_v10, %v16261_v1  ;;  %v7900_v46 = vpop.permute.xlu0 %7899  ;;  %v8783_v1 = vmul.f32 %v16521_v4, %v16479_v19 }
0x1e07   :  { %v7913_v23 = vmul.f32 %v7900_v46, %v16264_v48  ;;  %v16528_v35 = vpack.c.bf16 %v8451_v9, %v8450_v18  ;;  %v12667_v57 = vpack.c.bf16 %v8788_v5, %v8787_v14 }
0x1e08   :  { %v8453_v52 = vmul.f32 %v16500_v25, %v7914_v32  ;;  %v12659_v60 = vpack.c.bf16 %v8784_v36, %v8783_v1  ;;  %v8790_v31 = vmul.f32 %v16521_v4, %v7914_v32 }
0x1e09   :  { %12638 = vmatpush3.bf16.xpose.msk.msra.mxu1 %vm14842_vm11, %v12636_v3  ;;  %12225 = vmatprep.mubr.msk.f32.mxu0 %vm77_vm0, %v7913_v23  ;;  %v8452_v44 = vmul.f32 %v16500_v25, %v7913_v23  ;;  %v12640_v17 = vpack.c.bf16 %v7914_v32, %v7913_v23  ;;  %v8789_v59 = vmul.f32 %v16521_v4, %v7913_v23 }
0x1e0a   :  { %12639 = vmatprep.subr.bf16.mxu1 %v17445_v56  ;;  %12226 = vmatmul.mubr.msk.f32.gmra.mrb[122].mxu0 %vm77_vm0, %v7914_v32  ;;  %v8785_v56 = vmul.f32 %v16521_v4, %v7909_v13 }
0x1e0b   :  { %v16539_v48 = vpack.c.bf16 %v8453_v52, %v8452_v44  ;;  %v12671_v51 = vpack.c.bf16 %v8790_v31, %v8789_v59 }
0x1e0c   :  { %v12663_v55 = vpack.c.bf16 %v8786_v43, %v8785_v56 }
0x1e11   :  { %12642 = vmatpush3.bf16.xpose.msk.msra.mxu1 %vm14842_vm11, %v12640_v17 }
0x1e12   :  { %12660 = vmatprep.subr.bf16.mxu1 %v12659_v60 }
0x1e18   :  { %12245 = vmatmul.mubr.msk.f32.vlgmr.msra.gmra.mrb[94].mxu1 %vm77_vm0, %v7919_v11 }
0x1e19   :  { %12662 = vmatpush3.bf16.msra.mxu1 %v12659_v60 }
0x1e1a   :  { %12664 = vmatprep.subr.bf16.mxu1 %v12663_v55 }
0x1e1d   :  { %12666 = vmatpush3.bf16.msra.mxu1 %v12663_v55 }
0x1e1e   :  { %12668 = vmatprep.subr.bf16.mxu1 %v12667_v57 }
0x1e21   :  { %12670 = vmatpush3.bf16.msra.mxu1 %v12667_v57 }
0x1e22   :  { %12672 = vmatprep.subr.bf16.mxu1 %v12671_v51 }
0x1e25   :  { %12674 = vmatpush3.bf16.msra.mxu1 %v12671_v51 }
0x1e26   :  { %12676 = vmatprep.subr.bf16.mxu1 %v16557_v58 }
0x1ec5   :  { %v12218_v50 = vpop.f32.mrb[116].mxu0 }
0x1ec6   :  { %v8011_v27 = vpop.f32.mrb[117].mxu0 }
0x1ec7   :  { %8167 = vperm.xlu1 %12740, %v8011_v27  }
0x1ecb   :  { %8172 = vperm.xlu1 %12740, %v12218_v50  }
0x1ed3   :  { %v12221_v53 = vpop.f32.mrb[118].mxu0 }
0x1ed4   :  { %v8021_v49 = vpop.f32.mrb[119].mxu0 }
0x1ed5   :  { %8177 = vperm.xlu1 %12740, %v8021_v49  }
0x1ed9   :  { %8182 = vperm.xlu1 %12740, %v12221_v53   ;;  %v12224_v33 = vpop.f32.mrb[120].mxu0 }
0x1eda   :  { %v8031_v29 = vpop.f32.mrb[121].mxu0 }
0x1edd   :  { %8187 = vperm.xlu1 %12740, %v8031_v29   ;;  %v16560_v34 = vpop.f32.mrb[122].mxu0 }
0x1ede   :  { %v8041_v42 = vpop.f32.mrb[123].mxu0 }
0x1ee1   :  { %8192 = vperm.xlu1 %12740, %v12224_v33  }
0x1ee5   :  { %8197 = vperm.xlu1 %12740, %v8041_v42  }
0x1ee9   :  { %8202 = vperm.xlu1 %12740, %v16560_v34  }
0x1eeb   :  { %v16563_v39 = vpop.f32.mrb[94].mxu1 }
0x1eec   :  { %v12246_v24 = vpop.f32.mrb[95].mxu1  ;;  %v8123_v63 = vsel %vm3299_vm12, %v16563_v39, -inf  ;;  %v8208_v26 = vrot.slane %v16563_v39, %v17508_v45 }
0x1eed   :  { %8124 = vmax.xlane.f32.xlu0 %v8123_v63  ;;  %12742 = vset.pattern.permute.xlu1 %v17525_v30 }
0x1eee   :  { %8523 = vperm.xlu1 %12742, %v12218_v50  }
0x1ef2   :  { %8527 = vperm.xlu1 %12742, %v8021_v49  }
0x1ef6   :  { %8531 = vperm.xlu1 %12742, %v12221_v53  }
0x1efa   :  { %8535 = vperm.xlu1 %12742, %v8031_v29  }
0x1efe   :  { %12743 = vset.pattern.permute.xlu1 %v17440_v40 }
0x1f03   :  { %8519 = vperm.xlu0 %12741, %v8011_v27  }
0x1f07   :  { %8539 = vperm.xlu0 %12741, %v12224_v33  }
0x1f0b   :  { %12744 = vset.pattern.permute.xlu0 %v17440_v40 }
0x1f46   :  { %v8168_v11 = vpop.permute.xlu1 %8167 }
0x1f4a   :  { %v8173_v55 = vpop.permute.xlu1 %8172 }
0x1f54   :  { %v8178_v14 = vpop.permute.xlu1 %8177 }
0x1f58   :  { %v8183_v5 = vpop.permute.xlu1 %8182 }
0x1f59   :  { %v8212_v63 = vadd.f32 %v8208_v26, %v8183_v5 }
0x1f5b   :  { %vm8220_vm2 = vcmp.ge.f32.partialorder %v8212_v63, 0.0 }
0x1f5c   :  { %v8188_v57 = vpop.permute.xlu1 %8187 }
0x1f60   :  { %v8193_v59 = vpop.permute.xlu1 %8192 }
0x1f64   :  { %v8198_v31 = vpop.permute.xlu1 %8197 }
0x1f68   :  { %v8203_v51 = vpop.permute.xlu1 %8202 }
0x1f6d   :  { %v16577_v0 = vpop.permute.xlu1 %8523 }
0x1f7a   :  { %v8125_v22 = vpop.xlane.xlu0 %8124 }
0x1f7b   :  { %v8126_v41 = vsel %vm3303_vm13, %v8125_v22, -inf }
0x1f7c   :  { %v8127_v19 = vrot.slane %v8126_v41, 4 }
0x1f7e   :  { %v8128_v62 = vmax.f32 %v8126_v41, %v8127_v19 }
0x1f80   :  { %v8129_v6 = vrot.slane %v8128_v62, 2 }
0x1f82   :  { %v8130_v21 = vmax.f32 %v8128_v62, %v8129_v6  ;;  %v13625_v6 = vld [vmem:[%s17387_s1] sm:$0xff] }
0x1f84   :  { %v8131_v54 = vrot.slane %v8130_v21, 1 }
0x1f86   :  { %v8132_v12 = vmax.f32 %v8130_v21, %v8131_v54  ;;  %v8228_v54 = vmul.f32 0.2, %v8212_v63 }
0x1f88   :  { %v8135_v38 = vadd.f32 %v8132_v12, %v8021_v49  ;;  %v8133_v13 = vadd.f32 %v8132_v12, %v8011_v27  ;;  %v8140_v28 = vadd.f32 %v16560_v34, %v8132_v12  ;;  %v8134_v20 = vadd.f32 %v12218_v50, %v8132_v12  ;;  %v8520_v49 = vpop.permute.xlu0 %8519 }
0x1f89   :  { %v8136_v7 = vadd.f32 %v12221_v53, %v8132_v12  ;;  %v8137_v46 = vadd.f32 %v8132_v12, %v8031_v29  ;;  %v8138_v44 = vadd.f32 %v12224_v33, %v8132_v12  ;;  %v8139_v17 = vadd.f32 %v8132_v12, %v8041_v42 }
0x1f8a   :  { %vm8143_vm11 = vcmp.ge.f32.partialorder %v8135_v38, 0.0  ;;  %v8151_v2 = vmul.f32 0.2, %v8135_v38  ;;  %vm8141_vm12 = vcmp.ge.f32.partialorder %v8133_v13, 0.0  ;;  %v8149_v8 = vmul.f32 0.2, %v8133_v13 }
0x1f8b   :  { %v8156_v9 = vmul.f32 0.2, %v8140_v28  ;;  %v8150_v3 = vmul.f32 0.2, %v8134_v20  ;;  %vm8148_vm13 = vcmp.ge.f32.partialorder %v8140_v28, 0.0  ;;  %vm8142_vm4 = vcmp.ge.f32.partialorder %v8134_v20, 0.0 }
0x1f8c   :  { %v8159_v61 = vsel %vm8143_vm11, %v8135_v38, %v8151_v2  ;;  %v8157_v16 = vsel %vm8141_vm12, %v8133_v13, %v8149_v8  ;;  %v8152_v32 = vmul.f32 0.2, %v8136_v7  ;;  %vm8144_vm5 = vcmp.ge.f32.partialorder %v8136_v7, 0.0  ;;  %v16591_v41 = vpop.permute.xlu0 %8539 }
0x1f8d   :  { %8261 = vperm.xlu0 %12744, %v8159_v61   ;;  %8251 = vperm.xlu1 %12743, %v8157_v16   ;;  %v8164_v10 = vsel %vm8148_vm13, %v8140_v28, %v8156_v9  ;;  %v8158_v18 = vsel %vm8142_vm4, %v8134_v20, %v8150_v3  ;;  %v8153_v52 = vmul.f32 0.2, %v8137_v46  ;;  %vm8145_vm8 = vcmp.ge.f32.partialorder %v8137_v46, 0.0  ;;  %v16600_v28 = vld [vmem:[%s17387_s1 + $0x10] sm:$0xff] }
0x1f8e   :  { %v8160_v23 = vsel %vm8144_vm5, %v8136_v7, %v8152_v32  ;;  %v8154_v36 = vmul.f32 0.2, %v8138_v44  ;;  %vm8146_vm9 = vcmp.ge.f32.partialorder %v8138_v44, 0.0  ;;  %v8155_v56 = vmul.f32 0.2, %v8139_v17 }
0x1f8f   :  { %v8161_v1 = vsel %vm8145_vm8, %v8137_v46, %v8153_v52  ;;  %vm8147_vm6 = vcmp.ge.f32.partialorder %v8139_v17, 0.0  ;;  %v8209_v50 = vadd.f32 %v8208_v26, %v8168_v11  ;;  %v8211_v27 = vadd.f32 %v8208_v26, %v8178_v14 }
0x1f90   :  { %v8162_v60 = vsel %vm8146_vm9, %v8138_v44, %v8154_v36  ;;  %v8163_v43 = vsel %vm8147_vm6, %v8139_v17, %v8155_v56  ;;  %v8210_v29 = vadd.f32 %v8208_v26, %v8173_v55  ;;  %v8214_v3 = vadd.f32 %v8208_v26, %v8193_v59  ;;  %v16614_v36 = vld [vmem:[%s17387_s1 + $0x18] sm:$0xff] }
0x1f91   :  { %8286 = vperm.xlu0 %12744, %v8164_v10   ;;  %8256 = vperm.xlu1 %12743, %v8158_v18   ;;  %v8225_v33 = vmul.f32 0.2, %v8209_v50  ;;  %vm8217_vm10 = vcmp.ge.f32.partialorder %v8209_v50, 0.0  ;;  %vm8219_vm14 = vcmp.ge.f32.partialorder %v8211_v27, 0.0  ;;  %v8236_v32 = vsel %vm8220_vm2, %v8212_v63, %v8228_v54 }
0x1f92   :  { %v8226_v24 = vmul.f32 0.2, %v8210_v29  ;;  %vm8218_vm15 = vcmp.ge.f32.partialorder %v8210_v29, 0.0  ;;  %v8216_v46 = vadd.f32 %v8208_v26, %v8203_v51  ;;  %v8244_v17 = vadd.f32 %v16614_v36, %v8236_v32 }
0x1f93   :  { %v8233_v45 = vsel %vm8217_vm10, %v8209_v50, %v8225_v33  ;;  %v8215_v56 = vadd.f32 %v8208_v26, %v8198_v31  ;;  %vm8222_vm12 = vcmp.ge.f32.partialorder %v8214_v3, 0.0  ;;  %v16620_v50 = vld [vmem:[%s17387_s1 + $0x20] sm:$0xff] }
0x1f94   :  { %v8241_v21 = vadd.f32 %v13625_v6, %v8233_v45  ;;  %v8234_v38 = vsel %vm8218_vm15, %v8210_v29, %v8226_v24  ;;  %v8232_v14 = vmul.f32 0.2, %v8216_v46  ;;  %vm8224_vm13 = vcmp.ge.f32.partialorder %v8216_v46, 0.0 }
0x1f95   :  { %12745 = vset.pattern.permute.xlu0 %v17525_v30  ;;  %8266 = vperm.xlu1 %12743, %v8160_v23   ;;  %v8231_v31 = vmul.f32 0.2, %v8215_v56  ;;  %vm8223_vm4 = vcmp.ge.f32.partialorder %v8215_v56, 0.0 }
0x1f96   :  { %8595 = vperm.xlu0 %12745, %v8157_v16  }
0x1f99   :  { %8271 = vperm.xlu1 %12743, %v8161_v1  }
0x1f9a   :  { %8543 = vperm.xlu0 %12745, %v8041_v42   ;;  %v16587_v42 = vrot.slane %v16563_v39, %v17527_v37  ;;  %v8213_v37 = vadd.f32 %v8208_v26, %v8188_v57 }
0x1f9c   :  { %v8554_v19 = vadd.f32 %v16587_v42, %v8520_v49  ;;  %v8229_v9 = vmul.f32 0.2, %v8213_v37  ;;  %vm8221_vm11 = vcmp.ge.f32.partialorder %v8213_v37, 0.0  ;;  %v8555_v26 = vadd.f32 %v16587_v42, %v16577_v0 }
0x1f9d   :  { %8276 = vperm.xlu1 %12743, %v8162_v60  }
0x1f9e   :  { %8547 = vperm.xlu0 %12745, %v16560_v34   ;;  %v8227_v34 = vmul.f32 0.2, %v8211_v27  ;;  %v8570_v13 = vmul.f32 0.2, %v8554_v19  ;;  %vm8562_vm3 = vcmp.ge.f32.partialorder %v8554_v19, 0.0  ;;  %v8237_v55 = vsel %vm8221_vm11, %v8213_v37, %v8229_v9 }
0x1f9f   :  { %v8571_v0 = vmul.f32 0.2, %v8555_v26  ;;  %vm8563_vm5 = vcmp.ge.f32.partialorder %v8555_v26, 0.0 }
0x1fa0   :  { %v8235_v62 = vsel %vm8219_vm14, %v8211_v27, %v8227_v34  ;;  %v8578_v52 = vsel %vm8562_vm3, %v8554_v19, %v8570_v13  ;;  %v8245_v27 = vadd.f32 %v16620_v50, %v8237_v55  ;;  %v8240_v34 = vsel %vm8224_vm13, %v8216_v46, %v8232_v14  ;;  %v16628_v19 = vld [vmem:[%s17387_s1 + $0x28] sm:$0xff] }
0x1fa1   :  { %8281 = vperm.xlu1 %12743, %v8163_v43   ;;  %v8243_v20 = vadd.f32 %v16600_v28, %v8235_v62  ;;  %v8586_v11 = vadd.f32 %v13625_v6, %v8578_v52  ;;  %v8559_v46 = vadd.f32 %v16587_v42, %v16591_v41 }
0x1fa2   :  { %8615 = vperm.xlu0 %12745, %v8162_v60   ;;  %v8230_v60 = vmul.f32 0.2, %v8214_v3 }
0x1fa3   :  { %vm8567_vm6 = vcmp.ge.f32.partialorder %v8559_v46, 0.0 }
0x1fa4   :  { %v8238_v29 = vsel %vm8222_vm12, %v8214_v3, %v8230_v60 }
0x1fa5   :  { %12746 = vset.pattern.permute.xlu1 %v17525_v30  ;;  %v16579_v30 = vpop.permute.xlu1 %8527  ;;  %v8246_v62 = vadd.f32 %v16628_v19, %v8238_v29 }
0x1fa6   :  { %8623 = vperm.xlu0 %12745, %v8164_v10   ;;  %8599 = vperm.xlu1 %12746, %v8158_v18  }
0x1fa9   :  { %v16583_v53 = vpop.permute.xlu1 %8531 }
0x1faa   :  { %8603 = vperm.xlu1 %12746, %v8159_v61   ;;  %12748 = vset.pattern.permute.xlu0 %v17440_v40  ;;  %v16606_v61 = vld [vmem:[%s17387_s1 + $0x8] sm:$0xff] }
0x1fab   :  { %v8242_v16 = vadd.f32 %v16606_v61, %v8234_v38 }
0x1fad   :  { %v16589_v22 = vpop.permute.xlu1 %8535 }
0x1fae   :  { %8607 = vperm.xlu1 %12746, %v8160_v23   ;;  %v8558_v41 = vadd.f32 %v16587_v42, %v16589_v22 }
0x1fb0   :  { %vm8566_vm14 = vcmp.ge.f32.partialorder %v8558_v41, 0.0 }
0x1fb2   :  { %8611 = vperm.xlu1 %12746, %v8161_v1  }
0x1fb6   :  { %8619 = vperm.xlu1 %12746, %v8163_v43  }
0x1fba   :  { %12747 = vset.pattern.permute.xlu1 %v17440_v40 }
0x200c   :  { %v8262_v39 = vpop.permute.xlu0 %8261  ;;  %v8252_v12 = vpop.permute.xlu1 %8251 }
0x200d   :  { %v8289_v2 = vsub.f32 %v8241_v21, %v8252_v12  ;;  %v8291_v8 = vsub.f32 %v8243_v20, %v8262_v39  ;;  %v16636_v21 = vld [vmem:[%s17387_s1 + $0x38] sm:$0xff]  ;;  %v8239_v39 = vsel %vm8223_vm4, %v8215_v56, %v8231_v31  ;;  %v8556_v12 = vadd.f32 %v16587_v42, %v16579_v30 }
0x200e   :  { %v8248_v54 = vadd.f32 %v16636_v21, %v8240_v34  ;;  %v8579_v30 = vsel %vm8563_vm5, %v8555_v26, %v8571_v0 }
0x200f   :  { %v8297_v7 = vmul.f32 1.442695, %v8289_v2  ;;  %v8301_v44 = vmul.f32 1.442695, %v8291_v8  ;;  %v16647_v2 = vld [vmem:[%s17387_s1 + $0x30] sm:$0xff]  ;;  %vm8564_vm8 = vcmp.ge.f32.partialorder %v8556_v12, 0.0 }
0x2010   :  { %v16609_v10 = vpop.permute.xlu0 %8286  ;;  %v8257_v18 = vpop.permute.xlu1 %8256  ;;  %v8247_v8 = vadd.f32 %v16647_v2, %v8239_v39  ;;  %v8572_v3 = vmul.f32 0.2, %v8556_v12 }
0x2011   :  { %v8290_v23 = vsub.f32 %v8242_v16, %v8257_v18  ;;  %13369 = vpow2.f32 %v8297_v7  ;;  %v8296_v13 = vsub.f32 %v8248_v54, %v16609_v10  ;;  %v8557_v18 = vadd.f32 %v16587_v42, %v16583_v53 }
0x2013   :  { %v8299_v1 = vmul.f32 1.442695, %v8290_v23  ;;  %v8311_v23 = vmul.f32 1.442695, %v8296_v13  ;;  %v8573_v60 = vmul.f32 0.2, %v8557_v18 }
0x2014   :  { %v8267_v43 = vpop.permute.xlu1 %8266  ;;  %vm8565_vm9 = vcmp.ge.f32.partialorder %v8557_v18, 0.0 }
0x2015   :  { %v8292_v5 = vsub.f32 %v8244_v17, %v8267_v43  ;;  %v8596_v57 = vpop.permute.xlu0 %8595  ;;  %13371 = vpow2.f32 %v8299_v1  ;;  %v8587_v17 = vadd.f32 %v16606_v61, %v8579_v30  ;;  %v8580_v43 = vsel %vm8564_vm8, %v8556_v12, %v8572_v3 }
0x2016   :  { %v8626_v59 = vsub.f32 %v8586_v11, %v8596_v57  ;;  %13373 = vpow2.f32 %v8301_v44  ;;  %v8575_v11 = vmul.f32 0.2, %v8559_v46  ;;  %v8574_v57 = vmul.f32 0.2, %v8558_v41 }
0x2017   :  { %v8303_v51 = vmul.f32 1.442695, %v8292_v5  ;;  %v8588_v5 = vadd.f32 %v16600_v28, %v8580_v43 }
0x2018   :  { %v8634_v49 = vmul.f32 1.442695, %v8626_v59  ;;  %v8272_v33 = vpop.permute.xlu1 %8271  ;;  %v8583_v31 = vsel %vm8567_vm6, %v8559_v46, %v8575_v11  ;;  %v9073_v11 = vld [vmem:[%s17393_s14] sm:$0xff] }
0x2019   :  { %13375 = vpow2.f32 %v8303_v51  ;;  %v8293_v24 = vsub.f32 %v8245_v27, %v8272_v33  ;;  %v8544_v45 = vpop.permute.xlu0 %8543  ;;  %v8581_v27 = vsel %vm8565_vm9, %v8557_v18, %v8573_v60 }
0x201a   :  { %13377 = vpow2.f32 %v8634_v49  ;;  %v8560_v59 = vadd.f32 %v16587_v42, %v8544_v45  ;;  %v8582_v45 = vsel %vm8566_vm14, %v8558_v41, %v8574_v57 }
0x201b   :  { %v8305_v63 = vmul.f32 1.442695, %v8293_v24  ;;  %v16631_v6 = vpop.eup %13369  ;;  %v8591_v24 = vadd.f32 %v16628_v19, %v8583_v31 }
0x201c   :  { %v8277_v37 = vpop.permute.xlu1 %8276  ;;  %12263 = vmatprep.mubr.msk.f32.mxu0 %vm3491_vm7, %v16631_v6  ;;  %v8576_v28 = vmul.f32 0.2, %v8560_v59  ;;  %vm8568_vm15 = vcmp.ge.f32.partialorder %v8560_v59, 0.0 }
0x201d   :  { %13379 = vpow2.f32 %v8305_v63  ;;  %v8294_v38 = vsub.f32 %v8246_v62, %v8277_v37  ;;  %v8548_v10 = vpop.permute.xlu0 %8547 }
0x201e   :  { %v8561_v1 = vadd.f32 %v16587_v42, %v8548_v10  ;;  %v8589_v42 = vadd.f32 %v16614_v36, %v8581_v27  ;;  %v8590_v36 = vadd.f32 %v16620_v50, %v8582_v45  ;;  %v8584_v13 = vsel %vm8568_vm15, %v8560_v59, %v8576_v28 }
0x201f   :  { %v8307_v20 = vmul.f32 1.442695, %v8294_v38  ;;  %v16650_v7 = vpop.eup %13371 }
0x2020   :  { %v8282_v16 = vpop.permute.xlu1 %8281  ;;  %v16652_v9 = vpop.eup %13373  ;;  %12264 = vmatmul.mubr.msk.f32.vlgmr.msra.gmra.mrb[124].mxu0 %vm3491_vm7, %v16650_v7  ;;  %v8577_v22 = vmul.f32 0.2, %v8561_v1  ;;  %vm8569_vm10 = vcmp.ge.f32.partialorder %v8561_v1, 0.0 }
0x2021   :  { %13381 = vpow2.f32 %v8307_v20  ;;  %v8295_v32 = vsub.f32 %v8247_v8, %v8282_v16  ;;  %12266 = vmatprep.mubr.msk.f32.mxu0 %vm3491_vm7, %v16652_v9  ;;  %12652 = vmatpush3.bf16.msra.mxu0 %v17443_v47  ;;  %v8616_v26 = vpop.permute.xlu0 %8615 }
0x2022   :  { %12653 = vmatprep.subr.bf16.mxu0 %v17443_v47  ;;  %v8585_v29 = vsel %vm8569_vm10, %v8561_v1, %v8577_v22  ;;  %v8631_v54 = vsub.f32 %v8591_v24, %v8616_v26 }
0x2023   :  { %v16663_v52 = vpop.eup %13375  ;;  %v8309_v44 = vmul.f32 1.442695, %v8295_v32  ;;  %v8593_v37 = vadd.f32 %v16636_v21, %v8585_v29  ;;  %v8592_v21 = vadd.f32 %v16647_v2, %v8584_v13  ;;  %v9076_v29 = vld [vmem:[%s17393_s14 + $0x18] sm:$0xff] }
0x2024   :  { %v13378_v53 = vpop.eup %13377  ;;  %12267 = vmatmul.mubr.msk.f32.gmra.mrb[126].mxu0 %vm3491_vm7, %v16663_v52  ;;  %v8644_v8 = vmul.f32 1.442695, %v8631_v54 }
0x2025   :  { %13383 = vpow2.f32 %v8309_v44  ;;  %12319 = vmatprep.mubr.msk.f32.mxu1 %vm3491_vm7, %v13378_v53  ;;  %v8600_v56 = vpop.permute.xlu1 %8599  ;;  %12654 = vmatpush3.bf16.msra.mxu0 %v17443_v47  ;;  %v8624_v12 = vpop.permute.xlu0 %8623 }
0x2026   :  { %13385 = vpow2.f32 %v8311_v23  ;;  %v8627_v55 = vsub.f32 %v8587_v17, %v8600_v56  ;;  %12655 = vmatprep.subr.bf16.mxu0 %v17443_v47  ;;  %v8633_v16 = vsub.f32 %v8593_v37, %v8624_v12 }
0x2027   :  { %v16674_v14 = vpop.eup %13379 }
0x2028   :  { %v8636_v61 = vmul.f32 1.442695, %v8627_v55  ;;  %12269 = vmatprep.mubr.msk.f32.mxu0 %vm3491_vm7, %v16674_v14  ;;  %v8648_v10 = vmul.f32 1.442695, %v8633_v16  ;;  %v9074_v55 = vld [vmem:[%s17393_s14 + $0x8] sm:$0xff] }
0x2029   :  { %v8604_v51 = vpop.permute.xlu1 %8603  ;;  %12656 = vmatpush3.bf16.msra.mxu0 %v17443_v47  ;;  %v12691_v22 = vpack.c.bf16 %v9074_v55, %v9073_v11 }
0x202a   :  { %v8628_v49 = vsub.f32 %v8588_v5, %v8604_v51  ;;  %13387 = vpow2.f32 %v8636_v61  ;;  %12657 = vmatprep.subr.bf16.mxu0 %v17443_v47 }
0x202b   :  { %v16682_v33 = vpop.eup %13381 }
0x202c   :  { %v8638_v34 = vmul.f32 1.442695, %v8628_v49  ;;  %12270 = vmatmul.mubr.msk.f32.gmra.mrb[128].mxu0 %vm3491_vm7, %v16682_v33 }
0x202d   :  { %v8608_v63 = vpop.permute.xlu1 %8607  ;;  %12658 = vmatpush3.bf16.msra.mxu0 %v17443_v47 }
0x202e   :  { %13389 = vpow2.f32 %v8638_v34  ;;  %v8629_v62 = vsub.f32 %v8589_v42, %v8608_v63  ;;  %12692 = vmatprep.subr.bf16.mxu0 %v12691_v22 }
0x202f   :  { %v16690_v0 = vpop.eup %13383 }
0x2030   :  { %v13386_v39 = vpop.eup %13385  ;;  %v8640_v38 = vmul.f32 1.442695, %v8629_v62  ;;  %12272 = vmatprep.mubr.msk.f32.mxu0 %vm3491_vm7, %v16690_v0 }
0x2031   :  { %12273 = vmatmul.mubr.msk.f32.gmra.mrb[130].mxu0 %vm3491_vm7, %v13386_v39  ;;  %v8612_v19 = vpop.permute.xlu1 %8611 }
0x2032   :  { %13391 = vpow2.f32 %v8640_v38  ;;  %v8630_v20 = vsub.f32 %v8590_v36, %v8612_v19  ;;  %12291 = vmatprep.mubr.msk.f32.mxu0 %vm3491_vm7, %v13378_v53 }
0x2034   :  { %v8642_v30 = vmul.f32 1.442695, %v8630_v20  ;;  %v13388_v3 = vpop.eup %13387 }
0x2035   :  { %v8620_v18 = vpop.permute.xlu1 %8619  ;;  %12292 = vmatmul.mubr.msk.f32.vlgmr.msra.gmra.mrb[132].mxu0 %vm3491_vm7, %v13388_v3  ;;  %12320 = vmatmul.mubr.msk.f32.vlgmr.msra.gmra.mrb[96].mxu1 %vm3491_vm7, %v13388_v3 }
0x2036   :  { %13393 = vpow2.f32 %v8642_v30  ;;  %v8632_v50 = vsub.f32 %v8592_v21, %v8620_v18  ;;  %12678 = vmatpush3.bf16.msra.mxu1 %v16557_v58  ;;  %12694 = vmatpush3.bf16.msra.mxu0 %v12691_v22 }
0x2037   :  { %13395 = vpow2.f32 %v8644_v8  ;;  %12680 = vmatprep.subr.bf16.mxu1 %v16512_v15 }
0x2038   :  { %v13390_v32 = vpop.eup %13389  ;;  %v8646_v46 = vmul.f32 1.442695, %v8632_v50 }
0x2039   :  { %12294 = vmatprep.mubr.msk.f32.mxu0 %vm3491_vm7, %v13390_v32  ;;  %12322 = vmatprep.mubr.msk.f32.mxu1 %vm3491_vm7, %v13390_v32 }
0x203a   :  { %13397 = vpow2.f32 %v8646_v46  ;;  %12682 = vmatpush3.bf16.msra.mxu1 %v16512_v15 }
0x203b   :  { %13399 = vpow2.f32 %v8648_v10  ;;  %12684 = vmatprep.subr.bf16.mxu1 %v16528_v35 }
0x203c   :  { %v13392_v2 = vpop.eup %13391 }
0x203d   :  { %12295 = vmatmul.mubr.msk.f32.gmra.mrb[134].mxu0 %vm3491_vm7, %v13392_v2  ;;  %12323 = vmatmul.mubr.msk.f32.gmra.mrb[98].mxu1 %vm3491_vm7, %v13392_v2 }
0x203e   :  { %12686 = vmatpush3.bf16.msra.mxu1 %v16528_v35 }
0x203f   :  { %12688 = vmatprep.subr.bf16.mxu1 %v16539_v48 }
0x2040   :  { %v13394_v58 = vpop.eup %13393 }
0x2041   :  { %v13396_v23 = vpop.eup %13395  ;;  %12297 = vmatprep.mubr.msk.f32.mxu0 %vm3491_vm7, %v13394_v58  ;;  %12325 = vmatprep.mubr.msk.f32.mxu1 %vm3491_vm7, %v13394_v58 }
0x2042   :  { %12298 = vmatmul.mubr.msk.f32.gmra.mrb[136].mxu0 %vm3491_vm7, %v13396_v23  ;;  %12326 = vmatmul.mubr.msk.f32.gmra.mrb[100].mxu1 %vm3491_vm7, %v13396_v23 }
0x2043   :  { %12690 = vmatpush3.bf16.msra.mxu1 %v16539_v48 }
0x2044   :  { %v13398_v15 = vpop.eup %13397  ;;  %12701 = vmatprep.subr.bf16.mxu1 %v17443_v47 }
0x2045   :  { %v13400_v44 = vpop.eup %13399  ;;  %12300 = vmatprep.mubr.msk.f32.mxu0 %vm3491_vm7, %v13398_v15  ;;  %12328 = vmatprep.mubr.msk.f32.mxu1 %vm3491_vm7, %v13398_v15 }
0x2046   :  { %12301 = vmatmul.mubr.msk.f32.gmra.mrb[138].mxu0 %vm3491_vm7, %v13400_v44  ;;  %12329 = vmatmul.mubr.msk.f32.gmra.mrb[102].mxu1 %vm3491_vm7, %v13400_v44 }
0x2047   :  { %12347 = vmatprep.mubr.msk.f32.mxu1 %vm3491_vm7, %v16631_v6 }
0x204a   :  { %12348 = vmatmul.mubr.msk.f32.vlgmr.msra.gmra.mrb[96].mxu1 %vm3491_vm7, %v16650_v7 }
0x204b   :  { %12350 = vmatprep.mubr.msk.f32.mxu1 %vm3491_vm7, %v16652_v9  ;;  %12702 = vmatpush3.bf16.msra.mxu1 %v17443_v47 }
0x204c   :  { %12705 = vmatprep.subr.bf16.mxu1 %v17443_v47 }
0x204e   :  { %12351 = vmatmul.mubr.msk.f32.gmra.mrb[98].mxu1 %vm3491_vm7, %v16663_v52 }
0x204f   :  { %12353 = vmatprep.mubr.msk.f32.mxu1 %vm3491_vm7, %v16674_v14 }
0x2052   :  { %12354 = vmatmul.mubr.msk.f32.gmra.mrb[100].mxu1 %vm3491_vm7, %v16682_v33  ;;  %v9075_v33 = vld [vmem:[%s17393_s14 + $0x10] sm:$0xff] }
0x2053   :  { %12356 = vmatprep.mubr.msk.f32.mxu1 %vm3491_vm7, %v16690_v0  ;;  %v12695_v42 = vpack.c.bf16 %v9076_v29, %v9075_v33 }
0x2055   :  { %12696 = vmatprep.subr.bf16.mxu0 %v12695_v42 }
0x2056   :  { %12357 = vmatmul.mubr.msk.f32.gmra.mrb[102].mxu1 %vm3491_vm7, %v13386_v39  ;;  %12698 = vmatpush3.bf16.msra.mxu0 %v12695_v42 }
0x2057   :  { %12699 = vmatprep.subr.bf16.mxu0 %v17443_v47 }
0x20f3   :  { %v12265_v35 = vpop.f32.mrb[124].mxu0 }
0x20f4   :  { %13401 = vrcp.f32 %v12265_v35  ;;  %v8403_v48 = vpop.f32.mrb[125].mxu0 }
0x20f5   :  { %13403 = vrcp.f32 %v8403_v48 }
0x20f7   :  { %v12268_v6 = vpop.f32.mrb[126].mxu0 }
0x20f8   :  { %13405 = vrcp.f32 %v12268_v6  ;;  %v8413_v7 = vpop.f32.mrb[127].mxu0 }
0x20f9   :  { %13407 = vrcp.f32 %v8413_v7 }
0x20fe   :  { %v13402_v9 = vpop.eup %13401 }
0x20ff   :  { %v12271_v52 = vpop.f32.mrb[128].mxu0  ;;  %8469 = vperm.xlu1 %12747, %v13402_v9   ;;  %v13404_v1 = vpop.eup %13403 }
0x2100   :  { %v8423_v53 = vpop.f32.mrb[129].mxu0 }
0x2102   :  { %v13406_v17 = vpop.eup %13405 }
0x2103   :  { %8479 = vperm.xlu0 %12748, %v13406_v17   ;;  %8464 = vperm.xlu1 %12747, %v13404_v1   ;;  %v13408_v56 = vpop.eup %13407 }
0x2104   :  { %v12274_v60 = vpop.f32.mrb[130].mxu0 }
0x2105   :  { %v8433_v41 = vpop.f32.mrb[131].mxu0 }
0x2107   :  { %8474 = vperm.xlu0 %12748, %v13408_v56  }
0x2108   :  { %v12293_v43 = vpop.f32.mrb[132].mxu0 }
0x2109   :  { %13409 = vrcp.f32 %v12293_v43  ;;  %v8740_v14 = vpop.f32.mrb[133].mxu0 }
0x210a   :  { %13411 = vrcp.f32 %v8740_v14 }
0x210b   :  { %13413 = vrcp.f32 %v8423_v53 }
0x2110   :  { %v12296_v61 = vpop.f32.mrb[134].mxu0 }
0x2111   :  { %13415 = vrcp.f32 %v12296_v61  ;;  %v8750_v5 = vpop.f32.mrb[135].mxu0 }
0x2112   :  { %13417 = vrcp.f32 %v12271_v52 }
0x2113   :  { %v13410_v57 = vpop.eup %13409  ;;  %13419 = vrcp.f32 %v8750_v5 }
0x2114   :  { %v13412_v59 = vpop.eup %13411  ;;  %9016 = vperm.xlu1 %12747, %v13410_v57   ;;  %13421 = vrcp.f32 %v8433_v41 }
0x2115   :  { %v12299_v51 = vpop.f32.mrb[136].mxu0  ;;  %9011 = vperm.xlu0 %12748, %v13412_v59   ;;  %v13414_v31 = vpop.eup %13413 }
0x2116   :  { %v8760_v27 = vpop.f32.mrb[137].mxu0  ;;  %13423 = vrcp.f32 %v12299_v51 }
0x2117   :  { %13425 = vrcp.f32 %v12274_v60 }
0x2118   :  { %13427 = vrcp.f32 %v8760_v27 }
0x2119   :  { %v12302_v26 = vpop.f32.mrb[138].mxu0  ;;  %8484 = vperm.xlu0 %12748, %v13414_v31  }
0x211a   :  { %v8770_v49 = vpop.f32.mrb[139].mxu0 }
0x211b   :  { %v13416_v34 = vpop.eup %13415  ;;  %13429 = vrcp.f32 %v8770_v49 }
0x211c   :  { %9026 = vperm.xlu1 %12747, %v13416_v34   ;;  %v13418_v28 = vpop.eup %13417  ;;  %13431 = vrcp.f32 %v12302_v26 }
0x211d   :  { %v12349_v24 = vpop.f32.mrb[96].mxu1  ;;  %8489 = vperm.xlu0 %12748, %v13418_v28   ;;  %v13420_v45 = vpop.eup %13419 }
0x211e   :  { %v8962_v63 = vpop.f32.mrb[97].mxu1  ;;  %v13422_v62 = vpop.eup %13421 }
0x2120   :  { %9021 = vperm.xlu1 %12747, %v13420_v45   ;;  %v13424_v37 = vpop.eup %13423 }
0x2121   :  { %v12352_v0 = vpop.f32.mrb[98].mxu1  ;;  %8494 = vperm.xlu0 %12748, %v13422_v62   ;;  %v13426_v39 = vpop.eup %13425 }
0x2122   :  { %v8972_v54 = vpop.f32.mrb[99].mxu1  ;;  %v13428_v36 = vpop.eup %13427 }
0x2124   :  { %9036 = vperm.xlu1 %12747, %v13424_v37  }
0x2125   :  { %v12355_v12 = vpop.f32.mrb[100].mxu1  ;;  %8499 = vperm.xlu0 %12748, %v13426_v39   ;;  %v13430_v20 = vpop.eup %13429 }
0x2126   :  { %v8982_v38 = vpop.f32.mrb[101].mxu1  ;;  %v13432_v8 = vpop.eup %13431 }
0x2128   :  { %9031 = vperm.xlu1 %12747, %v13428_v36  }
0x2129   :  { %v12358_v19 = vpop.f32.mrb[102].mxu1 }
0x212a   :  { %v8992_v13 = vpop.f32.mrb[103].mxu1 }
0x212c   :  { %9041 = vperm.xlu1 %12747, %v13430_v20  }
0x2130   :  { %9046 = vperm.xlu1 %12747, %v13432_v8  }
0x217e   :  { %v8470_v16 = vpop.permute.xlu1 %8469 }
0x217f   :  { %v8503_v50 = vmul.f32 %v8470_v16, %v16500_v25 }
0x2182   :  { %v8480_v30 = vpop.permute.xlu0 %8479  ;;  %v8465_v21 = vpop.permute.xlu1 %8464 }
0x2183   :  { %v8502_v46 = vmul.f32 %v8465_v21, %v16500_v25  ;;  %v8505_v7 = vmul.f32 %v8480_v30, %v16500_v25 }
0x2186   :  { %v8475_v3 = vpop.permute.xlu0 %8474 }
0x2187   :  { %v8504_v52 = vmul.f32 %v8475_v3, %v16500_v25 }
0x2193   :  { %v9017_v18 = vpop.permute.xlu1 %9016 }
0x2194   :  { %v9050_v10 = vmul.f32 %v9017_v18, %v16521_v4  ;;  %v9012_v32 = vpop.permute.xlu0 %9011 }
0x2195   :  { %v9049_v2 = vmul.f32 %v9012_v32, %v16521_v4 }
0x2196   :  { %v9058_v58 = vadd.f32 %v9050_v10, %v8503_v50 }
0x2197   :  { %v9057_v23 = vadd.f32 %v9049_v2, %v8502_v46 }
0x2198   :  { %v9066_v44 = vmul.f32 %v12349_v24, %v9058_v58  ;;  %v8485_v35 = vpop.permute.xlu0 %8484 }
0x2199   :  { %v9065_v15 = vmul.f32 %v9057_v23, %v8962_v63  ;;  %v8506_v61 = vmul.f32 %v8485_v35, %v16500_v25 }
0x219b   :  { %v9027_v48 = vpop.permute.xlu1 %9026  ;;  %12367 = vmatprep.mubr.msk.f32.mxu0 %vm77_vm0, %v9065_v15 }
0x219c   :  { %v9052_v6 = vmul.f32 %v9027_v48, %v16521_v4  ;;  %12368 = vmatmul.mubr.msk.f32.vlgmr.msra.gmra.mrb[140].mxu0 %vm77_vm0, %v9066_v44  ;;  %v8490_v17 = vpop.permute.xlu0 %8489 }
0x219d   :  { %12700 = vmatpush3.bf16.msra.mxu0 %v17443_v47  ;;  %v8507_v55 = vmul.f32 %v8490_v17, %v16500_v25 }
0x219e   :  { %12703 = vmatprep.subr.bf16.mxu0 %v17443_v47  ;;  %v9060_v1 = vadd.f32 %v9052_v6, %v8505_v7 }
0x219f   :  { %v9022_v9 = vpop.permute.xlu1 %9021 }
0x21a0   :  { %v9051_v53 = vmul.f32 %v9022_v9, %v16521_v4  ;;  %v9068_v43 = vmul.f32 %v12352_v0, %v9060_v1  ;;  %v8495_v14 = vpop.permute.xlu0 %8494 }
0x21a1   :  { %v8508_v27 = vmul.f32 %v8495_v14, %v16500_v25 }
0x21a2   :  { %v9059_v60 = vadd.f32 %v9051_v53, %v8504_v52 }
0x21a3   :  { %v9037_v41 = vpop.permute.xlu1 %9036 }
0x21a4   :  { %v9067_v56 = vmul.f32 %v9059_v60, %v8972_v54  ;;  %v9054_v11 = vmul.f32 %v9037_v41, %v16521_v4  ;;  %v8500_v33 = vpop.permute.xlu0 %8499 }
0x21a5   :  { %v8509_v42 = vmul.f32 %v8500_v33, %v16500_v25 }
0x21a6   :  { %12370 = vmatprep.mubr.msk.f32.mxu0 %vm77_vm0, %v9067_v56  ;;  %v9062_v57 = vadd.f32 %v9054_v11, %v8507_v55 }
0x21a7   :  { %12371 = vmatmul.mubr.msk.f32.gmra.mrb[142].mxu0 %vm77_vm0, %v9068_v43  ;;  %v9032_v22 = vpop.permute.xlu1 %9031 }
0x21a8   :  { %v9053_v5 = vmul.f32 %v9032_v22, %v16521_v4  ;;  %v9070_v49 = vmul.f32 %v12355_v12, %v9062_v57 }
0x21aa   :  { %v9061_v59 = vadd.f32 %v9053_v5, %v8506_v61 }
0x21ab   :  { %v9042_v51 = vpop.permute.xlu1 %9041 }
0x21ac   :  { %v9069_v31 = vmul.f32 %v9061_v59, %v8982_v38  ;;  %v9055_v26 = vmul.f32 %v9042_v51, %v16521_v4 }
0x21ae   :  { %v9063_v29 = vadd.f32 %v9055_v26, %v8508_v27  ;;  %12373 = vmatprep.mubr.msk.f32.mxu0 %vm77_vm0, %v9069_v31 }
0x21af   :  { %12374 = vmatmul.mubr.msk.f32.gmra.mrb[144].mxu0 %vm77_vm0, %v9070_v49  ;;  %v9047_v34 = vpop.permute.xlu1 %9046 }
0x21b0   :  { %v9071_v28 = vmul.f32 %v9063_v29, %v8992_v13  ;;  %v9056_v24 = vmul.f32 %v9047_v34, %v16521_v4 }
0x21b2   :  { %v9064_v63 = vadd.f32 %v9056_v24, %v8509_v42  ;;  %12376 = vmatprep.mubr.msk.f32.mxu0 %vm77_vm0, %v9071_v28 }
0x21b4   :  { %v9072_v45 = vmul.f32 %v12358_v19, %v9064_v63 }
0x21b6   :  { %12377 = vmatmul.mubr.msk.f32.gmra.mrb[146].mxu0 %vm77_vm0, %v9072_v45 }
0x226f   :  { %v16777_v62 = vpop.f32.mrb[140].mxu0 }
0x2270   :  { %v16779_v0 = vpop.f32.mrb[141].mxu0  ;;  %v9207_v37 = vmul.f32 %v16777_v62, %v16777_v62 }
0x2271   :  { %v9206_v54 = vmul.f32 %v16779_v0, %v16779_v0 }
0x2273   :  { %12383 = vmatprep.mubr.msk.f32.mxu0 %vm215_vm1, %v9206_v54 }
0x2274   :  { %12384 = vmatmul.mubr.msk.f32.vlgmr.msra.gmra.mrb[148].mxu0 %vm215_vm1, %v9207_v37 }
0x2275   :  { %12704 = vmatpush3.bf16.msra.mxu0 %v17443_v47 }
0x227a   :  { %v16788_v25 = vpop.f32.mrb[142].mxu0 }
0x227b   :  { %v16790_v4 = vpop.f32.mrb[143].mxu0  ;;  %v9209_v12 = vmul.f32 %v16788_v25, %v16788_v25 }
0x227c   :  { %v9208_v39 = vmul.f32 %v16790_v4, %v16790_v4 }
0x227e   :  { %12386 = vmatprep.mubr.msk.f32.mxu0 %vm215_vm1, %v9208_v39 }
0x227f   :  { %12387 = vmatmul.mubr.msk.f32.gmra.mrb[150].mxu0 %vm215_vm1, %v9209_v12 }
0x2282   :  { %v16798_v38 = vpop.f32.mrb[144].mxu0 }
0x2283   :  { %v16800_v36 = vpop.f32.mrb[145].mxu0  ;;  %v9211_v13 = vmul.f32 %v16798_v38, %v16798_v38 }
0x2284   :  { %v9210_v19 = vmul.f32 %v16800_v36, %v16800_v36 }
0x2286   :  { %12389 = vmatprep.mubr.msk.f32.mxu0 %vm215_vm1, %v9210_v19 }
0x2287   :  { %12390 = vmatmul.mubr.msk.f32.gmra.mrb[152].mxu0 %vm215_vm1, %v9211_v13 }
0x2289   :  { %v16808_v20 = vpop.f32.mrb[146].mxu0 }
0x228a   :  { %v16810_v8 = vpop.f32.mrb[147].mxu0  ;;  %v9213_v30 = vmul.f32 %v16808_v20, %v16808_v20 }
0x228b   :  { %v9212_v16 = vmul.f32 %v16810_v8, %v16810_v8 }
0x228d   :  { %12392 = vmatprep.mubr.msk.f32.mxu0 %vm215_vm1, %v9212_v16 }
0x228e   :  { %12393 = vmatmul.mubr.msk.f32.gmra.mrb[154].mxu0 %vm215_vm1, %v9213_v30 }
0x2347   :  { %v12385_v21 = vpop.f32.mrb[148].mxu0 }
0x2348   :  { %v9344_v3 = vmax.f32 %v12385_v21, 1e-30  ;;  %v9304_v18 = vpop.f32.mrb[149].mxu0 }
0x2349   :  { %v9343_v50 = vmax.f32 %v9304_v18, 1e-30 }
0x234a   :  { %13433 = vrsqrt.f32 %v9344_v3 }
0x234b   :  { %13435 = vrsqrt.f32 %v9343_v50 }
0x2352   :  { %v12388_v10 = vpop.f32.mrb[150].mxu0 }
0x2353   :  { %v9346_v32 = vmax.f32 %v12388_v10, 1e-30  ;;  %v9314_v46 = vpop.f32.mrb[151].mxu0 }
0x2354   :  { %v9345_v2 = vmax.f32 %v9314_v46, 1e-30  ;;  %v13434_v58 = vpop.eup %13433 }
0x2355   :  { %13437 = vrsqrt.f32 %v9346_v32  ;;  %v13436_v23 = vpop.eup %13435  ;;  %v9360_v15 = vmul.f32 %v13434_v58, %v12385_v21 }
0x2356   :  { %13439 = vrsqrt.f32 %v9345_v2  ;;  %v9359_v44 = vmul.f32 %v13436_v23, %v9304_v18 }
0x2357   :  { %13441 = vtanh.f32 %v9360_v15 }
0x2358   :  { %13443 = vtanh.f32 %v9359_v44 }
0x235a   :  { %v12391_v35 = vpop.f32.mrb[152].mxu0 }
0x235b   :  { %v9348_v48 = vmax.f32 %v12391_v35, 1e-30  ;;  %v9324_v6 = vpop.f32.mrb[153].mxu0 }
0x235c   :  { %v9347_v7 = vmax.f32 %v9324_v6, 1e-30 }
0x235d   :  { %13445 = vrsqrt.f32 %v9348_v48 }
0x235e   :  { %13447 = vrsqrt.f32 %v9347_v7 }
0x235f   :  { %v13438_v9 = vpop.eup %13437 }
0x2360   :  { %v13440_v52 = vpop.eup %13439  ;;  %v9362_v53 = vmul.f32 %v13438_v9, %v12388_v10 }
0x2361   :  { %v9361_v1 = vmul.f32 %v13440_v52, %v9314_v46  ;;  %v12394_v17 = vpop.f32.mrb[154].mxu0  ;;  %v13442_v60 = vpop.eup %13441 }
0x2362   :  { %13449 = vtanh.f32 %v9362_v53  ;;  %v9350_v41 = vmax.f32 %v12394_v17, 1e-30  ;;  %v9334_v56 = vpop.f32.mrb[155].mxu0  ;;  %v13444_v43 = vpop.eup %13443  ;;  %v9376_v55 = vmul.f32 %v13442_v60, %v13434_v58  ;;  %v9432_v14 = vmax.f32 %v13442_v60, 1e-15 }
0x2363   :  { %13451 = vtanh.f32 %v9361_v1  ;;  %v9349_v11 = vmax.f32 %v9334_v56, 1e-30  ;;  %v9375_v22 = vmul.f32 %v13444_v43, %v13436_v23  ;;  %v9431_v61 = vmax.f32 %v13444_v43, 1e-15 }
0x2364   :  { %13453 = vrsqrt.f32 %v9350_v41  ;;  %9390 = vperm.xlu1 %12747, %v9376_v55   ;;  %vm9440_vm0 = vcmp.gt.f32.partialorder %v9432_v14, 0.996 }
0x2365   :  { %13455 = vrsqrt.f32 %v9349_v11  ;;  %9385 = vperm.xlu0 %12748, %v9375_v22   ;;  %v9512_v27 = vsel %vm9440_vm0, 1, %v17440_v40  ;;  %vm9439_vm7 = vcmp.gt.f32.partialorder %v9431_v61, 0.996 }
0x2366   :  { %v9511_v49 = vsel %vm9439_vm7, 1, %v17440_v40 }
0x2367   :  { %v13446_v5 = vpop.eup %13445 }
0x2368   :  { %v13448_v57 = vpop.eup %13447  ;;  %v9364_v59 = vmul.f32 %v13446_v5, %v12391_v35 }
0x2369   :  { %v9363_v51 = vmul.f32 %v13448_v57, %v9324_v6  ;;  %9523 = vperm.xlu0 %12748, %v9512_v27  }
0x236a   :  { %13457 = vtanh.f32 %v9364_v59 }
0x236b   :  { %13459 = vtanh.f32 %v9363_v51 }
0x236c   :  { %v13450_v31 = vpop.eup %13449 }
0x236d   :  { %v13452_v26 = vpop.eup %13451  ;;  %v9378_v33 = vmul.f32 %v13450_v31, %v13438_v9  ;;  %v9434_v29 = vmax.f32 %v13450_v31, 1e-15  ;;  %9520 = vperm.xlu0 %12748, %v9511_v49  }
0x236e   :  { %v13454_v34 = vpop.eup %13453  ;;  %v9433_v42 = vmax.f32 %v13452_v26, 1e-15  ;;  %v9377_v54 = vmul.f32 %v13452_v26, %v13440_v52 }
0x236f   :  { %v13456_v28 = vpop.eup %13455  ;;  %v9366_v24 = vmul.f32 %v13454_v34, %v12394_v17  ;;  %9400 = vperm.xlu1 %12747, %v9378_v33   ;;  %vm9442_vm2 = vcmp.gt.f32.partialorder %v9434_v29, 0.996 }
0x2370   :  { %v9365_v63 = vmul.f32 %v13456_v28, %v9334_v56  ;;  %v9514_v45 = vsel %vm9442_vm2, 1, %v17440_v40  ;;  %vm9441_vm3 = vcmp.gt.f32.partialorder %v9433_v42, 0.996 }
0x2371   :  { %13461 = vtanh.f32 %v9366_v24  ;;  %9529 = vperm.xlu0 %12748, %v9514_v45   ;;  %v9513_v12 = vsel %vm9441_vm3, 1, %v17440_v40 }
0x2372   :  { %13463 = vtanh.f32 %v9365_v63 }
0x2373   :  { %13465 = vrcp.f32 %v9431_v61  ;;  %9395 = vperm.xlu1 %12747, %v9377_v54  }
0x2374   :  { %v13458_v37 = vpop.eup %13457  ;;  %13467 = vrcp.f32 %v9432_v14 }
0x2375   :  { %v13460_v39 = vpop.eup %13459  ;;  %v9380_v19 = vmul.f32 %v13458_v37, %v13446_v5  ;;  %v9436_v13 = vmax.f32 %v13458_v37, 1e-15  ;;  %9526 = vperm.xlu0 %12748, %v9513_v12   ;;  %13469 = vrcp.f32 %v9433_v42 }
0x2376   :  { %v9435_v16 = vmax.f32 %v13460_v39, 1e-15  ;;  %v9379_v21 = vmul.f32 %v13460_v39, %v13448_v57 }
0x2377   :  { %9410 = vperm.xlu1 %12747, %v9380_v19   ;;  %vm9444_vm11 = vcmp.gt.f32.partialorder %v9436_v13, 0.996 }
0x2378   :  { %v9516_v30 = vsel %vm9444_vm11, 1, %v17440_v40  ;;  %vm9443_vm12 = vcmp.gt.f32.partialorder %v9435_v16, 0.996  ;;  %13471 = vrcp.f32 %v9435_v16 }
0x2379   :  { %9535 = vperm.xlu0 %12748, %v9516_v30   ;;  %13473 = vrcp.f32 %v9434_v29  ;;  %v9515_v32 = vsel %vm9443_vm12, 1, %v17440_v40 }
0x237b   :  { %v13462_v3 = vpop.eup %13461  ;;  %9405 = vperm.xlu1 %12747, %v9379_v21  }
0x237c   :  { %v13464_v18 = vpop.eup %13463  ;;  %v9382_v50 = vmul.f32 %v13462_v3, %v13454_v34  ;;  %v9438_v23 = vmax.f32 %v13462_v3, 1e-15 }
0x237d   :  { %v13466_v10 = vpop.eup %13465  ;;  %v9437_v46 = vmax.f32 %v13464_v18, 1e-15  ;;  %9532 = vperm.xlu0 %12748, %v9515_v32   ;;  %v9381_v6 = vmul.f32 %v13464_v18, %v13456_v28 }
0x237e   :  { %v13468_v2 = vpop.eup %13467  ;;  %v9448_v58 = vmul.f32 0.996, %v13466_v10  ;;  %vm9446_vm4 = vcmp.gt.f32.partialorder %v9438_v23, 0.996 }
0x237f   :  { %9420 = vperm.xlu1 %12747, %v9382_v50   ;;  %13475 = vrcp.f32 %v9437_v46  ;;  %v13470_v15 = vpop.eup %13469  ;;  %v9450_v44 = vmul.f32 0.996, %v13468_v2  ;;  %vm9445_vm13 = vcmp.gt.f32.partialorder %v9437_v46, 0.996  ;;  %v9518_v11 = vsel %vm9446_vm4, 1, %v17440_v40 }
0x2380   :  { %13477 = vrcp.f32 %v9436_v13  ;;  %v9452_v35 = vmul.f32 0.996, %v13470_v15  ;;  %v9517_v56 = vsel %vm9445_vm13, 1, %v17440_v40 }
0x2381   :  { %9465 = vperm.xlu0 %12748, %v9448_v58   ;;  %13479 = vrcp.f32 %v9438_v23 }
0x2382   :  { %v13472_v48 = vpop.eup %13471 }
0x2383   :  { %9470 = vperm.xlu1 %12747, %v9450_v44   ;;  %v13474_v7 = vpop.eup %13473  ;;  %v9456_v9 = vmul.f32 0.996, %v13472_v48 }
0x2384   :  { %v9454_v53 = vmul.f32 0.996, %v13474_v7 }
0x2385   :  { %9475 = vperm.xlu0 %12748, %v9452_v35  }
0x2387   :  { %9415 = vperm.xlu1 %12747, %v9381_v6  }
0x2389   :  { %v13476_v52 = vpop.eup %13475  ;;  %9485 = vperm.xlu0 %12748, %v9456_v9  }
0x238a   :  { %v13478_v1 = vpop.eup %13477  ;;  %v9460_v17 = vmul.f32 0.996, %v13476_v52 }
0x238b   :  { %9480 = vperm.xlu1 %12747, %v9454_v53   ;;  %v9458_v60 = vmul.f32 0.996, %v13478_v1  ;;  %v13480_v41 = vpop.eup %13479 }
0x238c   :  { %v9462_v43 = vmul.f32 0.996, %v13480_v41 }
0x238d   :  { %9495 = vperm.xlu0 %12748, %v9460_v17  }
0x238f   :  { %9490 = vperm.xlu1 %12747, %v9458_v60  }
0x2391   :  { %9538 = vperm.xlu0 %12748, %v9517_v56  }
0x2393   :  { %9500 = vperm.xlu1 %12747, %v9462_v43  }
0x2397   :  { %9541 = vperm.xlu1 %12747, %v9518_v11  }
0x23e3   :  { %v9391_v22 = vpop.permute.xlu1 %9390 }
0x23e4   :  { %v9386_v55 = vpop.permute.xlu0 %9385  ;;  %v9424_v34 = vmul.f32 %v16777_v62, %v9391_v22 }
0x23e5   :  { %v9423_v29 = vmul.f32 %v9386_v55, %v16779_v0 }
0x23e8   :  { %v9524_v14 = vpop.permute.xlu0 %9523 }
0x23e9   :  { %vm9544_vm8 = vcmp.eq.s32.totalorder %v9524_v14, 1 }
0x23ec   :  { %v9521_v61 = vpop.permute.xlu0 %9520 }
0x23ed   :  { %vm9543_vm5 = vcmp.eq.s32.totalorder %v9521_v61, 1 }
0x23ee   :  { %v9401_v5 = vpop.permute.xlu1 %9400 }
0x23f0   :  { %v9530_v57 = vpop.permute.xlu0 %9529 }
0x23f1   :  { %vm9546_vm10 = vcmp.eq.s32.totalorder %v9530_v57, 1 }
0x23f2   :  { %v9396_v59 = vpop.permute.xlu1 %9395 }
0x23f3   :  { %v9425_v45 = vmul.f32 %v9396_v59, %v16790_v4  ;;  %v9426_v4 = vmul.f32 %v16788_v25, %v9401_v5 }
0x23f4   :  { %v9527_v51 = vpop.permute.xlu0 %9526 }
0x23f5   :  { %vm9545_vm9 = vcmp.eq.s32.totalorder %v9527_v51, 1 }
0x23f6   :  { %v9411_v27 = vpop.permute.xlu1 %9410 }
0x23f7   :  { %v9428_v10 = vmul.f32 %v16798_v38, %v9411_v27 }
0x23f8   :  { %v9536_v31 = vpop.permute.xlu0 %9535 }
0x23f9   :  { %vm9548_vm14 = vcmp.eq.s32.totalorder %v9536_v31, 1 }
0x23fa   :  { %v9406_v26 = vpop.permute.xlu1 %9405 }
0x23fb   :  { %v9427_v13 = vmul.f32 %v9406_v26, %v16800_v36 }
0x23fc   :  { %v9533_v49 = vpop.permute.xlu0 %9532 }
0x23fd   :  { %vm9547_vm6 = vcmp.eq.s32.totalorder %v9533_v49, 1 }
0x23fe   :  { %v9421_v33 = vpop.permute.xlu1 %9420 }
0x2400   :  { %v9466_v42 = vpop.permute.xlu0 %9465 }
0x2401   :  { %v9503_v28 = vmul.f32 %v9466_v42, %v9423_v29 }
0x2402   :  { %v9471_v24 = vpop.permute.xlu1 %9470 }
0x2403   :  { %v9504_v63 = vmul.f32 %v9471_v24, %v9424_v34  ;;  %v16829_v54 = vsel %vm9543_vm5, %v9503_v28, %v9423_v29 }
0x2404   :  { %v9559_v37 = vmul.f32 %v16829_v54, %v16829_v54  ;;  %v9476_v12 = vpop.permute.xlu0 %9475 }
0x2405   :  { %v16833_v39 = vsel %vm9544_vm8, %v9504_v63, %v9424_v34  ;;  %v9505_v62 = vmul.f32 %v9476_v12, %v9425_v45 }
0x2406   :  { %v9560_v0 = vmul.f32 %v16833_v39, %v16833_v39  ;;  %v9416_v19 = vpop.permute.xlu1 %9415  ;;  %12399 = vmatprep.mubr.msk.f32.mxu1 %vm215_vm1, %v9559_v37 }
0x2407   :  { %v16839_v16 = vsel %vm9545_vm9, %v9505_v62, %v9425_v45 }
0x2408   :  { %12400 = vmatmul.mubr.msk.f32.vlgmr.msra.gmra.mrb[104].mxu1 %vm215_vm1, %v9560_v0  ;;  %v9561_v30 = vmul.f32 %v16839_v16, %v16839_v16  ;;  %v9486_v21 = vpop.permute.xlu0 %9485 }
0x2409   :  { %12706 = vmatpush3.bf16.msra.mxu1 %v17443_v47  ;;  %v9507_v3 = vmul.f32 %v9486_v21, %v9427_v13  ;;  %v9429_v47 = vmul.f32 %v9416_v19, %v16810_v8  ;;  %v9430_v8 = vmul.f32 %v16808_v20, %v9421_v33 }
0x240a   :  { %v9481_v18 = vpop.permute.xlu1 %9480  ;;  %12402 = vmatprep.mubr.msk.f32.mxu1 %vm215_vm1, %v9561_v30 }
0x240b   :  { %v9506_v50 = vmul.f32 %v9481_v18, %v9426_v4  ;;  %v16847_v36 = vsel %vm9547_vm6, %v9507_v3, %v9427_v13 }
0x240c   :  { %v9496_v25 = vpop.permute.xlu0 %9495  ;;  %v9563_v58 = vmul.f32 %v16847_v36, %v16847_v36 }
0x240d   :  { %v16850_v32 = vsel %vm9546_vm10, %v9506_v50, %v9426_v4  ;;  %v9509_v15 = vmul.f32 %v9496_v25, %v9429_v47 }
0x240e   :  { %v9562_v46 = vmul.f32 %v16850_v32, %v16850_v32  ;;  %v9491_v2 = vpop.permute.xlu1 %9490 }
0x240f   :  { %v9508_v23 = vmul.f32 %v9491_v2, %v9428_v10 }
0x2410   :  { %12403 = vmatmul.mubr.msk.f32.gmra.mrb[106].mxu1 %vm215_vm1, %v9562_v46  ;;  %v9539_v38 = vpop.permute.xlu0 %9538 }
0x2411   :  { %v16858_v44 = vsel %vm9548_vm14, %v9508_v23, %v9428_v10  ;;  %12405 = vmatprep.mubr.msk.f32.mxu1 %vm215_vm1, %v9563_v58  ;;  %vm9549_vm15 = vcmp.eq.s32.totalorder %v9539_v38, 1 }
0x2412   :  { %v9564_v35 = vmul.f32 %v16858_v44, %v16858_v44  ;;  %v9501_v48 = vpop.permute.xlu1 %9500  ;;  %v16863_v6 = vsel %vm9549_vm15, %v9509_v15, %v9429_v47 }
0x2413   :  { %v9565_v7 = vmul.f32 %v16863_v6, %v16863_v6  ;;  %v9510_v9 = vmul.f32 %v9501_v48, %v9430_v8 }
0x2414   :  { %12406 = vmatmul.mubr.msk.f32.gmra.mrb[108].mxu1 %vm215_vm1, %v9564_v35 }
0x2415   :  { %12408 = vmatprep.mubr.msk.f32.mxu1 %vm215_vm1, %v9565_v7 }
0x2416   :  { %v9542_v52 = vpop.permute.xlu1 %9541 }
0x2417   :  { %vm9550_vm0 = vcmp.eq.s32.totalorder %v9542_v52, 1 }
0x2418   :  { %v16870_v53 = vsel %vm9550_vm0, %v9510_v9, %v9430_v8 }
0x2419   :  { %v9566_v1 = vmul.f32 %v16870_v53, %v16870_v53 }
0x241b   :  { %12409 = vmatmul.mubr.msk.f32.gmra.mrb[110].mxu1 %vm215_vm1, %v9566_v1 }
0x24db   :  { %v12401_v17 = vpop.f32.mrb[104].mxu1 }
0x24dc   :  { %v9697_v60 = vmax.f32 %v12401_v17, 1e-30  ;;  %v9657_v20 = vpop.f32.mrb[105].mxu1 }
0x24dd   :  { %v9696_v41 = vmax.f32 %v9657_v20, 1e-30 }
0x24de   :  { %13481 = vrsqrt.f32 %v9697_v60 }
0x24df   :  { %13483 = vrsqrt.f32 %v9696_v41 }
0x24e3   :  { %v12404_v56 = vpop.f32.mrb[106].mxu1 }
0x24e4   :  { %v9699_v43 = vmax.f32 %v12404_v56, 1e-30  ;;  %v9667_v11 = vpop.f32.mrb[107].mxu1 }
0x24e5   :  { %v9698_v55 = vmax.f32 %v9667_v11, 1e-30 }
0x24e6   :  { %13485 = vrsqrt.f32 %v9699_v43 }
0x24e7   :  { %13487 = vrsqrt.f32 %v9698_v55  ;;  %v12407_v14 = vpop.f32.mrb[108].mxu1 }
0x24e8   :  { %v16875_v22 = vpop.eup %13481  ;;  %v9701_v61 = vmax.f32 %v12407_v14, 1e-30  ;;  %v9677_v5 = vpop.f32.mrb[109].mxu1 }
0x24e9   :  { %v16877_v57 = vpop.eup %13483  ;;  %v9713_v59 = vmul.f32 %v16875_v22, %v12401_v17  ;;  %v9700_v51 = vmax.f32 %v9677_v5, 1e-30 }
0x24ea   :  { %v9712_v27 = vmul.f32 %v16877_v57, %v9657_v20  ;;  %13489 = vrsqrt.f32 %v9701_v61 }
0x24eb   :  { %v11086_v31 = vclamps-f32 %v9713_v59, 0.9999999  ;;  %13491 = vrsqrt.f32 %v9700_v51 }
0x24ec   :  { %v11085_v33 = vclamps-f32 %v9712_v27, 0.9999999 }
0x24ed   :  { %v9745_v26 = vadd.f32 1.0, %v11086_v31  ;;  %v9809_v49 = vsub.f32 0.0, %v11086_v31  ;;  %v9748_v19 = vmul.f32 -0.5, %v11086_v31  ;;  %v9751_v2 = vand.u32 2147483647, %v11086_v31 }
0x24ee   :  { %v12410_v29 = vpop.f32.mrb[110].mxu1  ;;  %v9736_v12 = vadd.f32 1.0, %v11085_v33  ;;  %v9739_v13 = vmul.f32 -0.5, %v11085_v33  ;;  %v16893_v21 = vsub.f32 0.0, %v11085_v33  ;;  %v9742_v48 = vand.u32 2147483647, %v11085_v33 }
0x24ef   :  { %13493 = vlog2.f32 %v9745_v26  ;;  %v9703_v34 = vmax.f32 %v12410_v29, 1e-30  ;;  %v9687_v42 = vpop.f32.mrb[111].mxu1  ;;  %v9825_v63 = vadd.f32 1.0, %v9809_v49  ;;  %v9828_v18 = vmul.f32 -0.5, %v9809_v49 }
0x24f0   :  { %v16881_v28 = vpop.eup %13485  ;;  %v9702_v24 = vmax.f32 %v9687_v42, 1e-30  ;;  %v9749_v25 = vadd.f32 1.0, %v9748_v19  ;;  %v9740_v46 = vadd.f32 1.0, %v9739_v13  ;;  %v9831_v15 = vand.u32 2147483647, %v9809_v49 }
0x24f1   :  { %v16883_v45 = vpop.eup %13487  ;;  %v9715_v37 = vmul.f32 %v16881_v28, %v12404_v56  ;;  %13495 = vrsqrt.f32 %v9703_v34  ;;  %v9829_v35 = vadd.f32 1.0, %v9828_v18  ;;  %v9816_v8 = vadd.f32 1.0, %v16893_v21 }
0x24f2   :  { %v9714_v0 = vmul.f32 %v16883_v45, %v9667_v11  ;;  %13497 = vlog2.f32 %v9825_v63  ;;  %v9750_v17 = vmul.f32 %v11086_v31, %v9749_v25  ;;  %v16910_v60 = vmul.f32 %v11085_v33, %v9740_v46 }
0x24f3   :  { %13499 = vrsqrt.f32 %v9702_v24  ;;  %v16891_v30 = vclamps-f32 %v9715_v37, 0.9999999  ;;  %vm16912_vm7 = vcmp.lt.f32.partialorder %v9751_v2, 0.0004427343  ;;  %vm16916_vm2 = vcmp.lt.f32.partialorder %v9831_v15, 0.0004427343 }
0x24f4   :  { %v16887_v62 = vpop.eup %13489  ;;  %13501 = vlog2.f32 %v9736_v12  ;;  %v16896_v50 = vclamps-f32 %v9714_v0, 0.9999999  ;;  %v9819_v55 = vmul.f32 -0.5, %v16893_v21  ;;  %v9830_v59 = vmul.f32 %v9829_v35, %v9809_v49 }
0x24f5   :  { %v16889_v4 = vpop.eup %13491  ;;  %v9717_v3 = vmul.f32 %v16887_v62, %v12407_v14  ;;  %v9763_v58 = vadd.f32 1.0, %v16891_v30  ;;  %v9766_v23 = vmul.f32 -0.5, %v16891_v30  ;;  %vm16924_vm3 = vcmp.lt.f32.partialorder %v9742_v48, 0.0004427343 }
0x24f6   :  { %v9716_v10 = vmul.f32 %v16889_v4, %v9677_v5  ;;  %v9754_v7 = vadd.f32 1.0, %v16896_v50  ;;  %v9757_v9 = vmul.f32 -0.5, %v16896_v50  ;;  %v16929_v27 = vsub.f32 0.0, %v16891_v30 }
0x24f7   :  { %v16901_v38 = vclamps-f32 %v9717_v3, 0.9999999  ;;  %13503 = vlog2.f32 %v9763_v58  ;;  %v9767_v43 = vadd.f32 1.0, %v9766_v23  ;;  %v9820_v19 = vadd.f32 1.0, %v9819_v55 }
0x24f8   :  { %v16906_v52 = vclamps-f32 %v9716_v10, 0.9999999  ;;  %13505 = vlog2.f32 %v9816_v8  ;;  %v9758_v31 = vadd.f32 1.0, %v9757_v9  ;;  %v16944_v3 = vsub.f32 0.0, %v16896_v50 }
0x24f9   :  { %v13494_v47 = vpop.eup %13493  ;;  %v9784_v61 = vmul.f32 -0.5, %v16901_v38  ;;  %13507 = vlog2.f32 %v9754_v7  ;;  %v9781_v34 = vadd.f32 1.0, %v16901_v38  ;;  %v16941_v13 = vmul.f32 %v16891_v30, %v9767_v43 }
0x24fa   :  { %v9747_v20 = vmul.f32 0.6931472, %v13494_v47  ;;  %v9775_v26 = vmul.f32 -0.5, %v16906_v52  ;;  %v9772_v37 = vadd.f32 1.0, %v16906_v52  ;;  %v16950_v10 = vmul.f32 %v16896_v50, %v9758_v31 }
0x24fb   :  { %v16908_v1 = vpop.eup %13495  ;;  %v9785_v18 = vadd.f32 1.0, %v9784_v61  ;;  %13509 = vlog2.f32 %v9781_v34  ;;  %v9843_v58 = vadd.f32 1.0, %v16929_v27  ;;  %v9821_v35 = vmul.f32 %v9820_v19, %v16893_v21 }
0x24fc   :  { %v13498_v56 = vpop.eup %13497  ;;  %v9719_v24 = vmul.f32 %v16908_v1, %v12410_v29  ;;  %v9753_v49 = vsel %vm16912_vm7, %v9750_v17, %v9747_v20  ;;  %v16947_v29 = vsub.f32 0.0, %v16901_v38  ;;  %v9776_v25 = vadd.f32 1.0, %v9775_v26 }
0x24fd   :  { %v16921_v14 = vpop.eup %13499  ;;  %v9827_v5 = vmul.f32 0.6931472, %v13498_v56  ;;  %13511 = vlog2.f32 %v9772_v37  ;;  %v16963_v48 = vmul.f32 %v16901_v38, %v9785_v18  ;;  %v9822_v8 = vand.u32 2147483647, %v16893_v21 }
0x24fe   :  { %v13502_v33 = vpop.eup %13501  ;;  %v9718_v12 = vmul.f32 %v16921_v14, %v9687_v42  ;;  %v16953_v42 = vsub.f32 0.0, %v16906_v52  ;;  %v16955_v47 = vclamps-f32 %v9719_v24, 0.9999999  ;;  %13513 = vlog2.f32 %v9843_v58 }
0x24ff   :  { %v9833_v63 = vsel %vm16916_vm2, %v9830_v59, %v9827_v5  ;;  %v9738_v2 = vmul.f32 0.6931472, %v13502_v33  ;;  %v9834_v7 = vadd.f32 1.0, %v16944_v3  ;;  %v16968_v17 = vmul.f32 %v16906_v52, %v9776_v25 }
0x2500   :  { %v9889_v0 = vsub.f32 %v9753_v49, %v9833_v63  ;;  %v16958_v23 = vclamps-f32 %v9718_v12, 0.9999999  ;;  %v9861_v41 = vadd.f32 1.0, %v16947_v29  ;;  %v9799_v43 = vadd.f32 1.0, %v16955_v47 }
0x2501   :  { %v13504_v9 = vpop.eup %13503  ;;  %v9744_v20 = vsel %vm16924_vm3, %v16910_v60, %v9738_v2  ;;  %v9802_v21 = vmul.f32 -0.5, %v16955_v47  ;;  %v16978_v11 = vsub.f32 0.0, %v16955_v47  ;;  %13515 = vlog2.f32 %v9834_v7 }
0x2502   :  { %v9897_v46 = vmul.f32 0.5, %v9889_v0  ;;  %v13506_v56 = vpop.eup %13505  ;;  %v9790_v61 = vadd.f32 1.0, %v16958_v23  ;;  %v16982_v5 = vmul.f32 -0.5, %v16958_v23  ;;  %v16986_v59 = vsub.f32 0.0, %v16958_v23 }
0x2503   :  { %v13508_v55 = vpop.eup %13507  ;;  %v9818_v60 = vmul.f32 0.6931472, %v13506_v56  ;;  %vm9823_vm11 = vcmp.lt.f32.partialorder %v9822_v8, 0.0004427343  ;;  %v9765_v51 = vmul.f32 0.6931472, %v13504_v9  ;;  %13517 = vlog2.f32 %v9861_v41 }
0x2504   :  { %v9905_v15 = vmul.f32 %v16875_v22, %v9897_v46  ;;  %v9769_v22 = vand.u32 2147483647, %v16891_v30  ;;  %v9846_v30 = vmul.f32 -0.5, %v16929_v27  ;;  %v9849_v26 = vand.u32 2147483647, %v16929_v27 }
0x2505   :  { %v9824_v31 = vsel %vm9823_vm11, %v9821_v35, %v9818_v60  ;;  %v9760_v33 = vand.u32 2147483647, %v16896_v50  ;;  %v9837_v34 = vmul.f32 -0.5, %v16944_v3  ;;  %13519 = vlog2.f32 %v9799_v43  ;;  %v13510_v19 = vpop.eup %13509 }
0x2506   :  { %9919 = vperm.xlu1 %12747, %v9905_v15   ;;  %v16991_v24 = vadd.f32 1.0, %v9802_v21  ;;  %v9888_v49 = vsub.f32 %v9744_v20, %v9824_v31  ;;  %v9864_v63 = vmul.f32 -0.5, %v16947_v29  ;;  %13521 = vlog2.f32 %v9790_v61 }
0x2507   :  { %vm16994_vm12 = vcmp.lt.f32.partialorder %v9769_v22, 0.0004427343  ;;  %v9847_v12 = vadd.f32 1.0, %v9846_v30  ;;  %v9852_v0 = vadd.f32 1.0, %v16953_v42  ;;  %v9756_v25 = vmul.f32 0.6931472, %v13508_v55  ;;  %v13512_v2 = vpop.eup %13511 }
0x2508   :  { %v9896_v18 = vmul.f32 0.5, %v9888_v49  ;;  %v9771_v50 = vsel %vm16994_vm12, %v16941_v13, %v9765_v51  ;;  %v9840_v46 = vand.u32 2147483647, %v16944_v3  ;;  %vm17003_vm13 = vcmp.lt.f32.partialorder %v9849_v26, 0.0004427343  ;;  %v13514_v8 = vpop.eup %13513 }
0x2509   :  { %vm17007_vm4 = vcmp.lt.f32.partialorder %v9760_v33, 0.0004427343  ;;  %v9838_v35 = vadd.f32 1.0, %v9837_v34  ;;  %13523 = vlog2.f32 %v9852_v0  ;;  %v9787_v9 = vand.u32 2147483647, %v16901_v38 }
0x250a   :  { %v9904_v7 = vmul.f32 %v16877_v57, %v9896_v18  ;;  %v9865_v13 = vadd.f32 1.0, %v9864_v63  ;;  %v9879_v20 = vadd.f32 1.0, %v16978_v11  ;;  %v9845_v22 = vmul.f32 0.6931472, %v13514_v8 }
0x250b   :  { %v9848_v41 = vmul.f32 %v9847_v12, %v16929_v27  ;;  %v9783_v56 = vmul.f32 0.6931472, %v13510_v19  ;;  %v9855_v43 = vmul.f32 -0.5, %v16953_v42  ;;  %v13516_v21 = vpop.eup %13515  ;;  %v9762_v55 = vsel %vm17007_vm4, %v16950_v10, %v9756_v25 }
0x250c   :  { %9914 = vperm.xlu0 %12748, %v9904_v7   ;;  %vm17019_vm5 = vcmp.lt.f32.partialorder %v9840_v46, 0.0004427343  ;;  %v9867_v57 = vand.u32 2147483647, %v16947_v29  ;;  %13525 = vlog2.f32 %v9879_v20  ;;  %v9836_v27 = vmul.f32 0.6931472, %v13516_v21 }
0x250d   :  { %v9851_v38 = vsel %vm17003_vm13, %v9848_v41, %v9845_v22  ;;  %v9839_v60 = vmul.f32 %v9838_v35, %v16944_v3  ;;  %v9774_v30 = vmul.f32 0.6931472, %v13512_v2  ;;  %v13518_v51 = vpop.eup %13517  ;;  %vm17027_vm8 = vcmp.lt.f32.partialorder %v9787_v9, 0.0004427343 }
0x250e   :  { %v9891_v31 = vsub.f32 %v9771_v50, %v9851_v38  ;;  %v9866_v10 = vmul.f32 %v9865_v13, %v16947_v29  ;;  %v9870_v33 = vadd.f32 1.0, %v16986_v59  ;;  %v9863_v49 = vmul.f32 0.6931472, %v13518_v51 }
0x250f   :  { %v9842_v34 = vsel %vm17019_vm5, %v9839_v60, %v9836_v27  ;;  %v9856_v63 = vadd.f32 1.0, %v9855_v43  ;;  %v9882_v37 = vmul.f32 -0.5, %v16978_v11  ;;  %v13520_v12 = vpop.eup %13519  ;;  %vm9868_vm9 = vcmp.lt.f32.partialorder %v9867_v57, 0.0004427343 }
0x2510   :  { %v9899_v3 = vmul.f32 0.5, %v9891_v31  ;;  %v9890_v0 = vsub.f32 %v9762_v55, %v9842_v34  ;;  %13527 = vlog2.f32 %v9870_v33  ;;  %v13522_v19 = vpop.eup %13521  ;;  %v9789_v18 = vsel %vm17027_vm8, %v16963_v48, %v9783_v56 }
0x2511   :  { %v9869_v29 = vsel %vm9868_vm9, %v9866_v10, %v9863_v49  ;;  %v9778_v50 = vand.u32 2147483647, %v16906_v52  ;;  %v9858_v25 = vand.u32 2147483647, %v16953_v42  ;;  %v9805_v15 = vand.u32 2147483647, %v16955_v47 }
0x2512   :  { %v9907_v46 = vmul.f32 %v16881_v28, %v9899_v3  ;;  %v9898_v2 = vmul.f32 0.5, %v9890_v0  ;;  %v9893_v58 = vsub.f32 %v9789_v18, %v9869_v29  ;;  %v9794_v8 = vadd.f32 1.0, %v16982_v5 }
0x2513   :  { %v13524_v35 = vpop.eup %13523  ;;  %v9857_v7 = vmul.f32 %v9856_v63, %v16953_v42  ;;  %v9883_v9 = vadd.f32 1.0, %v9882_v37  ;;  %v9873_v13 = vmul.f32 -0.5, %v16986_v59  ;;  %v9885_v22 = vand.u32 2147483647, %v16978_v11 }
0x2514   :  { %9929 = vperm.xlu1 %12747, %v9907_v46   ;;  %v9906_v48 = vmul.f32 %v16883_v45, %v9898_v2  ;;  %v9901_v52 = vmul.f32 0.5, %v9893_v58  ;;  %v9854_v20 = vmul.f32 0.6931472, %v13524_v35  ;;  %v9804_v28 = vmul.f32 %v16955_v47, %v16991_v24 }
0x2515   :  { %vm9779_vm6 = vcmp.lt.f32.partialorder %v9778_v50, 0.0004427343  ;;  %vm9859_vm10 = vcmp.lt.f32.partialorder %v9858_v25, 0.0004427343  ;;  %v9801_v41 = vmul.f32 0.6931472, %v13520_v12  ;;  %v9884_v55 = vmul.f32 %v9883_v9, %v16978_v11 }
0x2516   :  { %v13526_v56 = vpop.eup %13525  ;;  %9924 = vperm.xlu0 %12748, %v9906_v48   ;;  %v9909_v42 = vmul.f32 %v16887_v62, %v9901_v52  ;;  %v9780_v5 = vsel %vm9779_vm6, %v16968_v17, %v9774_v30  ;;  %v9860_v43 = vsel %vm9859_vm10, %v9857_v7, %v9854_v20  ;;  %vm9806_vm14 = vcmp.lt.f32.partialorder %v9805_v15, 0.0004427343 }
0x2517   :  { %v9892_v21 = vsub.f32 %v9780_v5, %v9860_v43  ;;  %v9881_v45 = vmul.f32 0.6931472, %v13526_v56  ;;  %v9874_v61 = vadd.f32 1.0, %v9873_v13  ;;  %vm9886_vm15 = vcmp.lt.f32.partialorder %v9885_v22, 0.0004427343 }
0x2518   :  { %9939 = vperm.xlu1 %12747, %v9909_v42   ;;  %v9796_v47 = vand.u32 2147483647, %v16958_v23  ;;  %v9876_v24 = vand.u32 2147483647, %v16986_v59  ;;  %v9807_v38 = vsel %vm9806_vm14, %v9804_v28, %v9801_v41  ;;  %v9792_v60 = vmul.f32 0.6931472, %v13522_v19 }
0x2519   :  { %v9900_v57 = vmul.f32 0.5, %v9892_v21  ;;  %v9887_v27 = vsel %vm9886_vm15, %v9884_v55, %v9881_v45  ;;  %v9795_v17 = vmul.f32 %v16958_v23, %v9794_v8  ;;  %v9875_v11 = vmul.f32 %v9874_v61, %v16986_v59 }
0x251a   :  { %v13528_v62 = vpop.eup %13527  ;;  %v9895_v51 = vsub.f32 %v9807_v38, %v9887_v27  ;;  %vm9797_vm0 = vcmp.lt.f32.partialorder %v9796_v47, 0.0004427343  ;;  %vm9877_vm7 = vcmp.lt.f32.partialorder %v9876_v24, 0.0004427343 }
0x251b   :  { %v9908_v30 = vmul.f32 %v16889_v4, %v9900_v57  ;;  %v9872_v31 = vmul.f32 0.6931472, %v13528_v62  ;;  %v9798_v10 = vsel %vm9797_vm0, %v9795_v17, %v9792_v60 }
0x251c   :  { %v9903_v26 = vmul.f32 0.5, %v9895_v51 }
0x251d   :  { %9934 = vperm.xlu0 %12748, %v9908_v30   ;;  %v9878_v33 = vsel %vm9877_vm7, %v9875_v11, %v9872_v31 }
0x251e   :  { %v9911_v34 = vmul.f32 %v16908_v1, %v9903_v26  ;;  %v9894_v49 = vsub.f32 %v9798_v10, %v9878_v33 }
0x2520   :  { %9949 = vperm.xlu1 %12747, %v9911_v34   ;;  %v9902_v63 = vmul.f32 0.5, %v9894_v49 }
0x2522   :  { %v9910_v37 = vmul.f32 %v16921_v14, %v9902_v63 }
0x2524   :  { %9944 = vperm.xlu0 %12748, %v9910_v37  }
0x2585   :  { %v9920_v23 = vpop.permute.xlu1 %9919 }
0x2586   :  { %v9953_v4 = vmul.f32 %v9920_v23, %v16833_v39 }
0x2588   :  { %v9969_v12 = vmul.f32 0.01, %v9953_v4  ;;  %vm9961_vm2 = vcmp.ge.f32.partialorder %v9953_v4, 0.0 }
0x258a   :  { %v17062_v19 = vsel %vm9961_vm2, %v9953_v4, %v9969_v12 }
0x258b   :  { %v9915_v3 = vpop.permute.xlu0 %9914  ;;  %v9985_v14 = vmul.f32 %v17062_v19, %v17062_v19 }
0x258c   :  { %v9952_v59 = vmul.f32 %v9915_v3, %v16829_v54 }
0x258e   :  { %vm9960_vm3 = vcmp.ge.f32.partialorder %v9952_v59, 0.0  ;;  %v9968_v0 = vmul.f32 0.01, %v9952_v59 }
0x2590   :  { %v17064_v18 = vsel %vm9960_vm3, %v9952_v59, %v9968_v0 }
0x2591   :  { %v9984_v1 = vmul.f32 %v17064_v18, %v17064_v18 }
0x2593   :  { %v9930_v29 = vpop.permute.xlu1 %9929  ;;  %12415 = vmatprep.mubr.msk.f32.mxu0 %vm215_vm1, %v9984_v1 }
0x2594   :  { %v9955_v39 = vmul.f32 %v9930_v29, %v16850_v32  ;;  %12416 = vmatmul.mubr.msk.f32.vlgmr.msra.gmra.mrb[156].mxu0 %vm215_vm1, %v9985_v14 }
0x2595   :  { %v9925_v54 = vpop.permute.xlu0 %9924 }
0x2596   :  { %vm9963_vm11 = vcmp.ge.f32.partialorder %v9955_v39, 0.0  ;;  %v9971_v50 = vmul.f32 0.01, %v9955_v39  ;;  %v9954_v25 = vmul.f32 %v9925_v54, %v16839_v16 }
0x2597   :  { %v9940_v46 = vpop.permute.xlu1 %9939 }
0x2598   :  { %vm9962_vm12 = vcmp.ge.f32.partialorder %v9954_v25, 0.0  ;;  %v9970_v2 = vmul.f32 0.01, %v9954_v25  ;;  %v9957_v58 = vmul.f32 %v9940_v46, %v16858_v44  ;;  %v17075_v15 = vsel %vm9963_vm11, %v9955_v39, %v9971_v50 }
0x2599   :  { %v9987_v32 = vmul.f32 %v17075_v15, %v17075_v15 }
0x259a   :  { %v17077_v35 = vsel %vm9962_vm12, %v9954_v25, %v9970_v2  ;;  %v9973_v7 = vmul.f32 0.01, %v9957_v58  ;;  %vm9965_vm13 = vcmp.ge.f32.partialorder %v9957_v58, 0.0 }
0x259b   :  { %v9986_v8 = vmul.f32 %v17077_v35, %v17077_v35 }
0x259c   :  { %v9935_v9 = vpop.permute.xlu0 %9934  ;;  %v17086_v48 = vsel %vm9965_vm13, %v9957_v58, %v9973_v7 }
0x259d   :  { %v9956_v16 = vmul.f32 %v9935_v9, %v16847_v36  ;;  %12418 = vmatprep.mubr.msk.f32.mxu0 %vm215_vm1, %v9986_v8  ;;  %v9989_v28 = vmul.f32 %v17086_v48, %v17086_v48 }
0x259e   :  { %12419 = vmatmul.mubr.msk.f32.gmra.mrb[158].mxu0 %vm215_vm1, %v9987_v32 }
0x259f   :  { %vm9964_vm4 = vcmp.ge.f32.partialorder %v9956_v16, 0.0  ;;  %v9972_v44 = vmul.f32 0.01, %v9956_v16  ;;  %v9950_v13 = vpop.permute.xlu1 %9949 }
0x25a0   :  { %v9959_v52 = vmul.f32 %v9950_v13, %v16870_v53 }
0x25a1   :  { %v17089_v20 = vsel %vm9964_vm4, %v9956_v16, %v9972_v44 }
0x25a2   :  { %v9988_v22 = vmul.f32 %v17089_v20, %v17089_v20  ;;  %v9975_v36 = vmul.f32 0.01, %v9959_v52  ;;  %vm9967_vm5 = vcmp.ge.f32.partialorder %v9959_v52, 0.0 }
0x25a3   :  { %v9945_v41 = vpop.permute.xlu0 %9944 }
0x25a4   :  { %v9958_v56 = vmul.f32 %v9945_v41, %v16863_v6  ;;  %12421 = vmatprep.mubr.msk.f32.mxu0 %vm215_vm1, %v9988_v22  ;;  %v17098_v53 = vsel %vm9967_vm5, %v9959_v52, %v9975_v36 }
0x25a5   :  { %12422 = vmatmul.mubr.msk.f32.gmra.mrb[160].mxu0 %vm215_vm1, %v9989_v28  ;;  %v9991_v21 = vmul.f32 %v17098_v53, %v17098_v53 }
0x25a6   :  { %vm9966_vm8 = vcmp.ge.f32.partialorder %v9958_v56, 0.0  ;;  %v9974_v42 = vmul.f32 0.01, %v9958_v56 }
0x25a8   :  { %v17100_v5 = vsel %vm9966_vm8, %v9958_v56, %v9974_v42 }
0x25a9   :  { %v9990_v43 = vmul.f32 %v17100_v5, %v17100_v5 }
0x25ab   :  { %12424 = vmatprep.mubr.msk.f32.mxu0 %vm215_vm1, %v9990_v43 }
0x25ac   :  { %12425 = vmatmul.mubr.msk.f32.gmra.mrb[162].mxu0 %vm215_vm1, %v9991_v21 }
0x2667   :  { %v12417_v6 = vpop.f32.mrb[156].mxu0 }
0x2668   :  { %v10122_v45 = vmax.f32 %v12417_v6, 1e-30  ;;  %v10082_v55 = vpop.f32.mrb[157].mxu0 }
0x2669   :  { %v10121_v61 = vmax.f32 %v10082_v55, 1e-30 }
0x266a   :  { %13529 = vrsqrt.f32 %v10122_v45 }
0x266b   :  { %13531 = vrsqrt.f32 %v10121_v61 }
0x2671   :  { %v12420_v47 = vpop.f32.mrb[158].mxu0 }
0x2672   :  { %v10124_v24 = vmax.f32 %v12420_v47, 1e-30  ;;  %v10092_v57 = vpop.f32.mrb[159].mxu0 }
0x2673   :  { %v10123_v38 = vmax.f32 %v10092_v57, 1e-30 }
0x2674   :  { %v13530_v27 = vpop.eup %13529  ;;  %13533 = vrsqrt.f32 %v10124_v24 }
0x2675   :  { %v13532_v60 = vpop.eup %13531  ;;  %v10138_v62 = vmul.f32 %v13530_v27, %v12417_v6  ;;  %13535 = vrsqrt.f32 %v10123_v38 }
0x2676   :  { %v10137_v51 = vmul.f32 %v13532_v60, %v10082_v55 }
0x2677   :  { %13537 = vtanh.f32 %v10138_v62 }
0x2678   :  { %13539 = vtanh.f32 %v10137_v51  ;;  %v12423_v17 = vpop.f32.mrb[160].mxu0 }
0x2679   :  { %v10126_v30 = vmax.f32 %v12423_v17, 1e-30  ;;  %v10102_v31 = vpop.f32.mrb[161].mxu0 }
0x267a   :  { %v10125_v11 = vmax.f32 %v10102_v31, 1e-30 }
0x267b   :  { %13541 = vrsqrt.f32 %v10126_v30 }
0x267c   :  { %13543 = vrsqrt.f32 %v10125_v11 }
0x267e   :  { %v13534_v26 = vpop.eup %13533 }
0x267f   :  { %v13536_v10 = vpop.eup %13535  ;;  %v10140_v33 = vmul.f32 %v13534_v26, %v12420_v47  ;;  %v12426_v34 = vpop.f32.mrb[162].mxu0 }
0x2680   :  { %v10139_v49 = vmul.f32 %v13536_v10, %v10092_v57  ;;  %v10128_v63 = vmax.f32 %v12426_v34, 1e-30  ;;  %v10112_v37 = vpop.f32.mrb[163].mxu0 }
0x2681   :  { %v13538_v23 = vpop.eup %13537  ;;  %13545 = vtanh.f32 %v10140_v33  ;;  %v10127_v4 = vmax.f32 %v10112_v37, 1e-30 }
0x2682   :  { %v13540_v12 = vpop.eup %13539  ;;  %13547 = vtanh.f32 %v10139_v49  ;;  %v10154_v3 = vmul.f32 %v13538_v23, %v13530_v27  ;;  %v10210_v59 = vmax.f32 %v13538_v23, 1e-15 }
0x2683   :  { %13549 = vrsqrt.f32 %v10128_v63  ;;  %v10153_v0 = vmul.f32 %v13540_v12, %v13532_v60  ;;  %v10209_v14 = vmax.f32 %v13540_v12, 1e-15 }
0x2684   :  { %13551 = vrsqrt.f32 %v10127_v4  ;;  %10168 = vperm.xlu1 %12747, %v10154_v3   ;;  %vm10218_vm9 = vcmp.gt.f32.partialorder %v10210_v59, 0.996 }
0x2685   :  { %v13542_v1 = vpop.eup %13541  ;;  %10163 = vperm.xlu0 %12748, %v10153_v0   ;;  %v10290_v50 = vsel %vm10218_vm9, 1, %v17440_v40  ;;  %vm10217_vm6 = vcmp.gt.f32.partialorder %v10209_v14, 0.996 }
0x2686   :  { %v13544_v29 = vpop.eup %13543  ;;  %v10142_v39 = vmul.f32 %v13542_v1, %v12423_v17  ;;  %v10289_v58 = vsel %vm10217_vm6, 1, %v17440_v40 }
0x2687   :  { %v10141_v54 = vmul.f32 %v13544_v29, %v10102_v31 }
0x2688   :  { %13553 = vtanh.f32 %v10142_v39 }
0x2689   :  { %13555 = vtanh.f32 %v10141_v54  ;;  %10301 = vperm.xlu0 %12748, %v10290_v50  }
0x268b   :  { %v13546_v25 = vpop.eup %13545 }
0x268c   :  { %v13548_v46 = vpop.eup %13547  ;;  %v10156_v2 = vmul.f32 %v13546_v25, %v13534_v26  ;;  %v10212_v8 = vmax.f32 %v13546_v25, 1e-15 }
0x268d   :  { %v13550_v32 = vpop.eup %13549  ;;  %10298 = vperm.xlu0 %12748, %v10289_v58   ;;  %v10211_v7 = vmax.f32 %v13548_v46, 1e-15  ;;  %v10155_v13 = vmul.f32 %v13548_v46, %v13536_v10 }
0x268e   :  { %v13552_v9 = vpop.eup %13551  ;;  %v10144_v16 = vmul.f32 %v13550_v32, %v12426_v34  ;;  %10178 = vperm.xlu1 %12747, %v10156_v2   ;;  %vm10220_vm10 = vcmp.gt.f32.partialorder %v10212_v8, 0.996 }
0x268f   :  { %v10143_v44 = vmul.f32 %v13552_v9, %v10112_v37  ;;  %v10292_v52 = vsel %vm10220_vm10, 1, %v17440_v40  ;;  %vm10219_vm14 = vcmp.gt.f32.partialorder %v10211_v7, 0.996 }
0x2690   :  { %13557 = vtanh.f32 %v10144_v16  ;;  %v10291_v56 = vsel %vm10219_vm14, 1, %v17440_v40 }
0x2691   :  { %13559 = vtanh.f32 %v10143_v44  ;;  %10307 = vperm.xlu0 %12748, %v10292_v52  }
0x2692   :  { %v13554_v22 = vpop.eup %13553  ;;  %13561 = vrcp.f32 %v10209_v14  ;;  %10173 = vperm.xlu1 %12747, %v10155_v13  }
0x2693   :  { %v13556_v28 = vpop.eup %13555  ;;  %13563 = vrcp.f32 %v10210_v59  ;;  %v10214_v36 = vmax.f32 %v13554_v22, 1e-15  ;;  %v10158_v41 = vmul.f32 %v13554_v22, %v13542_v1 }
0x2694   :  { %v10213_v42 = vmax.f32 %v13556_v28, 1e-15  ;;  %13565 = vrcp.f32 %v10211_v7  ;;  %v10157_v43 = vmul.f32 %v13556_v28, %v13544_v29 }
0x2695   :  { %10304 = vperm.xlu0 %12748, %v10291_v56   ;;  %vm10222_vm15 = vcmp.gt.f32.partialorder %v10214_v36, 0.996 }
0x2696   :  { %10188 = vperm.xlu1 %12747, %v10158_v41   ;;  %v10294_v21 = vsel %vm10222_vm15, 1, %v17440_v40  ;;  %vm10221_vm0 = vcmp.gt.f32.partialorder %v10213_v42, 0.996  ;;  %13567 = vrcp.f32 %v10213_v42 }
0x2697   :  { %13569 = vrcp.f32 %v10212_v8  ;;  %v10293_v24 = vsel %vm10221_vm0, 1, %v17440_v40 }
0x2699   :  { %10313 = vperm.xlu0 %12748, %v10294_v21  }
0x269a   :  { %v13558_v6 = vpop.eup %13557  ;;  %10183 = vperm.xlu1 %12747, %v10157_v43  }
0x269b   :  { %v13560_v45 = vpop.eup %13559  ;;  %v10160_v47 = vmul.f32 %v13558_v6, %v13550_v32  ;;  %v10216_v27 = vmax.f32 %v13558_v6, 1e-15 }
0x269c   :  { %v13562_v55 = vpop.eup %13561  ;;  %v10215_v61 = vmax.f32 %v13560_v45, 1e-15  ;;  %v10159_v30 = vmul.f32 %v13560_v45, %v13552_v9 }
0x269d   :  { %v13564_v57 = vpop.eup %13563  ;;  %10310 = vperm.xlu0 %12748, %v10293_v24   ;;  %v10226_v38 = vmul.f32 0.996, %v13562_v55  ;;  %vm10224_vm2 = vcmp.gt.f32.partialorder %v10216_v27, 0.996 }
0x269e   :  { %10198 = vperm.xlu1 %12747, %v10160_v47   ;;  %13571 = vrcp.f32 %v10215_v61  ;;  %v13566_v60 = vpop.eup %13565  ;;  %v10228_v62 = vmul.f32 0.996, %v13564_v57  ;;  %vm10223_vm7 = vcmp.gt.f32.partialorder %v10215_v61, 0.996  ;;  %v10296_v4 = vsel %vm10224_vm2, 1, %v17440_v40 }
0x269f   :  { %13573 = vrcp.f32 %v10214_v36  ;;  %v10230_v51 = vmul.f32 0.996, %v13566_v60  ;;  %v10295_v23 = vsel %vm10223_vm7, 1, %v17440_v40 }
0x26a0   :  { %13575 = vrcp.f32 %v10216_v27  ;;  %v13568_v17 = vpop.eup %13567 }
0x26a1   :  { %10243 = vperm.xlu0 %12748, %v10226_v38   ;;  %v13570_v31 = vpop.eup %13569  ;;  %v10234_v11 = vmul.f32 0.996, %v13568_v17 }
0x26a2   :  { %10248 = vperm.xlu1 %12747, %v10228_v62   ;;  %v10232_v10 = vmul.f32 0.996, %v13570_v31 }
0x26a5   :  { %10253 = vperm.xlu0 %12748, %v10230_v51  }
0x26a6   :  { %10193 = vperm.xlu1 %12747, %v10159_v30  }
0x26a8   :  { %v13572_v26 = vpop.eup %13571 }
0x26a9   :  { %v13574_v33 = vpop.eup %13573  ;;  %10263 = vperm.xlu0 %12748, %v10234_v11   ;;  %v10238_v34 = vmul.f32 0.996, %v13572_v26 }
0x26aa   :  { %10258 = vperm.xlu1 %12747, %v10232_v10   ;;  %v10236_v49 = vmul.f32 0.996, %v13574_v33  ;;  %v13576_v63 = vpop.eup %13575 }
0x26ab   :  { %v10240_v37 = vmul.f32 0.996, %v13576_v63 }
0x26ad   :  { %10273 = vperm.xlu0 %12748, %v10238_v34  }
0x26ae   :  { %10268 = vperm.xlu1 %12747, %v10236_v49  }
0x26b1   :  { %10316 = vperm.xlu0 %12748, %v10295_v23  }
0x26b2   :  { %10278 = vperm.xlu1 %12747, %v10240_v37  }
0x26b6   :  { %10319 = vperm.xlu1 %12747, %v10296_v4  }
0x2703   :  { %v10169_v59 = vpop.permute.xlu1 %10168 }
0x2704   :  { %v10164_v12 = vpop.permute.xlu0 %10163  ;;  %v10202_v8 = vmul.f32 %v10169_v59, %v17062_v19 }
0x2705   :  { %v10201_v58 = vmul.f32 %v10164_v12, %v17064_v18 }
0x2708   :  { %v10302_v3 = vpop.permute.xlu0 %10301 }
0x2709   :  { %vm10322_vm11 = vcmp.eq.s32.totalorder %v10302_v3, 1 }
0x270c   :  { %v10299_v0 = vpop.permute.xlu0 %10298 }
0x270d   :  { %v10179_v1 = vpop.permute.xlu1 %10178  ;;  %vm10321_vm3 = vcmp.eq.s32.totalorder %v10299_v0, 1 }
0x2710   :  { %v10308_v14 = vpop.permute.xlu0 %10307 }
0x2711   :  { %v10174_v29 = vpop.permute.xlu1 %10173  ;;  %vm10324_vm4 = vcmp.eq.s32.totalorder %v10308_v14, 1 }
0x2712   :  { %v10203_v16 = vmul.f32 %v10174_v29, %v17077_v35  ;;  %v10204_v35 = vmul.f32 %v10179_v1, %v17075_v15 }
0x2714   :  { %v10305_v39 = vpop.permute.xlu0 %10304 }
0x2715   :  { %v10189_v54 = vpop.permute.xlu1 %10188  ;;  %vm10323_vm12 = vcmp.eq.s32.totalorder %v10305_v39, 1 }
0x2718   :  { %v10314_v50 = vpop.permute.xlu0 %10313 }
0x2719   :  { %v10184_v25 = vpop.permute.xlu1 %10183  ;;  %vm10326_vm5 = vcmp.eq.s32.totalorder %v10314_v50, 1 }
0x271a   :  { %v10205_v36 = vmul.f32 %v10184_v25, %v17089_v20  ;;  %v10206_v20 = vmul.f32 %v10189_v54, %v17086_v48 }
0x271c   :  { %v10311_v46 = vpop.permute.xlu0 %10310 }
0x271d   :  { %v10199_v2 = vpop.permute.xlu1 %10198  ;;  %vm10325_vm13 = vcmp.eq.s32.totalorder %v10311_v46, 1 }
0x271e   :  { %v10208_v30 = vmul.f32 %v10199_v2, %v17098_v53 }
0x2720   :  { %v10244_v32 = vpop.permute.xlu0 %10243 }
0x2721   :  { %v10249_v40 = vpop.permute.xlu1 %10248  ;;  %v10281_v7 = vmul.f32 %v10244_v32, %v10201_v58 }
0x2722   :  { %v10282_v9 = vmul.f32 %v10249_v40, %v10202_v8 }
0x2723   :  { %v17119_v44 = vsel %vm10321_vm3, %v10281_v7, %v10201_v58 }
0x2724   :  { %v17121_v13 = vsel %vm10322_vm11, %v10282_v9, %v10202_v8  ;;  %v10337_v52 = vmul.f32 %v17119_v44, %v17119_v44  ;;  %v10254_v22 = vpop.permute.xlu0 %10253 }
0x2725   :  { %v10338_v18 = vmul.f32 %v17121_v13, %v17121_v13  ;;  %v10194_v19 = vpop.permute.xlu1 %10193  ;;  %v10283_v28 = vmul.f32 %v10254_v22, %v10203_v16 }
0x2726   :  { %12431 = vmatprep.mubr.msk.f32.mxu1 %vm215_vm1, %v10337_v52  ;;  %v10207_v57 = vmul.f32 %v10194_v19, %v17100_v5 }
0x2727   :  { %v17129_v41 = vsel %vm10323_vm12, %v10283_v28, %v10203_v16  ;;  %12432 = vmatmul.mubr.msk.f32.vlgmr.msra.gmra.mrb[112].mxu1 %vm215_vm1, %v10338_v18 }
0x2728   :  { %v10339_v56 = vmul.f32 %v17129_v41, %v17129_v41  ;;  %v10264_v42 = vpop.permute.xlu0 %10263 }
0x2729   :  { %v10259_v43 = vpop.permute.xlu1 %10258  ;;  %v10285_v21 = vmul.f32 %v10264_v42, %v10205_v36 }
0x272a   :  { %v10284_v6 = vmul.f32 %v10259_v43, %v10204_v35  ;;  %12434 = vmatprep.mubr.msk.f32.mxu1 %vm215_vm1, %v10339_v56 }
0x272b   :  { %v17136_v45 = vsel %vm10325_vm13, %v10285_v21, %v10205_v36 }
0x272c   :  { %v17139_v55 = vsel %vm10324_vm4, %v10284_v6, %v10204_v35  ;;  %v10341_v15 = vmul.f32 %v17136_v45, %v17136_v45  ;;  %v10274_v61 = vpop.permute.xlu0 %10273 }
0x272d   :  { %v10340_v47 = vmul.f32 %v17139_v55, %v17139_v55  ;;  %v10269_v24 = vpop.permute.xlu1 %10268  ;;  %v10287_v60 = vmul.f32 %v10274_v61, %v10207_v57 }
0x272e   :  { %v10286_v38 = vmul.f32 %v10269_v24, %v10206_v20 }
0x272f   :  { %12435 = vmatmul.mubr.msk.f32.gmra.mrb[114].mxu1 %vm215_vm1, %v10340_v47 }
0x2730   :  { %v17147_v27 = vsel %vm10326_vm5, %v10286_v38, %v10206_v20  ;;  %12437 = vmatprep.mubr.msk.f32.mxu1 %vm215_vm1, %v10341_v15  ;;  %v10317_v48 = vpop.permute.xlu0 %10316 }
0x2731   :  { %v10342_v62 = vmul.f32 %v17147_v27, %v17147_v27  ;;  %v10279_v51 = vpop.permute.xlu1 %10278  ;;  %vm10327_vm8 = vcmp.eq.s32.totalorder %v10317_v48, 1 }
0x2732   :  { %v17152_v17 = vsel %vm10327_vm8, %v10287_v60, %v10207_v57  ;;  %v10288_v31 = vmul.f32 %v10279_v51, %v10208_v30 }
0x2733   :  { %v10343_v5 = vmul.f32 %v17152_v17, %v17152_v17  ;;  %12438 = vmatmul.mubr.msk.f32.gmra.mrb[116].mxu1 %vm215_vm1, %v10342_v62 }
0x2735   :  { %v10320_v11 = vpop.permute.xlu1 %10319  ;;  %12440 = vmatprep.mubr.msk.f32.mxu1 %vm215_vm1, %v10343_v5 }
0x2736   :  { %vm10328_vm9 = vcmp.eq.s32.totalorder %v10320_v11, 1 }
0x2737   :  { %v17159_v26 = vsel %vm10328_vm9, %v10288_v31, %v10208_v30 }
0x2738   :  { %v10344_v10 = vmul.f32 %v17159_v26, %v17159_v26 }
0x273a   :  { %12441 = vmatmul.mubr.msk.f32.gmra.mrb[118].mxu1 %vm215_vm1, %v10344_v10 }
0x27fa   :  { %v12433_v33 = vpop.f32.mrb[112].mxu1 }
0x27fb   :  { %v10475_v34 = vmax.f32 %v12433_v33, 1e-30  ;;  %v10435_v53 = vpop.f32.mrb[113].mxu1 }
0x27fc   :  { %v10474_v49 = vmax.f32 %v10435_v53, 1e-30 }
0x27fd   :  { %13577 = vrsqrt.f32 %v10475_v34 }
0x27fe   :  { %13579 = vrsqrt.f32 %v10474_v49 }
0x2802   :  { %v12436_v63 = vpop.f32.mrb[114].mxu1 }
0x2803   :  { %v10477_v37 = vmax.f32 %v12436_v63, 1e-30  ;;  %v10445_v23 = vpop.f32.mrb[115].mxu1 }
0x2804   :  { %v10476_v4 = vmax.f32 %v10445_v23, 1e-30 }
0x2805   :  { %13581 = vrsqrt.f32 %v10477_v37 }
0x2806   :  { %13583 = vrsqrt.f32 %v10476_v4  ;;  %v12439_v12 = vpop.f32.mrb[116].mxu1 }
0x2807   :  { %v17164_v3 = vpop.eup %13577  ;;  %v10479_v59 = vmax.f32 %v12439_v12, 1e-30  ;;  %v10455_v0 = vpop.f32.mrb[117].mxu1 }
0x2808   :  { %v17166_v1 = vpop.eup %13579  ;;  %v10491_v14 = vmul.f32 %v17164_v3, %v12433_v33  ;;  %v10478_v29 = vmax.f32 %v10455_v0, 1e-30 }
0x2809   :  { %v10490_v39 = vmul.f32 %v17166_v1, %v10435_v53  ;;  %13585 = vrsqrt.f32 %v10479_v59 }
0x280a   :  { %v11110_v54 = vclamps-f32 %v10491_v14, 0.9999999  ;;  %13587 = vrsqrt.f32 %v10478_v29 }
0x280b   :  { %v11109_v46 = vclamps-f32 %v10490_v39, 0.9999999 }
0x280c   :  { %v10523_v50 = vadd.f32 1.0, %v11110_v54  ;;  %v10587_v25 = vsub.f32 0.0, %v11110_v54  ;;  %v10526_v22 = vmul.f32 -0.5, %v11110_v54  ;;  %v10529_v20 = vand.u32 2147483647, %v11110_v54 }
0x280d   :  { %v12442_v2 = vpop.f32.mrb[118].mxu1  ;;  %v10514_v52 = vadd.f32 1.0, %v11109_v46  ;;  %v10517_v28 = vmul.f32 -0.5, %v11109_v46  ;;  %v17182_v56 = vsub.f32 0.0, %v11109_v46  ;;  %v10520_v48 = vand.u32 2147483647, %v11109_v46 }
0x280e   :  { %v10481_v58 = vmax.f32 %v12442_v2, 1e-30  ;;  %v10465_v8 = vpop.f32.mrb[119].mxu1  ;;  %13589 = vlog2.f32 %v10523_v50  ;;  %v10603_v7 = vadd.f32 1.0, %v10587_v25  ;;  %v10606_v42 = vmul.f32 -0.5, %v10587_v25 }
0x280f   :  { %v17170_v32 = vpop.eup %13581  ;;  %v10480_v40 = vmax.f32 %v10465_v8, 1e-30  ;;  %v10527_v43 = vadd.f32 1.0, %v10526_v22  ;;  %v10518_v15 = vadd.f32 1.0, %v10517_v28  ;;  %v10609_v47 = vand.u32 2147483647, %v10587_v25 }
0x2810   :  { %v17172_v9 = vpop.eup %13583  ;;  %v10493_v16 = vmul.f32 %v17170_v32, %v12436_v63  ;;  %13591 = vrsqrt.f32 %v10481_v58  ;;  %v10607_v60 = vadd.f32 1.0, %v10606_v42  ;;  %v10594_v62 = vadd.f32 1.0, %v17182_v56 }
0x2811   :  { %13593 = vrsqrt.f32 %v10480_v40  ;;  %v10492_v18 = vmul.f32 %v17172_v9, %v10445_v23  ;;  %v10528_v30 = vmul.f32 %v11110_v54, %v10527_v43  ;;  %vm17196_vm6 = vcmp.lt.f32.partialorder %v10529_v20, 0.0004427343 }
0x2812   :  { %13595 = vlog2.f32 %v10603_v7  ;;  %v17180_v35 = vclamps-f32 %v10493_v16, 0.9999999  ;;  %v17202_v33 = vmul.f32 %v11109_v46, %v10518_v15  ;;  %vm17206_vm10 = vcmp.lt.f32.partialorder %v10609_v47, 0.0004427343 }
0x2813   :  { %v17176_v19 = vpop.eup %13585  ;;  %13597 = vlog2.f32 %v10514_v52  ;;  %v17184_v21 = vclamps-f32 %v10492_v18, 0.9999999  ;;  %v10597_v49 = vmul.f32 -0.5, %v17182_v56  ;;  %vm17213_vm14 = vcmp.lt.f32.partialorder %v10520_v48, 0.0004427343 }
0x2814   :  { %v17178_v36 = vpop.eup %13587  ;;  %v10495_v6 = vmul.f32 %v17176_v19, %v12439_v12  ;;  %v10541_v24 = vadd.f32 1.0, %v17180_v35  ;;  %v10544_v57 = vmul.f32 -0.5, %v17180_v35  ;;  %v17218_v29 = vsub.f32 0.0, %v17180_v35 }
0x2815   :  { %v10494_v61 = vmul.f32 %v17178_v36, %v10455_v0  ;;  %v10535_v5 = vmul.f32 -0.5, %v17184_v21  ;;  %v10532_v23 = vadd.f32 1.0, %v17184_v21  ;;  %v10608_v0 = vmul.f32 %v10607_v60, %v10587_v25 }
0x2816   :  { %v17194_v31 = vclamps-f32 %v10495_v6, 0.9999999  ;;  %13599 = vlog2.f32 %v10541_v24  ;;  %v10545_v37 = vadd.f32 1.0, %v10544_v57  ;;  %v17223_v58 = vsub.f32 0.0, %v17184_v21 }
0x2817   :  { %v17204_v34 = vclamps-f32 %v10494_v61, 0.9999999  ;;  %13601 = vlog2.f32 %v10594_v62  ;;  %v10536_v39 = vadd.f32 1.0, %v10535_v5  ;;  %v10598_v52 = vadd.f32 1.0, %v10597_v49 }
0x2818   :  { %v13590_v38 = vpop.eup %13589  ;;  %v10562_v54 = vmul.f32 -0.5, %v17194_v31  ;;  %13603 = vlog2.f32 %v10532_v23  ;;  %v17236_v22 = vsub.f32 0.0, %v17194_v31  ;;  %v10621_v47 = vadd.f32 1.0, %v17218_v29 }
0x2819   :  { %v10525_v4 = vmul.f32 0.6931472, %v13590_v38  ;;  %v10553_v25 = vmul.f32 -0.5, %v17204_v34  ;;  %v10550_v7 = vadd.f32 1.0, %v17204_v34  ;;  %v17241_v42 = vmul.f32 %v17184_v21, %v10536_v39 }
0x281a   :  { %v17191_v51 = vpop.eup %13591  ;;  %v10563_v43 = vadd.f32 1.0, %v10562_v54  ;;  %v17247_v24 = vsub.f32 0.0, %v17204_v34  ;;  %v10599_v57 = vmul.f32 %v10598_v52, %v17182_v56  ;;  %v10600_v38 = vand.u32 2147483647, %v17182_v56 }
0x281b   :  { %v17200_v10 = vpop.eup %13593  ;;  %v10497_v12 = vmul.f32 %v17191_v51, %v12442_v2  ;;  %v10559_v2 = vadd.f32 1.0, %v17194_v31  ;;  %v10531_v16 = vsel %vm17196_vm6, %v10528_v30, %v10525_v4  ;;  %v10554_v15 = vadd.f32 1.0, %v10553_v25 }
0x281c   :  { %v13596_v63 = vpop.eup %13595  ;;  %v10496_v50 = vmul.f32 %v17200_v10, %v10465_v8  ;;  %v17233_v8 = vmul.f32 %v17180_v35, %v10545_v37  ;;  %v17255_v5 = vmul.f32 %v17194_v31, %v10563_v43  ;;  %v10612_v49 = vadd.f32 1.0, %v17223_v58 }
0x281d   :  { %v10605_v59 = vmul.f32 0.6931472, %v13596_v63  ;;  %v13598_v46 = vpop.eup %13597  ;;  %v17238_v18 = vclamps-f32 %v10497_v12, 0.9999999  ;;  %13605 = vlog2.f32 %v10559_v2  ;;  %v17263_v63 = vmul.f32 %v17204_v34, %v10554_v15 }
0x281e   :  { %v17243_v6 = vclamps-f32 %v10496_v50, 0.9999999  ;;  %v10516_v20 = vmul.f32 0.6931472, %v13598_v46  ;;  %13607 = vlog2.f32 %v10550_v7  ;;  %v10547_v23 = vand.u32 2147483647, %v17180_v35 }
0x281f   :  { %v10611_v40 = vsel %vm17206_vm10, %v10608_v0, %v10605_v59  ;;  %v10577_v60 = vadd.f32 1.0, %v17238_v18  ;;  %v10580_v48 = vmul.f32 -0.5, %v17238_v18  ;;  %13609 = vlog2.f32 %v10621_v47 }
0x2820   :  { %v10667_v28 = vsub.f32 %v10531_v16, %v10611_v40  ;;  %v13600_v30 = vpop.eup %13599  ;;  %v10568_v11 = vadd.f32 1.0, %v17243_v6  ;;  %v10522_v53 = vsel %vm17213_vm14, %v17202_v33, %v10516_v20  ;;  %v17266_v37 = vsub.f32 0.0, %v17238_v18 }
0x2821   :  { %v13602_v56 = vpop.eup %13601  ;;  %v10574_v4 = vand.u32 2147483647, %v17243_v6  ;;  %v10624_v59 = vmul.f32 -0.5, %v17218_v29  ;;  %13611 = vlog2.f32 %v10612_v49  ;;  %v10581_v33 = vadd.f32 1.0, %v10580_v48 }
0x2822   :  { %v10675_v61 = vmul.f32 0.5, %v10667_v28  ;;  %v10596_v12 = vmul.f32 0.6931472, %v13602_v56  ;;  %13613 = vlog2.f32 %v10577_v60  ;;  %vm10601_vm15 = vcmp.lt.f32.partialorder %v10600_v38, 0.0004427343  ;;  %v13604_v14 = vpop.eup %13603 }
0x2823   :  { %v10639_v0 = vadd.f32 1.0, %v17236_v22  ;;  %13615 = vlog2.f32 %v10568_v11  ;;  %v17274_v39 = vsub.f32 0.0, %v17243_v6  ;;  %v10543_v50 = vmul.f32 0.6931472, %v13600_v30 }
0x2824   :  { %v10683_v62 = vmul.f32 %v17164_v3, %v10675_v61  ;;  %v10571_v3 = vmul.f32 -0.5, %v17243_v6  ;;  %v10602_v54 = vsel %vm10601_vm15, %v10599_v57, %v10596_v12  ;;  %v10615_v2 = vmul.f32 -0.5, %v17223_v58 }
0x2825   :  { %v10666_v35 = vsub.f32 %v10522_v53, %v10602_v54  ;;  %13617 = vlog2.f32 %v10639_v0  ;;  %vm17279_vm0 = vcmp.lt.f32.partialorder %v10547_v23, 0.0004427343  ;;  %v10625_v40 = vadd.f32 1.0, %v10624_v59 }
0x2826   :  { %10697 = vperm.xlu1 %12747, %v10683_v62   ;;  %v17276_v46 = vadd.f32 1.0, %v10571_v3  ;;  %v10538_v7 = vand.u32 2147483647, %v17184_v21  ;;  %v10630_v16 = vadd.f32 1.0, %v17247_v24  ;;  %v17286_v28 = vmul.f32 %v17238_v18, %v10581_v33 }
0x2827   :  { %v13606_v52 = vpop.eup %13605  ;;  %v10674_v43 = vmul.f32 0.5, %v10666_v35  ;;  %v10627_v20 = vand.u32 2147483647, %v17218_v29  ;;  %v10534_v15 = vmul.f32 0.6931472, %v13604_v14  ;;  %v10549_v47 = vsel %vm17279_vm0, %v17233_v8, %v10543_v50 }
0x2828   :  { %v13608_v61 = vpop.eup %13607  ;;  %v10565_v57 = vand.u32 2147483647, %v17194_v31  ;;  %v10642_v38 = vmul.f32 -0.5, %v17236_v22  ;;  %13619 = vlog2.f32 %v10630_v16  ;;  %v10616_v48 = vadd.f32 1.0, %v10615_v2 }
0x2829   :  { %v13610_v21 = vpop.eup %13609  ;;  %v10682_v60 = vmul.f32 %v17166_v1, %v10674_v43  ;;  %v10618_v62 = vand.u32 2147483647, %v17223_v58  ;;  %v10657_v30 = vadd.f32 1.0, %v17266_v37  ;;  %v10626_v53 = vmul.f32 %v10625_v40, %v17218_v29 }
0x282a   :  { %v10623_v11 = vmul.f32 0.6931472, %v13610_v21  ;;  %vm17298_vm7 = vcmp.lt.f32.partialorder %v10538_v7, 0.0004427343  ;;  %v10561_v8 = vmul.f32 0.6931472, %v13606_v52  ;;  %v10617_v14 = vmul.f32 %v10616_v48, %v17223_v58 }
0x282b   :  { %10692 = vperm.xlu0 %12748, %v10682_v60   ;;  %vm10628_vm2 = vcmp.lt.f32.partialorder %v10627_v20, 0.0004427343  ;;  %v10540_v31 = vsel %vm17298_vm7, %v17241_v42, %v10534_v15  ;;  %v10633_v1 = vmul.f32 -0.5, %v17247_v24  ;;  %13621 = vlog2.f32 %v10657_v30  ;;  %v13612_v56 = vpop.eup %13611 }
0x282c   :  { %v10629_v3 = vsel %vm10628_vm2, %v10626_v53, %v10623_v11  ;;  %vm17306_vm3 = vcmp.lt.f32.partialorder %v10565_v57, 0.0004427343  ;;  %v10643_v29 = vadd.f32 1.0, %v10642_v38  ;;  %v10648_v12 = vadd.f32 1.0, %v17274_v39  ;;  %v13614_v59 = vpop.eup %13613 }
0x282d   :  { %v10669_v33 = vsub.f32 %v10549_v47, %v10629_v3  ;;  %v10614_v0 = vmul.f32 0.6931472, %v13612_v56  ;;  %v10645_v54 = vand.u32 2147483647, %v17236_v22  ;;  %v13616_v42 = vpop.eup %13615  ;;  %vm10619_vm11 = vcmp.lt.f32.partialorder %v10618_v62, 0.0004427343 }
0x282e   :  { %v10567_v50 = vsel %vm17306_vm3, %v17255_v5, %v10561_v8  ;;  %v10660_v35 = vmul.f32 -0.5, %v17266_v37  ;;  %13623 = vlog2.f32 %v10648_v12  ;;  %v10556_v7 = vand.u32 2147483647, %v17204_v34 }
0x282f   :  { %v13618_v2 = vpop.eup %13617  ;;  %v10677_v25 = vmul.f32 0.5, %v10669_v33  ;;  %v10620_v40 = vsel %vm10619_vm11, %v10617_v14, %v10614_v0  ;;  %v10634_v16 = vadd.f32 1.0, %v10633_v1  ;;  %v10644_v58 = vmul.f32 %v10643_v29, %v17236_v22 }
0x2830   :  { %v10668_v52 = vsub.f32 %v10540_v31, %v10620_v40  ;;  %v10641_v43 = vmul.f32 0.6931472, %v13618_v2  ;;  %v10636_v20 = vand.u32 2147483647, %v17247_v24  ;;  %vm10646_vm12 = vcmp.lt.f32.partialorder %v10645_v54, 0.0004427343 }
0x2831   :  { %v10685_v15 = vmul.f32 %v17170_v32, %v10677_v25  ;;  %v10552_v47 = vmul.f32 0.6931472, %v13608_v61  ;;  %v10651_v5 = vmul.f32 -0.5, %v17274_v39  ;;  %v10583_v60 = vand.u32 2147483647, %v17238_v18 }
0x2832   :  { %v13620_v57 = vpop.eup %13619  ;;  %v10676_v38 = vmul.f32 0.5, %v10668_v52  ;;  %v10647_v21 = vsel %vm10646_vm12, %v10644_v58, %v10641_v43  ;;  %v10661_v48 = vadd.f32 1.0, %v10660_v35  ;;  %v10635_v30 = vmul.f32 %v10634_v16, %v17247_v24 }
0x2833   :  { %10707 = vperm.xlu1 %12747, %v10685_v15   ;;  %v10671_v34 = vsub.f32 %v10567_v50, %v10647_v21  ;;  %v10632_v62 = vmul.f32 0.6931472, %v13620_v57  ;;  %v10663_v22 = vand.u32 2147483647, %v17266_v37  ;;  %vm10557_vm13 = vcmp.lt.f32.partialorder %v10556_v7, 0.0004427343 }
0x2834   :  { %v10684_v11 = vmul.f32 %v17172_v9, %v10676_v38  ;;  %vm10637_vm4 = vcmp.lt.f32.partialorder %v10636_v20, 0.0004427343  ;;  %v10579_v32 = vmul.f32 0.6931472, %v13614_v59  ;;  %v10558_v49 = vsel %vm10557_vm13, %v17263_v63, %v10552_v47 }
0x2835   :  { %v13622_v61 = vpop.eup %13621  ;;  %v10679_v53 = vmul.f32 0.5, %v10671_v34  ;;  %v10638_v8 = vsel %vm10637_vm4, %v10635_v30, %v10632_v62  ;;  %v10652_v31 = vadd.f32 1.0, %v10651_v5  ;;  %v10662_v56 = vmul.f32 %v10661_v48, %v17266_v37 }
0x2836   :  { %10702 = vperm.xlu0 %12748, %v10684_v11   ;;  %v10670_v18 = vsub.f32 %v10558_v49, %v10638_v8  ;;  %v10659_v1 = vmul.f32 0.6931472, %v13622_v61  ;;  %v10654_v24 = vand.u32 2147483647, %v17274_v39  ;;  %vm10584_vm5 = vcmp.lt.f32.partialorder %v10583_v60, 0.0004427343 }
0x2837   :  { %v10687_v3 = vmul.f32 %v17176_v19, %v10679_v53  ;;  %vm10664_vm8 = vcmp.lt.f32.partialorder %v10663_v22, 0.0004427343  ;;  %v10570_v9 = vmul.f32 0.6931472, %v13616_v42  ;;  %v10585_v12 = vsel %vm10584_vm5, %v17286_v28, %v10579_v32 }
0x2838   :  { %v13624_v23 = vpop.eup %13623  ;;  %v10678_v29 = vmul.f32 0.5, %v10670_v18  ;;  %v10665_v59 = vsel %vm10664_vm8, %v10662_v56, %v10659_v1  ;;  %v10573_v63 = vmul.f32 %v17243_v6, %v17276_v46  ;;  %v10653_v37 = vmul.f32 %v10652_v31, %v17274_v39 }
0x2839   :  { %10717 = vperm.xlu1 %12747, %v10687_v3   ;;  %v10673_v33 = vsub.f32 %v10585_v12, %v10665_v59  ;;  %v10650_v0 = vmul.f32 0.6931472, %v13624_v23  ;;  %vm10575_vm9 = vcmp.lt.f32.partialorder %v10574_v4, 0.0004427343  ;;  %vm10655_vm6 = vcmp.lt.f32.partialorder %v10654_v24, 0.0004427343 }
0x283a   :  { %v10686_v14 = vmul.f32 %v17178_v36, %v10678_v29  ;;  %v10576_v54 = vsel %vm10575_vm9, %v10573_v63, %v10570_v9 }
0x283b   :  { %v10681_v19 = vmul.f32 0.5, %v10673_v33  ;;  %v10656_v42 = vsel %vm10655_vm6, %v10653_v37, %v10650_v0 }
0x283c   :  { %10712 = vperm.xlu0 %12748, %v10686_v14   ;;  %v10672_v28 = vsub.f32 %v10576_v54, %v10656_v42 }
0x283d   :  { %v10689_v50 = vmul.f32 %v17191_v51, %v10681_v19 }
0x283e   :  { %v10680_v35 = vmul.f32 0.5, %v10672_v28 }
0x283f   :  { %10727 = vperm.xlu1 %12747, %v10689_v50  }
0x2840   :  { %v10688_v46 = vmul.f32 %v17200_v10, %v10680_v35 }
0x2842   :  { %10722 = vperm.xlu0 %12748, %v10688_v46  }
0x28a5   :  { %v10698_v2 = vpop.permute.xlu1 %10697 }
0x28a6   :  { %v10731_v39 = vmul.f32 %v10698_v2, %v17121_v13 }
0x28a8   :  { %10739 = vst.msk [vmem:[%s17394_s15 + $0x8] sm:$0xff] %vm215_vm1, %v10731_v39 }
0x28aa   :  { %v10693_v36 = vpop.permute.xlu0 %10692 }
0x28ab   :  { %v10730_v6 = vmul.f32 %v10693_v36, %v17119_v44 }
0x28ad   :  { %10738 = vst.msk [vmem:[%s17394_s15] sm:$0xff] %vm215_vm1, %v10730_v6 }
0x28b2   :  { %v10708_v51 = vpop.permute.xlu1 %10707 }
0x28b3   :  { %v10733_v10 = vmul.f32 %v10708_v51, %v17139_v55 }
0x28b5   :  { %10741 = vst.msk [vmem:[%s17394_s15 + $0x18] sm:$0xff] %vm215_vm1, %v10733_v10  ;;  %v10703_v13 = vpop.permute.xlu0 %10702 }
0x28b6   :  { %v10732_v4 = vmul.f32 %v10703_v13, %v17129_v41 }
0x28b8   :  { %10740 = vst.msk [vmem:[%s17394_s15 + $0x10] sm:$0xff] %vm215_vm1, %v10732_v4  ;;  %v10718_v44 = vpop.permute.xlu1 %10717 }
0x28b9   :  { %v10735_v25 = vmul.f32 %v10718_v44, %v17147_v27 }
0x28bb   :  { %10743 = vst.msk [vmem:[%s17394_s15 + $0x28] sm:$0xff] %vm215_vm1, %v10735_v25  ;;  %v10713_v55 = vpop.permute.xlu0 %10712 }
0x28bc   :  { %v10734_v40 = vmul.f32 %v10713_v55, %v17136_v45 }
0x28be   :  { %10742 = vst.msk [vmem:[%s17394_s15 + $0x20] sm:$0xff] %vm215_vm1, %v10734_v40  ;;  %v10728_v41 = vpop.permute.xlu1 %10727 }
0x28bf   :  { %v10737_v7 = vmul.f32 %v10728_v41, %v17159_v26 }
0x28c1   :  { %10745 = vst.msk [vmem:[%s17394_s15 + $0x38] sm:$0xff] %vm215_vm1, %v10737_v7  ;;  %v10723_v27 = vpop.permute.xlu0 %10722 }
0x28c2   :  { %v10736_v16 = vmul.f32 %v10723_v27, %v17152_v17 }
0x28c4   :  { %10744 = vst.msk [vmem:[%s17394_s15 + $0x30] sm:$0xff] %vm215_vm1, %v10736_v16 }

</bundles_post_ra>
